<compile_context>
chip_gen: v7x
topology: tpu7x:2x2x1
jax: 0.10.0
libtpu: 0.0.40
codegen_flags: <defaults>
</compile_context>

<pallas_src>
import functools

import jax
import jax.numpy as jnp
from jax.experimental import pallas as pl
from jax.experimental.pallas import tpu as pltpu


_LANES = 128  # physical channel width of every conv-side tensor (lane tile)

_VMEM = pl.BlockSpec(memory_space=pltpu.MemorySpace.VMEM)
_ANY = pl.BlockSpec(memory_space=pl.ANY)


# ---------------------------------------------------------------------------
# The single fused kernel
# ---------------------------------------------------------------------------

def _noprop_kernel(x_ref, z_ref,
                   w1_ref, b1_ref, w2_ref, b2_ref, w3_ref, b3_ref,
                   wimg_hbm, bimg_ref, wz1_ref, bz1_ref,
                   wbig_hbm, bz2_ref, bz3_ref, bc1_ref, bc2_ref,
                   wl_ref, bl_ref, wemb_ref,
                   o_ref,
                   xp1_ref, xp2_ref, xp3_ref, col_ref,
                   s1_ref, s3_ref, himg_ref,
                   wimg_vmem, wbig_vmem, dma_sem,
                   *, n, hw):
    f32, bf16 = jnp.float32, jnp.bfloat16
    h2, h4 = hw // 2, hw // 4
    cin = x_ref.shape[-1]
    c1, c2, c3 = w1_ref.shape[1], w2_ref.shape[1], w3_ref.shape[1]

    # ---- overlap the big dense-weight loads with the conv pathway ----------
    cp_img = pltpu.make_async_copy(wimg_hbm, wimg_vmem, dma_sem.at[0])
    cp_big = pltpu.make_async_copy(wbig_hbm, wbig_vmem, dma_sem.at[1])
    cp_img.start()
    cp_big.start()

    # ---- pre-zero padded conv-input buffers (gives the 'SAME' padding and
    #      keeps the unused channel lanes at 0 so zero weight rows see 0) ----
    xp1_ref[...] = jnp.zeros_like(xp1_ref)
    xp2_ref[...] = jnp.zeros_like(xp2_ref)
    xp3_ref[...] = jnp.zeros_like(xp3_ref)

    # Stage the (tiny) NHWC input into the padded buffer.  Interior columns
    # start at sublane offset 8, so the store is tile-aligned.
    xp1_ref[:, 1:1 + hw, 8:8 + hw, 0:cin] = x_ref[...]

    def conv3x3_relu(xp_ref, h, w, w_ref, b_ref):
        """3x3 'SAME' conv + bias + ReLU as one K-fused im2col matmul.

        xp_ref: padded input, data window at rows [1:1+h], cols [8:8+w],
                channels physically padded to 128 (zeros beyond Cin).
        The im2col lhs is assembled in col_ref as 9 lane-aligned 128-wide
        column blocks (tap order (kh, kw)); the weight has matching layout
        (9*128, Cout) with zero rows for the padded channels."""
        rows = n * h * w
        for dh in range(3):
            for dw in range(3):
                tap = dh * 3 + dw
                part = xp_ref[:, dh:dh + h, 7 + dw:7 + dw + w, :]
                col_ref[0:rows, tap * _LANES:(tap + 1) * _LANES] = (
                    part.reshape(rows, _LANES).astype(bf16))
        y = jnp.dot(col_ref[0:rows, :], w_ref[...],
                    preferred_element_type=f32)
        return jnp.maximum(y + b_ref[...], 0.0)            # (rows, Cout)

    # ---- conv1 (Cin -> 32) + ReLU + 2x2 max-pool ----------------------------
    y1 = conv3x3_relu(xp1_ref, hw, hw, w1_ref, b1_ref)             # (n*hw*hw, 32)
    # H half of the pool via the leading-dim reshape, W half via strided reads.
    s1_ref[...] = jnp.max(y1.reshape(n, h2, 2, hw, c1), axis=2)    # (n,h2,hw,32)
    p1 = jnp.maximum(s1_ref[:, :, pl.ds(0, h2, stride=2), :],
                     s1_ref[:, :, pl.ds(1, h2, stride=2), :])      # (n,h2,h2,32)
    xp2_ref[:, 1:1 + h2, 8:8 + h2, 0:c1] = p1

    # ---- conv2 (32 -> 64) + ReLU  (Dropout2d == identity in eval mode) -----
    y2 = conv3x3_relu(xp2_ref, h2, h2, w2_ref, b2_ref)             # (n*h2*h2, 64)
    xp3_ref[:, 1:1 + h2, 8:8 + h2, 0:c2] = y2.reshape(n, h2, h2, c2)

    # ---- conv3 (64 -> 128) + ReLU + 2x2 max-pool ----------------------------
    y3 = conv3x3_relu(xp3_ref, h2, h2, w3_ref, b3_ref)             # (n*h2*h2, 128)
    s3_ref[...] = jnp.max(y3.reshape(n, h4, 2, h2, c3), axis=2)    # (n,h4,h2,128)

    # W half of the pool + NHWC (h, w, c) flatten, written straight into a
    # lane-dense (n, h4*h4*128) slab for the fc_img matmul.
    for hh in range(h4):
        for ww in range(h4):
            piece = jnp.maximum(s3_ref[:, hh, 2 * ww, :],
                                s3_ref[:, hh, 2 * ww + 1, :])       # (n, 128)
            k = hh * h4 + ww
            himg_ref[:, k * c3:(k + 1) * c3] = piece

    # ---- dense head (BatchNorm folded into the Linear weights) -------------
    cp_img.wait()
    cp_big.wait()

    def mm(x, w):
        return jnp.dot(x.astype(w.dtype), w, preferred_element_type=f32)

    # Image features: Flatten -> Linear -> BN (folded), no activation.
    img = mm(himg_ref[...], wimg_vmem[...]) + bimg_ref[...]

    # Latent pathway: Linear+BN+ReLU, Linear+BN+ReLU, Linear+BN, + residual.
    zt1 = jnp.maximum(mm(z_ref[...], wz1_ref[...]) + bz1_ref[...], 0.0)
    hz = jnp.maximum(mm(zt1, wbig_vmem[:, 0:256]) + bz2_ref[...], 0.0)
    zt = mm(hz, wbig_vmem[:, 256:512]) + bz3_ref[...] + zt1

    # Combined pathway: concat(img, zt) @ Wc1 == img @ Wc1[:256] + zt @ Wc1[256:]
    c = jnp.maximum(mm(img, wbig_vmem[:, 512:768]) +
                    mm(zt, wbig_vmem[:, 768:1024]) + bc1_ref[...], 0.0)
    c = jnp.maximum(mm(c, wbig_vmem[:, 1024:1152]) + bc2_ref[...], 0.0)

    # logits -> softmax -> probs @ W_embed.
    logits = mm(c, wl_ref[...]) + bl_ref[...]
    m = jnp.max(logits, axis=-1, keepdims=True)
    e = jnp.exp(logits - m)
    probs = e / jnp.sum(e, axis=-1, keepdims=True)
    o_ref[...] = jnp.dot(probs, wemb_ref[...].astype(f32),
                         preferred_element_type=f32).astype(o_ref.dtype)


# ---------------------------------------------------------------------------
# Wrapper
# ---------------------------------------------------------------------------

def noprop_block_forward(params, z_t_1, x_nchw, W_embed):
    p = params
    n, cin, hw, hw_w = x_nchw.shape
    assert hw == hw_w and hw % 16 == 0 and cin <= _LANES and hw >= 16
    h2, h4 = hw // 2, hw // 4
    flat = 128 * h4 * h4
    emb = W_embed.shape[1]

    x = jnp.transpose(x_nchw, (0, 2, 3, 1)).astype(jnp.float32)     # NCHW -> NHWC

    args = (x, z_t_1.astype(jnp.float32),
            p['conv1_w'], p['conv1_b'], p['conv2_w'], p['conv2_b'],
            p['conv3_w'], p['conv3_b'],
            p['fc_img_w'], p['fc_img_b'],
            p['fc_z1_w'], p['fc_z1_b'],
            p['dense_pack_w'],
            p['fc_z2_b'], p['fc_z3_b'], p['fc_c1_b'], p['fc_c2_b'],
            p['logit_w'], p['logit_b'], W_embed.astype(jnp.float32))
    hbm_idx = {8, 12}   # fc_img_w, dense_pack_w -> manual overlapped DMA
    in_specs = [_ANY if i in hbm_idx else _VMEM for i in range(len(args))]

    # Note (v7x): at batch=2 a grid would be pure per-step overhead; when
    # batching up, add a "parallel" grid axis over the batch to use both
    # TensorCores and revisit VMEM headroom (64 MiB on v7x).
    return pl.pallas_call(
        functools.partial(_noprop_kernel, n=n, hw=hw),
        in_specs=in_specs,
        out_specs=_VMEM,
        out_shape=jax.ShapeDtypeStruct((n, emb), jnp.float32),
        scratch_shapes=[
            pltpu.VMEM((n, hw + 2, hw + 9, _LANES), jnp.float32),   # xp1 (padded in)
            pltpu.VMEM((n, h2 + 2, h2 + 9, _LANES), jnp.float32),   # xp2
            pltpu.VMEM((n, h2 + 2, h2 + 9, _LANES), jnp.float32),   # xp3
            pltpu.VMEM((n * hw * hw, 9 * _LANES), jnp.bfloat16),    # im2col (shared)
            pltpu.VMEM((n, h2, hw, 32), jnp.float32),               # conv1 H-pooled
            pltpu.VMEM((n, h4, h2, 128), jnp.float32),              # conv3 H-pooled
            pltpu.VMEM((n, flat), jnp.float32),                     # flattened img feat
            pltpu.VMEM((flat, 256), jnp.bfloat16),                  # fc_img weight
            pltpu.VMEM((256, 1152), jnp.bfloat16),                  # packed dense weights
            pltpu.SemaphoreType.DMA((2,)),
        ],
        compiler_params=pltpu.CompilerParams(
            vmem_limit_bytes=32 * 1024 * 1024),
    )(*args)


# ---------------------------------------------------------------------------
# Parameters: synthetic PyTorch-style init + one-time preparation
# ---------------------------------------------------------------------------

def init_raw_params(key, num_classes, embedding_dim, img_channels, img_size):
    """Deterministic synthetic params in PyTorch-like shapes/orderings."""
    ks = iter(jax.random.split(key, 64))

    def lin(in_f, out_f):
        w = jax.random.normal(next(ks), (in_f, out_f), jnp.float32) / jnp.sqrt(
            jnp.float32(in_f))
        b = 0.01 * jax.random.normal(next(ks), (out_f,), jnp.float32)
        return w, b

    def conv(cin, cout):
        w = jax.random.normal(next(ks), (cout, cin, 3, 3), jnp.float32) / jnp.sqrt(
            jnp.float32(cin * 9))
        b = 0.01 * jax.random.normal(next(ks), (cout,), jnp.float32)
        return w, b

    def bn(f):
        gamma = 1.0 + 0.1 * jax.random.normal(next(ks), (f,), jnp.float32)
        beta = 0.1 * jax.random.normal(next(ks), (f,), jnp.float32)
        mean = 0.05 * jax.random.normal(next(ks), (f,), jnp.float32)
        var = 1.0 + 0.1 * jax.random.uniform(next(ks), (f,), jnp.float32)
        return (gamma, beta, mean, var)

    p = {}
    p['conv1_w'], p['conv1_b'] = conv(img_channels, 32)
    p['conv2_w'], p['conv2_b'] = conv(32, 64)
    p['conv3_w'], p['conv3_b'] = conv(64, 128)
    flat = 128 * (img_size // 4) * (img_size // 4)
    # fc_img rows follow the PyTorch NCHW flatten order (c, h, w).
    p['fc_img_w'], p['fc_img_b'] = lin(flat, 256)
    p['bn_img'] = bn(256)
    p['fc_z1_w'], p['fc_z1_b'] = lin(embedding_dim, 256)
    p['bn_z1'] = bn(256)
    p['fc_z2_w'], p['fc_z2_b'] = lin(256, 256)
    p['bn_z2'] = bn(256)
    p['fc_z3_w'], p['fc_z3_b'] = lin(256, 256)
    p['bn_z3'] = bn(256)
    p['fc_c1_w'], p['fc_c1_b'] = lin(512, 256)
    p['bn_c1'] = bn(256)
    p['fc_c2_w'], p['fc_c2_b'] = lin(256, 128)
    p['bn_c2'] = bn(128)
    p['logit_w'], p['logit_b'] = lin(128, num_classes)
    return p


def prepare_params(raw, img_size, eps=1e-5):
    """One-time prep: fold BN into Linear weights, permute fc_img rows to the
    NHWC flatten order, split/pack the dense weights for the kernel, pad conv
    weights to the lane-aligned (9*128, Cout) im2col layout, cast to bf16."""
    bf16, f32 = jnp.bfloat16, jnp.float32

    def fold(w, b, bn):
        gamma, beta, mean, var = bn
        s = gamma / jnp.sqrt(var + eps)
        return w * s[None, :], b * s + (beta - mean * s)

    def conv(w, b):
        # (Cout, Cin, 3, 3) -> (9*128, Cout); rows ordered (kh, kw, c) with the
        # channel dim zero-padded to 128 so every im2col block is lane-aligned.
        cout, cin = w.shape[0], w.shape[1]
        w9 = jnp.transpose(w, (2, 3, 1, 0))                        # (3,3,cin,cout)
        w9 = jnp.pad(w9, ((0, 0), (0, 0), (0, _LANES - cin), (0, 0)))
        return w9.reshape(9 * _LANES, cout).astype(bf16), b.reshape(1, -1).astype(f32)

    p = {}
    p['conv1_w'], p['conv1_b'] = conv(raw['conv1_w'], raw['conv1_b'])
    p['conv2_w'], p['conv2_b'] = conv(raw['conv2_w'], raw['conv2_b'])
    p['conv3_w'], p['conv3_b'] = conv(raw['conv3_w'], raw['conv3_b'])

    # fc_img: permute rows from PyTorch NCHW flatten (c, h, w) to (h, w, c).
    s4 = img_size // 4
    w = raw['fc_img_w'].reshape(128, s4, s4, 256)
    w = jnp.transpose(w, (1, 2, 0, 3)).reshape(128 * s4 * s4, 256)
    w, b = fold(w, raw['fc_img_b'], raw['bn_img'])
    p['fc_img_w'], p['fc_img_b'] = w.astype(bf16), b.reshape(1, -1).astype(f32)

    zw = {}
    for name in ('z1', 'z2', 'z3'):
        w, b = fold(raw[f'fc_{name}_w'], raw[f'fc_{name}_b'], raw[f'bn_{name}'])
        zw[name] = w.astype(bf16)
        p[f'fc_{name}_b'] = b.reshape(1, -1).astype(f32)
    p['fc_z1_w'] = zw['z1']

    # fc_combined[0]: fold BN and split rows so the concat disappears.
    w, b = fold(raw['fc_c1_w'], raw['fc_c1_b'], raw['bn_c1'])
    c1a, c1b = w[:256].astype(bf16), w[256:].astype(bf16)
    p['fc_c1_b'] = b.reshape(1, -1).astype(f32)

    w, b = fold(raw['fc_c2_w'], raw['fc_c2_b'], raw['bn_c2'])
    c2 = w.astype(bf16)
    p['fc_c2_b'] = b.reshape(1, -1).astype(f32)

    # Pack every (256, ·) dense weight into one matrix so a single async copy
    # can stream them into VMEM while the conv pathway runs.
    p['dense_pack_w'] = jnp.concatenate([zw['z2'], zw['z3'], c1a, c1b, c2], axis=1)

    p['logit_w'] = raw['logit_w'].astype(bf16)
    p['logit_b'] = raw['logit_b'].reshape(1, -1).astype(f32)
    return p


# ---------------------------------------------------------------------------
# Pure-JAX reference (same prepared params) for a numerical self-check
# ---------------------------------------------------------------------------

def reference_forward(params, z_t_1, x_nchw, W_embed):
    p = params
    f32, bf16 = jnp.float32, jnp.bfloat16
    x = jnp.transpose(x_nchw, (0, 2, 3, 1)).astype(f32)

    def conv(t, wflat, b):
        cout = wflat.shape[1]
        cin = t.shape[-1]
        k = wflat.reshape(3, 3, _LANES, cout)[:, :, :cin, :]        # HWIO
        y = jax.lax.conv_general_dilated(
            t.astype(bf16), k, (1, 1), 'SAME',
            dimension_numbers=('NHWC', 'HWIO', 'NHWC'),
            preferred_element_type=f32)
        return jnp.maximum(y + b.reshape(1, 1, 1, -1), 0.0)

    def pool(t):
        n, h, w, c = t.shape
        return jnp.max(t.reshape(n, h // 2, 2, w // 2, 2, c), axis=(2, 4))

    y = pool(conv(x, p['conv1_w'], p['conv1_b']))
    y = conv(y, p['conv2_w'], p['conv2_b'])
    y = pool(conv(y, p['conv3_w'], p['conv3_b']))
    h = y.reshape(y.shape[0], -1)

    def lin(t, w, b, relu=False):
        o = jnp.dot(t.astype(bf16), w, preferred_element_type=f32) + b
        return jnp.maximum(o, 0.0) if relu else o

    dp = p['dense_pack_w']
    w_z2, w_z3 = dp[:, 0:256], dp[:, 256:512]
    w_c1a, w_c1b, w_c2 = dp[:, 512:768], dp[:, 768:1024], dp[:, 1024:1152]

    img = lin(h, p['fc_img_w'], p['fc_img_b'])
    zt1 = lin(z_t_1.astype(f32), p['fc_z1_w'], p['fc_z1_b'], relu=True)
    hz = lin(zt1, w_z2, p['fc_z2_b'], relu=True)
    zt = lin(hz, w_z3, p['fc_z3_b']) + zt1
    c = lin(jnp.concatenate([img, zt], axis=1),
            jnp.concatenate([w_c1a, w_c1b], axis=0), p['fc_c1_b'], relu=True)
    c = lin(c, w_c2, p['fc_c2_b'], relu=True)
    logits = lin(c, p['logit_w'], p['logit_b'])
    probs = jax.nn.softmax(logits, axis=-1)
    return jnp.dot(probs, W_embed.astype(f32))


# ---------------------------------------------------------------------------
# Main
# ---------------------------------------------------------------------------

if __name__ == "__main__":
    num_classes = 10
    embedding_dim = 32
    img_channels = 3
    img_size = 16      # img_size // 4 == 4 -> flatten dim = 128 * 4 * 4 = 2048
    batch = 2

    key = jax.random.PRNGKey(0)
    k_par, k_x, k_z, k_w = jax.random.split(key, 4)
    raw = init_raw_params(k_par, num_classes, embedding_dim, img_channels, img_size)
    params = prepare_params(raw, img_size)   # eager, one-time prep

    x = jax.random.normal(k_x, (batch, img_channels, img_size, img_size), jnp.float32)
    z_t_1 = jax.random.normal(k_z, (batch, embedding_dim), jnp.float32)
    W_embed = jax.random.normal(k_w, (num_classes, embedding_dim), jnp.float32)

    fwd = jax.jit(noprop_block_forward)
    out = jax.block_until_ready(fwd(params, z_t_1, x, W_embed))

    ref = jax.block_until_ready(jax.jit(reference_forward)(params, z_t_1, x, W_embed))

    assert out.shape == (batch, embedding_dim)
    assert bool(jnp.all(jnp.isfinite(out)))
    assert bool(jnp.allclose(out, ref, atol=5e-2, rtol=5e-2))
    print("KERNEL_OK")
</pallas_src>

<mosaic_0001>
module attributes {stable_mosaic.version = 11 : i64} {
  func.func @_noprop_kernel(%arg0: memref<2x16x16x3xf32, #tpu.memory_space<vmem>>, %arg1: memref<2x32xf32, #tpu.memory_space<vmem>>, %arg2: memref<1152x32xbf16, #tpu.memory_space<vmem>>, %arg3: memref<1x32xf32, #tpu.memory_space<vmem>>, %arg4: memref<1152x64xbf16, #tpu.memory_space<vmem>>, %arg5: memref<1x64xf32, #tpu.memory_space<vmem>>, %arg6: memref<1152x128xbf16, #tpu.memory_space<vmem>>, %arg7: memref<1x128xf32, #tpu.memory_space<vmem>>, %arg8: memref<2048x256xbf16, #tpu.memory_space<any>>, %arg9: memref<1x256xf32, #tpu.memory_space<vmem>>, %arg10: memref<32x256xbf16, #tpu.memory_space<vmem>>, %arg11: memref<1x256xf32, #tpu.memory_space<vmem>>, %arg12: memref<256x1152xbf16, #tpu.memory_space<any>>, %arg13: memref<1x256xf32, #tpu.memory_space<vmem>>, %arg14: memref<1x256xf32, #tpu.memory_space<vmem>>, %arg15: memref<1x256xf32, #tpu.memory_space<vmem>>, %arg16: memref<1x128xf32, #tpu.memory_space<vmem>>, %arg17: memref<128x10xbf16, #tpu.memory_space<vmem>>, %arg18: memref<1x10xf32, #tpu.memory_space<vmem>>, %arg19: memref<10x32xf32, #tpu.memory_space<vmem>>, %arg20: memref<2x32xf32, #tpu.memory_space<vmem>>, %arg21: memref<2x18x25x128xf32, #tpu.memory_space<vmem>>, %arg22: memref<2x10x17x128xf32, #tpu.memory_space<vmem>>, %arg23: memref<2x10x17x128xf32, #tpu.memory_space<vmem>>, %arg24: memref<512x1152xbf16, #tpu.memory_space<vmem>>, %arg25: memref<2x8x16x32xf32, #tpu.memory_space<vmem>>, %arg26: memref<2x4x8x128xf32, #tpu.memory_space<vmem>>, %arg27: memref<2x2048xf32, #tpu.memory_space<vmem>>, %arg28: memref<2048x256xbf16, #tpu.memory_space<vmem>>, %arg29: memref<256x1152xbf16, #tpu.memory_space<vmem>>, %arg30: memref<2x!tpu.dma_semaphore, #tpu.memory_space<semaphore_mem>>) attributes {dimension_semantics = [], scalar_prefetch = 0 : i64, scratch_operands = 10 : i64, tpu.core_type = #tpu.core_type<tc>} {
    %c0_i32 = arith.constant 0 : i32
    %0 = tpu.memref_slice %arg30[%c0_i32] : memref<2x!tpu.dma_semaphore, #tpu.memory_space<semaphore_mem>> -> memref<1x!tpu.dma_semaphore, #tpu.memory_space<semaphore_mem>>
    %1 = tpu.memref_squeeze %0 : memref<1x!tpu.dma_semaphore, #tpu.memory_space<semaphore_mem>> -> memref<!tpu.dma_semaphore, #tpu.memory_space<semaphore_mem>>
    tpu.enqueue_dma source(%arg8 : memref<2048x256xbf16, #tpu.memory_space<any>>) target(%arg28 : memref<2048x256xbf16, #tpu.memory_space<vmem>>) target_semaphore(%1 : memref<!tpu.dma_semaphore, #tpu.memory_space<semaphore_mem>>)
    %c1_i32 = arith.constant 1 : i32
    %2 = tpu.memref_slice %arg30[%c1_i32] : memref<2x!tpu.dma_semaphore, #tpu.memory_space<semaphore_mem>> -> memref<1x!tpu.dma_semaphore, #tpu.memory_space<semaphore_mem>>
    %3 = tpu.memref_squeeze %2 : memref<1x!tpu.dma_semaphore, #tpu.memory_space<semaphore_mem>> -> memref<!tpu.dma_semaphore, #tpu.memory_space<semaphore_mem>>
    tpu.enqueue_dma source(%arg12 : memref<256x1152xbf16, #tpu.memory_space<any>>) target(%arg29 : memref<256x1152xbf16, #tpu.memory_space<vmem>>) target_semaphore(%3 : memref<!tpu.dma_semaphore, #tpu.memory_space<semaphore_mem>>)
    %cst = arith.constant 0.000000e+00 : f32
    %4 = vector.broadcast %cst : f32 to vector<2x18x25x128xf32>
    %c0 = arith.constant 0 : index
    %c0_0 = arith.constant 0 : index
    %c0_1 = arith.constant 0 : index
    %c0_2 = arith.constant 0 : index
    %5 = vector.load %arg21[%c0, %c0_0, %c0_1, %c0_2] : memref<2x18x25x128xf32, #tpu.memory_space<vmem>>, vector<2x18x25x128xf32>
    tpu.vector_store %arg21[%c0, %c0_0, %c0_1, %c0_2], %4 {strides = array<i32>} : memref<2x18x25x128xf32, #tpu.memory_space<vmem>>, vector<2x18x25x128xf32>,
    %cst_3 = arith.constant 0.000000e+00 : f32
    %6 = vector.broadcast %cst_3 : f32 to vector<2x10x17x128xf32>
    %c0_4 = arith.constant 0 : index
    %c0_5 = arith.constant 0 : index
    %c0_6 = arith.constant 0 : index
    %c0_7 = arith.constant 0 : index
    %7 = vector.load %arg22[%c0_4, %c0_5, %c0_6, %c0_7] : memref<2x10x17x128xf32, #tpu.memory_space<vmem>>, vector<2x10x17x128xf32>
    tpu.vector_store %arg22[%c0_4, %c0_5, %c0_6, %c0_7], %6 {strides = array<i32>} : memref<2x10x17x128xf32, #tpu.memory_space<vmem>>, vector<2x10x17x128xf32>,
    %cst_8 = arith.constant 0.000000e+00 : f32
    %8 = vector.broadcast %cst_8 : f32 to vector<2x10x17x128xf32>
    %c0_9 = arith.constant 0 : index
    %c0_10 = arith.constant 0 : index
    %c0_11 = arith.constant 0 : index
    %c0_12 = arith.constant 0 : index
    %9 = vector.load %arg23[%c0_9, %c0_10, %c0_11, %c0_12] : memref<2x10x17x128xf32, #tpu.memory_space<vmem>>, vector<2x10x17x128xf32>
    tpu.vector_store %arg23[%c0_9, %c0_10, %c0_11, %c0_12], %8 {strides = array<i32>} : memref<2x10x17x128xf32, #tpu.memory_space<vmem>>, vector<2x10x17x128xf32>,
    %c0_13 = arith.constant 0 : index
    %c0_14 = arith.constant 0 : index
    %c0_15 = arith.constant 0 : index
    %c0_16 = arith.constant 0 : index
    %10 = vector.load %arg0[%c0_13, %c0_14, %c0_15, %c0_16] : memref<2x16x16x3xf32, #tpu.memory_space<vmem>>, vector<2x16x16x3xf32>
    %c0_17 = arith.constant 0 : index
    %c1 = arith.constant 1 : index
    %c8 = arith.constant 8 : index
    %c0_18 = arith.constant 0 : index
    %11 = vector.load %arg21[%c0_17, %c1, %c8, %c0_18] : memref<2x18x25x128xf32, #tpu.memory_space<vmem>>, vector<2x16x16x3xf32>
    tpu.vector_store %arg21[%c0_17, %c1, %c8, %c0_18], %10 {strides = array<i32>} : memref<2x18x25x128xf32, #tpu.memory_space<vmem>>, vector<2x16x16x3xf32>,
    %c0_19 = arith.constant 0 : index
    %c0_20 = arith.constant 0 : index
    %c7 = arith.constant 7 : index
    %c0_21 = arith.constant 0 : index
    %12 = vector.load %arg21[%c0_19, %c0_20, %c7, %c0_21] : memref<2x18x25x128xf32, #tpu.memory_space<vmem>>, vector<2x16x16x128xf32>
    %13 = vector.shape_cast %12 : vector<2x16x16x128xf32> to vector<512x128xf32>
    %14 = arith.truncf %13 : vector<512x128xf32> to vector<512x128xbf16>
    %c0_22 = arith.constant 0 : index
    %c0_23 = arith.constant 0 : index
    %15 = vector.load %arg24[%c0_22, %c0_23] : memref<512x1152xbf16, #tpu.memory_space<vmem>>, vector<512x128xbf16>
    tpu.vector_store %arg24[%c0_22, %c0_23], %14 {strides = array<i32>} : memref<512x1152xbf16, #tpu.memory_space<vmem>>, vector<512x128xbf16>,
    %c0_24 = arith.constant 0 : index
    %c0_25 = arith.constant 0 : index
    %c8_26 = arith.constant 8 : index
    %c0_27 = arith.constant 0 : index
    %16 = vector.load %arg21[%c0_24, %c0_25, %c8_26, %c0_27] : memref<2x18x25x128xf32, #tpu.memory_space<vmem>>, vector<2x16x16x128xf32>
    %17 = vector.shape_cast %16 : vector<2x16x16x128xf32> to vector<512x128xf32>
    %18 = arith.truncf %17 : vector<512x128xf32> to vector<512x128xbf16>
    %c0_28 = arith.constant 0 : index
    %c128 = arith.constant 128 : index
    %19 = vector.load %arg24[%c0_28, %c128] : memref<512x1152xbf16, #tpu.memory_space<vmem>>, vector<512x128xbf16>
    tpu.vector_store %arg24[%c0_28, %c128], %18 {strides = array<i32>} : memref<512x1152xbf16, #tpu.memory_space<vmem>>, vector<512x128xbf16>,
    %c0_29 = arith.constant 0 : index
    %c0_30 = arith.constant 0 : index
    %c9 = arith.constant 9 : index
    %c0_31 = arith.constant 0 : index
    %20 = vector.load %arg21[%c0_29, %c0_30, %c9, %c0_31] : memref<2x18x25x128xf32, #tpu.memory_space<vmem>>, vector<2x16x16x128xf32>
    %21 = vector.shape_cast %20 : vector<2x16x16x128xf32> to vector<512x128xf32>
    %22 = arith.truncf %21 : vector<512x128xf32> to vector<512x128xbf16>
    %c0_32 = arith.constant 0 : index
    %c256 = arith.constant 256 : index
    %23 = vector.load %arg24[%c0_32, %c256] : memref<512x1152xbf16, #tpu.memory_space<vmem>>, vector<512x128xbf16>
    tpu.vector_store %arg24[%c0_32, %c256], %22 {strides = array<i32>} : memref<512x1152xbf16, #tpu.memory_space<vmem>>, vector<512x128xbf16>,
    %c0_33 = arith.constant 0 : index
    %c1_34 = arith.constant 1 : index
    %c7_35 = arith.constant 7 : index
    %c0_36 = arith.constant 0 : index
    %24 = vector.load %arg21[%c0_33, %c1_34, %c7_35, %c0_36] : memref<2x18x25x128xf32, #tpu.memory_space<vmem>>, vector<2x16x16x128xf32>
    %25 = vector.shape_cast %24 : vector<2x16x16x128xf32> to vector<512x128xf32>
    %26 = arith.truncf %25 : vector<512x128xf32> to vector<512x128xbf16>
    %c0_37 = arith.constant 0 : index
    %c384 = arith.constant 384 : index
    %27 = vector.load %arg24[%c0_37, %c384] : memref<512x1152xbf16, #tpu.memory_space<vmem>>, vector<512x128xbf16>
    tpu.vector_store %arg24[%c0_37, %c384], %26 {strides = array<i32>} : memref<512x1152xbf16, #tpu.memory_space<vmem>>, vector<512x128xbf16>,
    %c0_38 = arith.constant 0 : index
    %c1_39 = arith.constant 1 : index
    %c8_40 = arith.constant 8 : index
    %c0_41 = arith.constant 0 : index
    %28 = vector.load %arg21[%c0_38, %c1_39, %c8_40, %c0_41] : memref<2x18x25x128xf32, #tpu.memory_space<vmem>>, vector<2x16x16x128xf32>
    %29 = vector.shape_cast %28 : vector<2x16x16x128xf32> to vector<512x128xf32>
    %30 = arith.truncf %29 : vector<512x128xf32> to vector<512x128xbf16>
    %c0_42 = arith.constant 0 : index
    %c512 = arith.constant 512 : index
    %31 = vector.load %arg24[%c0_42, %c512] : memref<512x1152xbf16, #tpu.memory_space<vmem>>, vector<512x128xbf16>
    tpu.vector_store %arg24[%c0_42, %c512], %30 {strides = array<i32>} : memref<512x1152xbf16, #tpu.memory_space<vmem>>, vector<512x128xbf16>,
    %c0_43 = arith.constant 0 : index
    %c1_44 = arith.constant 1 : index
    %c9_45 = arith.constant 9 : index
    %c0_46 = arith.constant 0 : index
    %32 = vector.load %arg21[%c0_43, %c1_44, %c9_45, %c0_46] : memref<2x18x25x128xf32, #tpu.memory_space<vmem>>, vector<2x16x16x128xf32>
    %33 = vector.shape_cast %32 : vector<2x16x16x128xf32> to vector<512x128xf32>
    %34 = arith.truncf %33 : vector<512x128xf32> to vector<512x128xbf16>
    %c0_47 = arith.constant 0 : index
    %c640 = arith.constant 640 : index
    %35 = vector.load %arg24[%c0_47, %c640] : memref<512x1152xbf16, #tpu.memory_space<vmem>>, vector<512x128xbf16>
    tpu.vector_store %arg24[%c0_47, %c640], %34 {strides = array<i32>} : memref<512x1152xbf16, #tpu.memory_space<vmem>>, vector<512x128xbf16>,
    %c0_48 = arith.constant 0 : index
    %c2 = arith.constant 2 : index
    %c7_49 = arith.constant 7 : index
    %c0_50 = arith.constant 0 : index
    %36 = vector.load %arg21[%c0_48, %c2, %c7_49, %c0_50] : memref<2x18x25x128xf32, #tpu.memory_space<vmem>>, vector<2x16x16x128xf32>
    %37 = vector.shape_cast %36 : vector<2x16x16x128xf32> to vector<512x128xf32>
    %38 = arith.truncf %37 : vector<512x128xf32> to vector<512x128xbf16>
    %c0_51 = arith.constant 0 : index
    %c768 = arith.constant 768 : index
    %39 = vector.load %arg24[%c0_51, %c768] : memref<512x1152xbf16, #tpu.memory_space<vmem>>, vector<512x128xbf16>
    tpu.vector_store %arg24[%c0_51, %c768], %38 {strides = array<i32>} : memref<512x1152xbf16, #tpu.memory_space<vmem>>, vector<512x128xbf16>,
    %c0_52 = arith.constant 0 : index
    %c2_53 = arith.constant 2 : index
    %c8_54 = arith.constant 8 : index
    %c0_55 = arith.constant 0 : index
    %40 = vector.load %arg21[%c0_52, %c2_53, %c8_54, %c0_55] : memref<2x18x25x128xf32, #tpu.memory_space<vmem>>, vector<2x16x16x128xf32>
    %41 = vector.shape_cast %40 : vector<2x16x16x128xf32> to vector<512x128xf32>
    %42 = arith.truncf %41 : vector<512x128xf32> to vector<512x128xbf16>
    %c0_56 = arith.constant 0 : index
    %c896 = arith.constant 896 : index
    %43 = vector.load %arg24[%c0_56, %c896] : memref<512x1152xbf16, #tpu.memory_space<vmem>>, vector<512x128xbf16>
    tpu.vector_store %arg24[%c0_56, %c896], %42 {strides = array<i32>} : memref<512x1152xbf16, #tpu.memory_space<vmem>>, vector<512x128xbf16>,
    %c0_57 = arith.constant 0 : index
    %c2_58 = arith.constant 2 : index
    %c9_59 = arith.constant 9 : index
    %c0_60 = arith.constant 0 : index
    %44 = vector.load %arg21[%c0_57, %c2_58, %c9_59, %c0_60] : memref<2x18x25x128xf32, #tpu.memory_space<vmem>>, vector<2x16x16x128xf32>
    %45 = vector.shape_cast %44 : vector<2x16x16x128xf32> to vector<512x128xf32>
    %46 = arith.truncf %45 : vector<512x128xf32> to vector<512x128xbf16>
    %c0_61 = arith.constant 0 : index
    %c1024 = arith.constant 1024 : index
    %47 = vector.load %arg24[%c0_61, %c1024] : memref<512x1152xbf16, #tpu.memory_space<vmem>>, vector<512x128xbf16>
    tpu.vector_store %arg24[%c0_61, %c1024], %46 {strides = array<i32>} : memref<512x1152xbf16, #tpu.memory_space<vmem>>, vector<512x128xbf16>,
    %c0_62 = arith.constant 0 : index
    %c0_63 = arith.constant 0 : index
    %48 = vector.load %arg24[%c0_62, %c0_63] : memref<512x1152xbf16, #tpu.memory_space<vmem>>, vector<512x1152xbf16>
    %c0_64 = arith.constant 0 : index
    %c0_65 = arith.constant 0 : index
    %49 = vector.load %arg2[%c0_64, %c0_65] : memref<1152x32xbf16, #tpu.memory_space<vmem>>, vector<1152x32xbf16>
    %cst_66 = arith.constant dense<0.000000e+00> : vector<512x32xf32>
    %50 = tpu.matmul %48, %49, %cst_66 {dimension_numbers = #tpu.dot_dimension_numbers<[1], [0], [0], [1], [0, 0, 1, 1], [], []>} : vector<512x1152xbf16>, vector<1152x32xbf16>, vector<512x32xf32> -> vector<512x32xf32>
    %c0_67 = arith.constant 0 : index
    %c0_68 = arith.constant 0 : index
    %51 = vector.load %arg3[%c0_67, %c0_68] : memref<1x32xf32, #tpu.memory_space<vmem>>, vector<1x32xf32>
    %52 = vector.broadcast %51 : vector<1x32xf32> to vector<512x32xf32>
    %53 = arith.addf %50, %52 : vector<512x32xf32>
    %cst_69 = arith.constant 0.000000e+00 : f32
    %54 = vector.broadcast %cst_69 : f32 to vector<512x32xf32>
    %55 = arith.maximumf %53, %54 : vector<512x32xf32>
    %56 = vector.shape_cast %55 : vector<512x32xf32> to vector<2x8x2x16x32xf32>
    %cst_70 = arith.constant dense<0xFF800000> : vector<2x8x16x32xf32>
    %57 = vector.multi_reduction <maximumf>, %56, %cst_70 [2] : vector<2x8x2x16x32xf32> to vector<2x8x16x32xf32>
    %c0_71 = arith.constant 0 : index
    %c0_72 = arith.constant 0 : index
    %c0_73 = arith.constant 0 : index
    %c0_74 = arith.constant 0 : index
    %58 = vector.load %arg25[%c0_71, %c0_72, %c0_73, %c0_74] : memref<2x8x16x32xf32, #tpu.memory_space<vmem>>, vector<2x8x16x32xf32>
    tpu.vector_store %arg25[%c0_71, %c0_72, %c0_73, %c0_74], %57 {strides = array<i32>} : memref<2x8x16x32xf32, #tpu.memory_space<vmem>>, vector<2x8x16x32xf32>,
    %c0_75 = arith.constant 0 : index
    %c0_76 = arith.constant 0 : index
    %c0_77 = arith.constant 0 : index
    %c0_78 = arith.constant 0 : index
    %59 = tpu.strided_load %arg25[%c0_75, %c0_76, %c0_77, %c0_78] {strides = array<i32: 1, 1, 2, 1>} : memref<2x8x16x32xf32, #tpu.memory_space<vmem>>, vector<2x8x8x32xf32>
    %c0_79 = arith.constant 0 : index
    %c0_80 = arith.constant 0 : index
    %c1_81 = arith.constant 1 : index
    %c0_82 = arith.constant 0 : index
    %60 = tpu.strided_load %arg25[%c0_79, %c0_80, %c1_81, %c0_82] {strides = array<i32: 1, 1, 2, 1>} : memref<2x8x16x32xf32, #tpu.memory_space<vmem>>, vector<2x8x8x32xf32>
    %61 = arith.maximumf %59, %60 : vector<2x8x8x32xf32>
    %c0_83 = arith.constant 0 : index
    %c1_84 = arith.constant 1 : index
    %c8_85 = arith.constant 8 : index
    %c0_86 = arith.constant 0 : index
    %62 = vector.load %arg22[%c0_83, %c1_84, %c8_85, %c0_86] : memref<2x10x17x128xf32, #tpu.memory_space<vmem>>, vector<2x8x8x32xf32>
    tpu.vector_store %arg22[%c0_83, %c1_84, %c8_85, %c0_86], %61 {strides = array<i32>} : memref<2x10x17x128xf32, #tpu.memory_space<vmem>>, vector<2x8x8x32xf32>,
    %c0_87 = arith.constant 0 : index
    %c0_88 = arith.constant 0 : index
    %c7_89 = arith.constant 7 : index
    %c0_90 = arith.constant 0 : index
    %63 = vector.load %arg22[%c0_87, %c0_88, %c7_89, %c0_90] : memref<2x10x17x128xf32, #tpu.memory_space<vmem>>, vector<2x8x8x128xf32>
    %64 = vector.shape_cast %63 : vector<2x8x8x128xf32> to vector<128x128xf32>
    %65 = arith.truncf %64 : vector<128x128xf32> to vector<128x128xbf16>
    %c0_91 = arith.constant 0 : index
    %c0_92 = arith.constant 0 : index
    %66 = vector.load %arg24[%c0_91, %c0_92] : memref<512x1152xbf16, #tpu.memory_space<vmem>>, vector<128x128xbf16>
    tpu.vector_store %arg24[%c0_91, %c0_92], %65 {strides = array<i32>} : memref<512x1152xbf16, #tpu.memory_space<vmem>>, vector<128x128xbf16>,
    %c0_93 = arith.constant 0 : index
    %c0_94 = arith.constant 0 : index
    %c8_95 = arith.constant 8 : index
    %c0_96 = arith.constant 0 : index
    %67 = vector.load %arg22[%c0_93, %c0_94, %c8_95, %c0_96] : memref<2x10x17x128xf32, #tpu.memory_space<vmem>>, vector<2x8x8x128xf32>
    %68 = vector.shape_cast %67 : vector<2x8x8x128xf32> to vector<128x128xf32>
    %69 = arith.truncf %68 : vector<128x128xf32> to vector<128x128xbf16>
    %c0_97 = arith.constant 0 : index
    %c128_98 = arith.constant 128 : index
    %70 = vector.load %arg24[%c0_97, %c128_98] : memref<512x1152xbf16, #tpu.memory_space<vmem>>, vector<128x128xbf16>
    tpu.vector_store %arg24[%c0_97, %c128_98], %69 {strides = array<i32>} : memref<512x1152xbf16, #tpu.memory_space<vmem>>, vector<128x128xbf16>,
    %c0_99 = arith.constant 0 : index
    %c0_100 = arith.constant 0 : index
    %c9_101 = arith.constant 9 : index
    %c0_102 = arith.constant 0 : index
    %71 = vector.load %arg22[%c0_99, %c0_100, %c9_101, %c0_102] : memref<2x10x17x128xf32, #tpu.memory_space<vmem>>, vector<2x8x8x128xf32>
    %72 = vector.shape_cast %71 : vector<2x8x8x128xf32> to vector<128x128xf32>
    %73 = arith.truncf %72 : vector<128x128xf32> to vector<128x128xbf16>
    %c0_103 = arith.constant 0 : index
    %c256_104 = arith.constant 256 : index
    %74 = vector.load %arg24[%c0_103, %c256_104] : memref<512x1152xbf16, #tpu.memory_space<vmem>>, vector<128x128xbf16>
    tpu.vector_store %arg24[%c0_103, %c256_104], %73 {strides = array<i32>} : memref<512x1152xbf16, #tpu.memory_space<vmem>>, vector<128x128xbf16>,
    %c0_105 = arith.constant 0 : index
    %c1_106 = arith.constant 1 : index
    %c7_107 = arith.constant 7 : index
    %c0_108 = arith.constant 0 : index
    %75 = vector.load %arg22[%c0_105, %c1_106, %c7_107, %c0_108] : memref<2x10x17x128xf32, #tpu.memory_space<vmem>>, vector<2x8x8x128xf32>
    %76 = vector.shape_cast %75 : vector<2x8x8x128xf32> to vector<128x128xf32>
    %77 = arith.truncf %76 : vector<128x128xf32> to vector<128x128xbf16>
    %c0_109 = arith.constant 0 : index
    %c384_110 = arith.constant 384 : index
    %78 = vector.load %arg24[%c0_109, %c384_110] : memref<512x1152xbf16, #tpu.memory_space<vmem>>, vector<128x128xbf16>
    tpu.vector_store %arg24[%c0_109, %c384_110], %77 {strides = array<i32>} : memref<512x1152xbf16, #tpu.memory_space<vmem>>, vector<128x128xbf16>,
    %c0_111 = arith.constant 0 : index
    %c1_112 = arith.constant 1 : index
    %c8_113 = arith.constant 8 : index
    %c0_114 = arith.constant 0 : index
    %79 = vector.load %arg22[%c0_111, %c1_112, %c8_113, %c0_114] : memref<2x10x17x128xf32, #tpu.memory_space<vmem>>, vector<2x8x8x128xf32>
    %80 = vector.shape_cast %79 : vector<2x8x8x128xf32> to vector<128x128xf32>
    %81 = arith.truncf %80 : vector<128x128xf32> to vector<128x128xbf16>
    %c0_115 = arith.constant 0 : index
    %c512_116 = arith.constant 512 : index
    %82 = vector.load %arg24[%c0_115, %c512_116] : memref<512x1152xbf16, #tpu.memory_space<vmem>>, vector<128x128xbf16>
    tpu.vector_store %arg24[%c0_115, %c512_116], %81 {strides = array<i32>} : memref<512x1152xbf16, #tpu.memory_space<vmem>>, vector<128x128xbf16>,
    %c0_117 = arith.constant 0 : index
    %c1_118 = arith.constant 1 : index
    %c9_119 = arith.constant 9 : index
    %c0_120 = arith.constant 0 : index
    %83 = vector.load %arg22[%c0_117, %c1_118, %c9_119, %c0_120] : memref<2x10x17x128xf32, #tpu.memory_space<vmem>>, vector<2x8x8x128xf32>
    %84 = vector.shape_cast %83 : vector<2x8x8x128xf32> to vector<128x128xf32>
    %85 = arith.truncf %84 : vector<128x128xf32> to vector<128x128xbf16>
    %c0_121 = arith.constant 0 : index
    %c640_122 = arith.constant 640 : index
    %86 = vector.load %arg24[%c0_121, %c640_122] : memref<512x1152xbf16, #tpu.memory_space<vmem>>, vector<128x128xbf16>
    tpu.vector_store %arg24[%c0_121, %c640_122], %85 {strides = array<i32>} : memref<512x1152xbf16, #tpu.memory_space<vmem>>, vector<128x128xbf16>,
    %c0_123 = arith.constant 0 : index
    %c2_124 = arith.constant 2 : index
    %c7_125 = arith.constant 7 : index
    %c0_126 = arith.constant 0 : index
    %87 = vector.load %arg22[%c0_123, %c2_124, %c7_125, %c0_126] : memref<2x10x17x128xf32, #tpu.memory_space<vmem>>, vector<2x8x8x128xf32>
    %88 = vector.shape_cast %87 : vector<2x8x8x128xf32> to vector<128x128xf32>
    %89 = arith.truncf %88 : vector<128x128xf32> to vector<128x128xbf16>
    %c0_127 = arith.constant 0 : index
    %c768_128 = arith.constant 768 : index
    %90 = vector.load %arg24[%c0_127, %c768_128] : memref<512x1152xbf16, #tpu.memory_space<vmem>>, vector<128x128xbf16>
    tpu.vector_store %arg24[%c0_127, %c768_128], %89 {strides = array<i32>} : memref<512x1152xbf16, #tpu.memory_space<vmem>>, vector<128x128xbf16>,
    %c0_129 = arith.constant 0 : index
    %c2_130 = arith.constant 2 : index
    %c8_131 = arith.constant 8 : index
    %c0_132 = arith.constant 0 : index
    %91 = vector.load %arg22[%c0_129, %c2_130, %c8_131, %c0_132] : memref<2x10x17x128xf32, #tpu.memory_space<vmem>>, vector<2x8x8x128xf32>
    %92 = vector.shape_cast %91 : vector<2x8x8x128xf32> to vector<128x128xf32>
    %93 = arith.truncf %92 : vector<128x128xf32> to vector<128x128xbf16>
    %c0_133 = arith.constant 0 : index
    %c896_134 = arith.constant 896 : index
    %94 = vector.load %arg24[%c0_133, %c896_134] : memref<512x1152xbf16, #tpu.memory_space<vmem>>, vector<128x128xbf16>
    tpu.vector_store %arg24[%c0_133, %c896_134], %93 {strides = array<i32>} : memref<512x1152xbf16, #tpu.memory_space<vmem>>, vector<128x128xbf16>,
    %c0_135 = arith.constant 0 : index
    %c2_136 = arith.constant 2 : index
    %c9_137 = arith.constant 9 : index
    %c0_138 = arith.constant 0 : index
    %95 = vector.load %arg22[%c0_135, %c2_136, %c9_137, %c0_138] : memref<2x10x17x128xf32, #tpu.memory_space<vmem>>, vector<2x8x8x128xf32>
    %96 = vector.shape_cast %95 : vector<2x8x8x128xf32> to vector<128x128xf32>
    %97 = arith.truncf %96 : vector<128x128xf32> to vector<128x128xbf16>
    %c0_139 = arith.constant 0 : index
    %c1024_140 = arith.constant 1024 : index
    %98 = vector.load %arg24[%c0_139, %c1024_140] : memref<512x1152xbf16, #tpu.memory_space<vmem>>, vector<128x128xbf16>
    tpu.vector_store %arg24[%c0_139, %c1024_140], %97 {strides = array<i32>} : memref<512x1152xbf16, #tpu.memory_space<vmem>>, vector<128x128xbf16>,
    %c0_141 = arith.constant 0 : index
    %c0_142 = arith.constant 0 : index
    %99 = vector.load %arg24[%c0_141, %c0_142] : memref<512x1152xbf16, #tpu.memory_space<vmem>>, vector<128x1152xbf16>
    %c0_143 = arith.constant 0 : index
    %c0_144 = arith.constant 0 : index
    %100 = vector.load %arg4[%c0_143, %c0_144] : memref<1152x64xbf16, #tpu.memory_space<vmem>>, vector<1152x64xbf16>
    %cst_145 = arith.constant dense<0.000000e+00> : vector<128x64xf32>
    %101 = tpu.matmul %99, %100, %cst_145 {dimension_numbers = #tpu.dot_dimension_numbers<[1], [0], [0], [1], [0, 0, 1, 1], [], []>} : vector<128x1152xbf16>, vector<1152x64xbf16>, vector<128x64xf32> -> vector<128x64xf32>
    %c0_146 = arith.constant 0 : index
    %c0_147 = arith.constant 0 : index
    %102 = vector.load %arg5[%c0_146, %c0_147] : memref<1x64xf32, #tpu.memory_space<vmem>>, vector<1x64xf32>
    %103 = vector.broadcast %102 : vector<1x64xf32> to vector<128x64xf32>
    %104 = arith.addf %101, %103 : vector<128x64xf32>
    %cst_148 = arith.constant 0.000000e+00 : f32
    %105 = vector.broadcast %cst_148 : f32 to vector<128x64xf32>
    %106 = arith.maximumf %104, %105 : vector<128x64xf32>
    %107 = vector.shape_cast %106 : vector<128x64xf32> to vector<2x8x8x64xf32>
    %c0_149 = arith.constant 0 : index
    %c1_150 = arith.constant 1 : index
    %c8_151 = arith.constant 8 : index
    %c0_152 = arith.constant 0 : index
    %108 = vector.load %arg23[%c0_149, %c1_150, %c8_151, %c0_152] : memref<2x10x17x128xf32, #tpu.memory_space<vmem>>, vector<2x8x8x64xf32>
    tpu.vector_store %arg23[%c0_149, %c1_150, %c8_151, %c0_152], %107 {strides = array<i32>} : memref<2x10x17x128xf32, #tpu.memory_space<vmem>>, vector<2x8x8x64xf32>,
    %c0_153 = arith.constant 0 : index
    %c0_154 = arith.constant 0 : index
    %c7_155 = arith.constant 7 : index
    %c0_156 = arith.constant 0 : index
    %109 = vector.load %arg23[%c0_153, %c0_154, %c7_155, %c0_156] : memref<2x10x17x128xf32, #tpu.memory_space<vmem>>, vector<2x8x8x128xf32>
    %110 = vector.shape_cast %109 : vector<2x8x8x128xf32> to vector<128x128xf32>
    %111 = arith.truncf %110 : vector<128x128xf32> to vector<128x128xbf16>
    %c0_157 = arith.constant 0 : index
    %c0_158 = arith.constant 0 : index
    %112 = vector.load %arg24[%c0_157, %c0_158] : memref<512x1152xbf16, #tpu.memory_space<vmem>>, vector<128x128xbf16>
    tpu.vector_store %arg24[%c0_157, %c0_158], %111 {strides = array<i32>} : memref<512x1152xbf16, #tpu.memory_space<vmem>>, vector<128x128xbf16>,
    %c0_159 = arith.constant 0 : index
    %c0_160 = arith.constant 0 : index
    %c8_161 = arith.constant 8 : index
    %c0_162 = arith.constant 0 : index
    %113 = vector.load %arg23[%c0_159, %c0_160, %c8_161, %c0_162] : memref<2x10x17x128xf32, #tpu.memory_space<vmem>>, vector<2x8x8x128xf32>
    %114 = vector.shape_cast %113 : vector<2x8x8x128xf32> to vector<128x128xf32>
    %115 = arith.truncf %114 : vector<128x128xf32> to vector<128x128xbf16>
    %c0_163 = arith.constant 0 : index
    %c128_164 = arith.constant 128 : index
    %116 = vector.load %arg24[%c0_163, %c128_164] : memref<512x1152xbf16, #tpu.memory_space<vmem>>, vector<128x128xbf16>
    tpu.vector_store %arg24[%c0_163, %c128_164], %115 {strides = array<i32>} : memref<512x1152xbf16, #tpu.memory_space<vmem>>, vector<128x128xbf16>,
    %c0_165 = arith.constant 0 : index
    %c0_166 = arith.constant 0 : index
    %c9_167 = arith.constant 9 : index
    %c0_168 = arith.constant 0 : index
    %117 = vector.load %arg23[%c0_165, %c0_166, %c9_167, %c0_168] : memref<2x10x17x128xf32, #tpu.memory_space<vmem>>, vector<2x8x8x128xf32>
    %118 = vector.shape_cast %117 : vector<2x8x8x128xf32> to vector<128x128xf32>
    %119 = arith.truncf %118 : vector<128x128xf32> to vector<128x128xbf16>
    %c0_169 = arith.constant 0 : index
    %c256_170 = arith.constant 256 : index
    %120 = vector.load %arg24[%c0_169, %c256_170] : memref<512x1152xbf16, #tpu.memory_space<vmem>>, vector<128x128xbf16>
    tpu.vector_store %arg24[%c0_169, %c256_170], %119 {strides = array<i32>} : memref<512x1152xbf16, #tpu.memory_space<vmem>>, vector<128x128xbf16>,
    %c0_171 = arith.constant 0 : index
    %c1_172 = arith.constant 1 : index
    %c7_173 = arith.constant 7 : index
    %c0_174 = arith.constant 0 : index
    %121 = vector.load %arg23[%c0_171, %c1_172, %c7_173, %c0_174] : memref<2x10x17x128xf32, #tpu.memory_space<vmem>>, vector<2x8x8x128xf32>
    %122 = vector.shape_cast %121 : vector<2x8x8x128xf32> to vector<128x128xf32>
    %123 = arith.truncf %122 : vector<128x128xf32> to vector<128x128xbf16>
    %c0_175 = arith.constant 0 : index
    %c384_176 = arith.constant 384 : index
    %124 = vector.load %arg24[%c0_175, %c384_176] : memref<512x1152xbf16, #tpu.memory_space<vmem>>, vector<128x128xbf16>
    tpu.vector_store %arg24[%c0_175, %c384_176], %123 {strides = array<i32>} : memref<512x1152xbf16, #tpu.memory_space<vmem>>, vector<128x128xbf16>,
    %c0_177 = arith.constant 0 : index
    %c1_178 = arith.constant 1 : index
    %c8_179 = arith.constant 8 : index
    %c0_180 = arith.constant 0 : index
    %125 = vector.load %arg23[%c0_177, %c1_178, %c8_179, %c0_180] : memref<2x10x17x128xf32, #tpu.memory_space<vmem>>, vector<2x8x8x128xf32>
    %126 = vector.shape_cast %125 : vector<2x8x8x128xf32> to vector<128x128xf32>
    %127 = arith.truncf %126 : vector<128x128xf32> to vector<128x128xbf16>
    %c0_181 = arith.constant 0 : index
    %c512_182 = arith.constant 512 : index
    %128 = vector.load %arg24[%c0_181, %c512_182] : memref<512x1152xbf16, #tpu.memory_space<vmem>>, vector<128x128xbf16>
    tpu.vector_store %arg24[%c0_181, %c512_182], %127 {strides = array<i32>} : memref<512x1152xbf16, #tpu.memory_space<vmem>>, vector<128x128xbf16>,
    %c0_183 = arith.constant 0 : index
    %c1_184 = arith.constant 1 : index
    %c9_185 = arith.constant 9 : index
    %c0_186 = arith.constant 0 : index
    %129 = vector.load %arg23[%c0_183, %c1_184, %c9_185, %c0_186] : memref<2x10x17x128xf32, #tpu.memory_space<vmem>>, vector<2x8x8x128xf32>
    %130 = vector.shape_cast %129 : vector<2x8x8x128xf32> to vector<128x128xf32>
    %131 = arith.truncf %130 : vector<128x128xf32> to vector<128x128xbf16>
    %c0_187 = arith.constant 0 : index
    %c640_188 = arith.constant 640 : index
    %132 = vector.load %arg24[%c0_187, %c640_188] : memref<512x1152xbf16, #tpu.memory_space<vmem>>, vector<128x128xbf16>
    tpu.vector_store %arg24[%c0_187, %c640_188], %131 {strides = array<i32>} : memref<512x1152xbf16, #tpu.memory_space<vmem>>, vector<128x128xbf16>,
    %c0_189 = arith.constant 0 : index
    %c2_190 = arith.constant 2 : index
    %c7_191 = arith.constant 7 : index
    %c0_192 = arith.constant 0 : index
    %133 = vector.load %arg23[%c0_189, %c2_190, %c7_191, %c0_192] : memref<2x10x17x128xf32, #tpu.memory_space<vmem>>, vector<2x8x8x128xf32>
    %134 = vector.shape_cast %133 : vector<2x8x8x128xf32> to vector<128x128xf32>
    %135 = arith.truncf %134 : vector<128x128xf32> to vector<128x128xbf16>
    %c0_193 = arith.constant 0 : index
    %c768_194 = arith.constant 768 : index
    %136 = vector.load %arg24[%c0_193, %c768_194] : memref<512x1152xbf16, #tpu.memory_space<vmem>>, vector<128x128xbf16>
    tpu.vector_store %arg24[%c0_193, %c768_194], %135 {strides = array<i32>} : memref<512x1152xbf16, #tpu.memory_space<vmem>>, vector<128x128xbf16>,
    %c0_195 = arith.constant 0 : index
    %c2_196 = arith.constant 2 : index
    %c8_197 = arith.constant 8 : index
    %c0_198 = arith.constant 0 : index
    %137 = vector.load %arg23[%c0_195, %c2_196, %c8_197, %c0_198] : memref<2x10x17x128xf32, #tpu.memory_space<vmem>>, vector<2x8x8x128xf32>
    %138 = vector.shape_cast %137 : vector<2x8x8x128xf32> to vector<128x128xf32>
    %139 = arith.truncf %138 : vector<128x128xf32> to vector<128x128xbf16>
    %c0_199 = arith.constant 0 : index
    %c896_200 = arith.constant 896 : index
    %140 = vector.load %arg24[%c0_199, %c896_200] : memref<512x1152xbf16, #tpu.memory_space<vmem>>, vector<128x128xbf16>
    tpu.vector_store %arg24[%c0_199, %c896_200], %139 {strides = array<i32>} : memref<512x1152xbf16, #tpu.memory_space<vmem>>, vector<128x128xbf16>,
    %c0_201 = arith.constant 0 : index
    %c2_202 = arith.constant 2 : index
    %c9_203 = arith.constant 9 : index
    %c0_204 = arith.constant 0 : index
    %141 = vector.load %arg23[%c0_201, %c2_202, %c9_203, %c0_204] : memref<2x10x17x128xf32, #tpu.memory_space<vmem>>, vector<2x8x8x128xf32>
    %142 = vector.shape_cast %141 : vector<2x8x8x128xf32> to vector<128x128xf32>
    %143 = arith.truncf %142 : vector<128x128xf32> to vector<128x128xbf16>
    %c0_205 = arith.constant 0 : index
    %c1024_206 = arith.constant 1024 : index
    %144 = vector.load %arg24[%c0_205, %c1024_206] : memref<512x1152xbf16, #tpu.memory_space<vmem>>, vector<128x128xbf16>
    tpu.vector_store %arg24[%c0_205, %c1024_206], %143 {strides = array<i32>} : memref<512x1152xbf16, #tpu.memory_space<vmem>>, vector<128x128xbf16>,
    %c0_207 = arith.constant 0 : index
    %c0_208 = arith.constant 0 : index
    %145 = vector.load %arg24[%c0_207, %c0_208] : memref<512x1152xbf16, #tpu.memory_space<vmem>>, vector<128x1152xbf16>
    %c0_209 = arith.constant 0 : index
    %c0_210 = arith.constant 0 : index
    %146 = vector.load %arg6[%c0_209, %c0_210] : memref<1152x128xbf16, #tpu.memory_space<vmem>>, vector<1152x128xbf16>
    %cst_211 = arith.constant dense<0.000000e+00> : vector<128x128xf32>
    %147 = tpu.matmul %145, %146, %cst_211 {dimension_numbers = #tpu.dot_dimension_numbers<[1], [0], [0], [1], [0, 0, 1, 1], [], []>} : vector<128x1152xbf16>, vector<1152x128xbf16>, vector<128x128xf32> -> vector<128x128xf32>
    %c0_212 = arith.constant 0 : index
    %c0_213 = arith.constant 0 : index
    %148 = vector.load %arg7[%c0_212, %c0_213] : memref<1x128xf32, #tpu.memory_space<vmem>>, vector<1x128xf32>
    %149 = vector.broadcast %148 : vector<1x128xf32> to vector<128x128xf32>
    %150 = arith.addf %147, %149 : vector<128x128xf32>
    %cst_214 = arith.constant 0.000000e+00 : f32
    %151 = vector.broadcast %cst_214 : f32 to vector<128x128xf32>
    %152 = arith.maximumf %150, %151 : vector<128x128xf32>
    %153 = vector.shape_cast %152 : vector<128x128xf32> to vector<2x4x2x8x128xf32>
    %cst_215 = arith.constant dense<0xFF800000> : vector<2x4x8x128xf32>
    %154 = vector.multi_reduction <maximumf>, %153, %cst_215 [2] : vector<2x4x2x8x128xf32> to vector<2x4x8x128xf32>
    %c0_216 = arith.constant 0 : index
    %c0_217 = arith.constant 0 : index
    %c0_218 = arith.constant 0 : index
    %c0_219 = arith.constant 0 : index
    %155 = vector.load %arg26[%c0_216, %c0_217, %c0_218, %c0_219] : memref<2x4x8x128xf32, #tpu.memory_space<vmem>>, vector<2x4x8x128xf32>
    tpu.vector_store %arg26[%c0_216, %c0_217, %c0_218, %c0_219], %154 {strides = array<i32>} : memref<2x4x8x128xf32, #tpu.memory_space<vmem>>, vector<2x4x8x128xf32>,
    %c0_220 = arith.constant 0 : index
    %c0_221 = arith.constant 0 : index
    %c0_222 = arith.constant 0 : index
    %c0_223 = arith.constant 0 : index
    %156 = vector.load %arg26[%c0_220, %c0_221, %c0_222, %c0_223] : memref<2x4x8x128xf32, #tpu.memory_space<vmem>>, vector<2x1x1x128xf32>
    %157 = vector.shape_cast %156 : vector<2x1x1x128xf32> to vector<2x128xf32>
    %c0_224 = arith.constant 0 : index
    %c0_225 = arith.constant 0 : index
    %c1_226 = arith.constant 1 : index
    %c0_227 = arith.constant 0 : index
    %158 = vector.load %arg26[%c0_224, %c0_225, %c1_226, %c0_227] : memref<2x4x8x128xf32, #tpu.memory_space<vmem>>, vector<2x1x1x128xf32>
    %159 = vector.shape_cast %158 : vector<2x1x1x128xf32> to vector<2x128xf32>
    %160 = arith.maximumf %157, %159 : vector<2x128xf32>
    %c0_228 = arith.constant 0 : index
    %c0_229 = arith.constant 0 : index
    %161 = vector.load %arg27[%c0_228, %c0_229] : memref<2x2048xf32, #tpu.memory_space<vmem>>, vector<2x128xf32>
    tpu.vector_store %arg27[%c0_228, %c0_229], %160 {strides = array<i32>} : memref<2x2048xf32, #tpu.memory_space<vmem>>, vector<2x128xf32>,
    %c0_230 = arith.constant 0 : index
    %c0_231 = arith.constant 0 : index
    %c2_232 = arith.constant 2 : index
    %c0_233 = arith.constant 0 : index
    %162 = vector.load %arg26[%c0_230, %c0_231, %c2_232, %c0_233] : memref<2x4x8x128xf32, #tpu.memory_space<vmem>>, vector<2x1x1x128xf32>
    %163 = vector.shape_cast %162 : vector<2x1x1x128xf32> to vector<2x128xf32>
    %c0_234 = arith.constant 0 : index
    %c0_235 = arith.constant 0 : index
    %c3 = arith.constant 3 : index
    %c0_236 = arith.constant 0 : index
    %164 = vector.load %arg26[%c0_234, %c0_235, %c3, %c0_236] : memref<2x4x8x128xf32, #tpu.memory_space<vmem>>, vector<2x1x1x128xf32>
    %165 = vector.shape_cast %164 : vector<2x1x1x128xf32> to vector<2x128xf32>
    %166 = arith.maximumf %163, %165 : vector<2x128xf32>
    %c0_237 = arith.constant 0 : index
    %c128_238 = arith.constant 128 : index
    %167 = vector.load %arg27[%c0_237, %c128_238] : memref<2x2048xf32, #tpu.memory_space<vmem>>, vector<2x128xf32>
    tpu.vector_store %arg27[%c0_237, %c128_238], %166 {strides = array<i32>} : memref<2x2048xf32, #tpu.memory_space<vmem>>, vector<2x128xf32>,
    %c0_239 = arith.constant 0 : index
    %c0_240 = arith.constant 0 : index
    %c4 = arith.constant 4 : index
    %c0_241 = arith.constant 0 : index
    %168 = vector.load %arg26[%c0_239, %c0_240, %c4, %c0_241] : memref<2x4x8x128xf32, #tpu.memory_space<vmem>>, vector<2x1x1x128xf32>
    %169 = vector.shape_cast %168 : vector<2x1x1x128xf32> to vector<2x128xf32>
    %c0_242 = arith.constant 0 : index
    %c0_243 = arith.constant 0 : index
    %c5 = arith.constant 5 : index
    %c0_244 = arith.constant 0 : index
    %170 = vector.load %arg26[%c0_242, %c0_243, %c5, %c0_244] : memref<2x4x8x128xf32, #tpu.memory_space<vmem>>, vector<2x1x1x128xf32>
    %171 = vector.shape_cast %170 : vector<2x1x1x128xf32> to vector<2x128xf32>
    %172 = arith.maximumf %169, %171 : vector<2x128xf32>
    %c0_245 = arith.constant 0 : index
    %c256_246 = arith.constant 256 : index
    %173 = vector.load %arg27[%c0_245, %c256_246] : memref<2x2048xf32, #tpu.memory_space<vmem>>, vector<2x128xf32>
    tpu.vector_store %arg27[%c0_245, %c256_246], %172 {strides = array<i32>} : memref<2x2048xf32, #tpu.memory_space<vmem>>, vector<2x128xf32>,
    %c0_247 = arith.constant 0 : index
    %c0_248 = arith.constant 0 : index
    %c6 = arith.constant 6 : index
    %c0_249 = arith.constant 0 : index
    %174 = vector.load %arg26[%c0_247, %c0_248, %c6, %c0_249] : memref<2x4x8x128xf32, #tpu.memory_space<vmem>>, vector<2x1x1x128xf32>
    %175 = vector.shape_cast %174 : vector<2x1x1x128xf32> to vector<2x128xf32>
    %c0_250 = arith.constant 0 : index
    %c0_251 = arith.constant 0 : index
    %c7_252 = arith.constant 7 : index
    %c0_253 = arith.constant 0 : index
    %176 = vector.load %arg26[%c0_250, %c0_251, %c7_252, %c0_253] : memref<2x4x8x128xf32, #tpu.memory_space<vmem>>, vector<2x1x1x128xf32>
    %177 = vector.shape_cast %176 : vector<2x1x1x128xf32> to vector<2x128xf32>
    %178 = arith.maximumf %175, %177 : vector<2x128xf32>
    %c0_254 = arith.constant 0 : index
    %c384_255 = arith.constant 384 : index
    %179 = vector.load %arg27[%c0_254, %c384_255] : memref<2x2048xf32, #tpu.memory_space<vmem>>, vector<2x128xf32>
    tpu.vector_store %arg27[%c0_254, %c384_255], %178 {strides = array<i32>} : memref<2x2048xf32, #tpu.memory_space<vmem>>, vector<2x128xf32>,
    %c0_256 = arith.constant 0 : index
    %c1_257 = arith.constant 1 : index
    %c0_258 = arith.constant 0 : index
    %c0_259 = arith.constant 0 : index
    %180 = vector.load %arg26[%c0_256, %c1_257, %c0_258, %c0_259] : memref<2x4x8x128xf32, #tpu.memory_space<vmem>>, vector<2x1x1x128xf32>
    %181 = vector.shape_cast %180 : vector<2x1x1x128xf32> to vector<2x128xf32>
    %c0_260 = arith.constant 0 : index
    %c1_261 = arith.constant 1 : index
    %c1_262 = arith.constant 1 : index
    %c0_263 = arith.constant 0 : index
    %182 = vector.load %arg26[%c0_260, %c1_261, %c1_262, %c0_263] : memref<2x4x8x128xf32, #tpu.memory_space<vmem>>, vector<2x1x1x128xf32>
    %183 = vector.shape_cast %182 : vector<2x1x1x128xf32> to vector<2x128xf32>
    %184 = arith.maximumf %181, %183 : vector<2x128xf32>
    %c0_264 = arith.constant 0 : index
    %c512_265 = arith.constant 512 : index
    %185 = vector.load %arg27[%c0_264, %c512_265] : memref<2x2048xf32, #tpu.memory_space<vmem>>, vector<2x128xf32>
    tpu.vector_store %arg27[%c0_264, %c512_265], %184 {strides = array<i32>} : memref<2x2048xf32, #tpu.memory_space<vmem>>, vector<2x128xf32>,
    %c0_266 = arith.constant 0 : index
    %c1_267 = arith.constant 1 : index
    %c2_268 = arith.constant 2 : index
    %c0_269 = arith.constant 0 : index
    %186 = vector.load %arg26[%c0_266, %c1_267, %c2_268, %c0_269] : memref<2x4x8x128xf32, #tpu.memory_space<vmem>>, vector<2x1x1x128xf32>
    %187 = vector.shape_cast %186 : vector<2x1x1x128xf32> to vector<2x128xf32>
    %c0_270 = arith.constant 0 : index
    %c1_271 = arith.constant 1 : index
    %c3_272 = arith.constant 3 : index
    %c0_273 = arith.constant 0 : index
    %188 = vector.load %arg26[%c0_270, %c1_271, %c3_272, %c0_273] : memref<2x4x8x128xf32, #tpu.memory_space<vmem>>, vector<2x1x1x128xf32>
    %189 = vector.shape_cast %188 : vector<2x1x1x128xf32> to vector<2x128xf32>
    %190 = arith.maximumf %187, %189 : vector<2x128xf32>
    %c0_274 = arith.constant 0 : index
    %c640_275 = arith.constant 640 : index
    %191 = vector.load %arg27[%c0_274, %c640_275] : memref<2x2048xf32, #tpu.memory_space<vmem>>, vector<2x128xf32>
    tpu.vector_store %arg27[%c0_274, %c640_275], %190 {strides = array<i32>} : memref<2x2048xf32, #tpu.memory_space<vmem>>, vector<2x128xf32>,
    %c0_276 = arith.constant 0 : index
    %c1_277 = arith.constant 1 : index
    %c4_278 = arith.constant 4 : index
    %c0_279 = arith.constant 0 : index
    %192 = vector.load %arg26[%c0_276, %c1_277, %c4_278, %c0_279] : memref<2x4x8x128xf32, #tpu.memory_space<vmem>>, vector<2x1x1x128xf32>
    %193 = vector.shape_cast %192 : vector<2x1x1x128xf32> to vector<2x128xf32>
    %c0_280 = arith.constant 0 : index
    %c1_281 = arith.constant 1 : index
    %c5_282 = arith.constant 5 : index
    %c0_283 = arith.constant 0 : index
    %194 = vector.load %arg26[%c0_280, %c1_281, %c5_282, %c0_283] : memref<2x4x8x128xf32, #tpu.memory_space<vmem>>, vector<2x1x1x128xf32>
    %195 = vector.shape_cast %194 : vector<2x1x1x128xf32> to vector<2x128xf32>
    %196 = arith.maximumf %193, %195 : vector<2x128xf32>
    %c0_284 = arith.constant 0 : index
    %c768_285 = arith.constant 768 : index
    %197 = vector.load %arg27[%c0_284, %c768_285] : memref<2x2048xf32, #tpu.memory_space<vmem>>, vector<2x128xf32>
    tpu.vector_store %arg27[%c0_284, %c768_285], %196 {strides = array<i32>} : memref<2x2048xf32, #tpu.memory_space<vmem>>, vector<2x128xf32>,
    %c0_286 = arith.constant 0 : index
    %c1_287 = arith.constant 1 : index
    %c6_288 = arith.constant 6 : index
    %c0_289 = arith.constant 0 : index
    %198 = vector.load %arg26[%c0_286, %c1_287, %c6_288, %c0_289] : memref<2x4x8x128xf32, #tpu.memory_space<vmem>>, vector<2x1x1x128xf32>
    %199 = vector.shape_cast %198 : vector<2x1x1x128xf32> to vector<2x128xf32>
    %c0_290 = arith.constant 0 : index
    %c1_291 = arith.constant 1 : index
    %c7_292 = arith.constant 7 : index
    %c0_293 = arith.constant 0 : index
    %200 = vector.load %arg26[%c0_290, %c1_291, %c7_292, %c0_293] : memref<2x4x8x128xf32, #tpu.memory_space<vmem>>, vector<2x1x1x128xf32>
    %201 = vector.shape_cast %200 : vector<2x1x1x128xf32> to vector<2x128xf32>
    %202 = arith.maximumf %199, %201 : vector<2x128xf32>
    %c0_294 = arith.constant 0 : index
    %c896_295 = arith.constant 896 : index
    %203 = vector.load %arg27[%c0_294, %c896_295] : memref<2x2048xf32, #tpu.memory_space<vmem>>, vector<2x128xf32>
    tpu.vector_store %arg27[%c0_294, %c896_295], %202 {strides = array<i32>} : memref<2x2048xf32, #tpu.memory_space<vmem>>, vector<2x128xf32>,
    %c0_296 = arith.constant 0 : index
    %c2_297 = arith.constant 2 : index
    %c0_298 = arith.constant 0 : index
    %c0_299 = arith.constant 0 : index
    %204 = vector.load %arg26[%c0_296, %c2_297, %c0_298, %c0_299] : memref<2x4x8x128xf32, #tpu.memory_space<vmem>>, vector<2x1x1x128xf32>
    %205 = vector.shape_cast %204 : vector<2x1x1x128xf32> to vector<2x128xf32>
    %c0_300 = arith.constant 0 : index
    %c2_301 = arith.constant 2 : index
    %c1_302 = arith.constant 1 : index
    %c0_303 = arith.constant 0 : index
    %206 = vector.load %arg26[%c0_300, %c2_301, %c1_302, %c0_303] : memref<2x4x8x128xf32, #tpu.memory_space<vmem>>, vector<2x1x1x128xf32>
    %207 = vector.shape_cast %206 : vector<2x1x1x128xf32> to vector<2x128xf32>
    %208 = arith.maximumf %205, %207 : vector<2x128xf32>
    %c0_304 = arith.constant 0 : index
    %c1024_305 = arith.constant 1024 : index
    %209 = vector.load %arg27[%c0_304, %c1024_305] : memref<2x2048xf32, #tpu.memory_space<vmem>>, vector<2x128xf32>
    tpu.vector_store %arg27[%c0_304, %c1024_305], %208 {strides = array<i32>} : memref<2x2048xf32, #tpu.memory_space<vmem>>, vector<2x128xf32>,
    %c0_306 = arith.constant 0 : index
    %c2_307 = arith.constant 2 : index
    %c2_308 = arith.constant 2 : index
    %c0_309 = arith.constant 0 : index
    %210 = vector.load %arg26[%c0_306, %c2_307, %c2_308, %c0_309] : memref<2x4x8x128xf32, #tpu.memory_space<vmem>>, vector<2x1x1x128xf32>
    %211 = vector.shape_cast %210 : vector<2x1x1x128xf32> to vector<2x128xf32>
    %c0_310 = arith.constant 0 : index
    %c2_311 = arith.constant 2 : index
    %c3_312 = arith.constant 3 : index
    %c0_313 = arith.constant 0 : index
    %212 = vector.load %arg26[%c0_310, %c2_311, %c3_312, %c0_313] : memref<2x4x8x128xf32, #tpu.memory_space<vmem>>, vector<2x1x1x128xf32>
    %213 = vector.shape_cast %212 : vector<2x1x1x128xf32> to vector<2x128xf32>
    %214 = arith.maximumf %211, %213 : vector<2x128xf32>
    %c0_314 = arith.constant 0 : index
    %c1152 = arith.constant 1152 : index
    %215 = vector.load %arg27[%c0_314, %c1152] : memref<2x2048xf32, #tpu.memory_space<vmem>>, vector<2x128xf32>
    tpu.vector_store %arg27[%c0_314, %c1152], %214 {strides = array<i32>} : memref<2x2048xf32, #tpu.memory_space<vmem>>, vector<2x128xf32>,
    %c0_315 = arith.constant 0 : index
    %c2_316 = arith.constant 2 : index
    %c4_317 = arith.constant 4 : index
    %c0_318 = arith.constant 0 : index
    %216 = vector.load %arg26[%c0_315, %c2_316, %c4_317, %c0_318] : memref<2x4x8x128xf32, #tpu.memory_space<vmem>>, vector<2x1x1x128xf32>
    %217 = vector.shape_cast %216 : vector<2x1x1x128xf32> to vector<2x128xf32>
    %c0_319 = arith.constant 0 : index
    %c2_320 = arith.constant 2 : index
    %c5_321 = arith.constant 5 : index
    %c0_322 = arith.constant 0 : index
    %218 = vector.load %arg26[%c0_319, %c2_320, %c5_321, %c0_322] : memref<2x4x8x128xf32, #tpu.memory_space<vmem>>, vector<2x1x1x128xf32>
    %219 = vector.shape_cast %218 : vector<2x1x1x128xf32> to vector<2x128xf32>
    %220 = arith.maximumf %217, %219 : vector<2x128xf32>
    %c0_323 = arith.constant 0 : index
    %c1280 = arith.constant 1280 : index
    %221 = vector.load %arg27[%c0_323, %c1280] : memref<2x2048xf32, #tpu.memory_space<vmem>>, vector<2x128xf32>
    tpu.vector_store %arg27[%c0_323, %c1280], %220 {strides = array<i32>} : memref<2x2048xf32, #tpu.memory_space<vmem>>, vector<2x128xf32>,
    %c0_324 = arith.constant 0 : index
    %c2_325 = arith.constant 2 : index
    %c6_326 = arith.constant 6 : index
    %c0_327 = arith.constant 0 : index
    %222 = vector.load %arg26[%c0_324, %c2_325, %c6_326, %c0_327] : memref<2x4x8x128xf32, #tpu.memory_space<vmem>>, vector<2x1x1x128xf32>
    %223 = vector.shape_cast %222 : vector<2x1x1x128xf32> to vector<2x128xf32>
    %c0_328 = arith.constant 0 : index
    %c2_329 = arith.constant 2 : index
    %c7_330 = arith.constant 7 : index
    %c0_331 = arith.constant 0 : index
    %224 = vector.load %arg26[%c0_328, %c2_329, %c7_330, %c0_331] : memref<2x4x8x128xf32, #tpu.memory_space<vmem>>, vector<2x1x1x128xf32>
    %225 = vector.shape_cast %224 : vector<2x1x1x128xf32> to vector<2x128xf32>
    %226 = arith.maximumf %223, %225 : vector<2x128xf32>
    %c0_332 = arith.constant 0 : index
    %c1408 = arith.constant 1408 : index
    %227 = vector.load %arg27[%c0_332, %c1408] : memref<2x2048xf32, #tpu.memory_space<vmem>>, vector<2x128xf32>
    tpu.vector_store %arg27[%c0_332, %c1408], %226 {strides = array<i32>} : memref<2x2048xf32, #tpu.memory_space<vmem>>, vector<2x128xf32>,
    %c0_333 = arith.constant 0 : index
    %c3_334 = arith.constant 3 : index
    %c0_335 = arith.constant 0 : index
    %c0_336 = arith.constant 0 : index
    %228 = vector.load %arg26[%c0_333, %c3_334, %c0_335, %c0_336] : memref<2x4x8x128xf32, #tpu.memory_space<vmem>>, vector<2x1x1x128xf32>
    %229 = vector.shape_cast %228 : vector<2x1x1x128xf32> to vector<2x128xf32>
    %c0_337 = arith.constant 0 : index
    %c3_338 = arith.constant 3 : index
    %c1_339 = arith.constant 1 : index
    %c0_340 = arith.constant 0 : index
    %230 = vector.load %arg26[%c0_337, %c3_338, %c1_339, %c0_340] : memref<2x4x8x128xf32, #tpu.memory_space<vmem>>, vector<2x1x1x128xf32>
    %231 = vector.shape_cast %230 : vector<2x1x1x128xf32> to vector<2x128xf32>
    %232 = arith.maximumf %229, %231 : vector<2x128xf32>
    %c0_341 = arith.constant 0 : index
    %c1536 = arith.constant 1536 : index
    %233 = vector.load %arg27[%c0_341, %c1536] : memref<2x2048xf32, #tpu.memory_space<vmem>>, vector<2x128xf32>
    tpu.vector_store %arg27[%c0_341, %c1536], %232 {strides = array<i32>} : memref<2x2048xf32, #tpu.memory_space<vmem>>, vector<2x128xf32>,
    %c0_342 = arith.constant 0 : index
    %c3_343 = arith.constant 3 : index
    %c2_344 = arith.constant 2 : index
    %c0_345 = arith.constant 0 : index
    %234 = vector.load %arg26[%c0_342, %c3_343, %c2_344, %c0_345] : memref<2x4x8x128xf32, #tpu.memory_space<vmem>>, vector<2x1x1x128xf32>
    %235 = vector.shape_cast %234 : vector<2x1x1x128xf32> to vector<2x128xf32>
    %c0_346 = arith.constant 0 : index
    %c3_347 = arith.constant 3 : index
    %c3_348 = arith.constant 3 : index
    %c0_349 = arith.constant 0 : index
    %236 = vector.load %arg26[%c0_346, %c3_347, %c3_348, %c0_349] : memref<2x4x8x128xf32, #tpu.memory_space<vmem>>, vector<2x1x1x128xf32>
    %237 = vector.shape_cast %236 : vector<2x1x1x128xf32> to vector<2x128xf32>
    %238 = arith.maximumf %235, %237 : vector<2x128xf32>
    %c0_350 = arith.constant 0 : index
    %c1664 = arith.constant 1664 : index
    %239 = vector.load %arg27[%c0_350, %c1664] : memref<2x2048xf32, #tpu.memory_space<vmem>>, vector<2x128xf32>
    tpu.vector_store %arg27[%c0_350, %c1664], %238 {strides = array<i32>} : memref<2x2048xf32, #tpu.memory_space<vmem>>, vector<2x128xf32>,
    %c0_351 = arith.constant 0 : index
    %c3_352 = arith.constant 3 : index
    %c4_353 = arith.constant 4 : index
    %c0_354 = arith.constant 0 : index
    %240 = vector.load %arg26[%c0_351, %c3_352, %c4_353, %c0_354] : memref<2x4x8x128xf32, #tpu.memory_space<vmem>>, vector<2x1x1x128xf32>
    %241 = vector.shape_cast %240 : vector<2x1x1x128xf32> to vector<2x128xf32>
    %c0_355 = arith.constant 0 : index
    %c3_356 = arith.constant 3 : index
    %c5_357 = arith.constant 5 : index
    %c0_358 = arith.constant 0 : index
    %242 = vector.load %arg26[%c0_355, %c3_356, %c5_357, %c0_358] : memref<2x4x8x128xf32, #tpu.memory_space<vmem>>, vector<2x1x1x128xf32>
    %243 = vector.shape_cast %242 : vector<2x1x1x128xf32> to vector<2x128xf32>
    %244 = arith.maximumf %241, %243 : vector<2x128xf32>
    %c0_359 = arith.constant 0 : index
    %c1792 = arith.constant 1792 : index
    %245 = vector.load %arg27[%c0_359, %c1792] : memref<2x2048xf32, #tpu.memory_space<vmem>>, vector<2x128xf32>
    tpu.vector_store %arg27[%c0_359, %c1792], %244 {strides = array<i32>} : memref<2x2048xf32, #tpu.memory_space<vmem>>, vector<2x128xf32>,
    %c0_360 = arith.constant 0 : index
    %c3_361 = arith.constant 3 : index
    %c6_362 = arith.constant 6 : index
    %c0_363 = arith.constant 0 : index
    %246 = vector.load %arg26[%c0_360, %c3_361, %c6_362, %c0_363] : memref<2x4x8x128xf32, #tpu.memory_space<vmem>>, vector<2x1x1x128xf32>
    %247 = vector.shape_cast %246 : vector<2x1x1x128xf32> to vector<2x128xf32>
    %c0_364 = arith.constant 0 : index
    %c3_365 = arith.constant 3 : index
    %c7_366 = arith.constant 7 : index
    %c0_367 = arith.constant 0 : index
    %248 = vector.load %arg26[%c0_364, %c3_365, %c7_366, %c0_367] : memref<2x4x8x128xf32, #tpu.memory_space<vmem>>, vector<2x1x1x128xf32>
    %249 = vector.shape_cast %248 : vector<2x1x1x128xf32> to vector<2x128xf32>
    %250 = arith.maximumf %247, %249 : vector<2x128xf32>
    %c0_368 = arith.constant 0 : index
    %c1920 = arith.constant 1920 : index
    %251 = vector.load %arg27[%c0_368, %c1920] : memref<2x2048xf32, #tpu.memory_space<vmem>>, vector<2x128xf32>
    tpu.vector_store %arg27[%c0_368, %c1920], %250 {strides = array<i32>} : memref<2x2048xf32, #tpu.memory_space<vmem>>, vector<2x128xf32>,
    %c0_i32_369 = arith.constant 0 : i32
    %252 = tpu.memref_slice %arg30[%c0_i32_369] : memref<2x!tpu.dma_semaphore, #tpu.memory_space<semaphore_mem>> -> memref<1x!tpu.dma_semaphore, #tpu.memory_space<semaphore_mem>>
    %253 = tpu.memref_squeeze %252 : memref<1x!tpu.dma_semaphore, #tpu.memory_space<semaphore_mem>> -> memref<!tpu.dma_semaphore, #tpu.memory_space<semaphore_mem>>
    tpu.wait_dma2 semaphore(%253 : memref<!tpu.dma_semaphore, #tpu.memory_space<semaphore_mem>>) src(%arg8 : memref<2048x256xbf16, #tpu.memory_space<any>>) dst(%arg28 : memref<2048x256xbf16, #tpu.memory_space<vmem>>)
    %c1_i32_370 = arith.constant 1 : i32
    %254 = tpu.memref_slice %arg30[%c1_i32_370] : memref<2x!tpu.dma_semaphore, #tpu.memory_space<semaphore_mem>> -> memref<1x!tpu.dma_semaphore, #tpu.memory_space<semaphore_mem>>
    %255 = tpu.memref_squeeze %254 : memref<1x!tpu.dma_semaphore, #tpu.memory_space<semaphore_mem>> -> memref<!tpu.dma_semaphore, #tpu.memory_space<semaphore_mem>>
    tpu.wait_dma2 semaphore(%255 : memref<!tpu.dma_semaphore, #tpu.memory_space<semaphore_mem>>) src(%arg12 : memref<256x1152xbf16, #tpu.memory_space<any>>) dst(%arg29 : memref<256x1152xbf16, #tpu.memory_space<vmem>>)
    %c0_371 = arith.constant 0 : index
    %c0_372 = arith.constant 0 : index
    %256 = vector.load %arg27[%c0_371, %c0_372] : memref<2x2048xf32, #tpu.memory_space<vmem>>, vector<2x2048xf32>
    %c0_373 = arith.constant 0 : index
    %c0_374 = arith.constant 0 : index
    %257 = vector.load %arg28[%c0_373, %c0_374] : memref<2048x256xbf16, #tpu.memory_space<vmem>>, vector<2048x256xbf16>
    %258 = arith.truncf %256 : vector<2x2048xf32> to vector<2x2048xbf16>
    %cst_375 = arith.constant dense<0.000000e+00> : vector<2x256xf32>
    %259 = tpu.matmul %258, %257, %cst_375 {dimension_numbers = #tpu.dot_dimension_numbers<[1], [0], [0], [1], [0, 0, 1, 1], [], []>} : vector<2x2048xbf16>, vector<2048x256xbf16>, vector<2x256xf32> -> vector<2x256xf32>
    %c0_376 = arith.constant 0 : index
    %c0_377 = arith.constant 0 : index
    %260 = vector.load %arg9[%c0_376, %c0_377] : memref<1x256xf32, #tpu.memory_space<vmem>>, vector<1x256xf32>
    %261 = vector.broadcast %260 : vector<1x256xf32> to vector<2x256xf32>
    %262 = arith.addf %259, %261 : vector<2x256xf32>
    %c0_378 = arith.constant 0 : index
    %c0_379 = arith.constant 0 : index
    %263 = vector.load %arg1[%c0_378, %c0_379] : memref<2x32xf32, #tpu.memory_space<vmem>>, vector<2x32xf32>
    %c0_380 = arith.constant 0 : index
    %c0_381 = arith.constant 0 : index
    %264 = vector.load %arg10[%c0_380, %c0_381] : memref<32x256xbf16, #tpu.memory_space<vmem>>, vector<32x256xbf16>
    %265 = arith.truncf %263 : vector<2x32xf32> to vector<2x32xbf16>
    %cst_382 = arith.constant dense<0.000000e+00> : vector<2x256xf32>
    %266 = tpu.matmul %265, %264, %cst_382 {dimension_numbers = #tpu.dot_dimension_numbers<[1], [0], [0], [1], [0, 0, 1, 1], [], []>} : vector<2x32xbf16>, vector<32x256xbf16>, vector<2x256xf32> -> vector<2x256xf32>
    %c0_383 = arith.constant 0 : index
    %c0_384 = arith.constant 0 : index
    %267 = vector.load %arg11[%c0_383, %c0_384] : memref<1x256xf32, #tpu.memory_space<vmem>>, vector<1x256xf32>
    %268 = vector.broadcast %267 : vector<1x256xf32> to vector<2x256xf32>
    %269 = arith.addf %266, %268 : vector<2x256xf32>
    %cst_385 = arith.constant 0.000000e+00 : f32
    %270 = vector.broadcast %cst_385 : f32 to vector<2x256xf32>
    %271 = arith.maximumf %269, %270 : vector<2x256xf32>
    %c0_386 = arith.constant 0 : index
    %c0_387 = arith.constant 0 : index
    %272 = vector.load %arg29[%c0_386, %c0_387] : memref<256x1152xbf16, #tpu.memory_space<vmem>>, vector<256x256xbf16>
    %273 = arith.truncf %271 : vector<2x256xf32> to vector<2x256xbf16>
    %cst_388 = arith.constant dense<0.000000e+00> : vector<2x256xf32>
    %274 = tpu.matmul %273, %272, %cst_388 {dimension_numbers = #tpu.dot_dimension_numbers<[1], [0], [0], [1], [0, 0, 1, 1], [], []>} : vector<2x256xbf16>, vector<256x256xbf16>, vector<2x256xf32> -> vector<2x256xf32>
    %c0_389 = arith.constant 0 : index
    %c0_390 = arith.constant 0 : index
    %275 = vector.load %arg13[%c0_389, %c0_390] : memref<1x256xf32, #tpu.memory_space<vmem>>, vector<1x256xf32>
    %276 = vector.broadcast %275 : vector<1x256xf32> to vector<2x256xf32>
    %277 = arith.addf %274, %276 : vector<2x256xf32>
    %cst_391 = arith.constant 0.000000e+00 : f32
    %278 = vector.broadcast %cst_391 : f32 to vector<2x256xf32>
    %279 = arith.maximumf %277, %278 : vector<2x256xf32>
    %c0_392 = arith.constant 0 : index
    %c256_393 = arith.constant 256 : index
    %280 = vector.load %arg29[%c0_392, %c256_393] : memref<256x1152xbf16, #tpu.memory_space<vmem>>, vector<256x256xbf16>
    %281 = arith.truncf %279 : vector<2x256xf32> to vector<2x256xbf16>
    %cst_394 = arith.constant dense<0.000000e+00> : vector<2x256xf32>
    %282 = tpu.matmul %281, %280, %cst_394 {dimension_numbers = #tpu.dot_dimension_numbers<[1], [0], [0], [1], [0, 0, 1, 1], [], []>} : vector<2x256xbf16>, vector<256x256xbf16>, vector<2x256xf32> -> vector<2x256xf32>
    %c0_395 = arith.constant 0 : index
    %c0_396 = arith.constant 0 : index
    %283 = vector.load %arg14[%c0_395, %c0_396] : memref<1x256xf32, #tpu.memory_space<vmem>>, vector<1x256xf32>
    %284 = vector.broadcast %283 : vector<1x256xf32> to vector<2x256xf32>
    %285 = arith.addf %282, %284 : vector<2x256xf32>
    %286 = arith.addf %285, %271 : vector<2x256xf32>
    %c0_397 = arith.constant 0 : index
    %c512_398 = arith.constant 512 : index
    %287 = vector.load %arg29[%c0_397, %c512_398] : memref<256x1152xbf16, #tpu.memory_space<vmem>>, vector<256x256xbf16>
    %288 = arith.truncf %262 : vector<2x256xf32> to vector<2x256xbf16>
    %cst_399 = arith.constant dense<0.000000e+00> : vector<2x256xf32>
    %289 = tpu.matmul %288, %287, %cst_399 {dimension_numbers = #tpu.dot_dimension_numbers<[1], [0], [0], [1], [0, 0, 1, 1], [], []>} : vector<2x256xbf16>, vector<256x256xbf16>, vector<2x256xf32> -> vector<2x256xf32>
    %c0_400 = arith.constant 0 : index
    %c768_401 = arith.constant 768 : index
    %290 = vector.load %arg29[%c0_400, %c768_401] : memref<256x1152xbf16, #tpu.memory_space<vmem>>, vector<256x256xbf16>
    %291 = arith.truncf %286 : vector<2x256xf32> to vector<2x256xbf16>
    %cst_402 = arith.constant dense<0.000000e+00> : vector<2x256xf32>
    %292 = tpu.matmul %291, %290, %cst_402 {dimension_numbers = #tpu.dot_dimension_numbers<[1], [0], [0], [1], [0, 0, 1, 1], [], []>} : vector<2x256xbf16>, vector<256x256xbf16>, vector<2x256xf32> -> vector<2x256xf32>
    %293 = arith.addf %289, %292 : vector<2x256xf32>
    %c0_403 = arith.constant 0 : index
    %c0_404 = arith.constant 0 : index
    %294 = vector.load %arg15[%c0_403, %c0_404] : memref<1x256xf32, #tpu.memory_space<vmem>>, vector<1x256xf32>
    %295 = vector.broadcast %294 : vector<1x256xf32> to vector<2x256xf32>
    %296 = arith.addf %293, %295 : vector<2x256xf32>
    %cst_405 = arith.constant 0.000000e+00 : f32
    %297 = vector.broadcast %cst_405 : f32 to vector<2x256xf32>
    %298 = arith.maximumf %296, %297 : vector<2x256xf32>
    %c0_406 = arith.constant 0 : index
    %c1024_407 = arith.constant 1024 : index
    %299 = vector.load %arg29[%c0_406, %c1024_407] : memref<256x1152xbf16, #tpu.memory_space<vmem>>, vector<256x128xbf16>
    %300 = arith.truncf %298 : vector<2x256xf32> to vector<2x256xbf16>
    %cst_408 = arith.constant dense<0.000000e+00> : vector<2x128xf32>
    %301 = tpu.matmul %300, %299, %cst_408 {dimension_numbers = #tpu.dot_dimension_numbers<[1], [0], [0], [1], [0, 0, 1, 1], [], []>} : vector<2x256xbf16>, vector<256x128xbf16>, vector<2x128xf32> -> vector<2x128xf32>
    %c0_409 = arith.constant 0 : index
    %c0_410 = arith.constant 0 : index
    %302 = vector.load %arg16[%c0_409, %c0_410] : memref<1x128xf32, #tpu.memory_space<vmem>>, vector<1x128xf32>
    %303 = vector.broadcast %302 : vector<1x128xf32> to vector<2x128xf32>
    %304 = arith.addf %301, %303 : vector<2x128xf32>
    %cst_411 = arith.constant 0.000000e+00 : f32
    %305 = vector.broadcast %cst_411 : f32 to vector<2x128xf32>
    %306 = arith.maximumf %304, %305 : vector<2x128xf32>
    %c0_412 = arith.constant 0 : index
    %c0_413 = arith.constant 0 : index
    %307 = vector.load %arg17[%c0_412, %c0_413] : memref<128x10xbf16, #tpu.memory_space<vmem>>, vector<128x10xbf16>
    %308 = arith.truncf %306 : vector<2x128xf32> to vector<2x128xbf16>
    %cst_414 = arith.constant dense<0.000000e+00> : vector<2x10xf32>
    %309 = tpu.matmul %308, %307, %cst_414 {dimension_numbers = #tpu.dot_dimension_numbers<[1], [0], [0], [1], [0, 0, 1, 1], [], []>} : vector<2x128xbf16>, vector<128x10xbf16>, vector<2x10xf32> -> vector<2x10xf32>
    %c0_415 = arith.constant 0 : index
    %c0_416 = arith.constant 0 : index
    %310 = vector.load %arg18[%c0_415, %c0_416] : memref<1x10xf32, #tpu.memory_space<vmem>>, vector<1x10xf32>
    %311 = vector.broadcast %310 : vector<1x10xf32> to vector<2x10xf32>
    %312 = arith.addf %309, %311 : vector<2x10xf32>
    %cst_417 = arith.constant dense<0xFF800000> : vector<2xf32>
    %313 = vector.multi_reduction <maximumf>, %312, %cst_417 [1] : vector<2x10xf32> to vector<2xf32>
    %314 = vector.shape_cast %313 : vector<2xf32> to vector<2x1xf32>
    %315 = vector.broadcast %314 : vector<2x1xf32> to vector<2x10xf32>
    %316 = arith.subf %312, %315 : vector<2x10xf32>
    %317 = math.exp %316 : vector<2x10xf32>
    %cst_418 = arith.constant dense<0.000000e+00> : vector<2xf32>
    %318 = vector.multi_reduction <add>, %317, %cst_418 [1] : vector<2x10xf32> to vector<2xf32>
    %319 = vector.shape_cast %318 : vector<2xf32> to vector<2x1xf32>
    %320 = vector.broadcast %319 : vector<2x1xf32> to vector<2x10xf32>
    %321 = arith.divf %317, %320 : vector<2x10xf32>
    %c0_419 = arith.constant 0 : index
    %c0_420 = arith.constant 0 : index
    %322 = vector.load %arg19[%c0_419, %c0_420] : memref<10x32xf32, #tpu.memory_space<vmem>>, vector<10x32xf32>
    %cst_421 = arith.constant dense<0.000000e+00> : vector<2x32xf32>
    %323 = tpu.matmul %321, %322, %cst_421 {dimension_numbers = #tpu.dot_dimension_numbers<[1], [0], [0], [1], [0, 0, 1, 1], [], []>} : vector<2x10xf32>, vector<10x32xf32>, vector<2x32xf32> -> vector<2x32xf32>
    %c0_422 = arith.constant 0 : index
    %c0_423 = arith.constant 0 : index
    %324 = vector.load %arg20[%c0_422, %c0_423] : memref<2x32xf32, #tpu.memory_space<vmem>>, vector<2x32xf32>
    tpu.vector_store %arg20[%c0_422, %c0_423], %323 {strides = array<i32>} : memref<2x32xf32, #tpu.memory_space<vmem>>, vector<2x32xf32>,
    return
  }
}

</mosaic_0001>

<bundles_post_ra>
// kernel: noprop_block_forward.1
= control target key start
LH: loop header
LB: loop body
LE: loop exit
PB: predicated region body
PF: predicated region fallthrough
CT: control target
= control target key end

     0   :  { %s19518_s0 = inlined_call_operand.vmem [shape: f32[2,16,16,3], index: 0, kind: input, shape index: {}]   ;;  %s19519_s1 = inlined_call_operand.vmem [shape: f32[2,32], index: 1, kind: input, shape index: {}]   ;;  %s19520_s2 = inlined_call_operand.vmem [shape: bf16[1152,32], index: 2, kind: input, shape index: {}]   ;;  %s19521_s3 = inlined_call_operand.vmem [shape: f32[1,32], index: 3, kind: input, shape index: {}]   ;;  %s19522_s4 = inlined_call_operand.vmem [shape: bf16[1152,64], index: 4, kind: input, shape index: {}]   ;;  %s19523_s5 = inlined_call_operand.vmem [shape: f32[1,64], index: 5, kind: input, shape index: {}]   ;;  %s19524_s6 = inlined_call_operand.hbm [shape: bf16[1152,128], index: 6, kind: input, shape index: {}]   ;;  %s19525_s7 = inlined_call_operand.vmem [shape: f32[1,128], index: 7, kind: input, shape index: {}]   ;;  %s19526_s8 = inlined_call_operand.vmem [shape: bf16[2048,256], index: 8, kind: input, shape index: {}]   ;;  %s19527_s9 = inlined_call_operand.vmem [shape: f32[1,256], index: 9, kind: input, shape index: {}]   ;;  %s19528_s10 = inlined_call_operand.vmem [shape: bf16[32,256], index: 10, kind: input, shape index: {}]   ;;  %s19529_s11 = inlined_call_operand.vmem [shape: f32[1,256], index: 11, kind: input, shape index: {}]   ;;  %s19530_s12 = inlined_call_operand.hbm [shape: bf16[256,1152], index: 12, kind: input, shape index: {}]   ;;  %s19531_s13 = inlined_call_operand.vmem [shape: f32[1,256], index: 13, kind: input, shape index: {}]   ;;  %s19532_s14 = inlined_call_operand.vmem [shape: f32[1,256], index: 14, kind: input, shape index: {}]   ;;  %s19533_s15 = inlined_call_operand.vmem [shape: f32[1,256], index: 15, kind: input, shape index: {}]   ;;  %s19534_s16 = inlined_call_operand.vmem [shape: f32[1,128], index: 16, kind: input, shape index: {}]   ;;  %s19535_s17 = inlined_call_operand.vmem [shape: bf16[128,10], index: 17, kind: input, shape index: {}]   ;;  %s19536_s18 = inlined_call_operand.vmem [shape: f32[1,10], index: 18, kind: input, shape index: {}]   ;;  %s19537_s19 = inlined_call_operand.vmem [shape: f32[10,32], index: 19, kind: input, shape index: {}]   ;;  %s19538_s20 = inlined_call_operand.hbm [shape: f32[2,32], index: 20, kind: output, shape index: {}]  }
   0x1   :  { %19544 = sst [smem:[#allocation23_spill]] %s19518_s0 }
   0x2   :  { %19545 = sst [smem:[#allocation24_spill]] %s19519_s1 }
   0x3   :  { %19546 = sst [smem:[#allocation25_spill]] %s19520_s2 }
   0x4   :  { %19547 = sst [smem:[#allocation26_spill]] %s19521_s3 }
   0x5   :  { %19548 = sst [smem:[#allocation27_spill]] %s19522_s4 }
   0x6   :  { %25 = vsyncpa [#allocation13], 0 }
   0x7   :  { %26 = vsyncpa [#allocation14], 0  ;;  %s15184_s1 = smov [#allocation12]   ;;  %s15132_s2 = scalar_lea.hbm %s19524_s6, 9216 }
   0x8   :  { %s44_s22 = sshll.u32 %s15184_s1, 4  ;;  %p15133_p0 = scmp.ne.s32.totalorder %s19524_s6, %s15132_s2  ;;  %s45_s22 = int_to_ptr.vmem [resolvable:$true] %s44_s22 }
   0x9   :  { %p15136_p1 = scmp.lt.u32.totalorder %s15132_s2, %s19524_s6 }
   0xb   :  { %p15138_p2 = pnand %p15136_p1, %p15133_p0 }
   0xd   :  { %15141 = shalt.err (!%p15138_p2)
}
   0xe   :  { %s15142_s28 = scalar_lea.vmem %s45_s22, 9216  ;;  %p15147_p4 = scmp.lt.s32.totalorder %s45_s22, %s45_s22 }
   0xf   :  { %p15143_p3 = scmp.ne.s32.totalorder %s45_s22, %s15142_s28  ;;  %p15148_p5 = scmp.lt.s32.totalorder %s15142_s28, %s15142_s28 }
  0x11   :  { %p15149_p6 = por %p15148_p5, %p15147_p4 }
  0x13   :  { %p15150_p7 = pnand %p15149_p6, %p15143_p3 }
  0x15   :  { %15153 = shalt.err (!%p15150_p7)
}
  0x16   :  { %s15185_s4 = smov 64   ;;  %s15186_s29 = smov 4  }
  0x17   :  { %50 = dma.hbm_to_vmem [thread:$0]  %s19524_s6, 9216, %s45_s22, [#allocation13], %s15185_s4, %s15185_s4, %s15186_s29  }
  0x18   :  { %15176 = dma.done.wait [#allocation13], 9216  }
  0x19   :  { %15177 = vsyncadd [#allocation13], 4294958080  ;;  %v94_v0 = vld [vmem:[%s19526_s8] sm:$0xf]  ;;  %v96_v1 = vld [vmem:[%s19526_s8 + $0x8] sm:$0xf] }
  0x1a   :  { %v98_v2 = vld [vmem:[%s19526_s8 + $0x4] sm:$0xf]  ;;  %95 = vst [vmem:[#allocation9] sm:$0xf] %v94_v0  ;;  %97 = vst [vmem:[#allocation9 + $0x4] sm:$0xf] %v96_v1 }
  0x1b   :  { %99 = vst [vmem:[#allocation9 + $0x8] sm:$0xf] %v98_v2  ;;  %v100_v3 = vld [vmem:[%s19526_s8 + $0xc] sm:$0xff]   ;;  %v104_v4 = vld [vmem:[%s19526_s8 + $0x18] sm:$0xf]  ;;  %v108_v6 = vld [vmem:[%s19526_s8 + $0x1c] sm:$0xff]  }
  0x1c   :  { %v106_v5 = vld [vmem:[%s19526_s8 + $0x14] sm:$0xf]  ;;  %101 = vst [vmem:[#allocation9 + $0xc] sm:$0xff] %v100_v3   ;;  %105 = vst [vmem:[#allocation9 + $0x14] sm:$0xf] %v104_v4  ;;  %v116_v9 = vld [vmem:[%s19526_s8 + $0x2c] sm:$0xff]  }
  0x1d   :  { %107 = vst [vmem:[#allocation9 + $0x18] sm:$0xf] %v106_v5  ;;  %v112_v7 = vld [vmem:[%s19526_s8 + $0x28] sm:$0xf]  ;;  %v114_v8 = vld [vmem:[%s19526_s8 + $0x24] sm:$0xf] }
  0x1e   :  { %109 = vst [vmem:[#allocation9 + $0x1c] sm:$0xff] %v108_v6   ;;  %113 = vst [vmem:[#allocation9 + $0x24] sm:$0xf] %v112_v7  ;;  %v120_v10 = vld [vmem:[%s19526_s8 + $0x38] sm:$0xf]  ;;  %v124_v12 = vld [vmem:[%s19526_s8 + $0x3c] sm:$0xff]  }
  0x1f   :  { %115 = vst [vmem:[#allocation9 + $0x28] sm:$0xf] %v114_v8  ;;  %v122_v11 = vld [vmem:[%s19526_s8 + $0x34] sm:$0xf]  ;;  %117 = vst [vmem:[#allocation9 + $0x2c] sm:$0xff] %v116_v9   ;;  %v132_v15 = vld [vmem:[%s19526_s8 + $0x4c] sm:$0xff]  }
  0x20   :  { %121 = vst [vmem:[#allocation9 + $0x34] sm:$0xf] %v120_v10  ;;  %123 = vst [vmem:[#allocation9 + $0x38] sm:$0xf] %v122_v11  ;;  %v128_v13 = vld [vmem:[%s19526_s8 + $0x48] sm:$0xf] }
  0x21   :  { %v130_v14 = vld [vmem:[%s19526_s8 + $0x44] sm:$0xf]  ;;  %125 = vst [vmem:[#allocation9 + $0x3c] sm:$0xff] %v124_v12   ;;  %129 = vst [vmem:[#allocation9 + $0x44] sm:$0xf] %v128_v13  ;;  %v140_v18 = vld [vmem:[%s19526_s8 + $0x5c] sm:$0xff]  }
  0x22   :  { %131 = vst [vmem:[#allocation9 + $0x48] sm:$0xf] %v130_v14  ;;  %v136_v16 = vld [vmem:[%s19526_s8 + $0x58] sm:$0xf]  ;;  %v138_v17 = vld [vmem:[%s19526_s8 + $0x54] sm:$0xf] }
  0x23   :  { %133 = vst [vmem:[#allocation9 + $0x4c] sm:$0xff] %v132_v15   ;;  %137 = vst [vmem:[#allocation9 + $0x54] sm:$0xf] %v136_v16  ;;  %v144_v19 = vld [vmem:[%s19526_s8 + $0x68] sm:$0xf]  ;;  %v148_v21 = vld [vmem:[%s19526_s8 + $0x6c] sm:$0xff]  }
  0x24   :  { %139 = vst [vmem:[#allocation9 + $0x58] sm:$0xf] %v138_v17  ;;  %v146_v20 = vld [vmem:[%s19526_s8 + $0x64] sm:$0xf]  ;;  %141 = vst [vmem:[#allocation9 + $0x5c] sm:$0xff] %v140_v18   ;;  %v156_v24 = vld [vmem:[%s19526_s8 + $0x7c] sm:$0xff]  }
  0x25   :  { %145 = vst [vmem:[#allocation9 + $0x64] sm:$0xf] %v144_v19  ;;  %147 = vst [vmem:[#allocation9 + $0x68] sm:$0xf] %v146_v20  ;;  %v152_v22 = vld [vmem:[%s19526_s8 + $0x78] sm:$0xf] }
  0x26   :  { %v154_v23 = vld [vmem:[%s19526_s8 + $0x74] sm:$0xf]  ;;  %149 = vst [vmem:[#allocation9 + $0x6c] sm:$0xff] %v148_v21   ;;  %153 = vst [vmem:[#allocation9 + $0x74] sm:$0xf] %v152_v22  ;;  %v164_v27 = vld [vmem:[%s19526_s8 + $0x8c] sm:$0xff]  }
  0x27   :  { %155 = vst [vmem:[#allocation9 + $0x78] sm:$0xf] %v154_v23  ;;  %v160_v25 = vld [vmem:[%s19526_s8 + $0x88] sm:$0xf]  ;;  %v162_v26 = vld [vmem:[%s19526_s8 + $0x84] sm:$0xf] }
  0x28   :  { %157 = vst [vmem:[#allocation9 + $0x7c] sm:$0xff] %v156_v24   ;;  %161 = vst [vmem:[#allocation9 + $0x84] sm:$0xf] %v160_v25  ;;  %v168_v28 = vld [vmem:[%s19526_s8 + $0x98] sm:$0xf]  ;;  %v172_v30 = vld [vmem:[%s19526_s8 + $0x9c] sm:$0xff]  }
  0x29   :  { %163 = vst [vmem:[#allocation9 + $0x88] sm:$0xf] %v162_v26  ;;  %v170_v29 = vld [vmem:[%s19526_s8 + $0x94] sm:$0xf]  ;;  %165 = vst [vmem:[#allocation9 + $0x8c] sm:$0xff] %v164_v27   ;;  %v180_v33 = vld [vmem:[%s19526_s8 + $0xac] sm:$0xff]  }
  0x2a   :  { %169 = vst [vmem:[#allocation9 + $0x94] sm:$0xf] %v168_v28  ;;  %171 = vst [vmem:[#allocation9 + $0x98] sm:$0xf] %v170_v29  ;;  %v176_v31 = vld [vmem:[%s19526_s8 + $0xa8] sm:$0xf] }
  0x2b   :  { %v178_v32 = vld [vmem:[%s19526_s8 + $0xa4] sm:$0xf]  ;;  %173 = vst [vmem:[#allocation9 + $0x9c] sm:$0xff] %v172_v30   ;;  %177 = vst [vmem:[#allocation9 + $0xa4] sm:$0xf] %v176_v31  ;;  %v188_v36 = vld [vmem:[%s19526_s8 + $0xbc] sm:$0xff]  }
  0x2c   :  { %179 = vst [vmem:[#allocation9 + $0xa8] sm:$0xf] %v178_v32  ;;  %v184_v34 = vld [vmem:[%s19526_s8 + $0xb8] sm:$0xf]  ;;  %v186_v35 = vld [vmem:[%s19526_s8 + $0xb4] sm:$0xf] }
  0x2d   :  { %181 = vst [vmem:[#allocation9 + $0xac] sm:$0xff] %v180_v33   ;;  %185 = vst [vmem:[#allocation9 + $0xb4] sm:$0xf] %v184_v34  ;;  %v192_v37 = vld [vmem:[%s19526_s8 + $0xc8] sm:$0xf]  ;;  %v196_v39 = vld [vmem:[%s19526_s8 + $0xcc] sm:$0xff]  }
  0x2e   :  { %187 = vst [vmem:[#allocation9 + $0xb8] sm:$0xf] %v186_v35  ;;  %v194_v38 = vld [vmem:[%s19526_s8 + $0xc4] sm:$0xf]  ;;  %189 = vst [vmem:[#allocation9 + $0xbc] sm:$0xff] %v188_v36   ;;  %v204_v42 = vld [vmem:[%s19526_s8 + $0xdc] sm:$0xff]  }
  0x2f   :  { %193 = vst [vmem:[#allocation9 + $0xc4] sm:$0xf] %v192_v37  ;;  %195 = vst [vmem:[#allocation9 + $0xc8] sm:$0xf] %v194_v38  ;;  %v200_v40 = vld [vmem:[%s19526_s8 + $0xd8] sm:$0xf] }
  0x30   :  { %v202_v41 = vld [vmem:[%s19526_s8 + $0xd4] sm:$0xf]  ;;  %197 = vst [vmem:[#allocation9 + $0xcc] sm:$0xff] %v196_v39   ;;  %201 = vst [vmem:[#allocation9 + $0xd4] sm:$0xf] %v200_v40  ;;  %v212_v45 = vld [vmem:[%s19526_s8 + $0xec] sm:$0xff]  }
  0x31   :  { %203 = vst [vmem:[#allocation9 + $0xd8] sm:$0xf] %v202_v41  ;;  %v208_v43 = vld [vmem:[%s19526_s8 + $0xe8] sm:$0xf]  ;;  %v210_v44 = vld [vmem:[%s19526_s8 + $0xe4] sm:$0xf] }
  0x32   :  { %205 = vst [vmem:[#allocation9 + $0xdc] sm:$0xff] %v204_v42   ;;  %209 = vst [vmem:[#allocation9 + $0xe4] sm:$0xf] %v208_v43  ;;  %v216_v46 = vld [vmem:[%s19526_s8 + $0xf8] sm:$0xf]  ;;  %v220_v48 = vld [vmem:[%s19526_s8 + $0xfc] sm:$0xff]  }
  0x33   :  { %211 = vst [vmem:[#allocation9 + $0xe8] sm:$0xf] %v210_v44  ;;  %v218_v47 = vld [vmem:[%s19526_s8 + $0xf4] sm:$0xf]  ;;  %213 = vst [vmem:[#allocation9 + $0xec] sm:$0xff] %v212_v45   ;;  %v228_v51 = vld [vmem:[%s19526_s8 + $0x10c] sm:$0xff]  }
  0x34   :  { %217 = vst [vmem:[#allocation9 + $0xf4] sm:$0xf] %v216_v46  ;;  %219 = vst [vmem:[#allocation9 + $0xf8] sm:$0xf] %v218_v47  ;;  %v224_v49 = vld [vmem:[%s19526_s8 + $0x108] sm:$0xf] }
  0x35   :  { %v226_v50 = vld [vmem:[%s19526_s8 + $0x104] sm:$0xf]  ;;  %221 = vst [vmem:[#allocation9 + $0xfc] sm:$0xff] %v220_v48   ;;  %225 = vst [vmem:[#allocation9 + $0x104] sm:$0xf] %v224_v49  ;;  %v236_v54 = vld [vmem:[%s19526_s8 + $0x11c] sm:$0xff]  }
  0x36   :  { %227 = vst [vmem:[#allocation9 + $0x108] sm:$0xf] %v226_v50  ;;  %v232_v52 = vld [vmem:[%s19526_s8 + $0x118] sm:$0xf]  ;;  %v234_v53 = vld [vmem:[%s19526_s8 + $0x114] sm:$0xf] }
  0x37   :  { %229 = vst [vmem:[#allocation9 + $0x10c] sm:$0xff] %v228_v51   ;;  %233 = vst [vmem:[#allocation9 + $0x114] sm:$0xf] %v232_v52  ;;  %v240_v55 = vld [vmem:[%s19526_s8 + $0x128] sm:$0xf]  ;;  %v244_v57 = vld [vmem:[%s19526_s8 + $0x12c] sm:$0xff]  }
  0x38   :  { %235 = vst [vmem:[#allocation9 + $0x118] sm:$0xf] %v234_v53  ;;  %v242_v56 = vld [vmem:[%s19526_s8 + $0x124] sm:$0xf]  ;;  %237 = vst [vmem:[#allocation9 + $0x11c] sm:$0xff] %v236_v54   ;;  %v252_v60 = vld [vmem:[%s19526_s8 + $0x13c] sm:$0xff]  }
  0x39   :  { %241 = vst [vmem:[#allocation9 + $0x124] sm:$0xf] %v240_v55  ;;  %243 = vst [vmem:[#allocation9 + $0x128] sm:$0xf] %v242_v56  ;;  %v248_v58 = vld [vmem:[%s19526_s8 + $0x138] sm:$0xf] }
  0x3a   :  { %v250_v59 = vld [vmem:[%s19526_s8 + $0x134] sm:$0xf]  ;;  %245 = vst [vmem:[#allocation9 + $0x12c] sm:$0xff] %v244_v57   ;;  %249 = vst [vmem:[#allocation9 + $0x134] sm:$0xf] %v248_v58  ;;  %v260_v63 = vld [vmem:[%s19526_s8 + $0x14c] sm:$0xff]  }
  0x3b   :  { %251 = vst [vmem:[#allocation9 + $0x138] sm:$0xf] %v250_v59  ;;  %v256_v61 = vld [vmem:[%s19526_s8 + $0x148] sm:$0xf]  ;;  %v258_v62 = vld [vmem:[%s19526_s8 + $0x144] sm:$0xf] }
  0x3c   :  { %253 = vst [vmem:[#allocation9 + $0x13c] sm:$0xff] %v252_v60   ;;  %257 = vst [vmem:[#allocation9 + $0x144] sm:$0xf] %v256_v61  ;;  %v264_v0 = vld [vmem:[%s19526_s8 + $0x158] sm:$0xf]  ;;  %v268_v2 = vld [vmem:[%s19526_s8 + $0x15c] sm:$0xff]  }
  0x3d   :  { %259 = vst [vmem:[#allocation9 + $0x148] sm:$0xf] %v258_v62  ;;  %v266_v1 = vld [vmem:[%s19526_s8 + $0x154] sm:$0xf]  ;;  %261 = vst [vmem:[#allocation9 + $0x14c] sm:$0xff] %v260_v63   ;;  %v276_v5 = vld [vmem:[%s19526_s8 + $0x16c] sm:$0xff]  }
  0x3e   :  { %265 = vst [vmem:[#allocation9 + $0x154] sm:$0xf] %v264_v0  ;;  %267 = vst [vmem:[#allocation9 + $0x158] sm:$0xf] %v266_v1  ;;  %v272_v3 = vld [vmem:[%s19526_s8 + $0x168] sm:$0xf] }
  0x3f   :  { %v274_v4 = vld [vmem:[%s19526_s8 + $0x164] sm:$0xf]  ;;  %269 = vst [vmem:[#allocation9 + $0x15c] sm:$0xff] %v268_v2   ;;  %273 = vst [vmem:[#allocation9 + $0x164] sm:$0xf] %v272_v3  ;;  %v284_v8 = vld [vmem:[%s19526_s8 + $0x17c] sm:$0xff]  }
  0x40   :  { %275 = vst [vmem:[#allocation9 + $0x168] sm:$0xf] %v274_v4  ;;  %v280_v6 = vld [vmem:[%s19526_s8 + $0x178] sm:$0xf]  ;;  %v282_v7 = vld [vmem:[%s19526_s8 + $0x174] sm:$0xf] }
  0x41   :  { %277 = vst [vmem:[#allocation9 + $0x16c] sm:$0xff] %v276_v5   ;;  %281 = vst [vmem:[#allocation9 + $0x174] sm:$0xf] %v280_v6  ;;  %v288_v9 = vld [vmem:[%s19526_s8 + $0x188] sm:$0xf]  ;;  %v292_v11 = vld [vmem:[%s19526_s8 + $0x18c] sm:$0xff]  }
  0x42   :  { %283 = vst [vmem:[#allocation9 + $0x178] sm:$0xf] %v282_v7  ;;  %v290_v10 = vld [vmem:[%s19526_s8 + $0x184] sm:$0xf]  ;;  %285 = vst [vmem:[#allocation9 + $0x17c] sm:$0xff] %v284_v8   ;;  %v300_v14 = vld [vmem:[%s19526_s8 + $0x19c] sm:$0xff]  }
  0x43   :  { %289 = vst [vmem:[#allocation9 + $0x184] sm:$0xf] %v288_v9  ;;  %291 = vst [vmem:[#allocation9 + $0x188] sm:$0xf] %v290_v10  ;;  %v296_v12 = vld [vmem:[%s19526_s8 + $0x198] sm:$0xf] }
  0x44   :  { %v298_v13 = vld [vmem:[%s19526_s8 + $0x194] sm:$0xf]  ;;  %293 = vst [vmem:[#allocation9 + $0x18c] sm:$0xff] %v292_v11   ;;  %297 = vst [vmem:[#allocation9 + $0x194] sm:$0xf] %v296_v12  ;;  %v308_v17 = vld [vmem:[%s19526_s8 + $0x1ac] sm:$0xff]  }
  0x45   :  { %299 = vst [vmem:[#allocation9 + $0x198] sm:$0xf] %v298_v13  ;;  %v304_v15 = vld [vmem:[%s19526_s8 + $0x1a8] sm:$0xf]  ;;  %v306_v16 = vld [vmem:[%s19526_s8 + $0x1a4] sm:$0xf] }
  0x46   :  { %301 = vst [vmem:[#allocation9 + $0x19c] sm:$0xff] %v300_v14   ;;  %305 = vst [vmem:[#allocation9 + $0x1a4] sm:$0xf] %v304_v15  ;;  %v312_v18 = vld [vmem:[%s19526_s8 + $0x1b8] sm:$0xf]  ;;  %v316_v20 = vld [vmem:[%s19526_s8 + $0x1bc] sm:$0xff]  }
  0x47   :  { %307 = vst [vmem:[#allocation9 + $0x1a8] sm:$0xf] %v306_v16  ;;  %v314_v19 = vld [vmem:[%s19526_s8 + $0x1b4] sm:$0xf]  ;;  %309 = vst [vmem:[#allocation9 + $0x1ac] sm:$0xff] %v308_v17   ;;  %v324_v23 = vld [vmem:[%s19526_s8 + $0x1cc] sm:$0xff]  }
  0x48   :  { %313 = vst [vmem:[#allocation9 + $0x1b4] sm:$0xf] %v312_v18  ;;  %315 = vst [vmem:[#allocation9 + $0x1b8] sm:$0xf] %v314_v19  ;;  %v320_v21 = vld [vmem:[%s19526_s8 + $0x1c8] sm:$0xf] }
  0x49   :  { %v322_v22 = vld [vmem:[%s19526_s8 + $0x1c4] sm:$0xf]  ;;  %317 = vst [vmem:[#allocation9 + $0x1bc] sm:$0xff] %v316_v20   ;;  %321 = vst [vmem:[#allocation9 + $0x1c4] sm:$0xf] %v320_v21  ;;  %v332_v26 = vld [vmem:[%s19526_s8 + $0x1dc] sm:$0xff]  }
  0x4a   :  { %323 = vst [vmem:[#allocation9 + $0x1c8] sm:$0xf] %v322_v22  ;;  %v328_v24 = vld [vmem:[%s19526_s8 + $0x1d8] sm:$0xf]  ;;  %v330_v25 = vld [vmem:[%s19526_s8 + $0x1d4] sm:$0xf] }
  0x4b   :  { %325 = vst [vmem:[#allocation9 + $0x1cc] sm:$0xff] %v324_v23   ;;  %329 = vst [vmem:[#allocation9 + $0x1d4] sm:$0xf] %v328_v24  ;;  %v336_v27 = vld [vmem:[%s19526_s8 + $0x1e8] sm:$0xf]  ;;  %v340_v29 = vld [vmem:[%s19526_s8 + $0x1ec] sm:$0xff]  }
  0x4c   :  { %331 = vst [vmem:[#allocation9 + $0x1d8] sm:$0xf] %v330_v25  ;;  %v338_v28 = vld [vmem:[%s19526_s8 + $0x1e4] sm:$0xf]  ;;  %333 = vst [vmem:[#allocation9 + $0x1dc] sm:$0xff] %v332_v26   ;;  %v348_v32 = vld [vmem:[%s19526_s8 + $0x1fc] sm:$0xff]  }
  0x4d   :  { %337 = vst [vmem:[#allocation9 + $0x1e4] sm:$0xf] %v336_v27  ;;  %339 = vst [vmem:[#allocation9 + $0x1e8] sm:$0xf] %v338_v28  ;;  %v344_v30 = vld [vmem:[%s19526_s8 + $0x1f8] sm:$0xf] }
  0x4e   :  { %v346_v31 = vld [vmem:[%s19526_s8 + $0x1f4] sm:$0xf]  ;;  %341 = vst [vmem:[#allocation9 + $0x1ec] sm:$0xff] %v340_v29   ;;  %345 = vst [vmem:[#allocation9 + $0x1f4] sm:$0xf] %v344_v30  ;;  %v356_v35 = vld [vmem:[%s19526_s8 + $0x20c] sm:$0xff]  }
  0x4f   :  { %347 = vst [vmem:[#allocation9 + $0x1f8] sm:$0xf] %v346_v31  ;;  %v352_v33 = vld [vmem:[%s19526_s8 + $0x208] sm:$0xf]  ;;  %v354_v34 = vld [vmem:[%s19526_s8 + $0x204] sm:$0xf] }
  0x50   :  { %349 = vst [vmem:[#allocation9 + $0x1fc] sm:$0xff] %v348_v32   ;;  %353 = vst [vmem:[#allocation9 + $0x204] sm:$0xf] %v352_v33  ;;  %v360_v36 = vld [vmem:[%s19526_s8 + $0x218] sm:$0xf]  ;;  %v364_v38 = vld [vmem:[%s19526_s8 + $0x21c] sm:$0xff]  }
  0x51   :  { %355 = vst [vmem:[#allocation9 + $0x208] sm:$0xf] %v354_v34  ;;  %v362_v37 = vld [vmem:[%s19526_s8 + $0x214] sm:$0xf]  ;;  %357 = vst [vmem:[#allocation9 + $0x20c] sm:$0xff] %v356_v35   ;;  %v372_v41 = vld [vmem:[%s19526_s8 + $0x22c] sm:$0xff]  }
  0x52   :  { %361 = vst [vmem:[#allocation9 + $0x214] sm:$0xf] %v360_v36  ;;  %363 = vst [vmem:[#allocation9 + $0x218] sm:$0xf] %v362_v37  ;;  %v368_v39 = vld [vmem:[%s19526_s8 + $0x228] sm:$0xf] }
  0x53   :  { %v370_v40 = vld [vmem:[%s19526_s8 + $0x224] sm:$0xf]  ;;  %365 = vst [vmem:[#allocation9 + $0x21c] sm:$0xff] %v364_v38   ;;  %369 = vst [vmem:[#allocation9 + $0x224] sm:$0xf] %v368_v39  ;;  %v380_v44 = vld [vmem:[%s19526_s8 + $0x23c] sm:$0xff]  }
  0x54   :  { %371 = vst [vmem:[#allocation9 + $0x228] sm:$0xf] %v370_v40  ;;  %v376_v42 = vld [vmem:[%s19526_s8 + $0x238] sm:$0xf]  ;;  %v378_v43 = vld [vmem:[%s19526_s8 + $0x234] sm:$0xf] }
  0x55   :  { %373 = vst [vmem:[#allocation9 + $0x22c] sm:$0xff] %v372_v41   ;;  %377 = vst [vmem:[#allocation9 + $0x234] sm:$0xf] %v376_v42  ;;  %v384_v45 = vld [vmem:[%s19526_s8 + $0x248] sm:$0xf]  ;;  %v388_v47 = vld [vmem:[%s19526_s8 + $0x24c] sm:$0xff]  }
  0x56   :  { %379 = vst [vmem:[#allocation9 + $0x238] sm:$0xf] %v378_v43  ;;  %v386_v46 = vld [vmem:[%s19526_s8 + $0x244] sm:$0xf]  ;;  %381 = vst [vmem:[#allocation9 + $0x23c] sm:$0xff] %v380_v44   ;;  %v396_v50 = vld [vmem:[%s19526_s8 + $0x25c] sm:$0xff]  }
  0x57   :  { %385 = vst [vmem:[#allocation9 + $0x244] sm:$0xf] %v384_v45  ;;  %387 = vst [vmem:[#allocation9 + $0x248] sm:$0xf] %v386_v46  ;;  %v392_v48 = vld [vmem:[%s19526_s8 + $0x258] sm:$0xf] }
  0x58   :  { %v394_v49 = vld [vmem:[%s19526_s8 + $0x254] sm:$0xf]  ;;  %389 = vst [vmem:[#allocation9 + $0x24c] sm:$0xff] %v388_v47   ;;  %393 = vst [vmem:[#allocation9 + $0x254] sm:$0xf] %v392_v48  ;;  %v404_v53 = vld [vmem:[%s19526_s8 + $0x26c] sm:$0xff]  }
  0x59   :  { %395 = vst [vmem:[#allocation9 + $0x258] sm:$0xf] %v394_v49  ;;  %v400_v51 = vld [vmem:[%s19526_s8 + $0x268] sm:$0xf]  ;;  %v402_v52 = vld [vmem:[%s19526_s8 + $0x264] sm:$0xf] }
  0x5a   :  { %397 = vst [vmem:[#allocation9 + $0x25c] sm:$0xff] %v396_v50   ;;  %401 = vst [vmem:[#allocation9 + $0x264] sm:$0xf] %v400_v51  ;;  %v408_v54 = vld [vmem:[%s19526_s8 + $0x278] sm:$0xf]  ;;  %v412_v56 = vld [vmem:[%s19526_s8 + $0x27c] sm:$0xff]  }
  0x5b   :  { %403 = vst [vmem:[#allocation9 + $0x268] sm:$0xf] %v402_v52  ;;  %v410_v55 = vld [vmem:[%s19526_s8 + $0x274] sm:$0xf]  ;;  %405 = vst [vmem:[#allocation9 + $0x26c] sm:$0xff] %v404_v53   ;;  %v420_v59 = vld [vmem:[%s19526_s8 + $0x28c] sm:$0xff]  }
  0x5c   :  { %409 = vst [vmem:[#allocation9 + $0x274] sm:$0xf] %v408_v54  ;;  %411 = vst [vmem:[#allocation9 + $0x278] sm:$0xf] %v410_v55  ;;  %v416_v57 = vld [vmem:[%s19526_s8 + $0x288] sm:$0xf] }
  0x5d   :  { %v418_v58 = vld [vmem:[%s19526_s8 + $0x284] sm:$0xf]  ;;  %413 = vst [vmem:[#allocation9 + $0x27c] sm:$0xff] %v412_v56   ;;  %417 = vst [vmem:[#allocation9 + $0x284] sm:$0xf] %v416_v57  ;;  %v428_v62 = vld [vmem:[%s19526_s8 + $0x29c] sm:$0xff]  }
  0x5e   :  { %419 = vst [vmem:[#allocation9 + $0x288] sm:$0xf] %v418_v58  ;;  %v424_v60 = vld [vmem:[%s19526_s8 + $0x298] sm:$0xf]  ;;  %v426_v61 = vld [vmem:[%s19526_s8 + $0x294] sm:$0xf] }
  0x5f   :  { %421 = vst [vmem:[#allocation9 + $0x28c] sm:$0xff] %v420_v59   ;;  %425 = vst [vmem:[#allocation9 + $0x294] sm:$0xf] %v424_v60  ;;  %v432_v63 = vld [vmem:[%s19526_s8 + $0x2a8] sm:$0xf]  ;;  %v436_v1 = vld [vmem:[%s19526_s8 + $0x2ac] sm:$0xff]  }
  0x60   :  { %427 = vst [vmem:[#allocation9 + $0x298] sm:$0xf] %v426_v61  ;;  %v434_v0 = vld [vmem:[%s19526_s8 + $0x2a4] sm:$0xf]  ;;  %429 = vst [vmem:[#allocation9 + $0x29c] sm:$0xff] %v428_v62   ;;  %v444_v4 = vld [vmem:[%s19526_s8 + $0x2bc] sm:$0xff]  }
  0x61   :  { %433 = vst [vmem:[#allocation9 + $0x2a4] sm:$0xf] %v432_v63  ;;  %435 = vst [vmem:[#allocation9 + $0x2a8] sm:$0xf] %v434_v0  ;;  %v440_v2 = vld [vmem:[%s19526_s8 + $0x2b8] sm:$0xf] }
  0x62   :  { %v442_v3 = vld [vmem:[%s19526_s8 + $0x2b4] sm:$0xf]  ;;  %437 = vst [vmem:[#allocation9 + $0x2ac] sm:$0xff] %v436_v1   ;;  %441 = vst [vmem:[#allocation9 + $0x2b4] sm:$0xf] %v440_v2  ;;  %v452_v7 = vld [vmem:[%s19526_s8 + $0x2cc] sm:$0xff]  }
  0x63   :  { %443 = vst [vmem:[#allocation9 + $0x2b8] sm:$0xf] %v442_v3  ;;  %v448_v5 = vld [vmem:[%s19526_s8 + $0x2c8] sm:$0xf]  ;;  %v450_v6 = vld [vmem:[%s19526_s8 + $0x2c4] sm:$0xf] }
  0x64   :  { %445 = vst [vmem:[#allocation9 + $0x2bc] sm:$0xff] %v444_v4   ;;  %449 = vst [vmem:[#allocation9 + $0x2c4] sm:$0xf] %v448_v5  ;;  %v456_v8 = vld [vmem:[%s19526_s8 + $0x2d8] sm:$0xf]  ;;  %v460_v10 = vld [vmem:[%s19526_s8 + $0x2dc] sm:$0xff]  }
  0x65   :  { %451 = vst [vmem:[#allocation9 + $0x2c8] sm:$0xf] %v450_v6  ;;  %v458_v9 = vld [vmem:[%s19526_s8 + $0x2d4] sm:$0xf]  ;;  %453 = vst [vmem:[#allocation9 + $0x2cc] sm:$0xff] %v452_v7   ;;  %v468_v13 = vld [vmem:[%s19526_s8 + $0x2ec] sm:$0xff]  }
  0x66   :  { %457 = vst [vmem:[#allocation9 + $0x2d4] sm:$0xf] %v456_v8  ;;  %459 = vst [vmem:[#allocation9 + $0x2d8] sm:$0xf] %v458_v9  ;;  %v464_v11 = vld [vmem:[%s19526_s8 + $0x2e8] sm:$0xf] }
  0x67   :  { %v466_v12 = vld [vmem:[%s19526_s8 + $0x2e4] sm:$0xf]  ;;  %461 = vst [vmem:[#allocation9 + $0x2dc] sm:$0xff] %v460_v10   ;;  %465 = vst [vmem:[#allocation9 + $0x2e4] sm:$0xf] %v464_v11  ;;  %v476_v16 = vld [vmem:[%s19526_s8 + $0x2fc] sm:$0xff]  }
  0x68   :  { %467 = vst [vmem:[#allocation9 + $0x2e8] sm:$0xf] %v466_v12  ;;  %v472_v14 = vld [vmem:[%s19526_s8 + $0x2f8] sm:$0xf]  ;;  %v474_v15 = vld [vmem:[%s19526_s8 + $0x2f4] sm:$0xf] }
  0x69   :  { %469 = vst [vmem:[#allocation9 + $0x2ec] sm:$0xff] %v468_v13   ;;  %473 = vst [vmem:[#allocation9 + $0x2f4] sm:$0xf] %v472_v14  ;;  %v480_v17 = vld [vmem:[%s19526_s8 + $0x308] sm:$0xf]  ;;  %v484_v19 = vld [vmem:[%s19526_s8 + $0x30c] sm:$0xff]  }
  0x6a   :  { %475 = vst [vmem:[#allocation9 + $0x2f8] sm:$0xf] %v474_v15  ;;  %v482_v18 = vld [vmem:[%s19526_s8 + $0x304] sm:$0xf]  ;;  %477 = vst [vmem:[#allocation9 + $0x2fc] sm:$0xff] %v476_v16   ;;  %v492_v22 = vld [vmem:[%s19526_s8 + $0x31c] sm:$0xff]  }
  0x6b   :  { %481 = vst [vmem:[#allocation9 + $0x304] sm:$0xf] %v480_v17  ;;  %483 = vst [vmem:[#allocation9 + $0x308] sm:$0xf] %v482_v18  ;;  %v488_v20 = vld [vmem:[%s19526_s8 + $0x318] sm:$0xf] }
  0x6c   :  { %v490_v21 = vld [vmem:[%s19526_s8 + $0x314] sm:$0xf]  ;;  %485 = vst [vmem:[#allocation9 + $0x30c] sm:$0xff] %v484_v19   ;;  %489 = vst [vmem:[#allocation9 + $0x314] sm:$0xf] %v488_v20  ;;  %v500_v25 = vld [vmem:[%s19526_s8 + $0x32c] sm:$0xff]  }
  0x6d   :  { %491 = vst [vmem:[#allocation9 + $0x318] sm:$0xf] %v490_v21  ;;  %v496_v23 = vld [vmem:[%s19526_s8 + $0x328] sm:$0xf]  ;;  %v498_v24 = vld [vmem:[%s19526_s8 + $0x324] sm:$0xf] }
  0x6e   :  { %493 = vst [vmem:[#allocation9 + $0x31c] sm:$0xff] %v492_v22   ;;  %497 = vst [vmem:[#allocation9 + $0x324] sm:$0xf] %v496_v23  ;;  %v504_v26 = vld [vmem:[%s19526_s8 + $0x338] sm:$0xf]  ;;  %v508_v28 = vld [vmem:[%s19526_s8 + $0x33c] sm:$0xff]  }
  0x6f   :  { %499 = vst [vmem:[#allocation9 + $0x328] sm:$0xf] %v498_v24  ;;  %v506_v27 = vld [vmem:[%s19526_s8 + $0x334] sm:$0xf]  ;;  %501 = vst [vmem:[#allocation9 + $0x32c] sm:$0xff] %v500_v25   ;;  %v516_v31 = vld [vmem:[%s19526_s8 + $0x34c] sm:$0xff]  }
  0x70   :  { %505 = vst [vmem:[#allocation9 + $0x334] sm:$0xf] %v504_v26  ;;  %507 = vst [vmem:[#allocation9 + $0x338] sm:$0xf] %v506_v27  ;;  %v512_v29 = vld [vmem:[%s19526_s8 + $0x348] sm:$0xf] }
  0x71   :  { %v514_v30 = vld [vmem:[%s19526_s8 + $0x344] sm:$0xf]  ;;  %509 = vst [vmem:[#allocation9 + $0x33c] sm:$0xff] %v508_v28   ;;  %513 = vst [vmem:[#allocation9 + $0x344] sm:$0xf] %v512_v29  ;;  %v524_v34 = vld [vmem:[%s19526_s8 + $0x35c] sm:$0xff]  }
  0x72   :  { %515 = vst [vmem:[#allocation9 + $0x348] sm:$0xf] %v514_v30  ;;  %v520_v32 = vld [vmem:[%s19526_s8 + $0x358] sm:$0xf]  ;;  %v522_v33 = vld [vmem:[%s19526_s8 + $0x354] sm:$0xf] }
  0x73   :  { %517 = vst [vmem:[#allocation9 + $0x34c] sm:$0xff] %v516_v31   ;;  %521 = vst [vmem:[#allocation9 + $0x354] sm:$0xf] %v520_v32  ;;  %v528_v35 = vld [vmem:[%s19526_s8 + $0x368] sm:$0xf]  ;;  %v532_v37 = vld [vmem:[%s19526_s8 + $0x36c] sm:$0xff]  }
  0x74   :  { %523 = vst [vmem:[#allocation9 + $0x358] sm:$0xf] %v522_v33  ;;  %v530_v36 = vld [vmem:[%s19526_s8 + $0x364] sm:$0xf]  ;;  %525 = vst [vmem:[#allocation9 + $0x35c] sm:$0xff] %v524_v34   ;;  %v540_v40 = vld [vmem:[%s19526_s8 + $0x37c] sm:$0xff]  }
  0x75   :  { %529 = vst [vmem:[#allocation9 + $0x364] sm:$0xf] %v528_v35  ;;  %531 = vst [vmem:[#allocation9 + $0x368] sm:$0xf] %v530_v36  ;;  %v536_v38 = vld [vmem:[%s19526_s8 + $0x378] sm:$0xf] }
  0x76   :  { %v538_v39 = vld [vmem:[%s19526_s8 + $0x374] sm:$0xf]  ;;  %533 = vst [vmem:[#allocation9 + $0x36c] sm:$0xff] %v532_v37   ;;  %537 = vst [vmem:[#allocation9 + $0x374] sm:$0xf] %v536_v38  ;;  %v548_v43 = vld [vmem:[%s19526_s8 + $0x38c] sm:$0xff]  }
  0x77   :  { %539 = vst [vmem:[#allocation9 + $0x378] sm:$0xf] %v538_v39  ;;  %v544_v41 = vld [vmem:[%s19526_s8 + $0x388] sm:$0xf]  ;;  %v546_v42 = vld [vmem:[%s19526_s8 + $0x384] sm:$0xf] }
  0x78   :  { %541 = vst [vmem:[#allocation9 + $0x37c] sm:$0xff] %v540_v40   ;;  %545 = vst [vmem:[#allocation9 + $0x384] sm:$0xf] %v544_v41  ;;  %v552_v44 = vld [vmem:[%s19526_s8 + $0x398] sm:$0xf]  ;;  %v556_v46 = vld [vmem:[%s19526_s8 + $0x39c] sm:$0xff]  }
  0x79   :  { %547 = vst [vmem:[#allocation9 + $0x388] sm:$0xf] %v546_v42  ;;  %v554_v45 = vld [vmem:[%s19526_s8 + $0x394] sm:$0xf]  ;;  %549 = vst [vmem:[#allocation9 + $0x38c] sm:$0xff] %v548_v43   ;;  %v564_v49 = vld [vmem:[%s19526_s8 + $0x3ac] sm:$0xff]  }
  0x7a   :  { %553 = vst [vmem:[#allocation9 + $0x394] sm:$0xf] %v552_v44  ;;  %555 = vst [vmem:[#allocation9 + $0x398] sm:$0xf] %v554_v45  ;;  %v560_v47 = vld [vmem:[%s19526_s8 + $0x3a8] sm:$0xf] }
  0x7b   :  { %v562_v48 = vld [vmem:[%s19526_s8 + $0x3a4] sm:$0xf]  ;;  %557 = vst [vmem:[#allocation9 + $0x39c] sm:$0xff] %v556_v46   ;;  %561 = vst [vmem:[#allocation9 + $0x3a4] sm:$0xf] %v560_v47  ;;  %v572_v52 = vld [vmem:[%s19526_s8 + $0x3bc] sm:$0xff]  }
  0x7c   :  { %563 = vst [vmem:[#allocation9 + $0x3a8] sm:$0xf] %v562_v48  ;;  %v568_v50 = vld [vmem:[%s19526_s8 + $0x3b8] sm:$0xf]  ;;  %v570_v51 = vld [vmem:[%s19526_s8 + $0x3b4] sm:$0xf] }
  0x7d   :  { %565 = vst [vmem:[#allocation9 + $0x3ac] sm:$0xff] %v564_v49   ;;  %569 = vst [vmem:[#allocation9 + $0x3b4] sm:$0xf] %v568_v50  ;;  %v576_v53 = vld [vmem:[%s19526_s8 + $0x3c8] sm:$0xf]  ;;  %v580_v55 = vld [vmem:[%s19526_s8 + $0x3cc] sm:$0xff]  }
  0x7e   :  { %571 = vst [vmem:[#allocation9 + $0x3b8] sm:$0xf] %v570_v51  ;;  %v578_v54 = vld [vmem:[%s19526_s8 + $0x3c4] sm:$0xf]  ;;  %573 = vst [vmem:[#allocation9 + $0x3bc] sm:$0xff] %v572_v52   ;;  %v588_v58 = vld [vmem:[%s19526_s8 + $0x3dc] sm:$0xff]  }
  0x7f   :  { %577 = vst [vmem:[#allocation9 + $0x3c4] sm:$0xf] %v576_v53  ;;  %579 = vst [vmem:[#allocation9 + $0x3c8] sm:$0xf] %v578_v54  ;;  %v584_v56 = vld [vmem:[%s19526_s8 + $0x3d8] sm:$0xf] }
  0x80   :  { %v586_v57 = vld [vmem:[%s19526_s8 + $0x3d4] sm:$0xf]  ;;  %581 = vst [vmem:[#allocation9 + $0x3cc] sm:$0xff] %v580_v55   ;;  %585 = vst [vmem:[#allocation9 + $0x3d4] sm:$0xf] %v584_v56  ;;  %v596_v61 = vld [vmem:[%s19526_s8 + $0x3ec] sm:$0xff]  }
  0x81   :  { %587 = vst [vmem:[#allocation9 + $0x3d8] sm:$0xf] %v586_v57  ;;  %v592_v59 = vld [vmem:[%s19526_s8 + $0x3e8] sm:$0xf]  ;;  %v594_v60 = vld [vmem:[%s19526_s8 + $0x3e4] sm:$0xf] }
  0x82   :  { %589 = vst [vmem:[#allocation9 + $0x3dc] sm:$0xff] %v588_v58   ;;  %593 = vst [vmem:[#allocation9 + $0x3e4] sm:$0xf] %v592_v59  ;;  %v600_v62 = vld [vmem:[%s19526_s8 + $0x3f8] sm:$0xf]  ;;  %v604_v0 = vld [vmem:[%s19526_s8 + $0x3fc] sm:$0xff]  }
  0x83   :  { %595 = vst [vmem:[#allocation9 + $0x3e8] sm:$0xf] %v594_v60  ;;  %v602_v63 = vld [vmem:[%s19526_s8 + $0x3f4] sm:$0xf]  ;;  %597 = vst [vmem:[#allocation9 + $0x3ec] sm:$0xff] %v596_v61   ;;  %v612_v3 = vld [vmem:[%s19526_s8 + $0x40c] sm:$0xff]  }
  0x84   :  { %601 = vst [vmem:[#allocation9 + $0x3f4] sm:$0xf] %v600_v62  ;;  %603 = vst [vmem:[#allocation9 + $0x3f8] sm:$0xf] %v602_v63  ;;  %v608_v1 = vld [vmem:[%s19526_s8 + $0x408] sm:$0xf] }
  0x85   :  { %v610_v2 = vld [vmem:[%s19526_s8 + $0x404] sm:$0xf]  ;;  %605 = vst [vmem:[#allocation9 + $0x3fc] sm:$0xff] %v604_v0   ;;  %609 = vst [vmem:[#allocation9 + $0x404] sm:$0xf] %v608_v1  ;;  %v620_v6 = vld [vmem:[%s19526_s8 + $0x41c] sm:$0xff]  }
  0x86   :  { %611 = vst [vmem:[#allocation9 + $0x408] sm:$0xf] %v610_v2  ;;  %v616_v4 = vld [vmem:[%s19526_s8 + $0x418] sm:$0xf]  ;;  %v618_v5 = vld [vmem:[%s19526_s8 + $0x414] sm:$0xf] }
  0x87   :  { %613 = vst [vmem:[#allocation9 + $0x40c] sm:$0xff] %v612_v3   ;;  %617 = vst [vmem:[#allocation9 + $0x414] sm:$0xf] %v616_v4  ;;  %v624_v7 = vld [vmem:[%s19526_s8 + $0x428] sm:$0xf]  ;;  %v628_v9 = vld [vmem:[%s19526_s8 + $0x42c] sm:$0xff]  }
  0x88   :  { %619 = vst [vmem:[#allocation9 + $0x418] sm:$0xf] %v618_v5  ;;  %v626_v8 = vld [vmem:[%s19526_s8 + $0x424] sm:$0xf]  ;;  %621 = vst [vmem:[#allocation9 + $0x41c] sm:$0xff] %v620_v6   ;;  %v636_v12 = vld [vmem:[%s19526_s8 + $0x43c] sm:$0xff]  }
  0x89   :  { %625 = vst [vmem:[#allocation9 + $0x424] sm:$0xf] %v624_v7  ;;  %627 = vst [vmem:[#allocation9 + $0x428] sm:$0xf] %v626_v8  ;;  %v632_v10 = vld [vmem:[%s19526_s8 + $0x438] sm:$0xf] }
  0x8a   :  { %v634_v11 = vld [vmem:[%s19526_s8 + $0x434] sm:$0xf]  ;;  %629 = vst [vmem:[#allocation9 + $0x42c] sm:$0xff] %v628_v9   ;;  %633 = vst [vmem:[#allocation9 + $0x434] sm:$0xf] %v632_v10  ;;  %v644_v15 = vld [vmem:[%s19526_s8 + $0x44c] sm:$0xff]  }
  0x8b   :  { %635 = vst [vmem:[#allocation9 + $0x438] sm:$0xf] %v634_v11  ;;  %v640_v13 = vld [vmem:[%s19526_s8 + $0x448] sm:$0xf]  ;;  %v642_v14 = vld [vmem:[%s19526_s8 + $0x444] sm:$0xf] }
  0x8c   :  { %637 = vst [vmem:[#allocation9 + $0x43c] sm:$0xff] %v636_v12   ;;  %641 = vst [vmem:[#allocation9 + $0x444] sm:$0xf] %v640_v13  ;;  %v648_v16 = vld [vmem:[%s19526_s8 + $0x458] sm:$0xf]  ;;  %v652_v18 = vld [vmem:[%s19526_s8 + $0x45c] sm:$0xff]  }
  0x8d   :  { %643 = vst [vmem:[#allocation9 + $0x448] sm:$0xf] %v642_v14  ;;  %v650_v17 = vld [vmem:[%s19526_s8 + $0x454] sm:$0xf]  ;;  %645 = vst [vmem:[#allocation9 + $0x44c] sm:$0xff] %v644_v15   ;;  %v660_v21 = vld [vmem:[%s19526_s8 + $0x46c] sm:$0xff]  }
  0x8e   :  { %649 = vst [vmem:[#allocation9 + $0x454] sm:$0xf] %v648_v16  ;;  %651 = vst [vmem:[#allocation9 + $0x458] sm:$0xf] %v650_v17  ;;  %v656_v19 = vld [vmem:[%s19526_s8 + $0x468] sm:$0xf] }
  0x8f   :  { %v658_v20 = vld [vmem:[%s19526_s8 + $0x464] sm:$0xf]  ;;  %653 = vst [vmem:[#allocation9 + $0x45c] sm:$0xff] %v652_v18   ;;  %657 = vst [vmem:[#allocation9 + $0x464] sm:$0xf] %v656_v19  ;;  %v668_v24 = vld [vmem:[%s19526_s8 + $0x47c] sm:$0xff]  }
  0x90   :  { %659 = vst [vmem:[#allocation9 + $0x468] sm:$0xf] %v658_v20  ;;  %v664_v22 = vld [vmem:[%s19526_s8 + $0x478] sm:$0xf]  ;;  %v666_v23 = vld [vmem:[%s19526_s8 + $0x474] sm:$0xf] }
  0x91   :  { %661 = vst [vmem:[#allocation9 + $0x46c] sm:$0xff] %v660_v21   ;;  %665 = vst [vmem:[#allocation9 + $0x474] sm:$0xf] %v664_v22  ;;  %v672_v25 = vld [vmem:[%s19526_s8 + $0x488] sm:$0xf]  ;;  %v676_v27 = vld [vmem:[%s19526_s8 + $0x48c] sm:$0xff]  }
  0x92   :  { %667 = vst [vmem:[#allocation9 + $0x478] sm:$0xf] %v666_v23  ;;  %v674_v26 = vld [vmem:[%s19526_s8 + $0x484] sm:$0xf]  ;;  %669 = vst [vmem:[#allocation9 + $0x47c] sm:$0xff] %v668_v24   ;;  %v684_v30 = vld [vmem:[%s19526_s8 + $0x49c] sm:$0xff]  }
  0x93   :  { %673 = vst [vmem:[#allocation9 + $0x484] sm:$0xf] %v672_v25  ;;  %675 = vst [vmem:[#allocation9 + $0x488] sm:$0xf] %v674_v26  ;;  %v680_v28 = vld [vmem:[%s19526_s8 + $0x498] sm:$0xf] }
  0x94   :  { %v682_v29 = vld [vmem:[%s19526_s8 + $0x494] sm:$0xf]  ;;  %677 = vst [vmem:[#allocation9 + $0x48c] sm:$0xff] %v676_v27   ;;  %681 = vst [vmem:[#allocation9 + $0x494] sm:$0xf] %v680_v28  ;;  %v692_v33 = vld [vmem:[%s19526_s8 + $0x4ac] sm:$0xff]  }
  0x95   :  { %683 = vst [vmem:[#allocation9 + $0x498] sm:$0xf] %v682_v29  ;;  %v688_v31 = vld [vmem:[%s19526_s8 + $0x4a8] sm:$0xf]  ;;  %v690_v32 = vld [vmem:[%s19526_s8 + $0x4a4] sm:$0xf] }
  0x96   :  { %685 = vst [vmem:[#allocation9 + $0x49c] sm:$0xff] %v684_v30   ;;  %689 = vst [vmem:[#allocation9 + $0x4a4] sm:$0xf] %v688_v31  ;;  %v696_v34 = vld [vmem:[%s19526_s8 + $0x4b8] sm:$0xf]  ;;  %v700_v36 = vld [vmem:[%s19526_s8 + $0x4bc] sm:$0xff]  }
  0x97   :  { %691 = vst [vmem:[#allocation9 + $0x4a8] sm:$0xf] %v690_v32  ;;  %v698_v35 = vld [vmem:[%s19526_s8 + $0x4b4] sm:$0xf]  ;;  %693 = vst [vmem:[#allocation9 + $0x4ac] sm:$0xff] %v692_v33   ;;  %v708_v39 = vld [vmem:[%s19526_s8 + $0x4cc] sm:$0xff]  }
  0x98   :  { %697 = vst [vmem:[#allocation9 + $0x4b4] sm:$0xf] %v696_v34  ;;  %699 = vst [vmem:[#allocation9 + $0x4b8] sm:$0xf] %v698_v35  ;;  %v704_v37 = vld [vmem:[%s19526_s8 + $0x4c8] sm:$0xf] }
  0x99   :  { %v706_v38 = vld [vmem:[%s19526_s8 + $0x4c4] sm:$0xf]  ;;  %701 = vst [vmem:[#allocation9 + $0x4bc] sm:$0xff] %v700_v36   ;;  %705 = vst [vmem:[#allocation9 + $0x4c4] sm:$0xf] %v704_v37  ;;  %v716_v42 = vld [vmem:[%s19526_s8 + $0x4dc] sm:$0xff]  }
  0x9a   :  { %707 = vst [vmem:[#allocation9 + $0x4c8] sm:$0xf] %v706_v38  ;;  %v712_v40 = vld [vmem:[%s19526_s8 + $0x4d8] sm:$0xf]  ;;  %v714_v41 = vld [vmem:[%s19526_s8 + $0x4d4] sm:$0xf] }
  0x9b   :  { %709 = vst [vmem:[#allocation9 + $0x4cc] sm:$0xff] %v708_v39   ;;  %713 = vst [vmem:[#allocation9 + $0x4d4] sm:$0xf] %v712_v40  ;;  %v720_v43 = vld [vmem:[%s19526_s8 + $0x4e8] sm:$0xf]  ;;  %v724_v45 = vld [vmem:[%s19526_s8 + $0x4ec] sm:$0xff]  }
  0x9c   :  { %715 = vst [vmem:[#allocation9 + $0x4d8] sm:$0xf] %v714_v41  ;;  %v722_v44 = vld [vmem:[%s19526_s8 + $0x4e4] sm:$0xf]  ;;  %717 = vst [vmem:[#allocation9 + $0x4dc] sm:$0xff] %v716_v42   ;;  %v732_v48 = vld [vmem:[%s19526_s8 + $0x4fc] sm:$0xff]  }
  0x9d   :  { %721 = vst [vmem:[#allocation9 + $0x4e4] sm:$0xf] %v720_v43  ;;  %723 = vst [vmem:[#allocation9 + $0x4e8] sm:$0xf] %v722_v44  ;;  %v728_v46 = vld [vmem:[%s19526_s8 + $0x4f8] sm:$0xf] }
  0x9e   :  { %v730_v47 = vld [vmem:[%s19526_s8 + $0x4f4] sm:$0xf]  ;;  %725 = vst [vmem:[#allocation9 + $0x4ec] sm:$0xff] %v724_v45   ;;  %729 = vst [vmem:[#allocation9 + $0x4f4] sm:$0xf] %v728_v46  ;;  %v740_v51 = vld [vmem:[%s19526_s8 + $0x50c] sm:$0xff]  }
  0x9f   :  { %731 = vst [vmem:[#allocation9 + $0x4f8] sm:$0xf] %v730_v47  ;;  %v736_v49 = vld [vmem:[%s19526_s8 + $0x508] sm:$0xf]  ;;  %v738_v50 = vld [vmem:[%s19526_s8 + $0x504] sm:$0xf] }
  0xa0   :  { %733 = vst [vmem:[#allocation9 + $0x4fc] sm:$0xff] %v732_v48   ;;  %737 = vst [vmem:[#allocation9 + $0x504] sm:$0xf] %v736_v49  ;;  %v744_v52 = vld [vmem:[%s19526_s8 + $0x518] sm:$0xf]  ;;  %v748_v54 = vld [vmem:[%s19526_s8 + $0x51c] sm:$0xff]  }
  0xa1   :  { %739 = vst [vmem:[#allocation9 + $0x508] sm:$0xf] %v738_v50  ;;  %v746_v53 = vld [vmem:[%s19526_s8 + $0x514] sm:$0xf]  ;;  %741 = vst [vmem:[#allocation9 + $0x50c] sm:$0xff] %v740_v51   ;;  %v756_v57 = vld [vmem:[%s19526_s8 + $0x52c] sm:$0xff]  }
  0xa2   :  { %745 = vst [vmem:[#allocation9 + $0x514] sm:$0xf] %v744_v52  ;;  %747 = vst [vmem:[#allocation9 + $0x518] sm:$0xf] %v746_v53  ;;  %v752_v55 = vld [vmem:[%s19526_s8 + $0x528] sm:$0xf] }
  0xa3   :  { %v754_v56 = vld [vmem:[%s19526_s8 + $0x524] sm:$0xf]  ;;  %749 = vst [vmem:[#allocation9 + $0x51c] sm:$0xff] %v748_v54   ;;  %753 = vst [vmem:[#allocation9 + $0x524] sm:$0xf] %v752_v55  ;;  %v764_v60 = vld [vmem:[%s19526_s8 + $0x53c] sm:$0xff]  }
  0xa4   :  { %755 = vst [vmem:[#allocation9 + $0x528] sm:$0xf] %v754_v56  ;;  %v760_v58 = vld [vmem:[%s19526_s8 + $0x538] sm:$0xf]  ;;  %v762_v59 = vld [vmem:[%s19526_s8 + $0x534] sm:$0xf] }
  0xa5   :  { %757 = vst [vmem:[#allocation9 + $0x52c] sm:$0xff] %v756_v57   ;;  %761 = vst [vmem:[#allocation9 + $0x534] sm:$0xf] %v760_v58  ;;  %v768_v61 = vld [vmem:[%s19526_s8 + $0x548] sm:$0xf]  ;;  %v772_v63 = vld [vmem:[%s19526_s8 + $0x54c] sm:$0xff]  }
  0xa6   :  { %763 = vst [vmem:[#allocation9 + $0x538] sm:$0xf] %v762_v59  ;;  %v770_v62 = vld [vmem:[%s19526_s8 + $0x544] sm:$0xf]  ;;  %765 = vst [vmem:[#allocation9 + $0x53c] sm:$0xff] %v764_v60   ;;  %v780_v2 = vld [vmem:[%s19526_s8 + $0x55c] sm:$0xff]  }
  0xa7   :  { %769 = vst [vmem:[#allocation9 + $0x544] sm:$0xf] %v768_v61  ;;  %771 = vst [vmem:[#allocation9 + $0x548] sm:$0xf] %v770_v62  ;;  %v776_v0 = vld [vmem:[%s19526_s8 + $0x558] sm:$0xf] }
  0xa8   :  { %v778_v1 = vld [vmem:[%s19526_s8 + $0x554] sm:$0xf]  ;;  %773 = vst [vmem:[#allocation9 + $0x54c] sm:$0xff] %v772_v63   ;;  %777 = vst [vmem:[#allocation9 + $0x554] sm:$0xf] %v776_v0  ;;  %v788_v5 = vld [vmem:[%s19526_s8 + $0x56c] sm:$0xff]  }
  0xa9   :  { %779 = vst [vmem:[#allocation9 + $0x558] sm:$0xf] %v778_v1  ;;  %v784_v3 = vld [vmem:[%s19526_s8 + $0x568] sm:$0xf]  ;;  %v786_v4 = vld [vmem:[%s19526_s8 + $0x564] sm:$0xf] }
  0xaa   :  { %781 = vst [vmem:[#allocation9 + $0x55c] sm:$0xff] %v780_v2   ;;  %785 = vst [vmem:[#allocation9 + $0x564] sm:$0xf] %v784_v3  ;;  %v792_v6 = vld [vmem:[%s19526_s8 + $0x578] sm:$0xf]  ;;  %v796_v8 = vld [vmem:[%s19526_s8 + $0x57c] sm:$0xff]  }
  0xab   :  { %787 = vst [vmem:[#allocation9 + $0x568] sm:$0xf] %v786_v4  ;;  %v794_v7 = vld [vmem:[%s19526_s8 + $0x574] sm:$0xf]  ;;  %789 = vst [vmem:[#allocation9 + $0x56c] sm:$0xff] %v788_v5   ;;  %v804_v11 = vld [vmem:[%s19526_s8 + $0x58c] sm:$0xff]  }
  0xac   :  { %793 = vst [vmem:[#allocation9 + $0x574] sm:$0xf] %v792_v6  ;;  %795 = vst [vmem:[#allocation9 + $0x578] sm:$0xf] %v794_v7  ;;  %v800_v9 = vld [vmem:[%s19526_s8 + $0x588] sm:$0xf] }
  0xad   :  { %v802_v10 = vld [vmem:[%s19526_s8 + $0x584] sm:$0xf]  ;;  %797 = vst [vmem:[#allocation9 + $0x57c] sm:$0xff] %v796_v8   ;;  %801 = vst [vmem:[#allocation9 + $0x584] sm:$0xf] %v800_v9  ;;  %v812_v14 = vld [vmem:[%s19526_s8 + $0x59c] sm:$0xff]  }
  0xae   :  { %803 = vst [vmem:[#allocation9 + $0x588] sm:$0xf] %v802_v10  ;;  %v808_v12 = vld [vmem:[%s19526_s8 + $0x598] sm:$0xf]  ;;  %v810_v13 = vld [vmem:[%s19526_s8 + $0x594] sm:$0xf] }
  0xaf   :  { %805 = vst [vmem:[#allocation9 + $0x58c] sm:$0xff] %v804_v11   ;;  %809 = vst [vmem:[#allocation9 + $0x594] sm:$0xf] %v808_v12  ;;  %v816_v15 = vld [vmem:[%s19526_s8 + $0x5a8] sm:$0xf]  ;;  %v820_v17 = vld [vmem:[%s19526_s8 + $0x5ac] sm:$0xff]  }
  0xb0   :  { %811 = vst [vmem:[#allocation9 + $0x598] sm:$0xf] %v810_v13  ;;  %v818_v16 = vld [vmem:[%s19526_s8 + $0x5a4] sm:$0xf]  ;;  %813 = vst [vmem:[#allocation9 + $0x59c] sm:$0xff] %v812_v14   ;;  %v828_v20 = vld [vmem:[%s19526_s8 + $0x5bc] sm:$0xff]  }
  0xb1   :  { %817 = vst [vmem:[#allocation9 + $0x5a4] sm:$0xf] %v816_v15  ;;  %819 = vst [vmem:[#allocation9 + $0x5a8] sm:$0xf] %v818_v16  ;;  %v824_v18 = vld [vmem:[%s19526_s8 + $0x5b8] sm:$0xf] }
  0xb2   :  { %v826_v19 = vld [vmem:[%s19526_s8 + $0x5b4] sm:$0xf]  ;;  %821 = vst [vmem:[#allocation9 + $0x5ac] sm:$0xff] %v820_v17   ;;  %825 = vst [vmem:[#allocation9 + $0x5b4] sm:$0xf] %v824_v18  ;;  %v836_v23 = vld [vmem:[%s19526_s8 + $0x5cc] sm:$0xff]  }
  0xb3   :  { %827 = vst [vmem:[#allocation9 + $0x5b8] sm:$0xf] %v826_v19  ;;  %v832_v21 = vld [vmem:[%s19526_s8 + $0x5c8] sm:$0xf]  ;;  %v834_v22 = vld [vmem:[%s19526_s8 + $0x5c4] sm:$0xf] }
  0xb4   :  { %829 = vst [vmem:[#allocation9 + $0x5bc] sm:$0xff] %v828_v20   ;;  %833 = vst [vmem:[#allocation9 + $0x5c4] sm:$0xf] %v832_v21  ;;  %v840_v24 = vld [vmem:[%s19526_s8 + $0x5d8] sm:$0xf]  ;;  %v844_v26 = vld [vmem:[%s19526_s8 + $0x5dc] sm:$0xff]  }
  0xb5   :  { %835 = vst [vmem:[#allocation9 + $0x5c8] sm:$0xf] %v834_v22  ;;  %v842_v25 = vld [vmem:[%s19526_s8 + $0x5d4] sm:$0xf]  ;;  %837 = vst [vmem:[#allocation9 + $0x5cc] sm:$0xff] %v836_v23   ;;  %v852_v29 = vld [vmem:[%s19526_s8 + $0x5ec] sm:$0xff]  }
  0xb6   :  { %841 = vst [vmem:[#allocation9 + $0x5d4] sm:$0xf] %v840_v24  ;;  %843 = vst [vmem:[#allocation9 + $0x5d8] sm:$0xf] %v842_v25  ;;  %v848_v27 = vld [vmem:[%s19526_s8 + $0x5e8] sm:$0xf] }
  0xb7   :  { %v850_v28 = vld [vmem:[%s19526_s8 + $0x5e4] sm:$0xf]  ;;  %845 = vst [vmem:[#allocation9 + $0x5dc] sm:$0xff] %v844_v26   ;;  %849 = vst [vmem:[#allocation9 + $0x5e4] sm:$0xf] %v848_v27  ;;  %v860_v32 = vld [vmem:[%s19526_s8 + $0x5fc] sm:$0xff]  }
  0xb8   :  { %851 = vst [vmem:[#allocation9 + $0x5e8] sm:$0xf] %v850_v28  ;;  %v856_v30 = vld [vmem:[%s19526_s8 + $0x5f8] sm:$0xf]  ;;  %v858_v31 = vld [vmem:[%s19526_s8 + $0x5f4] sm:$0xf] }
  0xb9   :  { %853 = vst [vmem:[#allocation9 + $0x5ec] sm:$0xff] %v852_v29   ;;  %857 = vst [vmem:[#allocation9 + $0x5f4] sm:$0xf] %v856_v30  ;;  %v864_v33 = vld [vmem:[%s19526_s8 + $0x608] sm:$0xf]  ;;  %v868_v35 = vld [vmem:[%s19526_s8 + $0x60c] sm:$0xff]  }
  0xba   :  { %859 = vst [vmem:[#allocation9 + $0x5f8] sm:$0xf] %v858_v31  ;;  %v866_v34 = vld [vmem:[%s19526_s8 + $0x604] sm:$0xf]  ;;  %861 = vst [vmem:[#allocation9 + $0x5fc] sm:$0xff] %v860_v32   ;;  %v876_v38 = vld [vmem:[%s19526_s8 + $0x61c] sm:$0xff]  }
  0xbb   :  { %865 = vst [vmem:[#allocation9 + $0x604] sm:$0xf] %v864_v33  ;;  %867 = vst [vmem:[#allocation9 + $0x608] sm:$0xf] %v866_v34  ;;  %v872_v36 = vld [vmem:[%s19526_s8 + $0x618] sm:$0xf] }
  0xbc   :  { %v874_v37 = vld [vmem:[%s19526_s8 + $0x614] sm:$0xf]  ;;  %869 = vst [vmem:[#allocation9 + $0x60c] sm:$0xff] %v868_v35   ;;  %873 = vst [vmem:[#allocation9 + $0x614] sm:$0xf] %v872_v36  ;;  %v884_v41 = vld [vmem:[%s19526_s8 + $0x62c] sm:$0xff]  }
  0xbd   :  { %875 = vst [vmem:[#allocation9 + $0x618] sm:$0xf] %v874_v37  ;;  %v880_v39 = vld [vmem:[%s19526_s8 + $0x628] sm:$0xf]  ;;  %v882_v40 = vld [vmem:[%s19526_s8 + $0x624] sm:$0xf] }
  0xbe   :  { %877 = vst [vmem:[#allocation9 + $0x61c] sm:$0xff] %v876_v38   ;;  %881 = vst [vmem:[#allocation9 + $0x624] sm:$0xf] %v880_v39  ;;  %v888_v42 = vld [vmem:[%s19526_s8 + $0x638] sm:$0xf]  ;;  %v892_v44 = vld [vmem:[%s19526_s8 + $0x63c] sm:$0xff]  }
  0xbf   :  { %883 = vst [vmem:[#allocation9 + $0x628] sm:$0xf] %v882_v40  ;;  %v890_v43 = vld [vmem:[%s19526_s8 + $0x634] sm:$0xf]  ;;  %885 = vst [vmem:[#allocation9 + $0x62c] sm:$0xff] %v884_v41   ;;  %v900_v47 = vld [vmem:[%s19526_s8 + $0x64c] sm:$0xff]  }
  0xc0   :  { %889 = vst [vmem:[#allocation9 + $0x634] sm:$0xf] %v888_v42  ;;  %891 = vst [vmem:[#allocation9 + $0x638] sm:$0xf] %v890_v43  ;;  %v896_v45 = vld [vmem:[%s19526_s8 + $0x648] sm:$0xf] }
  0xc1   :  { %v898_v46 = vld [vmem:[%s19526_s8 + $0x644] sm:$0xf]  ;;  %893 = vst [vmem:[#allocation9 + $0x63c] sm:$0xff] %v892_v44   ;;  %897 = vst [vmem:[#allocation9 + $0x644] sm:$0xf] %v896_v45  ;;  %v908_v50 = vld [vmem:[%s19526_s8 + $0x65c] sm:$0xff]  }
  0xc2   :  { %899 = vst [vmem:[#allocation9 + $0x648] sm:$0xf] %v898_v46  ;;  %v904_v48 = vld [vmem:[%s19526_s8 + $0x658] sm:$0xf]  ;;  %v906_v49 = vld [vmem:[%s19526_s8 + $0x654] sm:$0xf] }
  0xc3   :  { %901 = vst [vmem:[#allocation9 + $0x64c] sm:$0xff] %v900_v47   ;;  %905 = vst [vmem:[#allocation9 + $0x654] sm:$0xf] %v904_v48  ;;  %v912_v51 = vld [vmem:[%s19526_s8 + $0x668] sm:$0xf]  ;;  %v916_v53 = vld [vmem:[%s19526_s8 + $0x66c] sm:$0xff]  }
  0xc4   :  { %907 = vst [vmem:[#allocation9 + $0x658] sm:$0xf] %v906_v49  ;;  %v914_v52 = vld [vmem:[%s19526_s8 + $0x664] sm:$0xf]  ;;  %909 = vst [vmem:[#allocation9 + $0x65c] sm:$0xff] %v908_v50   ;;  %v924_v56 = vld [vmem:[%s19526_s8 + $0x67c] sm:$0xff]  }
  0xc5   :  { %913 = vst [vmem:[#allocation9 + $0x664] sm:$0xf] %v912_v51  ;;  %915 = vst [vmem:[#allocation9 + $0x668] sm:$0xf] %v914_v52  ;;  %v920_v54 = vld [vmem:[%s19526_s8 + $0x678] sm:$0xf] }
  0xc6   :  { %v922_v55 = vld [vmem:[%s19526_s8 + $0x674] sm:$0xf]  ;;  %917 = vst [vmem:[#allocation9 + $0x66c] sm:$0xff] %v916_v53   ;;  %921 = vst [vmem:[#allocation9 + $0x674] sm:$0xf] %v920_v54  ;;  %v932_v59 = vld [vmem:[%s19526_s8 + $0x68c] sm:$0xff]  }
  0xc7   :  { %923 = vst [vmem:[#allocation9 + $0x678] sm:$0xf] %v922_v55  ;;  %v928_v57 = vld [vmem:[%s19526_s8 + $0x688] sm:$0xf]  ;;  %v930_v58 = vld [vmem:[%s19526_s8 + $0x684] sm:$0xf] }
  0xc8   :  { %925 = vst [vmem:[#allocation9 + $0x67c] sm:$0xff] %v924_v56   ;;  %929 = vst [vmem:[#allocation9 + $0x684] sm:$0xf] %v928_v57  ;;  %v936_v60 = vld [vmem:[%s19526_s8 + $0x698] sm:$0xf]  ;;  %v940_v62 = vld [vmem:[%s19526_s8 + $0x69c] sm:$0xff]  }
  0xc9   :  { %931 = vst [vmem:[#allocation9 + $0x688] sm:$0xf] %v930_v58  ;;  %v938_v61 = vld [vmem:[%s19526_s8 + $0x694] sm:$0xf]  ;;  %933 = vst [vmem:[#allocation9 + $0x68c] sm:$0xff] %v932_v59   ;;  %v948_v1 = vld [vmem:[%s19526_s8 + $0x6ac] sm:$0xff]  }
  0xca   :  { %937 = vst [vmem:[#allocation9 + $0x694] sm:$0xf] %v936_v60  ;;  %939 = vst [vmem:[#allocation9 + $0x698] sm:$0xf] %v938_v61  ;;  %v944_v63 = vld [vmem:[%s19526_s8 + $0x6a8] sm:$0xf] }
  0xcb   :  { %v946_v0 = vld [vmem:[%s19526_s8 + $0x6a4] sm:$0xf]  ;;  %941 = vst [vmem:[#allocation9 + $0x69c] sm:$0xff] %v940_v62   ;;  %945 = vst [vmem:[#allocation9 + $0x6a4] sm:$0xf] %v944_v63  ;;  %v956_v4 = vld [vmem:[%s19526_s8 + $0x6bc] sm:$0xff]  }
  0xcc   :  { %947 = vst [vmem:[#allocation9 + $0x6a8] sm:$0xf] %v946_v0  ;;  %v952_v2 = vld [vmem:[%s19526_s8 + $0x6b8] sm:$0xf]  ;;  %v954_v3 = vld [vmem:[%s19526_s8 + $0x6b4] sm:$0xf] }
  0xcd   :  { %949 = vst [vmem:[#allocation9 + $0x6ac] sm:$0xff] %v948_v1   ;;  %953 = vst [vmem:[#allocation9 + $0x6b4] sm:$0xf] %v952_v2  ;;  %v960_v5 = vld [vmem:[%s19526_s8 + $0x6c8] sm:$0xf]  ;;  %v964_v7 = vld [vmem:[%s19526_s8 + $0x6cc] sm:$0xff]  }
  0xce   :  { %955 = vst [vmem:[#allocation9 + $0x6b8] sm:$0xf] %v954_v3  ;;  %v962_v6 = vld [vmem:[%s19526_s8 + $0x6c4] sm:$0xf]  ;;  %957 = vst [vmem:[#allocation9 + $0x6bc] sm:$0xff] %v956_v4   ;;  %v972_v10 = vld [vmem:[%s19526_s8 + $0x6dc] sm:$0xff]  }
  0xcf   :  { %961 = vst [vmem:[#allocation9 + $0x6c4] sm:$0xf] %v960_v5  ;;  %963 = vst [vmem:[#allocation9 + $0x6c8] sm:$0xf] %v962_v6  ;;  %v968_v8 = vld [vmem:[%s19526_s8 + $0x6d8] sm:$0xf] }
  0xd0   :  { %v970_v9 = vld [vmem:[%s19526_s8 + $0x6d4] sm:$0xf]  ;;  %965 = vst [vmem:[#allocation9 + $0x6cc] sm:$0xff] %v964_v7   ;;  %969 = vst [vmem:[#allocation9 + $0x6d4] sm:$0xf] %v968_v8  ;;  %v980_v13 = vld [vmem:[%s19526_s8 + $0x6ec] sm:$0xff]  }
  0xd1   :  { %971 = vst [vmem:[#allocation9 + $0x6d8] sm:$0xf] %v970_v9  ;;  %v976_v11 = vld [vmem:[%s19526_s8 + $0x6e8] sm:$0xf]  ;;  %v978_v12 = vld [vmem:[%s19526_s8 + $0x6e4] sm:$0xf] }
  0xd2   :  { %973 = vst [vmem:[#allocation9 + $0x6dc] sm:$0xff] %v972_v10   ;;  %977 = vst [vmem:[#allocation9 + $0x6e4] sm:$0xf] %v976_v11  ;;  %v984_v14 = vld [vmem:[%s19526_s8 + $0x6f8] sm:$0xf]  ;;  %v988_v16 = vld [vmem:[%s19526_s8 + $0x6fc] sm:$0xff]  }
  0xd3   :  { %979 = vst [vmem:[#allocation9 + $0x6e8] sm:$0xf] %v978_v12  ;;  %v986_v15 = vld [vmem:[%s19526_s8 + $0x6f4] sm:$0xf]  ;;  %981 = vst [vmem:[#allocation9 + $0x6ec] sm:$0xff] %v980_v13   ;;  %v996_v19 = vld [vmem:[%s19526_s8 + $0x70c] sm:$0xff]  }
  0xd4   :  { %985 = vst [vmem:[#allocation9 + $0x6f4] sm:$0xf] %v984_v14  ;;  %987 = vst [vmem:[#allocation9 + $0x6f8] sm:$0xf] %v986_v15  ;;  %v992_v17 = vld [vmem:[%s19526_s8 + $0x708] sm:$0xf] }
  0xd5   :  { %v994_v18 = vld [vmem:[%s19526_s8 + $0x704] sm:$0xf]  ;;  %989 = vst [vmem:[#allocation9 + $0x6fc] sm:$0xff] %v988_v16   ;;  %993 = vst [vmem:[#allocation9 + $0x704] sm:$0xf] %v992_v17  ;;  %v1004_v22 = vld [vmem:[%s19526_s8 + $0x71c] sm:$0xff]  }
  0xd6   :  { %995 = vst [vmem:[#allocation9 + $0x708] sm:$0xf] %v994_v18  ;;  %v1000_v20 = vld [vmem:[%s19526_s8 + $0x718] sm:$0xf]  ;;  %v1002_v21 = vld [vmem:[%s19526_s8 + $0x714] sm:$0xf] }
  0xd7   :  { %997 = vst [vmem:[#allocation9 + $0x70c] sm:$0xff] %v996_v19   ;;  %1001 = vst [vmem:[#allocation9 + $0x714] sm:$0xf] %v1000_v20  ;;  %v1008_v23 = vld [vmem:[%s19526_s8 + $0x728] sm:$0xf]  ;;  %v1012_v25 = vld [vmem:[%s19526_s8 + $0x72c] sm:$0xff]  }
  0xd8   :  { %1003 = vst [vmem:[#allocation9 + $0x718] sm:$0xf] %v1002_v21  ;;  %v1010_v24 = vld [vmem:[%s19526_s8 + $0x724] sm:$0xf]  ;;  %1005 = vst [vmem:[#allocation9 + $0x71c] sm:$0xff] %v1004_v22   ;;  %v1020_v28 = vld [vmem:[%s19526_s8 + $0x73c] sm:$0xff]  }
  0xd9   :  { %1009 = vst [vmem:[#allocation9 + $0x724] sm:$0xf] %v1008_v23  ;;  %1011 = vst [vmem:[#allocation9 + $0x728] sm:$0xf] %v1010_v24  ;;  %v1016_v26 = vld [vmem:[%s19526_s8 + $0x738] sm:$0xf] }
  0xda   :  { %v1018_v27 = vld [vmem:[%s19526_s8 + $0x734] sm:$0xf]  ;;  %1013 = vst [vmem:[#allocation9 + $0x72c] sm:$0xff] %v1012_v25   ;;  %1017 = vst [vmem:[#allocation9 + $0x734] sm:$0xf] %v1016_v26  ;;  %v1028_v31 = vld [vmem:[%s19526_s8 + $0x74c] sm:$0xff]  }
  0xdb   :  { %1019 = vst [vmem:[#allocation9 + $0x738] sm:$0xf] %v1018_v27  ;;  %v1024_v29 = vld [vmem:[%s19526_s8 + $0x748] sm:$0xf]  ;;  %v1026_v30 = vld [vmem:[%s19526_s8 + $0x744] sm:$0xf] }
  0xdc   :  { %1021 = vst [vmem:[#allocation9 + $0x73c] sm:$0xff] %v1020_v28   ;;  %1025 = vst [vmem:[#allocation9 + $0x744] sm:$0xf] %v1024_v29  ;;  %v1032_v32 = vld [vmem:[%s19526_s8 + $0x758] sm:$0xf]  ;;  %v1036_v34 = vld [vmem:[%s19526_s8 + $0x75c] sm:$0xff]  }
  0xdd   :  { %1027 = vst [vmem:[#allocation9 + $0x748] sm:$0xf] %v1026_v30  ;;  %v1034_v33 = vld [vmem:[%s19526_s8 + $0x754] sm:$0xf]  ;;  %1029 = vst [vmem:[#allocation9 + $0x74c] sm:$0xff] %v1028_v31   ;;  %v1044_v37 = vld [vmem:[%s19526_s8 + $0x76c] sm:$0xff]  }
  0xde   :  { %1033 = vst [vmem:[#allocation9 + $0x754] sm:$0xf] %v1032_v32  ;;  %1035 = vst [vmem:[#allocation9 + $0x758] sm:$0xf] %v1034_v33  ;;  %v1040_v35 = vld [vmem:[%s19526_s8 + $0x768] sm:$0xf] }
  0xdf   :  { %v1042_v36 = vld [vmem:[%s19526_s8 + $0x764] sm:$0xf]  ;;  %1037 = vst [vmem:[#allocation9 + $0x75c] sm:$0xff] %v1036_v34   ;;  %1041 = vst [vmem:[#allocation9 + $0x764] sm:$0xf] %v1040_v35  ;;  %v1052_v40 = vld [vmem:[%s19526_s8 + $0x77c] sm:$0xff]  }
  0xe0   :  { %1043 = vst [vmem:[#allocation9 + $0x768] sm:$0xf] %v1042_v36  ;;  %v1048_v38 = vld [vmem:[%s19526_s8 + $0x778] sm:$0xf]  ;;  %v1050_v39 = vld [vmem:[%s19526_s8 + $0x774] sm:$0xf] }
  0xe1   :  { %1045 = vst [vmem:[#allocation9 + $0x76c] sm:$0xff] %v1044_v37   ;;  %1049 = vst [vmem:[#allocation9 + $0x774] sm:$0xf] %v1048_v38  ;;  %v1056_v41 = vld [vmem:[%s19526_s8 + $0x788] sm:$0xf]  ;;  %v1060_v43 = vld [vmem:[%s19526_s8 + $0x78c] sm:$0xff]  }
  0xe2   :  { %1051 = vst [vmem:[#allocation9 + $0x778] sm:$0xf] %v1050_v39  ;;  %v1058_v42 = vld [vmem:[%s19526_s8 + $0x784] sm:$0xf]  ;;  %1053 = vst [vmem:[#allocation9 + $0x77c] sm:$0xff] %v1052_v40   ;;  %v1068_v46 = vld [vmem:[%s19526_s8 + $0x79c] sm:$0xff]  }
  0xe3   :  { %1057 = vst [vmem:[#allocation9 + $0x784] sm:$0xf] %v1056_v41  ;;  %1059 = vst [vmem:[#allocation9 + $0x788] sm:$0xf] %v1058_v42  ;;  %v1064_v44 = vld [vmem:[%s19526_s8 + $0x798] sm:$0xf] }
  0xe4   :  { %v1066_v45 = vld [vmem:[%s19526_s8 + $0x794] sm:$0xf]  ;;  %1061 = vst [vmem:[#allocation9 + $0x78c] sm:$0xff] %v1060_v43   ;;  %1065 = vst [vmem:[#allocation9 + $0x794] sm:$0xf] %v1064_v44  ;;  %v1076_v49 = vld [vmem:[%s19526_s8 + $0x7ac] sm:$0xff]  }
  0xe5   :  { %1067 = vst [vmem:[#allocation9 + $0x798] sm:$0xf] %v1066_v45  ;;  %v1072_v47 = vld [vmem:[%s19526_s8 + $0x7a8] sm:$0xf]  ;;  %v1074_v48 = vld [vmem:[%s19526_s8 + $0x7a4] sm:$0xf] }
  0xe6   :  { %1069 = vst [vmem:[#allocation9 + $0x79c] sm:$0xff] %v1068_v46   ;;  %1073 = vst [vmem:[#allocation9 + $0x7a4] sm:$0xf] %v1072_v47  ;;  %v1080_v50 = vld [vmem:[%s19526_s8 + $0x7b8] sm:$0xf]  ;;  %v1084_v52 = vld [vmem:[%s19526_s8 + $0x7bc] sm:$0xff]  }
  0xe7   :  { %1075 = vst [vmem:[#allocation9 + $0x7a8] sm:$0xf] %v1074_v48  ;;  %v1082_v51 = vld [vmem:[%s19526_s8 + $0x7b4] sm:$0xf]  ;;  %1077 = vst [vmem:[#allocation9 + $0x7ac] sm:$0xff] %v1076_v49   ;;  %v1092_v55 = vld [vmem:[%s19526_s8 + $0x7cc] sm:$0xff]  }
  0xe8   :  { %1081 = vst [vmem:[#allocation9 + $0x7b4] sm:$0xf] %v1080_v50  ;;  %1083 = vst [vmem:[#allocation9 + $0x7b8] sm:$0xf] %v1082_v51  ;;  %v1088_v53 = vld [vmem:[%s19526_s8 + $0x7c8] sm:$0xf] }
  0xe9   :  { %v1090_v54 = vld [vmem:[%s19526_s8 + $0x7c4] sm:$0xf]  ;;  %1085 = vst [vmem:[#allocation9 + $0x7bc] sm:$0xff] %v1084_v52   ;;  %1089 = vst [vmem:[#allocation9 + $0x7c4] sm:$0xf] %v1088_v53  ;;  %v1100_v58 = vld [vmem:[%s19526_s8 + $0x7dc] sm:$0xff]  }
  0xea   :  { %1091 = vst [vmem:[#allocation9 + $0x7c8] sm:$0xf] %v1090_v54  ;;  %v1096_v56 = vld [vmem:[%s19526_s8 + $0x7d8] sm:$0xf]  ;;  %v1098_v57 = vld [vmem:[%s19526_s8 + $0x7d4] sm:$0xf] }
  0xeb   :  { %1093 = vst [vmem:[#allocation9 + $0x7cc] sm:$0xff] %v1092_v55   ;;  %1097 = vst [vmem:[#allocation9 + $0x7d4] sm:$0xf] %v1096_v56  ;;  %v1104_v59 = vld [vmem:[%s19526_s8 + $0x7e8] sm:$0xf]  ;;  %v1108_v61 = vld [vmem:[%s19526_s8 + $0x7ec] sm:$0xff]  }
  0xec   :  { %1099 = vst [vmem:[#allocation9 + $0x7d8] sm:$0xf] %v1098_v57  ;;  %v1106_v60 = vld [vmem:[%s19526_s8 + $0x7e4] sm:$0xf]  ;;  %1101 = vst [vmem:[#allocation9 + $0x7dc] sm:$0xff] %v1100_v58  }
  0xed   :  { %1105 = vst [vmem:[#allocation9 + $0x7e4] sm:$0xf] %v1104_v59  ;;  %1107 = vst [vmem:[#allocation9 + $0x7e8] sm:$0xf] %v1106_v60  ;;  %v1112_v62 = vld [vmem:[%s19526_s8 + $0x7f8] sm:$0xf] }
  0xee   :  { %v1114_v63 = vld [vmem:[%s19526_s8 + $0x7f4] sm:$0xf]  ;;  %1109 = vst [vmem:[#allocation9 + $0x7ec] sm:$0xff] %v1108_v61   ;;  %1113 = vst [vmem:[#allocation9 + $0x7f4] sm:$0xf] %v1112_v62 }
  0xef   :  { %1115 = vst [vmem:[#allocation9 + $0x7f8] sm:$0xf] %v1114_v63  ;;  %v1116_v0 = vld [vmem:[%s19526_s8 + $0x7fc] sm:$0xf] }
  0xf0   :  { %1117 = vst [vmem:[#allocation9 + $0x7fc] sm:$0xf] %v1116_v0 }
  0xf1   :  { %4253 = vsyncadd [#allocation11], 32768  ;;  %s4259_s21 = sld [smem:[#allocation0]]   ;;  %s15187_s1 = smov [#allocation10]   ;;  %v15188_v1 = vmov 0   ;;  %v19543_v2 = vmov 0.0|0.0  }
  0xf2   :  { %s4267_s23 = sshll.u32 %s15187_s1, 4  ;;  %6708 = vmatprep.subr.bf16.mxu0 %v15188_v1  ;;  %s15189_s24 = smov 1152   ;;  %6740 = vmatprep.mubr.bf16.mxu0 %v19543_v2  ;;  %v15197_v3 = vmov 0.0   ;;  %vm4619_vm0 = vcmask 23552   ;;  %vm8217_vm1 = vcmask 261120   ;;  %vm9888_vm2 = vcmask 523264   ;;  %s4268_s23 = int_to_ptr.vmem [resolvable:$true] %s4267_s23 }
  0xf3   :  { %4271 = sst [smem:[#allocation18]] %s15189_s24  ;;  %s15190_s2 = smov 9   ;;  %vm11393_vm3 = vcmask 1041409   ;;  %vm11395_vm4 = vcmask 1043459   ;;  %vm11397_vm5 = vcmask 1045509   ;;  %vm11399_vm6 = vcmask 1047559  }
  0xf4   :  { %4273 = sst [smem:[#allocation18 + $0x1]] %s15189_s24  ;;  %s15192_s25 = smov 128  }
  0xf5   :  { %4275 = sst [smem:[#allocation18 + $0x2]] %s15190_s2  ;;  %s15193_s26 = smov 2  }
  0xf6   :  { %4277 = sst [smem:[#allocation18 + $0x3]] %s15185_s4  ;;  %s15194_s6 = smov 576  }
  0xf7   :  { %s13361_s8 = sshll.u32 %s4259_s21, 26  ;;  %4279 = sst [smem:[#allocation18 + $0x4]] %s15192_s25 }
  0xf8   :  { %s13362_s3 = sadd.s32 134217728, %s13361_s8  ;;  %4281 = sst [smem:[#allocation18 + $0x5]] %s15193_s26 }
  0xf9   :  { %4285 = sst [smem:[#allocation18 + $0x7]] %s15185_s4  ;;  %s15195_s22 = smov [#allocation11 + $0x1]  }
  0xfa   :  { %4283 = sst [smem:[#allocation18 + $0x6]] %s15194_s6  ;;  %s15196_s27 = smov [#allocation17]  }
  0xfb   :  { %4287 = sst [smem:[#allocation18 + $0x8]] %s15186_s29 }
  0xfc   :  { %4289 = dma.general %s19530_s12, 18432, %s4268_s23, %s15195_s22, %s15196_s27, [#allocation18], %s13362_s3, 0  }
  0xfd   :  { %4291 = vst [vmem:[#allocation2 + $0x8] sm:$0xff] %v15197_v3  ;;  %4292 = vst [vmem:[#allocation2 + $0x10] sm:$0xff] %v15197_v3  ;;  %s19549_s29 = sld [smem:[#allocation25_spill]]  ;;  %s19550_s27 = sld [smem:[#allocation23_spill]] }
  0xfe   :  { %4290 = vst [vmem:[#allocation2] sm:$0xff] %v15197_v3  ;;  %4293 = vst [vmem:[#allocation2 + $0x18] sm:$0x1] %v15197_v3  ;;  %s19551_s28 = sld [smem:[#allocation27_spill]] }
  0xff   :  { %4294 = vst [vmem:[#allocation2 + $0x20] sm:$0xff] %v15197_v3  ;;  %4295 = vst [vmem:[#allocation2 + $0x28] sm:$0xff] %v15197_v3 }
 0x100   :  { %4296 = vst [vmem:[#allocation2 + $0x30] sm:$0xff] %v15197_v3  ;;  %4297 = vst [vmem:[#allocation2 + $0x38] sm:$0x1] %v15197_v3 }
 0x101   :  { %4298 = vst [vmem:[#allocation2 + $0x40] sm:$0xff] %v15197_v3  ;;  %4299 = vst [vmem:[#allocation2 + $0x48] sm:$0xff] %v15197_v3 }
 0x102   :  { %4300 = vst [vmem:[#allocation2 + $0x50] sm:$0xff] %v15197_v3  ;;  %4301 = vst [vmem:[#allocation2 + $0x58] sm:$0x1] %v15197_v3 }
 0x103   :  { %4302 = vst [vmem:[#allocation2 + $0x60] sm:$0xff] %v15197_v3  ;;  %4303 = vst [vmem:[#allocation2 + $0x68] sm:$0xff] %v15197_v3  ;;  %v14890_v4 = vld [vmem:[%s19549_s29] sm:$0xff]   ;;  %v14891_v5 = vld [vmem:[%s19549_s29 + $0x8] sm:$0xff]  }
 0x104   :  { %4304 = vst [vmem:[#allocation2 + $0x70] sm:$0xff] %v15197_v3  ;;  %4305 = vst [vmem:[#allocation2 + $0x78] sm:$0x1] %v15197_v3  ;;  %6709 = vmatpush1.bf16.msra.mxu0 %v14890_v4  ;;  %v14892_v6 = vld [vmem:[%s19549_s29 + $0x10] sm:$0xff]   ;;  %v14893_v7 = vld [vmem:[%s19549_s29 + $0x18] sm:$0xff]  }
 0x105   :  { %4306 = vst [vmem:[#allocation2 + $0x80] sm:$0xff] %v15197_v3  ;;  %4307 = vst [vmem:[#allocation2 + $0x88] sm:$0xff] %v15197_v3  ;;  %6710 = vmatprep.subr.bf16.mxu0 %v15188_v1  ;;  %v14894_v8 = vld [vmem:[%s19549_s29 + $0x20] sm:$0xff]   ;;  %v14895_v9 = vld [vmem:[%s19549_s29 + $0x28] sm:$0xff]  }
 0x106   :  { %4308 = vst [vmem:[#allocation2 + $0x90] sm:$0xff] %v15197_v3  ;;  %4309 = vst [vmem:[#allocation2 + $0x98] sm:$0x1] %v15197_v3  ;;  %v4554_v10 = vld [vmem:[%s19550_s27] sm:$0xff]  ;;  %v4555_v11 = vld [vmem:[%s19550_s27 + $0x8] sm:$0xff] }
 0x107   :  { %4310 = vst [vmem:[#allocation2 + $0xa0] sm:$0xff] %v15197_v3  ;;  %4311 = vst [vmem:[#allocation2 + $0xa8] sm:$0xff] %v15197_v3  ;;  %v4556_v12 = vld [vmem:[%s19550_s27 + $0x10] sm:$0xff]  ;;  %v4557_v13 = vld [vmem:[%s19550_s27 + $0x18] sm:$0xff] }
 0x108   :  { %4312 = vst [vmem:[#allocation2 + $0xb0] sm:$0xff] %v15197_v3  ;;  %4313 = vst [vmem:[#allocation2 + $0xb8] sm:$0x1] %v15197_v3  ;;  %6711 = vmatpush1.bf16.msra.mxu0 %v14891_v5  ;;  %v4558_v14 = vld [vmem:[%s19550_s27 + $0x20] sm:$0xff]  ;;  %v4559_v15 = vld [vmem:[%s19550_s27 + $0x28] sm:$0xff] }
 0x109   :  { %4314 = vst [vmem:[#allocation2 + $0xc0] sm:$0xff] %v15197_v3  ;;  %4315 = vst [vmem:[#allocation2 + $0xc8] sm:$0xff] %v15197_v3  ;;  %6712 = vmatprep.subr.bf16.mxu0 %v15188_v1  ;;  %v4560_v16 = vld [vmem:[%s19550_s27 + $0x30] sm:$0xff]  ;;  %v4561_v17 = vld [vmem:[%s19550_s27 + $0x38] sm:$0xff] }
 0x10a   :  { %4316 = vst [vmem:[#allocation2 + $0xd0] sm:$0xff] %v15197_v3  ;;  %4317 = vst [vmem:[#allocation2 + $0xd8] sm:$0x1] %v15197_v3  ;;  %v14896_v18 = vld [vmem:[%s19549_s29 + $0x30] sm:$0xff]   ;;  %v4562_v19 = vld [vmem:[%s19550_s27 + $0x40] sm:$0xff] }
 0x10b   :  { %4318 = vst [vmem:[#allocation2 + $0xe0] sm:$0xff] %v15197_v3  ;;  %4319 = vst [vmem:[#allocation2 + $0xe8] sm:$0xff] %v15197_v3  ;;  %v4563_v20 = vld [vmem:[%s19550_s27 + $0x48] sm:$0xff]  ;;  %v4564_v21 = vld [vmem:[%s19550_s27 + $0x50] sm:$0xff] }
 0x10c   :  { %4320 = vst [vmem:[#allocation2 + $0xf0] sm:$0xff] %v15197_v3  ;;  %4321 = vst [vmem:[#allocation2 + $0xf8] sm:$0x1] %v15197_v3  ;;  %6713 = vmatpush1.bf16.msra.mxu0 %v14892_v6  ;;  %v4565_v22 = vld [vmem:[%s19550_s27 + $0x58] sm:$0xff]  ;;  %v4566_v23 = vld [vmem:[%s19550_s27 + $0x60] sm:$0xff] }
 0x10d   :  { %4322 = vst [vmem:[#allocation2 + $0x100] sm:$0xff] %v15197_v3  ;;  %4323 = vst [vmem:[#allocation2 + $0x108] sm:$0xff] %v15197_v3  ;;  %6714 = vmatprep.subr.bf16.mxu0 %v15188_v1  ;;  %v4567_v24 = vld [vmem:[%s19550_s27 + $0x68] sm:$0xff]  ;;  %v14897_v25 = vld [vmem:[%s19549_s29 + $0x38] sm:$0xff]  }
 0x10e   :  { %4324 = vst [vmem:[#allocation2 + $0x110] sm:$0xff] %v15197_v3  ;;  %4325 = vst [vmem:[#allocation2 + $0x118] sm:$0x1] %v15197_v3  ;;  %v14898_v26 = vld [vmem:[%s19549_s29 + $0x40] sm:$0xff]   ;;  %v14899_v27 = vld [vmem:[%s19549_s29 + $0x48] sm:$0xff]  }
 0x10f   :  { %4326 = vst [vmem:[#allocation2 + $0x120] sm:$0xff] %v15197_v3  ;;  %4327 = vst [vmem:[#allocation2 + $0x128] sm:$0xff] %v15197_v3  ;;  %v4568_v28 = vld [vmem:[%s19550_s27 + $0x70] sm:$0xff]  ;;  %v4569_v29 = vld [vmem:[%s19550_s27 + $0x78] sm:$0xff] }
 0x110   :  { %4328 = vst [vmem:[#allocation2 + $0x130] sm:$0xff] %v15197_v3  ;;  %4329 = vst [vmem:[#allocation2 + $0x138] sm:$0x1] %v15197_v3  ;;  %6715 = vmatpush1.bf16.msra.mxu0 %v14893_v7  ;;  %v4570_v30 = vld [vmem:[%s19550_s27 + $0x80] sm:$0xff]  ;;  %v4571_v31 = vld [vmem:[%s19550_s27 + $0x88] sm:$0xff] }
 0x111   :  { %4330 = vst [vmem:[#allocation2 + $0x140] sm:$0xff] %v15197_v3  ;;  %4331 = vst [vmem:[#allocation2 + $0x148] sm:$0xff] %v15197_v3  ;;  %6716 = vmatprep.subr.bf16.mxu0 %v15188_v1  ;;  %v4572_v32 = vld [vmem:[%s19550_s27 + $0x90] sm:$0xff]  ;;  %v4573_v33 = vld [vmem:[%s19550_s27 + $0x98] sm:$0xff] }
 0x112   :  { %4332 = vst [vmem:[#allocation2 + $0x150] sm:$0xff] %v15197_v3  ;;  %4333 = vst [vmem:[#allocation2 + $0x158] sm:$0x1] %v15197_v3  ;;  %v14900_v34 = vld [vmem:[%s19549_s29 + $0x50] sm:$0xff]   ;;  %v4574_v35 = vld [vmem:[%s19550_s27 + $0xa0] sm:$0xff] }
 0x113   :  { %4334 = vst [vmem:[#allocation2 + $0x160] sm:$0xff] %v15197_v3  ;;  %4335 = vst [vmem:[#allocation2 + $0x168] sm:$0xff] %v15197_v3  ;;  %v4575_v36 = vld [vmem:[%s19550_s27 + $0xa8] sm:$0xff]  ;;  %v4576_v37 = vld [vmem:[%s19550_s27 + $0xb0] sm:$0xff] }
 0x114   :  { %4336 = vst [vmem:[#allocation2 + $0x170] sm:$0xff] %v15197_v3  ;;  %4337 = vst [vmem:[#allocation2 + $0x178] sm:$0x1] %v15197_v3  ;;  %6717 = vmatpush1.bf16.msra.mxu0 %v14894_v8  ;;  %v4577_v38 = vld [vmem:[%s19550_s27 + $0xb8] sm:$0xff]  ;;  %v4578_v39 = vld [vmem:[%s19550_s27 + $0xc0] sm:$0xff] }
 0x115   :  { %4338 = vst [vmem:[#allocation2 + $0x180] sm:$0xff] %v15197_v3  ;;  %4339 = vst [vmem:[#allocation2 + $0x188] sm:$0xff] %v15197_v3  ;;  %6718 = vmatprep.subr.bf16.mxu0 %v15188_v1  ;;  %v4579_v40 = vld [vmem:[%s19550_s27 + $0xc8] sm:$0xff]  ;;  %v4580_v41 = vld [vmem:[%s19550_s27 + $0xd0] sm:$0xff] }
 0x116   :  { %4340 = vst [vmem:[#allocation2 + $0x190] sm:$0xff] %v15197_v3  ;;  %4341 = vst [vmem:[#allocation2 + $0x198] sm:$0x1] %v15197_v3  ;;  %v14901_v42 = vld [vmem:[%s19549_s29 + $0x58] sm:$0xff]   ;;  %v14902_v44 = vld [vmem:[%s19549_s29 + $0x60] sm:$0xff]  }
 0x117   :  { %4342 = vst [vmem:[#allocation2 + $0x1a0] sm:$0xff] %v15197_v3  ;;  %4343 = vst [vmem:[#allocation2 + $0x1a8] sm:$0xff] %v15197_v3  ;;  %v4581_v43 = vld [vmem:[%s19550_s27 + $0xd8] sm:$0xff]  ;;  %v14903_v45 = vld [vmem:[%s19549_s29 + $0x68] sm:$0xff]  }
 0x118   :  { %4344 = vst [vmem:[#allocation2 + $0x1b0] sm:$0xff] %v15197_v3  ;;  %4345 = vst [vmem:[#allocation2 + $0x1b8] sm:$0x1] %v15197_v3  ;;  %6719 = vmatpush1.bf16.msra.mxu0 %v14895_v9  ;;  %v14904_v46 = vld [vmem:[%s19549_s29 + $0x70] sm:$0xff]   ;;  %v4582_v47 = vld [vmem:[%s19550_s27 + $0xe0] sm:$0xff] }
 0x119   :  { %4346 = vst [vmem:[#allocation2 + $0x1c0] sm:$0xff] %v15197_v3  ;;  %4347 = vst [vmem:[#allocation2 + $0x1c8] sm:$0xff] %v15197_v3  ;;  %6720 = vmatprep.subr.bf16.mxu0 %v15188_v1  ;;  %v4583_v48 = vld [vmem:[%s19550_s27 + $0xe8] sm:$0xff]  ;;  %v14905_v49 = vld [vmem:[%s19549_s29 + $0x78] sm:$0xff]  }
 0x11a   :  { %4348 = vst [vmem:[#allocation2 + $0x1d0] sm:$0xff] %v15197_v3  ;;  %4349 = vst [vmem:[#allocation2 + $0x1d8] sm:$0x1] %v15197_v3  ;;  %v4684_v50 = vld [vmem:[#allocation2 + $0x7] sm:$0xff]  ;;  %v4685_v51 = vld [vmem:[#allocation2 + $0xf] sm:$0xff] }
 0x11b   :  { %4350 = vst [vmem:[#allocation2 + $0x1e0] sm:$0xff] %v15197_v3  ;;  %4351 = vst [vmem:[#allocation2 + $0x1e8] sm:$0xff] %v15197_v3  ;;  %v4748_v54 = vpack.c.bf16 %v4685_v51, %v4684_v50  ;;  %v14906_v55 = vld [vmem:[%s19549_s29 + $0x80] sm:$0xff]   ;;  %v4587_v58 = vld [vmem:[%s19550_s27 + $0x108] sm:$0xff] }
 0x11c   :  { %4352 = vst [vmem:[#allocation2 + $0x1f0] sm:$0xff] %v15197_v3  ;;  %4353 = vst [vmem:[#allocation2 + $0x1f8] sm:$0x1] %v15197_v3  ;;  %6721 = vmatpush1.bf16.msra.mxu0 %v14896_v18  ;;  %v4586_v56 = vld [vmem:[%s19550_s27 + $0x100] sm:$0xff]  ;;  %v14907_v61 = vld [vmem:[%s19549_s29 + $0x88] sm:$0xff]  }
 0x11d   :  { %4354 = vst [vmem:[#allocation2 + $0x200] sm:$0xff] %v15197_v3  ;;  %4355 = vst [vmem:[#allocation2 + $0x208] sm:$0xff] %v15197_v3  ;;  %6722 = vmatprep.subr.bf16.mxu0 %v15188_v1  ;;  %v4588_v4 = vld [vmem:[%s19550_s27 + $0x110] sm:$0xff]  ;;  %v4589_v7 = vld [vmem:[%s19550_s27 + $0x118] sm:$0xff] }
 0x11e   :  { %4356 = vst [vmem:[#allocation2 + $0x210] sm:$0xff] %v15197_v3  ;;  %4357 = vst [vmem:[#allocation2 + $0x218] sm:$0x1] %v15197_v3  ;;  %v14908_v6 = vld [vmem:[%s19549_s29 + $0x90] sm:$0xff]  }
 0x11f   :  { %4358 = vst [vmem:[#allocation2 + $0x220] sm:$0xff] %v15197_v3  ;;  %4359 = vst [vmem:[#allocation2 + $0x228] sm:$0xff] %v15197_v3 }
 0x120   :  { %4360 = vst [vmem:[#allocation2 + $0x230] sm:$0xff] %v15197_v3  ;;  %4361 = vst [vmem:[#allocation2 + $0x238] sm:$0x1] %v15197_v3  ;;  %6723 = vmatpush1.bf16.msra.mxu0 %v14897_v25 }
 0x121   :  { %4362 = vst [vmem:[#allocation2 + $0x240] sm:$0xff] %v15197_v3  ;;  %4363 = vst [vmem:[#allocation2 + $0x248] sm:$0xff] %v15197_v3  ;;  %6724 = vmatprep.subr.bf16.mxu0 %v15188_v1 }
 0x122   :  { %4364 = vst [vmem:[#allocation2 + $0x250] sm:$0xff] %v15197_v3  ;;  %4365 = vst [vmem:[#allocation2 + $0x258] sm:$0x1] %v15197_v3 }
 0x123   :  { %4366 = vst [vmem:[#allocation2 + $0x260] sm:$0xff] %v15197_v3  ;;  %4367 = vst [vmem:[#allocation2 + $0x268] sm:$0xff] %v15197_v3 }
 0x124   :  { %4368 = vst [vmem:[#allocation2 + $0x270] sm:$0xff] %v15197_v3  ;;  %4369 = vst [vmem:[#allocation2 + $0x278] sm:$0x1] %v15197_v3  ;;  %6725 = vmatpush1.bf16.msra.mxu0 %v14898_v26  ;;  %v14912_v26 = vld [vmem:[%s19549_s29 + $0xb0] sm:$0xff]  }
 0x125   :  { %4370 = vst [vmem:[#allocation2 + $0x280] sm:$0xff] %v15197_v3  ;;  %4371 = vst [vmem:[#allocation2 + $0x288] sm:$0xff] %v15197_v3  ;;  %6726 = vmatprep.subr.bf16.mxu0 %v15188_v1 }
 0x126   :  { %4372 = vst [vmem:[#allocation2 + $0x290] sm:$0xff] %v15197_v3  ;;  %4373 = vst [vmem:[#allocation2 + $0x298] sm:$0x1] %v15197_v3 }
 0x127   :  { %4374 = vst [vmem:[#allocation2 + $0x2a0] sm:$0xff] %v15197_v3  ;;  %4375 = vst [vmem:[#allocation2 + $0x2a8] sm:$0xff] %v15197_v3 }
 0x128   :  { %4376 = vst [vmem:[#allocation2 + $0x2b0] sm:$0xff] %v15197_v3  ;;  %4377 = vst [vmem:[#allocation2 + $0x2b8] sm:$0x1] %v15197_v3  ;;  %6727 = vmatpush1.bf16.msra.mxu0 %v14899_v27  ;;  %v4593_v27 = vld [vmem:[%s19550_s27 + $0x138] sm:$0xff] }
 0x129   :  { %4378 = vst [vmem:[#allocation2 + $0x2c0] sm:$0xff] %v15197_v3  ;;  %4379 = vst [vmem:[#allocation2 + $0x2c8] sm:$0xff] %v15197_v3  ;;  %6728 = vmatprep.subr.bf16.mxu0 %v15188_v1 }
 0x12a   :  { %4380 = vst [vmem:[#allocation2 + $0x2d0] sm:$0xff] %v15197_v3  ;;  %4381 = vst [vmem:[#allocation2 + $0x2d8] sm:$0x1] %v15197_v3 }
 0x12b   :  { %4382 = vst [vmem:[#allocation2 + $0x2e0] sm:$0xff] %v15197_v3  ;;  %4383 = vst [vmem:[#allocation2 + $0x2e8] sm:$0xff] %v15197_v3 }
 0x12c   :  { %4384 = vst [vmem:[#allocation2 + $0x2f0] sm:$0xff] %v15197_v3  ;;  %4385 = vst [vmem:[#allocation2 + $0x2f8] sm:$0x1] %v15197_v3  ;;  %6729 = vmatpush1.bf16.msra.mxu0 %v14900_v34  ;;  %v4594_v34 = vld [vmem:[%s19550_s27 + $0x140] sm:$0xff] }
 0x12d   :  { %4386 = vst [vmem:[#allocation2 + $0x300] sm:$0xff] %v15197_v3  ;;  %4387 = vst [vmem:[#allocation2 + $0x308] sm:$0xff] %v15197_v3  ;;  %6730 = vmatprep.subr.bf16.mxu0 %v15188_v1 }
 0x12e   :  { %4388 = vst [vmem:[#allocation2 + $0x310] sm:$0xff] %v15197_v3  ;;  %4389 = vst [vmem:[#allocation2 + $0x318] sm:$0x1] %v15197_v3 }
 0x12f   :  { %4390 = vst [vmem:[#allocation2 + $0x320] sm:$0xff] %v15197_v3  ;;  %4391 = vst [vmem:[#allocation2 + $0x328] sm:$0xff] %v15197_v3 }
 0x130   :  { %4392 = vst [vmem:[#allocation2 + $0x330] sm:$0xff] %v15197_v3  ;;  %4393 = vst [vmem:[#allocation2 + $0x338] sm:$0x1] %v15197_v3  ;;  %6731 = vmatpush1.bf16.msra.mxu0 %v14901_v42  ;;  %v14915_v42 = vld [vmem:[%s19549_s29 + $0xc8] sm:$0xff]  }
 0x131   :  { %4394 = vst [vmem:[#allocation2 + $0x340] sm:$0xff] %v15197_v3  ;;  %4395 = vst [vmem:[#allocation2 + $0x348] sm:$0xff] %v15197_v3  ;;  %6732 = vmatprep.subr.bf16.mxu0 %v15188_v1 }
 0x132   :  { %4396 = vst [vmem:[#allocation2 + $0x350] sm:$0xff] %v15197_v3  ;;  %4397 = vst [vmem:[#allocation2 + $0x358] sm:$0x1] %v15197_v3 }
 0x133   :  { %4398 = vst [vmem:[#allocation2 + $0x360] sm:$0xff] %v15197_v3  ;;  %4399 = vst [vmem:[#allocation2 + $0x368] sm:$0xff] %v15197_v3 }
 0x134   :  { %4400 = vst [vmem:[#allocation2 + $0x370] sm:$0xff] %v15197_v3  ;;  %4401 = vst [vmem:[#allocation2 + $0x378] sm:$0x1] %v15197_v3  ;;  %6733 = vmatpush1.bf16.msra.mxu0 %v14902_v44  ;;  %v4596_v44 = vld [vmem:[%s19550_s27 + $0x150] sm:$0xff] }
 0x135   :  { %4402 = vst [vmem:[#allocation2 + $0x380] sm:$0xff] %v15197_v3  ;;  %4403 = vst [vmem:[#allocation2 + $0x388] sm:$0xff] %v15197_v3  ;;  %6734 = vmatprep.subr.bf16.mxu0 %v15188_v1 }
 0x136   :  { %4404 = vst [vmem:[#allocation2 + $0x390] sm:$0xff] %v15197_v3  ;;  %4405 = vst [vmem:[#allocation2 + $0x398] sm:$0x1] %v15197_v3 }
 0x137   :  { %4406 = vst [vmem:[#allocation2 + $0x3a0] sm:$0xff] %v15197_v3  ;;  %4407 = vst [vmem:[#allocation2 + $0x3a8] sm:$0xff] %v15197_v3 }
 0x138   :  { %4408 = vst [vmem:[#allocation2 + $0x3b0] sm:$0xff] %v15197_v3  ;;  %4409 = vst [vmem:[#allocation2 + $0x3b8] sm:$0x1] %v15197_v3  ;;  %6735 = vmatpush1.bf16.msra.mxu0 %v14903_v45 }
 0x139   :  { %4410 = vst [vmem:[#allocation2 + $0x3c0] sm:$0xff] %v15197_v3  ;;  %4411 = vst [vmem:[#allocation2 + $0x3c8] sm:$0xff] %v15197_v3  ;;  %6736 = vmatprep.subr.bf16.mxu0 %v15188_v1 }
 0x13a   :  { %4412 = vst [vmem:[#allocation2 + $0x3d0] sm:$0xff] %v15197_v3  ;;  %4413 = vst [vmem:[#allocation2 + $0x3d8] sm:$0x1] %v15197_v3 }
 0x13b   :  { %4414 = vst [vmem:[#allocation2 + $0x3e0] sm:$0xff] %v15197_v3  ;;  %4415 = vst [vmem:[#allocation2 + $0x3e8] sm:$0xff] %v15197_v3 }
 0x13c   :  { %4416 = vst [vmem:[#allocation2 + $0x3f0] sm:$0xff] %v15197_v3  ;;  %4417 = vst [vmem:[#allocation2 + $0x3f8] sm:$0x1] %v15197_v3  ;;  %6737 = vmatpush1.bf16.msra.mxu0 %v14904_v46  ;;  %v14916_v46 = vld [vmem:[%s19549_s29 + $0xd0] sm:$0xff]  }
 0x13d   :  { %4418 = vst [vmem:[#allocation2 + $0x400] sm:$0xff] %v15197_v3  ;;  %4419 = vst [vmem:[#allocation2 + $0x408] sm:$0xff] %v15197_v3  ;;  %6738 = vmatprep.subr.bf16.mxu0 %v15188_v1 }
 0x13e   :  { %4420 = vst [vmem:[#allocation2 + $0x410] sm:$0xff] %v15197_v3  ;;  %4421 = vst [vmem:[#allocation2 + $0x418] sm:$0x1] %v15197_v3 }
 0x13f   :  { %4422 = vst [vmem:[#allocation2 + $0x420] sm:$0xff] %v15197_v3  ;;  %4423 = vst [vmem:[#allocation2 + $0x428] sm:$0xff] %v15197_v3 }
 0x140   :  { %4424 = vst [vmem:[#allocation2 + $0x430] sm:$0xff] %v15197_v3  ;;  %4425 = vst [vmem:[#allocation2 + $0x438] sm:$0x1] %v15197_v3  ;;  %6739 = vmatpush1.bf16.msra.mxu0 %v14905_v49 }
 0x141   :  { %4426 = vst [vmem:[#allocation2 + $0x440] sm:$0xff] %v15197_v3  ;;  %4427 = vst [vmem:[#allocation2 + $0x448] sm:$0xff] %v15197_v3  ;;  %6997 = vmatprep.subr.bf16.mxu0 %v15188_v1 }
 0x142   :  { %4428 = vst [vmem:[#allocation2 + $0x450] sm:$0xff] %v15197_v3  ;;  %4429 = vst [vmem:[#allocation2 + $0x458] sm:$0x1] %v15197_v3 }
 0x143   :  { %4430 = vst [vmem:[#allocation2 + $0x460] sm:$0xff] %v15197_v3  ;;  %4431 = vst [vmem:[#allocation2 + $0x468] sm:$0xff] %v15197_v3  ;;  %6741 = vmatmul.mubr.bf16.vlgmr.msra.gmra.mrb[0].mxu0 %v4748_v54 }
 0x144   :  { %4432 = vst [vmem:[#allocation2 + $0x470] sm:$0xff] %v15197_v3  ;;  %4433 = vst [vmem:[#allocation2 + $0x478] sm:$0x1] %v15197_v3  ;;  %6998 = vmatpush1.bf16.msra.mxu0 %v14906_v55  ;;  %v4599_v55 = vld [vmem:[%s19550_s27 + $0x168] sm:$0xff] }
 0x145   :  { %4434 = vst [vmem:[#allocation3] sm:$0xff] %v15197_v3  ;;  %4435 = vst [vmem:[#allocation3 + $0x8] sm:$0xff] %v15197_v3  ;;  %6999 = vmatprep.subr.bf16.mxu0 %v15188_v1 }
 0x146   :  { %4436 = vst [vmem:[#allocation3 + $0x10] sm:$0x1] %v15197_v3  ;;  %4437 = vst [vmem:[#allocation3 + $0x18] sm:$0xff] %v15197_v3 }
 0x147   :  { %4438 = vst [vmem:[#allocation3 + $0x20] sm:$0xff] %v15197_v3  ;;  %4439 = vst [vmem:[#allocation3 + $0x28] sm:$0x1] %v15197_v3 }
 0x148   :  { %4440 = vst [vmem:[#allocation3 + $0x30] sm:$0xff] %v15197_v3  ;;  %4441 = vst [vmem:[#allocation3 + $0x38] sm:$0xff] %v15197_v3  ;;  %7000 = vmatpush1.bf16.msra.mxu0 %v14907_v61 }
 0x149   :  { %4442 = vst [vmem:[#allocation3 + $0x40] sm:$0x1] %v15197_v3  ;;  %4443 = vst [vmem:[#allocation3 + $0x48] sm:$0xff] %v15197_v3  ;;  %7001 = vmatprep.subr.bf16.mxu0 %v15188_v1 }
 0x14a   :  { %4444 = vst [vmem:[#allocation3 + $0x50] sm:$0xff] %v15197_v3  ;;  %4445 = vst [vmem:[#allocation3 + $0x58] sm:$0x1] %v15197_v3 }
 0x14b   :  { %4446 = vst [vmem:[#allocation3 + $0x60] sm:$0xff] %v15197_v3  ;;  %4447 = vst [vmem:[#allocation3 + $0x68] sm:$0xff] %v15197_v3 }
 0x14c   :  { %4448 = vst [vmem:[#allocation3 + $0x70] sm:$0x1] %v15197_v3  ;;  %4449 = vst [vmem:[#allocation3 + $0x78] sm:$0xff] %v15197_v3  ;;  %7002 = vmatpush1.bf16.msra.mxu0 %v14908_v6 }
 0x14d   :  { %4450 = vst [vmem:[#allocation3 + $0x80] sm:$0xff] %v15197_v3  ;;  %4451 = vst [vmem:[#allocation3 + $0x88] sm:$0x1] %v15197_v3  ;;  %7003 = vmatprep.subr.bf16.mxu0 %v15188_v1 }
 0x14e   :  { %4452 = vst [vmem:[#allocation3 + $0x90] sm:$0xff] %v15197_v3  ;;  %4453 = vst [vmem:[#allocation3 + $0x98] sm:$0xff] %v15197_v3 }
 0x14f   :  { %4454 = vst [vmem:[#allocation3 + $0xa0] sm:$0x1] %v15197_v3  ;;  %4455 = vst [vmem:[#allocation3 + $0xa8] sm:$0xff] %v15197_v3 }
 0x150   :  { %4456 = vst [vmem:[#allocation3 + $0xb0] sm:$0xff] %v15197_v3  ;;  %4457 = vst [vmem:[#allocation3 + $0xb8] sm:$0x1] %v15197_v3 }
 0x151   :  { %4458 = vst [vmem:[#allocation3 + $0xc0] sm:$0xff] %v15197_v3  ;;  %4459 = vst [vmem:[#allocation3 + $0xc8] sm:$0xff] %v15197_v3 }
 0x152   :  { %4460 = vst [vmem:[#allocation3 + $0xd0] sm:$0x1] %v15197_v3  ;;  %4461 = vst [vmem:[#allocation3 + $0xd8] sm:$0xff] %v15197_v3 }
 0x153   :  { %4462 = vst [vmem:[#allocation3 + $0xe0] sm:$0xff] %v15197_v3  ;;  %4463 = vst [vmem:[#allocation3 + $0xe8] sm:$0x1] %v15197_v3 }
 0x154   :  { %4464 = vst [vmem:[#allocation3 + $0xf0] sm:$0xff] %v15197_v3  ;;  %4465 = vst [vmem:[#allocation3 + $0xf8] sm:$0xff] %v15197_v3 }
 0x155   :  { %4466 = vst [vmem:[#allocation3 + $0x100] sm:$0x1] %v15197_v3  ;;  %4467 = vst [vmem:[#allocation3 + $0x108] sm:$0xff] %v15197_v3 }
 0x156   :  { %4468 = vst [vmem:[#allocation3 + $0x110] sm:$0xff] %v15197_v3  ;;  %4469 = vst [vmem:[#allocation3 + $0x118] sm:$0x1] %v15197_v3 }
 0x157   :  { %4470 = vst [vmem:[#allocation3 + $0x120] sm:$0xff] %v15197_v3  ;;  %4471 = vst [vmem:[#allocation3 + $0x128] sm:$0xff] %v15197_v3 }
 0x158   :  { %4472 = vst [vmem:[#allocation3 + $0x130] sm:$0x1] %v15197_v3  ;;  %4473 = vst [vmem:[#allocation3 + $0x138] sm:$0xff] %v15197_v3 }
 0x159   :  { %4474 = vst [vmem:[#allocation3 + $0x140] sm:$0xff] %v15197_v3  ;;  %4475 = vst [vmem:[#allocation3 + $0x148] sm:$0x1] %v15197_v3 }
 0x15a   :  { %4476 = vst [vmem:[#allocation3 + $0x150] sm:$0xff] %v15197_v3  ;;  %4477 = vst [vmem:[#allocation3 + $0x158] sm:$0xff] %v15197_v3 }
 0x15b   :  { %4478 = vst [vmem:[#allocation3 + $0x160] sm:$0x1] %v15197_v3  ;;  %4479 = vst [vmem:[#allocation3 + $0x168] sm:$0xff] %v15197_v3 }
 0x15c   :  { %4480 = vst [vmem:[#allocation3 + $0x170] sm:$0xff] %v15197_v3  ;;  %4481 = vst [vmem:[#allocation3 + $0x178] sm:$0x1] %v15197_v3 }
 0x15d   :  { %4482 = vst [vmem:[#allocation3 + $0x180] sm:$0xff] %v15197_v3  ;;  %4483 = vst [vmem:[#allocation3 + $0x188] sm:$0xff] %v15197_v3 }
 0x15e   :  { %4484 = vst [vmem:[#allocation3 + $0x190] sm:$0x1] %v15197_v3  ;;  %4485 = vst [vmem:[#allocation3 + $0x198] sm:$0xff] %v15197_v3 }
 0x15f   :  { %4486 = vst [vmem:[#allocation3 + $0x1a0] sm:$0xff] %v15197_v3  ;;  %4487 = vst [vmem:[#allocation3 + $0x1a8] sm:$0x1] %v15197_v3 }
 0x160   :  { %4488 = vst [vmem:[#allocation3 + $0x1b0] sm:$0xff] %v15197_v3  ;;  %4489 = vst [vmem:[#allocation3 + $0x1b8] sm:$0xff] %v15197_v3 }
 0x161   :  { %4490 = vst [vmem:[#allocation3 + $0x1c0] sm:$0x1] %v15197_v3  ;;  %4491 = vst [vmem:[#allocation3 + $0x1c8] sm:$0xff] %v15197_v3 }
 0x162   :  { %4492 = vst [vmem:[#allocation3 + $0x1d0] sm:$0xff] %v15197_v3  ;;  %4493 = vst [vmem:[#allocation3 + $0x1d8] sm:$0x1] %v15197_v3 }
 0x163   :  { %4494 = vst [vmem:[#allocation4] sm:$0xff] %v15197_v3  ;;  %4495 = vst [vmem:[#allocation4 + $0x8] sm:$0xff] %v15197_v3 }
 0x164   :  { %4496 = vst [vmem:[#allocation4 + $0x10] sm:$0x1] %v15197_v3  ;;  %4497 = vst [vmem:[#allocation4 + $0x18] sm:$0xff] %v15197_v3 }
 0x165   :  { %4498 = vst [vmem:[#allocation4 + $0x20] sm:$0xff] %v15197_v3  ;;  %4499 = vst [vmem:[#allocation4 + $0x28] sm:$0x1] %v15197_v3 }
 0x166   :  { %4500 = vst [vmem:[#allocation4 + $0x30] sm:$0xff] %v15197_v3  ;;  %4501 = vst [vmem:[#allocation4 + $0x38] sm:$0xff] %v15197_v3 }
 0x167   :  { %4502 = vst [vmem:[#allocation4 + $0x40] sm:$0x1] %v15197_v3  ;;  %4503 = vst [vmem:[#allocation4 + $0x48] sm:$0xff] %v15197_v3 }
 0x168   :  { %4504 = vst [vmem:[#allocation4 + $0x50] sm:$0xff] %v15197_v3  ;;  %4505 = vst [vmem:[#allocation4 + $0x58] sm:$0x1] %v15197_v3 }
 0x169   :  { %4506 = vst [vmem:[#allocation4 + $0x60] sm:$0xff] %v15197_v3  ;;  %4507 = vst [vmem:[#allocation4 + $0x68] sm:$0xff] %v15197_v3 }
 0x16a   :  { %4508 = vst [vmem:[#allocation4 + $0x70] sm:$0x1] %v15197_v3  ;;  %4509 = vst [vmem:[#allocation4 + $0x78] sm:$0xff] %v15197_v3 }
 0x16b   :  { %4510 = vst [vmem:[#allocation4 + $0x80] sm:$0xff] %v15197_v3  ;;  %4511 = vst [vmem:[#allocation4 + $0x88] sm:$0x1] %v15197_v3 }
 0x16c   :  { %4512 = vst [vmem:[#allocation4 + $0x90] sm:$0xff] %v15197_v3  ;;  %4513 = vst [vmem:[#allocation4 + $0x98] sm:$0xff] %v15197_v3 }
 0x16d   :  { %4514 = vst [vmem:[#allocation4 + $0xa0] sm:$0x1] %v15197_v3  ;;  %4515 = vst [vmem:[#allocation4 + $0xa8] sm:$0xff] %v15197_v3 }
 0x16e   :  { %4516 = vst [vmem:[#allocation4 + $0xb0] sm:$0xff] %v15197_v3  ;;  %4517 = vst [vmem:[#allocation4 + $0xb8] sm:$0x1] %v15197_v3 }
 0x16f   :  { %4518 = vst [vmem:[#allocation4 + $0xc0] sm:$0xff] %v15197_v3  ;;  %4519 = vst [vmem:[#allocation4 + $0xc8] sm:$0xff] %v15197_v3 }
 0x170   :  { %4520 = vst [vmem:[#allocation4 + $0xd0] sm:$0x1] %v15197_v3  ;;  %4521 = vst [vmem:[#allocation4 + $0xd8] sm:$0xff] %v15197_v3 }
 0x171   :  { %4522 = vst [vmem:[#allocation4 + $0xe0] sm:$0xff] %v15197_v3  ;;  %4523 = vst [vmem:[#allocation4 + $0xe8] sm:$0x1] %v15197_v3 }
 0x172   :  { %4524 = vst [vmem:[#allocation4 + $0xf0] sm:$0xff] %v15197_v3  ;;  %4525 = vst [vmem:[#allocation4 + $0xf8] sm:$0xff] %v15197_v3 }
 0x173   :  { %4526 = vst [vmem:[#allocation4 + $0x100] sm:$0x1] %v15197_v3  ;;  %4527 = vst [vmem:[#allocation4 + $0x108] sm:$0xff] %v15197_v3 }
 0x174   :  { %4528 = vst [vmem:[#allocation4 + $0x110] sm:$0xff] %v15197_v3  ;;  %4529 = vst [vmem:[#allocation4 + $0x118] sm:$0x1] %v15197_v3 }
 0x175   :  { %4530 = vst [vmem:[#allocation4 + $0x120] sm:$0xff] %v15197_v3  ;;  %4531 = vst [vmem:[#allocation4 + $0x128] sm:$0xff] %v15197_v3 }
 0x176   :  { %4532 = vst [vmem:[#allocation4 + $0x130] sm:$0x1] %v15197_v3  ;;  %4533 = vst [vmem:[#allocation4 + $0x138] sm:$0xff] %v15197_v3 }
 0x177   :  { %4534 = vst [vmem:[#allocation4 + $0x140] sm:$0xff] %v15197_v3  ;;  %4535 = vst [vmem:[#allocation4 + $0x148] sm:$0x1] %v15197_v3 }
 0x178   :  { %4536 = vst [vmem:[#allocation4 + $0x150] sm:$0xff] %v15197_v3  ;;  %4537 = vst [vmem:[#allocation4 + $0x158] sm:$0xff] %v15197_v3 }
 0x179   :  { %4538 = vst [vmem:[#allocation4 + $0x160] sm:$0x1] %v15197_v3  ;;  %4539 = vst [vmem:[#allocation4 + $0x168] sm:$0xff] %v15197_v3 }
 0x17a   :  { %4540 = vst [vmem:[#allocation4 + $0x170] sm:$0xff] %v15197_v3  ;;  %4541 = vst [vmem:[#allocation4 + $0x178] sm:$0x1] %v15197_v3 }
 0x17b   :  { %4542 = vst [vmem:[#allocation4 + $0x180] sm:$0xff] %v15197_v3  ;;  %4543 = vst [vmem:[#allocation4 + $0x188] sm:$0xff] %v15197_v3 }
 0x17c   :  { %4544 = vst [vmem:[#allocation4 + $0x190] sm:$0x1] %v15197_v3  ;;  %4545 = vst [vmem:[#allocation4 + $0x198] sm:$0xff] %v15197_v3 }
 0x17d   :  { %4546 = vst [vmem:[#allocation4 + $0x1a0] sm:$0xff] %v15197_v3  ;;  %4547 = vst [vmem:[#allocation4 + $0x1a8] sm:$0x1] %v15197_v3 }
 0x17e   :  { %4548 = vst [vmem:[#allocation4 + $0x1b0] sm:$0xff] %v15197_v3  ;;  %4549 = vst [vmem:[#allocation4 + $0x1b8] sm:$0xff] %v15197_v3 }
 0x17f   :  { %4550 = vst [vmem:[#allocation4 + $0x1c0] sm:$0x1] %v15197_v3  ;;  %4551 = vst [vmem:[#allocation4 + $0x1c8] sm:$0xff] %v15197_v3 }
 0x180   :  { %4552 = vst [vmem:[#allocation4 + $0x1d0] sm:$0xff] %v15197_v3  ;;  %4553 = vst [vmem:[#allocation4 + $0x1d8] sm:$0x1] %v15197_v3 }
 0x181   :  { %4620 = vst.msk [vmem:[#allocation2 + $0x28] sm:$0xff] %vm4619_vm0, %v4554_v10  ;;  %4621 = vst.msk [vmem:[#allocation2 + $0x30] sm:$0xff] %vm4619_vm0, %v4555_v11  ;;  %v14909_v10 = vld [vmem:[%s19549_s29 + $0x98] sm:$0xff]  }
 0x182   :  { %4622 = vst.msk [vmem:[#allocation2 + $0x48] sm:$0xff] %vm4619_vm0, %v4556_v12  ;;  %4623 = vst.msk [vmem:[#allocation2 + $0x50] sm:$0xff] %vm4619_vm0, %v4557_v13  ;;  %7004 = vmatpush1.bf16.msra.mxu0 %v14909_v10  ;;  %v4602_v10 = vld [vmem:[%s19550_s27 + $0x180] sm:$0xff] }
 0x183   :  { %4624 = vst.msk [vmem:[#allocation2 + $0x68] sm:$0xff] %vm4619_vm0, %v4558_v14  ;;  %4625 = vst.msk [vmem:[#allocation2 + $0x70] sm:$0xff] %vm4619_vm0, %v4559_v15  ;;  %v4590_v14 = vld [vmem:[%s19550_s27 + $0x120] sm:$0xff]  ;;  %7005 = vmatprep.subr.bf16.mxu0 %v15188_v1 }
 0x184   :  { %4626 = vst.msk [vmem:[#allocation2 + $0x88] sm:$0xff] %vm4619_vm0, %v4560_v16  ;;  %4627 = vst.msk [vmem:[#allocation2 + $0x90] sm:$0xff] %vm4619_vm0, %v4561_v17  ;;  %v14910_v16 = vld [vmem:[%s19549_s29 + $0xa0] sm:$0xff]   ;;  %v4591_v17 = vld [vmem:[%s19550_s27 + $0x128] sm:$0xff] }
 0x185   :  { %4628 = vst.msk [vmem:[#allocation2 + $0xa8] sm:$0xff] %vm4619_vm0, %v4562_v19  ;;  %4629 = vst.msk [vmem:[#allocation2 + $0xb0] sm:$0xff] %vm4619_vm0, %v4563_v20 }
 0x186   :  { %4630 = vst.msk [vmem:[#allocation2 + $0xc8] sm:$0xff] %vm4619_vm0, %v4564_v21  ;;  %4631 = vst.msk [vmem:[#allocation2 + $0xd0] sm:$0xff] %vm4619_vm0, %v4565_v22  ;;  %v14911_v22 = vld [vmem:[%s19549_s29 + $0xa8] sm:$0xff]   ;;  %7006 = vmatpush1.bf16.msra.mxu0 %v14910_v16 }
 0x187   :  { %4632 = vst.msk [vmem:[#allocation2 + $0xe8] sm:$0xff] %vm4619_vm0, %v4566_v23  ;;  %4633 = vst.msk [vmem:[#allocation2 + $0xf0] sm:$0xff] %vm4619_vm0, %v4567_v24  ;;  %7007 = vmatprep.subr.bf16.mxu0 %v15188_v1  ;;  %v4592_v24 = vld [vmem:[%s19550_s27 + $0x130] sm:$0xff] }
 0x188   :  { %4634 = vst.msk [vmem:[#allocation2 + $0x108] sm:$0xff] %vm4619_vm0, %v4568_v28  ;;  %4635 = vst.msk [vmem:[#allocation2 + $0x110] sm:$0xff] %vm4619_vm0, %v4569_v29  ;;  %v4814_v52 = vld [vmem:[#allocation2 + $0x28] sm:$0xff]  ;;  %v4815_v53 = vld [vmem:[#allocation2 + $0x30] sm:$0xff] }
 0x189   :  { %4636 = vst.msk [vmem:[#allocation2 + $0x128] sm:$0xff] %vm4619_vm0, %v4570_v30  ;;  %4637 = vst.msk [vmem:[#allocation2 + $0x130] sm:$0xff] %vm4619_vm0, %v4571_v31  ;;  %v4877_v57 = vpack.c.bf16 %v4815_v53, %v4814_v52  ;;  %v4686_v59 = vld [vmem:[#allocation2 + $0x27] sm:$0xff]  ;;  %v4687_v60 = vld [vmem:[#allocation2 + $0x2f] sm:$0xff] }
 0x18a   :  { %4638 = vst.msk [vmem:[#allocation2 + $0x148] sm:$0xff] %vm4619_vm0, %v4572_v32  ;;  %4639 = vst.msk [vmem:[#allocation2 + $0x150] sm:$0xff] %vm4619_vm0, %v4573_v33  ;;  %v4816_v62 = vld [vmem:[#allocation2 + $0x48] sm:$0xff]  ;;  %v4817_v63 = vld [vmem:[#allocation2 + $0x50] sm:$0xff]  ;;  %v16948_v0 = vpack.c.bf16 %v4687_v60, %v4686_v59  ;;  %7008 = vmatpush1.bf16.msra.mxu0 %v14911_v22 }
 0x18b   :  { %4640 = vst.msk [vmem:[#allocation2 + $0x168] sm:$0xff] %vm4619_vm0, %v4574_v35  ;;  %4641 = vst.msk [vmem:[#allocation2 + $0x170] sm:$0xff] %vm4619_vm0, %v4575_v36  ;;  %6748 = vmatprep.mubr.bf16.mxu0 %v4877_v57  ;;  %v4878_v5 = vpack.c.bf16 %v4817_v63, %v4816_v62  ;;  %v4688_v8 = vld [vmem:[#allocation2 + $0x47] sm:$0xff]  ;;  %v4689_v9 = vld [vmem:[#allocation2 + $0x4f] sm:$0xff]  ;;  %7009 = vmatprep.subr.bf16.mxu0 %v15188_v1 }
 0x18c   :  { %4642 = vst.msk [vmem:[#allocation2 + $0x188] sm:$0xff] %vm4619_vm0, %v4576_v37  ;;  %4643 = vst.msk [vmem:[#allocation2 + $0x190] sm:$0xff] %vm4619_vm0, %v4577_v38  ;;  %6749 = vmatmul.mubr.bf16.gmra.mrb[4].mxu0 %v16948_v0  ;;  %v4818_v11 = vld [vmem:[#allocation2 + $0x68] sm:$0xff]  ;;  %v4819_v12 = vld [vmem:[#allocation2 + $0x70] sm:$0xff]  ;;  %v16967_v13 = vpack.c.bf16 %v4689_v9, %v4688_v8 }
 0x18d   :  { %4644 = vst.msk [vmem:[#allocation2 + $0x1a8] sm:$0xff] %vm4619_vm0, %v4578_v39  ;;  %4645 = vst.msk [vmem:[#allocation2 + $0x1b0] sm:$0xff] %vm4619_vm0, %v4579_v40  ;;  %6756 = vmatprep.mubr.bf16.mxu0 %v4878_v5  ;;  %v4879_v15 = vpack.c.bf16 %v4819_v12, %v4818_v11  ;;  %v4690_v18 = vld [vmem:[#allocation2 + $0x67] sm:$0xff]  ;;  %v4691_v19 = vld [vmem:[#allocation2 + $0x6f] sm:$0xff] }
 0x18e   :  { %4646 = vst.msk [vmem:[#allocation2 + $0x1c8] sm:$0xff] %vm4619_vm0, %v4580_v41  ;;  %4647 = vst.msk [vmem:[#allocation2 + $0x1d0] sm:$0xff] %vm4619_vm0, %v4581_v43  ;;  %v4820_v20 = vld [vmem:[#allocation2 + $0x88] sm:$0xff]  ;;  %v4821_v21 = vld [vmem:[#allocation2 + $0x90] sm:$0xff]  ;;  %v16986_v23 = vpack.c.bf16 %v4691_v19, %v4690_v18  ;;  %7010 = vmatpush1.bf16.msra.mxu0 %v14912_v26 }
 0x18f   :  { %4648 = vst.msk [vmem:[#allocation2 + $0x1e8] sm:$0xff] %vm4619_vm0, %v4582_v47  ;;  %4649 = vst.msk [vmem:[#allocation2 + $0x1f0] sm:$0xff] %vm4619_vm0, %v4583_v48  ;;  %v4880_v25 = vpack.c.bf16 %v4821_v21, %v4820_v20  ;;  %v4692_v28 = vld [vmem:[#allocation2 + $0x87] sm:$0xff]  ;;  %v4693_v29 = vld [vmem:[#allocation2 + $0x8f] sm:$0xff]  ;;  %7011 = vmatprep.subr.bf16.mxu0 %v15188_v1 }
 0x190   :  { %4652 = vst.msk [vmem:[#allocation2 + $0x268] sm:$0xff] %vm4619_vm0, %v4586_v56  ;;  %4653 = vst.msk [vmem:[#allocation2 + $0x270] sm:$0xff] %vm4619_vm0, %v4587_v58  ;;  %v14913_v30 = vld [vmem:[%s19549_s29 + $0xb8] sm:$0xff]   ;;  %v4822_v31 = vld [vmem:[#allocation2 + $0xa8] sm:$0xff]  ;;  %v17005_v33 = vpack.c.bf16 %v4693_v29, %v4692_v28 }
 0x191   :  { %4654 = vst.msk [vmem:[#allocation2 + $0x288] sm:$0xff] %vm4619_vm0, %v4588_v4  ;;  %4655 = vst.msk [vmem:[#allocation2 + $0x290] sm:$0xff] %vm4619_vm0, %v4589_v7  ;;  %v4823_v32 = vld [vmem:[#allocation2 + $0xb0] sm:$0xff]  ;;  %v14914_v36 = vld [vmem:[%s19549_s29 + $0xc0] sm:$0xff]  }
 0x192   :  { %4656 = vst.msk [vmem:[#allocation2 + $0x2a8] sm:$0xff] %vm4619_vm0, %v4590_v14  ;;  %4657 = vst.msk [vmem:[#allocation2 + $0x2b0] sm:$0xff] %vm4619_vm0, %v4591_v17  ;;  %v4881_v35 = vpack.c.bf16 %v4823_v32, %v4822_v31  ;;  %7012 = vmatpush1.bf16.msra.mxu0 %v14913_v30  ;;  %v4595_v37 = vld [vmem:[%s19550_s27 + $0x148] sm:$0xff]  ;;  %v4825_v41 = vld [vmem:[#allocation2 + $0xd0] sm:$0xff] }
 0x193   :  { %4658 = vst.msk [vmem:[#allocation2 + $0x2c8] sm:$0xff] %vm4619_vm0, %v4592_v24  ;;  %4659 = vst.msk [vmem:[#allocation2 + $0x2d0] sm:$0xff] %vm4619_vm0, %v4593_v27  ;;  %7013 = vmatprep.subr.bf16.mxu0 %v15188_v1  ;;  %v4694_v38 = vld [vmem:[#allocation2 + $0xa7] sm:$0xff]  ;;  %v4695_v39 = vld [vmem:[#allocation2 + $0xaf] sm:$0xff] }
 0x194   :  { %6757 = vmatmul.mubr.bf16.gmra.mrb[8].mxu0 %v16967_v13  ;;  %4660 = vst.msk [vmem:[#allocation2 + $0x2e8] sm:$0xff] %vm4619_vm0, %v4594_v34  ;;  %4661 = vst.msk [vmem:[#allocation2 + $0x2f0] sm:$0xff] %vm4619_vm0, %v4595_v37  ;;  %v4824_v40 = vld [vmem:[#allocation2 + $0xc8] sm:$0xff]  ;;  %v17024_v43 = vpack.c.bf16 %v4695_v39, %v4694_v38  ;;  %v4597_v47 = vld [vmem:[%s19550_s27 + $0x158] sm:$0xff] }
 0x195   :  { %6764 = vmatprep.mubr.bf16.mxu0 %v4879_v15  ;;  %v4882_v45 = vpack.c.bf16 %v4825_v41, %v4824_v40  ;;  %4662 = vst.msk [vmem:[#allocation2 + $0x308] sm:$0xff] %vm4619_vm0, %v4596_v44  ;;  %4663 = vst.msk [vmem:[#allocation2 + $0x310] sm:$0xff] %vm4619_vm0, %v4597_v47  ;;  %v4696_v48 = vld [vmem:[#allocation2 + $0xc7] sm:$0xff]  ;;  %v4697_v49 = vld [vmem:[#allocation2 + $0xcf] sm:$0xff] }
 0x196   :  { %7014 = vmatpush1.bf16.msra.mxu0 %v14914_v36  ;;  %v4826_v50 = vld [vmem:[#allocation2 + $0xe8] sm:$0xff]  ;;  %v4827_v51 = vld [vmem:[#allocation2 + $0xf0] sm:$0xff]  ;;  %v17040_v52 = vpack.c.bf16 %v4697_v49, %v4696_v48  ;;  %v4598_v53 = vld [vmem:[%s19550_s27 + $0x160] sm:$0xff]  ;;  %4665 = vst.msk [vmem:[#allocation2 + $0x330] sm:$0xff] %vm4619_vm0, %v4599_v55 }
 0x197   :  { %7015 = vmatprep.subr.bf16.mxu0 %v15188_v1  ;;  %v4883_v54 = vpack.c.bf16 %v4827_v51, %v4826_v50  ;;  %4664 = vst.msk [vmem:[#allocation2 + $0x328] sm:$0xff] %vm4619_vm0, %v4598_v53  ;;  %v4698_v56 = vld [vmem:[#allocation2 + $0xe7] sm:$0xff]  ;;  %v4699_v57 = vld [vmem:[#allocation2 + $0xef] sm:$0xff]  ;;  %v14917_v60 = vld [vmem:[%s19549_s29 + $0xd8] sm:$0xff]  }
 0x198   :  { %v4828_v58 = vld [vmem:[#allocation2 + $0x108] sm:$0xff]  ;;  %v4829_v59 = vld [vmem:[#allocation2 + $0x110] sm:$0xff]  ;;  %v17055_v61 = vpack.c.bf16 %v4699_v57, %v4698_v56  ;;  %v4601_v4 = vld [vmem:[%s19550_s27 + $0x178] sm:$0xff]  ;;  %4668 = vst.msk [vmem:[#allocation2 + $0x368] sm:$0xff] %vm4619_vm0, %v4602_v10 }
 0x199   :  { %v4600_v62 = vld [vmem:[%s19550_s27 + $0x170] sm:$0xff]  ;;  %v4884_v63 = vpack.c.bf16 %v4829_v59, %v4828_v58  ;;  %4667 = vst.msk [vmem:[#allocation2 + $0x350] sm:$0xff] %vm4619_vm0, %v4601_v4  ;;  %v4700_v5 = vld [vmem:[#allocation2 + $0x107] sm:$0xff]  ;;  %v4605_v22 = vld [vmem:[%s19550_s27 + $0x198] sm:$0xff] }
 0x19a   :  { %7016 = vmatpush1.bf16.msra.mxu0 %v14915_v42  ;;  %4666 = vst.msk [vmem:[#allocation2 + $0x348] sm:$0xff] %vm4619_vm0, %v4600_v62  ;;  %v4701_v6 = vld [vmem:[#allocation2 + $0x10f] sm:$0xff]  ;;  %v4702_v14 = vld [vmem:[#allocation2 + $0x127] sm:$0xff]  ;;  %4671 = vst.msk [vmem:[#allocation2 + $0x390] sm:$0xff] %vm4619_vm0, %v4605_v22 }
 0x19b   :  { %7017 = vmatprep.subr.bf16.mxu0 %v15188_v1  ;;  %v4830_v7 = vld [vmem:[#allocation2 + $0x128] sm:$0xff]  ;;  %v4831_v8 = vld [vmem:[#allocation2 + $0x130] sm:$0xff]  ;;  %v17066_v9 = vpack.c.bf16 %v4701_v6, %v4700_v5  ;;  %v14918_v18 = vld [vmem:[%s19549_s29 + $0xe0] sm:$0xff]  }
 0x19c   :  { %6765 = vmatmul.mubr.bf16.gmra.mrb[12].mxu0 %v16986_v23  ;;  %v4885_v11 = vpack.c.bf16 %v4831_v8, %v4830_v7  ;;  %v4603_v12 = vld [vmem:[%s19550_s27 + $0x188] sm:$0xff]  ;;  %v4833_v17 = vld [vmem:[#allocation2 + $0x150] sm:$0xff]  ;;  %v4606_v29 = vld [vmem:[%s19550_s27 + $0x1a0] sm:$0xff] }
 0x19d   :  { %6772 = vmatprep.mubr.bf16.mxu0 %v4880_v25  ;;  %4669 = vst.msk [vmem:[#allocation2 + $0x370] sm:$0xff] %vm4619_vm0, %v4603_v12  ;;  %v4703_v15 = vld [vmem:[#allocation2 + $0x12f] sm:$0xff]  ;;  %v4704_v24 = vld [vmem:[#allocation2 + $0x147] sm:$0xff]  ;;  %4672 = vst.msk [vmem:[#allocation2 + $0x3a8] sm:$0xff] %vm4619_vm0, %v4606_v29 }
 0x19e   :  { %7018 = vmatpush1.bf16.msra.mxu0 %v14916_v46  ;;  %v4832_v16 = vld [vmem:[#allocation2 + $0x148] sm:$0xff]  ;;  %v17081_v19 = vpack.c.bf16 %v4703_v15, %v4702_v14  ;;  %v4604_v20 = vld [vmem:[%s19550_s27 + $0x190] sm:$0xff]  ;;  %v4609_v41 = vld [vmem:[%s19550_s27 + $0x1b8] sm:$0xff] }
 0x19f   :  { %7019 = vmatprep.subr.bf16.mxu0 %v15188_v1  ;;  %v4886_v21 = vpack.c.bf16 %v4833_v17, %v4832_v16  ;;  %4670 = vst.msk [vmem:[#allocation2 + $0x388] sm:$0xff] %vm4619_vm0, %v4604_v20  ;;  %v4705_v25 = vld [vmem:[#allocation2 + $0x14f] sm:$0xff]  ;;  %v4706_v32 = vld [vmem:[#allocation2 + $0x167] sm:$0xff]  ;;  %4675 = vst.msk [vmem:[#allocation2 + $0x3d0] sm:$0xff] %vm4619_vm0, %v4609_v41 }
 0x1a0   :  { %v4834_v26 = vld [vmem:[#allocation2 + $0x168] sm:$0xff]  ;;  %v4835_v27 = vld [vmem:[#allocation2 + $0x170] sm:$0xff]  ;;  %v17092_v28 = vpack.c.bf16 %v4705_v25, %v4704_v24  ;;  %v4610_v48 = vld [vmem:[%s19550_s27 + $0x1c0] sm:$0xff] }
 0x1a1   :  { %v4887_v30 = vpack.c.bf16 %v4835_v27, %v4834_v26  ;;  %v4607_v31 = vld [vmem:[%s19550_s27 + $0x1a8] sm:$0xff]  ;;  %v4837_v36 = vld [vmem:[#allocation2 + $0x190] sm:$0xff]  ;;  %4676 = vst.msk [vmem:[#allocation2 + $0x3e8] sm:$0xff] %vm4619_vm0, %v4610_v48  ;;  %v4614_v7 = vld [vmem:[%s19550_s27 + $0x1e0] sm:$0xff] }
 0x1a2   :  { %7020 = vmatpush1.bf16.msra.mxu0 %v14917_v60  ;;  %4673 = vst.msk [vmem:[#allocation2 + $0x3b0] sm:$0xff] %vm4619_vm0, %v4607_v31  ;;  %v4707_v34 = vld [vmem:[#allocation2 + $0x16f] sm:$0xff]  ;;  %v4708_v42 = vld [vmem:[#allocation2 + $0x187] sm:$0xff]  ;;  %v4613_v60 = vld [vmem:[%s19550_s27 + $0x1d8] sm:$0xff] }
 0x1a3   :  { %7021 = vmatprep.subr.bf16.mxu0 %v15188_v1  ;;  %v14919_v37 = vld [vmem:[%s19549_s29 + $0xe8] sm:$0xff]   ;;  %v17107_v38 = vpack.c.bf16 %v4707_v34, %v4706_v32  ;;  %v4608_v39 = vld [vmem:[%s19550_s27 + $0x1b0] sm:$0xff]  ;;  %4679 = vst.msk [vmem:[#allocation2 + $0x410] sm:$0xff] %vm4619_vm0, %v4613_v60  ;;  %4680 = vst.msk [vmem:[#allocation2 + $0x428] sm:$0xff] %vm4619_vm0, %v4614_v7 }
 0x1a4   :  { %6773 = vmatmul.mubr.bf16.gmra.mrb[16].mxu0 %v17005_v33  ;;  %4674 = vst.msk [vmem:[#allocation2 + $0x3c8] sm:$0xff] %vm4619_vm0, %v4608_v39  ;;  %v4709_v44 = vld [vmem:[#allocation2 + $0x18f] sm:$0xff]  ;;  %v4710_v51 = vld [vmem:[#allocation2 + $0x1a7] sm:$0xff]  ;;  %v14921_v14 = vld [vmem:[%s19549_s29 + $0xf8] sm:$0xff]  }
 0x1a5   :  { %6780 = vmatprep.mubr.bf16.mxu0 %v4881_v35  ;;  %v4836_v35 = vld [vmem:[#allocation2 + $0x188] sm:$0xff]  ;;  %v4839_v46 = vld [vmem:[#allocation2 + $0x1b0] sm:$0xff]  ;;  %v17118_v47 = vpack.c.bf16 %v4709_v44, %v4708_v42 }
 0x1a6   :  { %7022 = vmatpush1.bf16.msra.mxu0 %v14918_v18  ;;  %v4888_v40 = vpack.c.bf16 %v4837_v36, %v4836_v35  ;;  %v4611_v50 = vld [vmem:[%s19550_s27 + $0x1c8] sm:$0xff]  ;;  %v4841_v55 = vld [vmem:[#allocation2 + $0x1d0] sm:$0xff] }
 0x1a7   :  { %7023 = vmatprep.subr.bf16.mxu0 %v15188_v1  ;;  %4677 = vst.msk [vmem:[#allocation2 + $0x3f0] sm:$0xff] %vm4619_vm0, %v4611_v50  ;;  %v4711_v53 = vld [vmem:[#allocation2 + $0x1af] sm:$0xff]  ;;  %v4712_v62 = vld [vmem:[#allocation2 + $0x1c7] sm:$0xff] }
 0x1a8   :  { %v14920_v56 = vld [vmem:[%s19549_s29 + $0xf0] sm:$0xff]   ;;  %v17133_v57 = vpack.c.bf16 %v4711_v53, %v4710_v51  ;;  %v4842_v4 = vld [vmem:[#allocation2 + $0x1e8] sm:$0xff] }
 0x1a9   :  { %v4612_v58 = vld [vmem:[%s19550_s27 + $0x1d0] sm:$0xff]  ;;  %v4615_v10 = vld [vmem:[%s19550_s27 + $0x1e8] sm:$0xff] }
 0x1aa   :  { %7024 = vmatpush1.bf16.msra.mxu0 %v14919_v37  ;;  %4678 = vst.msk [vmem:[#allocation2 + $0x408] sm:$0xff] %vm4619_vm0, %v4612_v58  ;;  %v4843_v5 = vld [vmem:[#allocation2 + $0x1f0] sm:$0xff]  ;;  %4681 = vst.msk [vmem:[#allocation2 + $0x430] sm:$0xff] %vm4619_vm0, %v4615_v10  ;;  %v4716_v16 = vld [vmem:[#allocation2 + $0x247] sm:$0xff] }
 0x1ab   :  { %7025 = vmatprep.subr.bf16.mxu0 %v15188_v1  ;;  %v4891_v8 = vpack.c.bf16 %v4843_v5, %v4842_v4  ;;  %v4715_v12 = vld [vmem:[#allocation2 + $0x1ef] sm:$0xff]  ;;  %v4718_v24 = vld [vmem:[#allocation2 + $0x267] sm:$0xff] }
 0x1ac   :  { %6781 = vmatmul.mubr.bf16.gmra.mrb[20].mxu0 %v17024_v43  ;;  %v4717_v17 = vld [vmem:[#allocation2 + $0x24f] sm:$0xff]  ;;  %v4720_v31 = vld [vmem:[#allocation2 + $0x287] sm:$0xff] }
 0x1ad   :  { %6788 = vmatprep.mubr.bf16.mxu0 %v4882_v45  ;;  %v4838_v45 = vld [vmem:[#allocation2 + $0x1a8] sm:$0xff]  ;;  %v4847_v20 = vld [vmem:[#allocation2 + $0x270] sm:$0xff] }
 0x1ae   :  { %v4889_v49 = vpack.c.bf16 %v4839_v46, %v4838_v45  ;;  %7026 = vmatpush1.bf16.msra.mxu0 %v14920_v56  ;;  %v4846_v18 = vld [vmem:[#allocation2 + $0x268] sm:$0xff]  ;;  %v4849_v27 = vld [vmem:[#allocation2 + $0x290] sm:$0xff] }
 0x1af   :  { %7027 = vmatprep.subr.bf16.mxu0 %v15188_v1  ;;  %v4893_v22 = vpack.c.bf16 %v4847_v20, %v4846_v18  ;;  %v4719_v25 = vld [vmem:[#allocation2 + $0x26f] sm:$0xff]  ;;  %v4722_v39 = vld [vmem:[#allocation2 + $0x2a7] sm:$0xff] }
 0x1b0   :  { %v4848_v26 = vld [vmem:[#allocation2 + $0x288] sm:$0xff]  ;;  %v17163_v29 = vpack.c.bf16 %v4719_v25, %v4718_v24  ;;  %v4851_v35 = vld [vmem:[#allocation2 + $0x2b0] sm:$0xff] }
 0x1b1   :  { %v4721_v32 = vld [vmem:[#allocation2 + $0x28f] sm:$0xff]  ;;  %v4724_v46 = vld [vmem:[#allocation2 + $0x2c7] sm:$0xff] }
 0x1b2   :  { %7028 = vmatpush1.bf16.msra.mxu0 %v14921_v14  ;;  %v4850_v34 = vld [vmem:[#allocation2 + $0x2a8] sm:$0xff]  ;;  %v17166_v36 = vpack.c.bf16 %v4721_v32, %v4720_v31  ;;  %v4853_v42 = vld [vmem:[#allocation2 + $0x2d0] sm:$0xff] }
 0x1b3   :  { %7286 = vmatprep.subr.bf16.mxu0 %v15188_v1  ;;  %v4895_v37 = vpack.c.bf16 %v4851_v35, %v4850_v34  ;;  %v4852_v41 = vld [vmem:[#allocation2 + $0x2c8] sm:$0xff]  ;;  %v4855_v50 = vld [vmem:[#allocation2 + $0x2f0] sm:$0xff] }
 0x1b4   :  { %6789 = vmatmul.mubr.bf16.gmra.mrb[24].mxu0 %v17040_v52  ;;  %v4896_v45 = vpack.c.bf16 %v4853_v42, %v4852_v41  ;;  %v4725_v48 = vld [vmem:[#allocation2 + $0x2cf] sm:$0xff]  ;;  %v4730_v10 = vld [vmem:[#allocation2 + $0x327] sm:$0xff] }
 0x1b5   :  { %6796 = vmatprep.mubr.bf16.mxu0 %v4883_v54  ;;  %v4840_v54 = vld [vmem:[#allocation2 + $0x1c8] sm:$0xff]  ;;  %v17172_v51 = vpack.c.bf16 %v4725_v48, %v4724_v46  ;;  %v4857_v58 = vld [vmem:[#allocation2 + $0x310] sm:$0xff] }
 0x1b6   :  { %v4890_v59 = vpack.c.bf16 %v4841_v55, %v4840_v54  ;;  %v4726_v54 = vld [vmem:[#allocation2 + $0x2e7] sm:$0xff]  ;;  %v4727_v55 = vld [vmem:[#allocation2 + $0x2ef] sm:$0xff] }
 0x1b7   :  { %v4856_v56 = vld [vmem:[#allocation2 + $0x308] sm:$0xff]  ;;  %v4859_v5 = vld [vmem:[#allocation2 + $0x330] sm:$0xff] }
 0x1b8   :  { %v4898_v60 = vpack.c.bf16 %v4857_v58, %v4856_v56  ;;  %v4858_v4 = vld [vmem:[#allocation2 + $0x328] sm:$0xff]  ;;  %v4861_v14 = vld [vmem:[#allocation2 + $0x350] sm:$0xff] }
 0x1b9   :  { %v4732_v18 = vld [vmem:[#allocation2 + $0x347] sm:$0xff]  ;;  %v4733_v20 = vld [vmem:[#allocation2 + $0x34f] sm:$0xff] }
 0x1ba   :  { %v17184_v24 = vpack.c.bf16 %v4733_v20, %v4732_v18  ;;  %v4865_v31 = vld [vmem:[#allocation2 + $0x390] sm:$0xff]  ;;  %v4736_v35 = vld [vmem:[#allocation2 + $0x387] sm:$0xff] }
 0x1bb   :  { %v4739_v46 = vld [vmem:[#allocation2 + $0x3af] sm:$0xff] }
 0x1bc   :  { %6797 = vmatmul.mubr.bf16.gmra.mrb[28].mxu0 %v17055_v61  ;;  %v4868_v48 = vld [vmem:[#allocation2 + $0x3c8] sm:$0xff]  ;;  %v4871_v58 = vld [vmem:[#allocation2 + $0x3f0] sm:$0xff] }
 0x1bd   :  { %6804 = vmatprep.mubr.bf16.mxu0 %v4884_v63  ;;  %v4713_v63 = vld [vmem:[#allocation2 + $0x1cf] sm:$0xff] }
 0x1be   :  { %v17144_v6 = vpack.c.bf16 %v4713_v63, %v4712_v62  ;;  %v4728_v62 = vld [vmem:[#allocation2 + $0x307] sm:$0xff]  ;;  %v4729_v63 = vld [vmem:[#allocation2 + $0x30f] sm:$0xff] }
 0x1bf   :  { %v17178_v7 = vpack.c.bf16 %v4729_v63, %v4728_v62  ;;  %v4870_v56 = vld [vmem:[#allocation2 + $0x3e8] sm:$0xff]  ;;  %v4875_v18 = vld [vmem:[#allocation2 + $0x430] sm:$0xff] }
 0x1c0   :  { %v4905_v62 = vpack.c.bf16 %v4871_v58, %v4870_v56  ;;  %v4742_v63 = vld [vmem:[#allocation2 + $0x3e7] sm:$0xff]  ;;  %v14928_v58 = vld [vmem:[%s19549_s29 + $0x130] sm:$0xff]  }
 0x1c4   :  { %6805 = vmatmul.mubr.bf16.gmra.mrb[32].mxu0 %v17066_v9 }
 0x1c5   :  { %6812 = vmatprep.mubr.bf16.mxu0 %v4885_v11  ;;  %v4714_v11 = vld [vmem:[#allocation2 + $0x1e7] sm:$0xff] }
 0x1c6   :  { %v17159_v15 = vpack.c.bf16 %v4715_v12, %v4714_v11  ;;  %v4731_v11 = vld [vmem:[#allocation2 + $0x32f] sm:$0xff] }
 0x1c7   :  { %v4860_v12 = vld [vmem:[#allocation2 + $0x348] sm:$0xff] }
 0x1cc   :  { %6813 = vmatmul.mubr.bf16.gmra.mrb[36].mxu0 %v17081_v19 }
 0x1cd   :  { %6820 = vmatprep.mubr.bf16.mxu0 %v4886_v21  ;;  %v4764_v21 = vpack.c.bf16 %v4717_v17, %v4716_v16  ;;  %v17181_v16 = vpack.c.bf16 %v4731_v11, %v4730_v10  ;;  %v4900_v17 = vpack.c.bf16 %v4861_v14, %v4860_v12  ;;  %v4744_v12 = vld [vmem:[#allocation2 + $0x407] sm:$0xff]  ;;  %v4745_v14 = vld [vmem:[#allocation2 + $0x40f] sm:$0xff] }
 0x1ce   :  { %v17202_v20 = vpack.c.bf16 %v4745_v14, %v4744_v12  ;;  %v14932_v14 = vld [vmem:[%s19549_s29 + $0x150] sm:$0xff]  }
 0x1d4   :  { %6821 = vmatmul.mubr.bf16.gmra.mrb[40].mxu0 %v17092_v28 }
 0x1d5   :  { %6828 = vmatprep.mubr.bf16.mxu0 %v4887_v30  ;;  %v4894_v30 = vpack.c.bf16 %v4849_v27, %v4848_v26  ;;  %v4734_v26 = vld [vmem:[#allocation2 + $0x367] sm:$0xff]  ;;  %v4735_v27 = vld [vmem:[#allocation2 + $0x36f] sm:$0xff] }
 0x1d6   :  { %v17187_v32 = vpack.c.bf16 %v4735_v27, %v4734_v26  ;;  %v4746_v26 = vld [vmem:[#allocation2 + $0x427] sm:$0xff]  ;;  %v4747_v27 = vld [vmem:[#allocation2 + $0x42f] sm:$0xff] }
 0x1dc   :  { %6829 = vmatmul.mubr.bf16.gmra.mrb[44].mxu0 %v17107_v38 }
 0x1dd   :  { %6836 = vmatprep.mubr.bf16.mxu0 %v4888_v40  ;;  %v4723_v40 = vld [vmem:[#allocation2 + $0x2af] sm:$0xff] }
 0x1de   :  { %v17169_v44 = vpack.c.bf16 %v4723_v40, %v4722_v39  ;;  %v4866_v39 = vld [vmem:[#allocation2 + $0x3a8] sm:$0xff]  ;;  %v4867_v40 = vld [vmem:[#allocation2 + $0x3b0] sm:$0xff] }
 0x1df   :  { %v4903_v42 = vpack.c.bf16 %v4867_v40, %v4866_v39  ;;  %v4942_v39 = vld [vmem:[#allocation2 + $0x29] sm:$0xff]  ;;  %v4943_v40 = vld [vmem:[#allocation2 + $0x31] sm:$0xff] }
 0x1e4   :  { %6837 = vmatmul.mubr.bf16.gmra.mrb[48].mxu0 %v17118_v47 }
 0x1e5   :  { %6844 = vmatprep.mubr.bf16.mxu0 %v4889_v49  ;;  %v4854_v49 = vld [vmem:[#allocation2 + $0x2e8] sm:$0xff] }
 0x1e6   :  { %v4897_v53 = vpack.c.bf16 %v4855_v50, %v4854_v49  ;;  %v4869_v49 = vld [vmem:[#allocation2 + $0x3d0] sm:$0xff] }
 0x1ec   :  { %6845 = vmatmul.mubr.bf16.gmra.mrb[52].mxu0 %v17133_v57 }
 0x1ed   :  { %6852 = vmatprep.mubr.bf16.mxu0 %v4890_v59  ;;  %v17175_v59 = vpack.c.bf16 %v4727_v55, %v4726_v54  ;;  %v4740_v54 = vld [vmem:[#allocation2 + $0x3c7] sm:$0xff]  ;;  %v4741_v55 = vld [vmem:[#allocation2 + $0x3cf] sm:$0xff] }
 0x1f4   :  { %6853 = vmatmul.mubr.bf16.gmra.mrb[56].mxu0 %v17144_v6 }
 0x1f5   :  { %6860 = vmatprep.mubr.bf16.mxu0 %v4891_v8  ;;  %v4899_v8 = vpack.c.bf16 %v4859_v5, %v4858_v4  ;;  %v4743_v4 = vld [vmem:[#allocation2 + $0x3ef] sm:$0xff] }
 0x1f6   :  { %v4872_v5 = vld [vmem:[#allocation2 + $0x408] sm:$0xff]  ;;  %v17199_v10 = vpack.c.bf16 %v4743_v4, %v4742_v63  ;;  %v14929_v63 = vld [vmem:[%s19549_s29 + $0x138] sm:$0xff]  }
 0x1fc   :  { %6861 = vmatmul.mubr.bf16.gmra.mrb[60].mxu0 %v17159_v15 }
 0x1fd   :  { %6868 = vmatprep.mubr.bf16.mxu0 %v19543_v2  ;;  %v15087_v2 = vld [vmem:[#allocation12 + $0x190] sm:$0xff]  }
 0x204   :  { %6869 = vmatmul.mubr.bf16.gmra.mrb[64].mxu0 %v4764_v21  ;;  %v4862_v21 = vld [vmem:[#allocation2 + $0x368] sm:$0xff] }
 0x205   :  { %6876 = vmatprep.mubr.bf16.mxu0 %v4893_v22  ;;  %v4863_v22 = vld [vmem:[#allocation2 + $0x370] sm:$0xff] }
 0x206   :  { %v4901_v25 = vpack.c.bf16 %v4863_v22, %v4862_v21  ;;  %v4584_v21 = vld [vmem:[%s19550_s27 + $0xf0] sm:$0xff]  ;;  %v4585_v22 = vld [vmem:[%s19550_s27 + $0xf8] sm:$0xff] }
 0x207   :  { %4650 = vst.msk [vmem:[#allocation2 + $0x208] sm:$0xff] %vm4619_vm0, %v4584_v21  ;;  %4651 = vst.msk [vmem:[#allocation2 + $0x210] sm:$0xff] %vm4619_vm0, %v4585_v22  ;;  %v14933_v21 = vld [vmem:[%s19549_s29 + $0x158] sm:$0xff]   ;;  %v4954_v22 = vld [vmem:[#allocation2 + $0xe9] sm:$0xff] }
 0x20c   :  { %6877 = vmatmul.mubr.bf16.gmra.mrb[68].mxu0 %v17163_v29 }
 0x20d   :  { %6884 = vmatprep.mubr.bf16.mxu0 %v4894_v30  ;;  %v4864_v30 = vld [vmem:[#allocation2 + $0x388] sm:$0xff] }
 0x20e   :  { %v4902_v34 = vpack.c.bf16 %v4865_v31, %v4864_v30  ;;  %v17213_v30 = vpack.c.bf16 %v4747_v27, %v4746_v26  ;;  %v4940_v31 = vld [vmem:[#allocation2 + $0x9] sm:$0xff]  ;;  %v4957_v27 = vld [vmem:[#allocation2 + $0x111] sm:$0xff] }
 0x20f   :  { %v4956_v26 = vld [vmem:[#allocation2 + $0x109] sm:$0xff] }
 0x214   :  { %6885 = vmatmul.mubr.bf16.gmra.mrb[72].mxu0 %v17166_v36 }
 0x215   :  { %6892 = vmatprep.mubr.bf16.mxu0 %v4895_v37  ;;  %v4737_v37 = vld [vmem:[#allocation2 + $0x38f] sm:$0xff] }
 0x216   :  { %v17190_v41 = vpack.c.bf16 %v4737_v37, %v4736_v35  ;;  %v14922_v37 = vld [vmem:[%s19549_s29 + $0x100] sm:$0xff]  }
 0x21c   :  { %6893 = vmatmul.mubr.bf16.gmra.mrb[76].mxu0 %v17169_v44 }
 0x21d   :  { %6900 = vmatprep.mubr.bf16.mxu0 %v4896_v45  ;;  %v4738_v45 = vld [vmem:[#allocation2 + $0x3a7] sm:$0xff] }
 0x21e   :  { %v17193_v50 = vpack.c.bf16 %v4739_v46, %v4738_v45  ;;  %v14924_v45 = vld [vmem:[%s19549_s29 + $0x110] sm:$0xff]  }
 0x21f   :  { %v4945_v46 = vld [vmem:[#allocation2 + $0x51] sm:$0xff] }
 0x224   :  { %6901 = vmatmul.mubr.bf16.gmra.mrb[80].mxu0 %v17172_v51 }
 0x225   :  { %6908 = vmatprep.mubr.bf16.mxu0 %v4897_v53  ;;  %v4904_v53 = vpack.c.bf16 %v4869_v49, %v4868_v48  ;;  %v14925_v48 = vld [vmem:[%s19549_s29 + $0x118] sm:$0xff]  }
 0x22c   :  { %6909 = vmatmul.mubr.bf16.gmra.mrb[84].mxu0 %v17175_v59 }
 0x22d   :  { %6916 = vmatprep.mubr.bf16.mxu0 %v4898_v60  ;;  %v17196_v60 = vpack.c.bf16 %v4741_v55, %v4740_v54  ;;  %v4947_v54 = vld [vmem:[#allocation2 + $0x71] sm:$0xff]  ;;  %v14927_v55 = vld [vmem:[%s19549_s29 + $0x128] sm:$0xff]  }
 0x234   :  { %6917 = vmatmul.mubr.bf16.gmra.mrb[88].mxu0 %v17178_v7 }
 0x235   :  { %6924 = vmatprep.mubr.bf16.mxu0 %v4899_v8  ;;  %v4873_v8 = vld [vmem:[#allocation2 + $0x410] sm:$0xff] }
 0x236   :  { %v4906_v11 = vpack.c.bf16 %v4873_v8, %v4872_v5  ;;  %v14930_v5 = vld [vmem:[%s19549_s29 + $0x140] sm:$0xff]   ;;  %v4951_v8 = vld [vmem:[#allocation2 + $0xb1] sm:$0xff] }
 0x23c   :  { %6925 = vmatmul.mubr.bf16.gmra.mrb[92].mxu0 %v17181_v16 }
 0x23d   :  { %6932 = vmatprep.mubr.bf16.mxu0 %v4900_v17  ;;  %v4874_v17 = vld [vmem:[#allocation2 + $0x428] sm:$0xff] }
 0x244   :  { %6933 = vmatmul.mubr.bf16.gmra.mrb[96].mxu0 %v17184_v24 }
 0x245   :  { %6940 = vmatprep.mubr.bf16.mxu0 %v4901_v25  ;;  %v4907_v25 = vpack.c.bf16 %v4875_v18, %v4874_v17  ;;  %v4953_v17 = vld [vmem:[#allocation2 + $0xd1] sm:$0xff] }
 0x24c   :  { %6941 = vmatmul.mubr.bf16.gmra.mrb[100].mxu0 %v17187_v32 }
 0x24d   :  { %6948 = vmatprep.mubr.bf16.mxu0 %v4902_v34  ;;  %v4941_v34 = vld [vmem:[#allocation2 + $0x11] sm:$0xff] }
 0x24e   :  { %v5004_v35 = vpack.c.bf16 %v4941_v34, %v4940_v31  ;;  %v17294_v31 = vpack.c.bf16 %v4957_v27, %v4956_v26  ;;  %v4958_v34 = vld [vmem:[#allocation2 + $0x129] sm:$0xff]  ;;  %v4977_v27 = vld [vmem:[#allocation2 + $0x291] sm:$0xff] }
 0x24f   :  { %v4976_v26 = vld [vmem:[#allocation2 + $0x289] sm:$0xff] }
 0x254   :  { %6949 = vmatmul.mubr.bf16.gmra.mrb[104].mxu0 %v17190_v41 }
 0x255   :  { %6956 = vmatprep.mubr.bf16.mxu0 %v4903_v42  ;;  %v14923_v42 = vld [vmem:[%s19549_s29 + $0x108] sm:$0xff]  }
 0x25c   :  { %6957 = vmatmul.mubr.bf16.gmra.mrb[108].mxu0 %v17193_v50 }
 0x25d   :  { %6964 = vmatprep.mubr.bf16.mxu0 %v4904_v53  ;;  %v14926_v53 = vld [vmem:[%s19549_s29 + $0x120] sm:$0xff]  }
 0x264   :  { %6965 = vmatmul.mubr.bf16.gmra.mrb[112].mxu0 %v17196_v60 }
 0x265   :  { %6972 = vmatprep.mubr.bf16.mxu0 %v4905_v62  ;;  %v4949_v62 = vld [vmem:[#allocation2 + $0x91] sm:$0xff] }
 0x26c   :  { %6973 = vmatmul.mubr.bf16.gmra.mrb[116].mxu0 %v17199_v10 }
 0x26d   :  { %6980 = vmatprep.mubr.bf16.mxu0 %v4906_v11  ;;  %v14931_v11 = vld [vmem:[%s19549_s29 + $0x148] sm:$0xff]  }
 0x274   :  { %6981 = vmatmul.mubr.bf16.gmra.mrb[120].mxu0 %v17202_v20 }
 0x275   :  { %6988 = vmatprep.mubr.bf16.mxu0 %v4907_v25  ;;  %v4955_v25 = vld [vmem:[#allocation2 + $0xf1] sm:$0xff] }
 0x27c   :  { %6989 = vmatmul.mubr.bf16.gmra.mrb[124].mxu0 %v17213_v30 }
 0x27d   :  { %7029 = vmatprep.mubr.bf16.mxu0 %v16948_v0  ;;  %v17225_v0 = vpack.c.bf16 %v4943_v40, %v4942_v39  ;;  %v4961_v39 = vld [vmem:[#allocation2 + $0x151] sm:$0xff] }
 0x284   :  { %7030 = vmatmul.mubr.bf16.vlgmr.msra.gmra.mrb[0].mxu0 %v5004_v35  ;;  %v4959_v35 = vld [vmem:[#allocation2 + $0x131] sm:$0xff] }
 0x285   :  { %7287 = vmatpush1.bf16.msra.mxu0 %v14922_v37  ;;  %7037 = vmatprep.mubr.bf16.mxu0 %v16967_v13  ;;  %v4944_v13 = vld [vmem:[#allocation2 + $0x49] sm:$0xff]  ;;  %v17302_v37 = vpack.c.bf16 %v4959_v35, %v4958_v34  ;;  %v4979_v34 = vld [vmem:[#allocation2 + $0x2b1] sm:$0xff] }
 0x286   :  { %7288 = vmatprep.subr.bf16.mxu0 %v15188_v1  ;;  %v17237_v49 = vpack.c.bf16 %v4945_v46, %v4944_v13  ;;  %v4965_v46 = vld [vmem:[#allocation2 + $0x191] sm:$0xff] }
 0x289   :  { %7289 = vmatpush1.bf16.msra.mxu0 %v14923_v42  ;;  %v4962_v42 = vld [vmem:[#allocation2 + $0x169] sm:$0xff] }
 0x28a   :  { %7290 = vmatprep.subr.bf16.mxu0 %v15188_v1 }
 0x28c   :  { %7038 = vmatmul.mubr.bf16.gmra.mrb[4].mxu0 %v17225_v0 }
 0x28d   :  { %7045 = vmatprep.mubr.bf16.mxu0 %v16986_v23  ;;  %7291 = vmatpush1.bf16.msra.mxu0 %v14924_v45  ;;  %v4946_v23 = vld [vmem:[#allocation2 + $0x69] sm:$0xff]  ;;  %v4963_v45 = vld [vmem:[#allocation2 + $0x171] sm:$0xff] }
 0x28e   :  { %7292 = vmatprep.subr.bf16.mxu0 %v15188_v1  ;;  %v17249_v56 = vpack.c.bf16 %v4947_v54, %v4946_v23  ;;  %v17314_v13 = vpack.c.bf16 %v4963_v45, %v4962_v42  ;;  %v4967_v23 = vld [vmem:[#allocation2 + $0x1b1] sm:$0xff] }
 0x28f   :  { %v4985_v45 = vld [vmem:[#allocation2 + $0x311] sm:$0xff] }
 0x291   :  { %7293 = vmatpush1.bf16.msra.mxu0 %v14925_v48 }
 0x292   :  { %7294 = vmatprep.subr.bf16.mxu0 %v15188_v1 }
 0x294   :  { %7046 = vmatmul.mubr.bf16.gmra.mrb[8].mxu0 %v17237_v49 }
 0x295   :  { %7053 = vmatprep.mubr.bf16.mxu0 %v17005_v33  ;;  %7295 = vmatpush1.bf16.msra.mxu0 %v14926_v53  ;;  %v4948_v33 = vld [vmem:[#allocation2 + $0x89] sm:$0xff] }
 0x296   :  { %7296 = vmatprep.subr.bf16.mxu0 %v15188_v1  ;;  %v17261_v4 = vpack.c.bf16 %v4949_v62, %v4948_v33  ;;  %v4966_v53 = vld [vmem:[#allocation2 + $0x1a9] sm:$0xff] }
 0x297   :  { %v17326_v54 = vpack.c.bf16 %v4967_v23, %v4966_v53  ;;  %v5099_v33 = vld [vmem:[#allocation2 + $0x20f] sm:$0xff] }
 0x298   :  { %v4989_v53 = vld [vmem:[#allocation2 + $0x351] sm:$0xff] }
 0x299   :  { %7297 = vmatpush1.bf16.msra.mxu0 %v14927_v55  ;;  %v4969_v55 = vld [vmem:[#allocation2 + $0x1d1] sm:$0xff] }
 0x29a   :  { %7298 = vmatprep.subr.bf16.mxu0 %v15188_v1 }
 0x29c   :  { %7054 = vmatmul.mubr.bf16.gmra.mrb[12].mxu0 %v17249_v56 }
 0x29d   :  { %7061 = vmatprep.mubr.bf16.mxu0 %v17024_v43  ;;  %7299 = vmatpush1.bf16.msra.mxu0 %v14928_v58  ;;  %v4950_v43 = vld [vmem:[#allocation2 + $0xa9] sm:$0xff] }
 0x29e   :  { %7300 = vmatprep.subr.bf16.mxu0 %v15188_v1  ;;  %v17273_v12 = vpack.c.bf16 %v4951_v8, %v4950_v43  ;;  %v5098_v58 = vld [vmem:[#allocation2 + $0x207] sm:$0xff]  ;;  %v4971_v8 = vld [vmem:[#allocation2 + $0x1f1] sm:$0xff] }
 0x29f   :  { %v4970_v43 = vld [vmem:[#allocation2 + $0x1e9] sm:$0xff] }
 0x2a1   :  { %7301 = vmatpush1.bf16.msra.mxu0 %v14929_v63  ;;  %v4617_v63 = vld [vmem:[%s19550_s27 + $0x1f8] sm:$0xff] }
 0x2a2   :  { %7302 = vmatprep.subr.bf16.mxu0 %v15188_v1  ;;  %4683 = vst.msk [vmem:[#allocation2 + $0x450] sm:$0xff] %vm4619_vm0, %v4617_v63 }
 0x2a4   :  { %7062 = vmatmul.mubr.bf16.gmra.mrb[16].mxu0 %v17261_v4 }
 0x2a5   :  { %7069 = vmatprep.mubr.bf16.mxu0 %v17040_v52  ;;  %7303 = vmatpush1.bf16.msra.mxu0 %v14930_v5  ;;  %v4952_v52 = vld [vmem:[#allocation2 + $0xc9] sm:$0xff]  ;;  %v5147_v5 = vpack.c.bf16 %v5099_v33, %v5098_v58  ;;  %v4993_v58 = vld [vmem:[#allocation2 + $0x391] sm:$0xff] }
 0x2a6   :  { %7304 = vmatprep.subr.bf16.mxu0 %v15188_v1  ;;  %v17282_v18 = vpack.c.bf16 %v4953_v17, %v4952_v52  ;;  %v4973_v52 = vld [vmem:[#allocation2 + $0x251] sm:$0xff] }
 0x2a9   :  { %7305 = vmatpush1.bf16.msra.mxu0 %v14931_v11  ;;  %v17345_v11 = vpack.c.bf16 %v4971_v8, %v4970_v43  ;;  %v4999_v43 = vld [vmem:[#allocation2 + $0x3f1] sm:$0xff] }
 0x2aa   :  { %7306 = vmatprep.subr.bf16.mxu0 %v15188_v1 }
 0x2ac   :  { %7070 = vmatmul.mubr.bf16.gmra.mrb[20].mxu0 %v17273_v12 }
 0x2ad   :  { %7077 = vmatprep.mubr.bf16.mxu0 %v17055_v61  ;;  %7307 = vmatpush1.bf16.msra.mxu0 %v14932_v14  ;;  %v17290_v61 = vpack.c.bf16 %v4955_v25, %v4954_v22  ;;  %v4972_v14 = vld [vmem:[#allocation2 + $0x249] sm:$0xff]  ;;  %v4975_v22 = vld [vmem:[#allocation2 + $0x271] sm:$0xff] }
 0x2ae   :  { %7308 = vmatprep.subr.bf16.mxu0 %v15188_v1  ;;  %v5020_v17 = vpack.c.bf16 %v4973_v52, %v4972_v14  ;;  %v5001_v14 = vld [vmem:[#allocation2 + $0x411] sm:$0xff] }
 0x2b1   :  { %7309 = vmatpush1.bf16.msra.mxu0 %v14933_v21  ;;  %v4974_v21 = vld [vmem:[#allocation2 + $0x269] sm:$0xff] }
 0x2b2   :  { %7310 = vmatprep.subr.bf16.mxu0 %v15188_v1  ;;  %v17350_v25 = vpack.c.bf16 %v4975_v22, %v4974_v21  ;;  %v5002_v22 = vld [vmem:[#allocation2 + $0x429] sm:$0xff] }
 0x2b4   :  { %7078 = vmatmul.mubr.bf16.gmra.mrb[24].mxu0 %v17282_v18 }
 0x2b5   :  { %7085 = vmatprep.mubr.bf16.mxu0 %v17066_v9  ;;  %v14934_v9 = vld [vmem:[%s19549_s29 + $0x160] sm:$0xff]  }
 0x2b6   :  { %7311 = vmatpush1.bf16.msra.mxu0 %v14934_v9  ;;  %v17354_v9 = vpack.c.bf16 %v4977_v27, %v4976_v26  ;;  %v5196_v27 = vld [vmem:[#allocation2 + $0x28] sm:$0xff] }
 0x2b7   :  { %7312 = vmatprep.subr.bf16.mxu0 %v15188_v1 }
 0x2bc   :  { %7086 = vmatmul.mubr.bf16.gmra.mrb[28].mxu0 %v17290_v61 }
 0x2bd   :  { %7093 = vmatprep.mubr.bf16.mxu0 %v17081_v19  ;;  %v4960_v19 = vld [vmem:[#allocation2 + $0x149] sm:$0xff] }
 0x2be   :  { %v17306_v40 = vpack.c.bf16 %v4961_v39, %v4960_v19  ;;  %v4981_v19 = vld [vmem:[#allocation2 + $0x2d1] sm:$0xff] }
 0x2c4   :  { %7094 = vmatmul.mubr.bf16.gmra.mrb[32].mxu0 %v17294_v31 }
 0x2c5   :  { %7101 = vmatprep.mubr.bf16.mxu0 %v17092_v28  ;;  %v14935_v28 = vld [vmem:[%s19549_s29 + $0x168] sm:$0xff]  }
 0x2c6   :  { %7313 = vmatpush1.bf16.msra.mxu0 %v14935_v28  ;;  %v4983_v28 = vld [vmem:[#allocation2 + $0x2f1] sm:$0xff] }
 0x2c7   :  { %7314 = vmatprep.subr.bf16.mxu0 %v15188_v1 }
 0x2cc   :  { %7102 = vmatmul.mubr.bf16.gmra.mrb[36].mxu0 %v17302_v37 }
 0x2cd   :  { %7109 = vmatprep.mubr.bf16.mxu0 %v17107_v38  ;;  %v4964_v38 = vld [vmem:[#allocation2 + $0x189] sm:$0xff] }
 0x2ce   :  { %v17318_v48 = vpack.c.bf16 %v4965_v46, %v4964_v38  ;;  %v4987_v46 = vld [vmem:[#allocation2 + $0x331] sm:$0xff] }
 0x2d4   :  { %7110 = vmatmul.mubr.bf16.gmra.mrb[40].mxu0 %v17306_v40 }
 0x2d5   :  { %7117 = vmatprep.mubr.bf16.mxu0 %v17118_v47  ;;  %v14936_v47 = vld [vmem:[%s19549_s29 + $0x170] sm:$0xff]  }
 0x2d6   :  { %7315 = vmatpush1.bf16.msra.mxu0 %v14936_v47 }
 0x2d7   :  { %7316 = vmatprep.subr.bf16.mxu0 %v15188_v1 }
 0x2dc   :  { %7118 = vmatmul.mubr.bf16.gmra.mrb[44].mxu0 %v17314_v13 }
 0x2dd   :  { %7125 = vmatprep.mubr.bf16.mxu0 %v17133_v57  ;;  %v4968_v57 = vld [vmem:[#allocation2 + $0x1c9] sm:$0xff] }
 0x2de   :  { %v17330_v62 = vpack.c.bf16 %v4969_v55, %v4968_v57  ;;  %v4991_v57 = vld [vmem:[#allocation2 + $0x371] sm:$0xff] }
 0x2e4   :  { %7126 = vmatmul.mubr.bf16.gmra.mrb[48].mxu0 %v17318_v48 }
 0x2e5   :  { %7133 = vmatprep.mubr.bf16.mxu0 %v17144_v6  ;;  %v4616_v6 = vld [vmem:[%s19550_s27 + $0x1f0] sm:$0xff] }
 0x2e6   :  { %4682 = vst.msk [vmem:[#allocation2 + $0x448] sm:$0xff] %vm4619_vm0, %v4616_v6  ;;  %v4995_v6 = vld [vmem:[#allocation2 + $0x3b1] sm:$0xff] }
 0x2ec   :  { %7134 = vmatmul.mubr.bf16.gmra.mrb[52].mxu0 %v17326_v54 }
 0x2ed   :  { %7141 = vmatprep.mubr.bf16.mxu0 %v17159_v15  ;;  %v14937_v15 = vld [vmem:[%s19549_s29 + $0x178] sm:$0xff]   ;;  %v5130_v52 = vld [vmem:[#allocation2 + $0x447] sm:$0xff] }
 0x2ee   :  { %7317 = vmatpush1.bf16.msra.mxu0 %v14937_v15 }
 0x2ef   :  { %7575 = vmatprep.subr.bf16.mxu0 %v15188_v1 }
 0x2f4   :  { %7142 = vmatmul.mubr.bf16.gmra.mrb[56].mxu0 %v17330_v62 }
 0x2f5   :  { %7149 = vmatprep.mubr.bf16.mxu0 %v5147_v5  ;;  %v4997_v5 = vld [vmem:[#allocation2 + $0x3d1] sm:$0xff] }
 0x2fc   :  { %7150 = vmatmul.mubr.bf16.gmra.mrb[60].mxu0 %v17345_v11 }
 0x2fd   :  { %7157 = vmatprep.mubr.bf16.mxu0 %v17163_v29  ;;  %v4978_v29 = vld [vmem:[#allocation2 + $0x2a9] sm:$0xff] }
 0x2fe   :  { %v17358_v35 = vpack.c.bf16 %v4979_v34, %v4978_v29  ;;  %v14938_v34 = vld [vmem:[%s19549_s29 + $0x180] sm:$0xff]  }
 0x304   :  { %7158 = vmatmul.mubr.bf16.gmra.mrb[64].mxu0 %v5020_v17 }
 0x305   :  { %7165 = vmatprep.mubr.bf16.mxu0 %v17166_v36  ;;  %v4980_v36 = vld [vmem:[#allocation2 + $0x2c9] sm:$0xff] }
 0x306   :  { %v17362_v39 = vpack.c.bf16 %v4981_v19, %v4980_v36  ;;  %v5198_v36 = vld [vmem:[#allocation2 + $0x48] sm:$0xff]  ;;  %v5199_v19 = vld [vmem:[#allocation2 + $0x50] sm:$0xff] }
 0x30c   :  { %7166 = vmatmul.mubr.bf16.gmra.mrb[68].mxu0 %v17350_v25 }
 0x30d   :  { %7173 = vmatprep.mubr.bf16.mxu0 %v17169_v44  ;;  %v4982_v44 = vld [vmem:[#allocation2 + $0x2e9] sm:$0xff] }
 0x30e   :  { %v17366_v42 = vpack.c.bf16 %v4983_v28, %v4982_v44  ;;  %v14939_v44 = vld [vmem:[%s19549_s29 + $0x188] sm:$0xff]   ;;  %v14940_v28 = vld [vmem:[%s19549_s29 + $0x190] sm:$0xff]  }
 0x314   :  { %7174 = vmatmul.mubr.bf16.gmra.mrb[72].mxu0 %v17354_v9 }
 0x315   :  { %7181 = vmatprep.mubr.bf16.mxu0 %v17172_v51  ;;  %v4984_v51 = vld [vmem:[#allocation2 + $0x309] sm:$0xff] }
 0x316   :  { %v17370_v38 = vpack.c.bf16 %v4985_v45, %v4984_v51  ;;  %v5201_v51 = vld [vmem:[#allocation2 + $0x70] sm:$0xff]  ;;  %v14941_v45 = vld [vmem:[%s19549_s29 + $0x198] sm:$0xff]  }
 0x31c   :  { %7182 = vmatmul.mubr.bf16.gmra.mrb[76].mxu0 %v17358_v35 }
 0x31d   :  { %7189 = vmatprep.mubr.bf16.mxu0 %v17175_v59  ;;  %v4986_v59 = vld [vmem:[#allocation2 + $0x329] sm:$0xff] }
 0x31e   :  { %v17374_v47 = vpack.c.bf16 %v4987_v46, %v4986_v59  ;;  %v14942_v46 = vld [vmem:[%s19549_s29 + $0x1a0] sm:$0xff]  }
 0x324   :  { %7190 = vmatmul.mubr.bf16.gmra.mrb[80].mxu0 %v17362_v39 }
 0x325   :  { %7197 = vmatprep.mubr.bf16.mxu0 %v17178_v7  ;;  %v4988_v7 = vld [vmem:[#allocation2 + $0x349] sm:$0xff] }
 0x326   :  { %v17378_v23 = vpack.c.bf16 %v4989_v53, %v4988_v7  ;;  %v5203_v7 = vld [vmem:[#allocation2 + $0x90] sm:$0xff]  ;;  %v14943_v53 = vld [vmem:[%s19549_s29 + $0x1a8] sm:$0xff]  }
 0x32c   :  { %7198 = vmatmul.mubr.bf16.gmra.mrb[84].mxu0 %v17366_v42 }
 0x32d   :  { %7205 = vmatprep.mubr.bf16.mxu0 %v17181_v16  ;;  %v4990_v16 = vld [vmem:[#allocation2 + $0x369] sm:$0xff] }
 0x32e   :  { %v17382_v55 = vpack.c.bf16 %v4991_v57, %v4990_v16  ;;  %v14944_v57 = vld [vmem:[%s19549_s29 + $0x1b0] sm:$0xff]  }
 0x334   :  { %7206 = vmatmul.mubr.bf16.gmra.mrb[88].mxu0 %v17370_v38 }
 0x335   :  { %7213 = vmatprep.mubr.bf16.mxu0 %v17184_v24  ;;  %v4992_v24 = vld [vmem:[#allocation2 + $0x389] sm:$0xff] }
 0x336   :  { %v17386_v33 = vpack.c.bf16 %v4993_v58, %v4992_v24  ;;  %v5205_v24 = vld [vmem:[#allocation2 + $0xb0] sm:$0xff]  ;;  %v14945_v58 = vld [vmem:[%s19549_s29 + $0x1b8] sm:$0xff]  }
 0x33c   :  { %7214 = vmatmul.mubr.bf16.gmra.mrb[92].mxu0 %v17374_v47 }
 0x33d   :  { %7221 = vmatprep.mubr.bf16.mxu0 %v17187_v32  ;;  %v4994_v32 = vld [vmem:[#allocation2 + $0x3a9] sm:$0xff] }
 0x33e   :  { %v17390_v63 = vpack.c.bf16 %v4995_v6, %v4994_v32  ;;  %v14946_v6 = vld [vmem:[%s19549_s29 + $0x1c0] sm:$0xff]  }
 0x344   :  { %7222 = vmatmul.mubr.bf16.gmra.mrb[96].mxu0 %v17378_v23 }
 0x345   :  { %7229 = vmatprep.mubr.bf16.mxu0 %v17190_v41  ;;  %v4996_v41 = vld [vmem:[#allocation2 + $0x3c9] sm:$0xff] }
 0x346   :  { %v17394_v15 = vpack.c.bf16 %v4997_v5, %v4996_v41  ;;  %v5207_v41 = vld [vmem:[#allocation2 + $0xd0] sm:$0xff]  ;;  %v14947_v5 = vld [vmem:[%s19549_s29 + $0x1c8] sm:$0xff]  }
 0x34c   :  { %7230 = vmatmul.mubr.bf16.gmra.mrb[100].mxu0 %v17382_v55 }
 0x34d   :  { %7237 = vmatprep.mubr.bf16.mxu0 %v17193_v50  ;;  %v4998_v50 = vld [vmem:[#allocation2 + $0x3e9] sm:$0xff] }
 0x34e   :  { %v17398_v8 = vpack.c.bf16 %v4999_v43, %v4998_v50  ;;  %v14948_v43 = vld [vmem:[%s19549_s29 + $0x1d0] sm:$0xff]  }
 0x354   :  { %7238 = vmatmul.mubr.bf16.gmra.mrb[104].mxu0 %v17386_v33 }
 0x355   :  { %7245 = vmatprep.mubr.bf16.mxu0 %v17196_v60  ;;  %v5000_v60 = vld [vmem:[#allocation2 + $0x409] sm:$0xff] }
 0x356   :  { %v17402_v17 = vpack.c.bf16 %v5001_v14, %v5000_v60  ;;  %v5209_v60 = vld [vmem:[#allocation2 + $0xf0] sm:$0xff] }
 0x35c   :  { %7246 = vmatmul.mubr.bf16.gmra.mrb[108].mxu0 %v17390_v63 }
 0x35d   :  { %7253 = vmatprep.mubr.bf16.mxu0 %v17199_v10  ;;  %v5131_v10 = vld [vmem:[#allocation2 + $0x44f] sm:$0xff] }
 0x35e   :  { %v5163_v21 = vpack.c.bf16 %v5131_v10, %v5130_v52  ;;  %v14949_v52 = vld [vmem:[%s19549_s29 + $0x1d8] sm:$0xff]   ;;  %v5210_v10 = vld [vmem:[#allocation2 + $0x108] sm:$0xff] }
 0x364   :  { %7254 = vmatmul.mubr.bf16.gmra.mrb[112].mxu0 %v17394_v15 }
 0x365   :  { %7261 = vmatprep.mubr.bf16.mxu0 %v17202_v20  ;;  %v5003_v20 = vld [vmem:[#allocation2 + $0x431] sm:$0xff] }
 0x366   :  { %v17405_v26 = vpack.c.bf16 %v5003_v20, %v5002_v22  ;;  %v5212_v22 = vld [vmem:[#allocation2 + $0x128] sm:$0xff]  ;;  %v5213_v20 = vld [vmem:[#allocation2 + $0x130] sm:$0xff] }
 0x36c   :  { %7262 = vmatmul.mubr.bf16.gmra.mrb[116].mxu0 %v17398_v8 }
 0x36d   :  { %7269 = vmatprep.mubr.bf16.mxu0 %v17213_v30  ;;  %v5197_v30 = vld [vmem:[#allocation2 + $0x30] sm:$0xff] }
 0x36e   :  { %v5260_v29 = vpack.c.bf16 %v5197_v30, %v5196_v27  ;;  %v17486_v27 = vpack.c.bf16 %v5213_v20, %v5212_v22  ;;  %v5214_v30 = vld [vmem:[#allocation2 + $0x148] sm:$0xff]  ;;  %v5229_v20 = vld [vmem:[#allocation2 + $0x270] sm:$0xff] }
 0x36f   :  { %v5228_v22 = vld [vmem:[#allocation2 + $0x268] sm:$0xff] }
 0x374   :  { %7270 = vmatmul.mubr.bf16.gmra.mrb[120].mxu0 %v17402_v17 }
 0x375   :  { %7277 = vmatprep.mubr.bf16.mxu0 %v5163_v21  ;;  %v5211_v21 = vld [vmem:[#allocation2 + $0x110] sm:$0xff] }
 0x37c   :  { %7278 = vmatmul.mubr.bf16.gmra.mrb[124].mxu0 %v17405_v26 }
 0x37d   :  { %7318 = vmatprep.mubr.bf16.mxu0 %v17225_v0  ;;  %v17417_v0 = vpack.c.bf16 %v5199_v19, %v5198_v36  ;;  %v5217_v36 = vld [vmem:[#allocation2 + $0x170] sm:$0xff] }
 0x384   :  { %7319 = vmatmul.mubr.bf16.vlgmr.msra.gmra.mrb[0].mxu0 %v5260_v29  ;;  %v5215_v29 = vld [vmem:[#allocation2 + $0x150] sm:$0xff] }
 0x385   :  { %7576 = vmatpush1.bf16.msra.mxu0 %v14938_v34  ;;  %7326 = vmatprep.mubr.bf16.mxu0 %v17237_v49  ;;  %v5200_v49 = vld [vmem:[#allocation2 + $0x68] sm:$0xff]  ;;  %v17494_v34 = vpack.c.bf16 %v5215_v29, %v5214_v30  ;;  %v5710_v29 = vld [vmem:[#allocation2 + $0x51] sm:$0xff] }
 0x386   :  { %7577 = vmatprep.subr.bf16.mxu0 %v15188_v1  ;;  %v17429_v59 = vpack.c.bf16 %v5201_v51, %v5200_v49  ;;  %v5221_v51 = vld [vmem:[#allocation2 + $0x1b0] sm:$0xff] }
 0x387   :  { %v5709_v30 = vld [vmem:[#allocation2 + $0x49] sm:$0xff] }
 0x389   :  { %7578 = vmatpush1.bf16.msra.mxu0 %v14939_v44  ;;  %v5218_v44 = vld [vmem:[#allocation2 + $0x188] sm:$0xff] }
 0x38a   :  { %7579 = vmatprep.subr.bf16.mxu0 %v15188_v1 }
 0x38c   :  { %7327 = vmatmul.mubr.bf16.gmra.mrb[4].mxu0 %v17417_v0 }
 0x38d   :  { %7334 = vmatprep.mubr.bf16.mxu0 %v17249_v56  ;;  %7580 = vmatpush1.bf16.msra.mxu0 %v14940_v28  ;;  %v5202_v56 = vld [vmem:[#allocation2 + $0x88] sm:$0xff]  ;;  %v5219_v28 = vld [vmem:[#allocation2 + $0x190] sm:$0xff] }
 0x38e   :  { %7581 = vmatprep.subr.bf16.mxu0 %v15188_v1  ;;  %v17441_v16 = vpack.c.bf16 %v5203_v7, %v5202_v56  ;;  %v17506_v49 = vpack.c.bf16 %v5219_v28, %v5218_v44  ;;  %v14954_v56 = vld [vmem:[%s19549_s29 + $0x208] sm:$0xff]   ;;  %v5223_v7 = vld [vmem:[#allocation2 + $0x1d0] sm:$0xff] }
 0x38f   :  { %v5230_v28 = vld [vmem:[#allocation2 + $0x288] sm:$0xff] }
 0x391   :  { %7582 = vmatpush1.bf16.msra.mxu0 %v14941_v45 }
 0x392   :  { %7583 = vmatprep.subr.bf16.mxu0 %v15188_v1 }
 0x394   :  { %7335 = vmatmul.mubr.bf16.gmra.mrb[8].mxu0 %v17429_v59 }
 0x395   :  { %7342 = vmatprep.mubr.bf16.mxu0 %v17261_v4  ;;  %7584 = vmatpush1.bf16.msra.mxu0 %v14942_v46  ;;  %v5204_v4 = vld [vmem:[#allocation2 + $0xa8] sm:$0xff]  ;;  %v14953_v46 = vld [vmem:[%s19549_s29 + $0x200] sm:$0xff]  }
 0x396   :  { %7585 = vmatprep.subr.bf16.mxu0 %v15188_v1  ;;  %v17453_v32 = vpack.c.bf16 %v5205_v24, %v5204_v4  ;;  %14219 = vmatprep.subr.bf16.mxu1 %v14953_v46  ;;  %v5224_v4 = vld [vmem:[#allocation2 + $0x1e8] sm:$0xff]  ;;  %v5225_v24 = vld [vmem:[#allocation2 + $0x1f0] sm:$0xff] }
 0x397   :  { %14220 = vmatpush3.bf16.msra.mxu1 %v14953_v46  ;;  %v5233_v46 = vld [vmem:[#allocation2 + $0x2b0] sm:$0xff] }
 0x398   :  { %14221 = vmatprep.subr.bf16.mxu1 %v14954_v56 }
 0x399   :  { %7586 = vmatpush1.bf16.msra.mxu0 %v14943_v53 }
 0x39a   :  { %7587 = vmatprep.subr.bf16.mxu0 %v15188_v1 }
 0x39b   :  { %14222 = vmatpush3.bf16.msra.mxu1 %v14954_v56  ;;  %v5713_v56 = vld [vmem:[#allocation2 + $0x89] sm:$0xff] }
 0x39c   :  { %7343 = vmatmul.mubr.bf16.gmra.mrb[12].mxu0 %v17441_v16 }
 0x39d   :  { %7350 = vmatprep.mubr.bf16.mxu0 %v17273_v12  ;;  %7588 = vmatpush1.bf16.msra.mxu0 %v14944_v57  ;;  %v5206_v12 = vld [vmem:[#allocation2 + $0xc8] sm:$0xff]  ;;  %v14955_v57 = vld [vmem:[%s19549_s29 + $0x210] sm:$0xff]  }
 0x39e   :  { %7589 = vmatprep.subr.bf16.mxu0 %v15188_v1  ;;  %v17465_v50 = vpack.c.bf16 %v5207_v41, %v5206_v12  ;;  %14223 = vmatprep.subr.bf16.mxu1 %v14955_v57  ;;  %v17534_v12 = vpack.c.bf16 %v5225_v24, %v5224_v4  ;;  %v5235_v24 = vld [vmem:[#allocation2 + $0x2d0] sm:$0xff] }
 0x39f   :  { %14224 = vmatpush3.bf16.msra.mxu1 %v14955_v57  ;;  %v5715_v57 = vld [vmem:[#allocation2 + $0xa9] sm:$0xff] }
 0x3a1   :  { %7590 = vmatpush1.bf16.msra.mxu0 %v14945_v58  ;;  %v5354_v58 = vld [vmem:[#allocation2 + $0x209] sm:$0xff] }
 0x3a2   :  { %7591 = vmatprep.subr.bf16.mxu0 %v15188_v1 }
 0x3a4   :  { %7351 = vmatmul.mubr.bf16.gmra.mrb[16].mxu0 %v17453_v32 }
 0x3a5   :  { %7358 = vmatprep.mubr.bf16.mxu0 %v17282_v18  ;;  %7592 = vmatpush1.bf16.msra.mxu0 %v14946_v6  ;;  %v5208_v18 = vld [vmem:[#allocation2 + $0xe8] sm:$0xff]  ;;  %v5355_v6 = vld [vmem:[#allocation2 + $0x211] sm:$0xff] }
 0x3a6   :  { %7593 = vmatprep.subr.bf16.mxu0 %v15188_v1  ;;  %v17474_v14 = vpack.c.bf16 %v5209_v60, %v5208_v18  ;;  %v17536_v41 = vpack.c.bf16 %v5355_v6, %v5354_v58  ;;  %v5226_v18 = vld [vmem:[#allocation2 + $0x208] sm:$0xff]  ;;  %v5227_v60 = vld [vmem:[#allocation2 + $0x210] sm:$0xff] }
 0x3a7   :  { %v5237_v6 = vld [vmem:[#allocation2 + $0x2f0] sm:$0xff] }
 0x3a9   :  { %7594 = vmatpush1.bf16.msra.mxu0 %v14947_v5  ;;  %v14958_v5 = vld [vmem:[%s19549_s29 + $0x220] sm:$0xff]  }
 0x3aa   :  { %7595 = vmatprep.subr.bf16.mxu0 %v15188_v1 }
 0x3ac   :  { %7359 = vmatmul.mubr.bf16.gmra.mrb[20].mxu0 %v17465_v50 }
 0x3ad   :  { %7366 = vmatprep.mubr.bf16.mxu0 %v17290_v61  ;;  %7596 = vmatpush1.bf16.msra.mxu0 %v14948_v43  ;;  %v17482_v61 = vpack.c.bf16 %v5211_v21, %v5210_v10  ;;  %v14959_v43 = vld [vmem:[%s19549_s29 + $0x228] sm:$0xff]   ;;  %v14960_v10 = vld [vmem:[%s19549_s29 + $0x230] sm:$0xff]   ;;  %v14961_v21 = vld [vmem:[%s19549_s29 + $0x238] sm:$0xff]  }
 0x3ae   :  { %7597 = vmatprep.subr.bf16.mxu0 %v15188_v1 }
 0x3b1   :  { %7598 = vmatpush1.bf16.msra.mxu0 %v14949_v52  ;;  %v17549_v52 = vpack.c.bf16 %v5227_v60, %v5226_v18  ;;  %v5719_v60 = vld [vmem:[#allocation2 + $0xe9] sm:$0xff] }
 0x3b2   :  { %7599 = vmatprep.subr.bf16.mxu0 %v15188_v1 }
 0x3b4   :  { %7367 = vmatmul.mubr.bf16.gmra.mrb[24].mxu0 %v17474_v14 }
 0x3b5   :  { %7374 = vmatprep.mubr.bf16.mxu0 %v17294_v31  ;;  %v14950_v31 = vld [vmem:[%s19549_s29 + $0x1e0] sm:$0xff]  }
 0x3b6   :  { %7600 = vmatpush1.bf16.msra.mxu0 %v14950_v31  ;;  %v5276_v31 = vpack.c.bf16 %v5229_v20, %v5228_v22  ;;  %v5239_v22 = vld [vmem:[#allocation2 + $0x310] sm:$0xff] }
 0x3b7   :  { %7601 = vmatprep.subr.bf16.mxu0 %v15188_v1 }
 0x3bc   :  { %7375 = vmatmul.mubr.bf16.gmra.mrb[28].mxu0 %v17482_v61 }
 0x3bd   :  { %7382 = vmatprep.mubr.bf16.mxu0 %v17302_v37  ;;  %v5216_v37 = vld [vmem:[#allocation2 + $0x168] sm:$0xff] }
 0x3be   :  { %v17498_v19 = vpack.c.bf16 %v5217_v36, %v5216_v37  ;;  %v5773_v37 = vpack.c.bf16 %v5710_v29, %v5709_v30  ;;  %v5711_v36 = vld [vmem:[#allocation2 + $0x69] sm:$0xff] }
 0x3bf   :  { %v5721_v29 = vld [vmem:[#allocation2 + $0x109] sm:$0xff] }
 0x3c0   :  { %14235 = vmatprep.mubr.bf16.mxu1 %v5773_v37  ;;  %v5722_v37 = vld [vmem:[#allocation2 + $0x111] sm:$0xff] }
 0x3c4   :  { %7383 = vmatmul.mubr.bf16.gmra.mrb[32].mxu0 %v17486_v27 }
 0x3c5   :  { %7390 = vmatprep.mubr.bf16.mxu0 %v17306_v40  ;;  %v14951_v40 = vld [vmem:[%s19549_s29 + $0x1e8] sm:$0xff]  }
 0x3c6   :  { %7602 = vmatpush1.bf16.msra.mxu0 %v14951_v40  ;;  %v5712_v40 = vld [vmem:[#allocation2 + $0x71] sm:$0xff] }
 0x3c7   :  { %7603 = vmatprep.subr.bf16.mxu0 %v15188_v1  ;;  %v5774_v44 = vpack.c.bf16 %v5712_v40, %v5711_v36  ;;  %v5779_v36 = vpack.c.bf16 %v5722_v37, %v5721_v29  ;;  %v5723_v40 = vld [vmem:[#allocation2 + $0x129] sm:$0xff] }
 0x3c8   :  { %v5733_v37 = vld [vmem:[#allocation2 + $0x1c9] sm:$0xff] }
 0x3cc   :  { %7391 = vmatmul.mubr.bf16.gmra.mrb[36].mxu0 %v17494_v34 }
 0x3cd   :  { %7398 = vmatprep.mubr.bf16.mxu0 %v17314_v13  ;;  %v5220_v13 = vld [vmem:[#allocation2 + $0x1a8] sm:$0xff] }
 0x3ce   :  { %v17510_v45 = vpack.c.bf16 %v5221_v51, %v5220_v13  ;;  %v5231_v13 = vld [vmem:[#allocation2 + $0x290] sm:$0xff]  ;;  %v5232_v51 = vld [vmem:[#allocation2 + $0x2a8] sm:$0xff] }
 0x3d4   :  { %7399 = vmatmul.mubr.bf16.gmra.mrb[40].mxu0 %v17498_v19 }
 0x3d5   :  { %7406 = vmatprep.mubr.bf16.mxu0 %v17318_v48  ;;  %v14952_v48 = vld [vmem:[%s19549_s29 + $0x1f0] sm:$0xff]  }
 0x3d6   :  { %7604 = vmatpush1.bf16.msra.mxu0 %v14952_v48  ;;  %v17564_v48 = vpack.c.bf16 %v5233_v46, %v5232_v51  ;;  %v5245_v46 = vld [vmem:[#allocation2 + $0x370] sm:$0xff] }
 0x3d7   :  { %7605 = vmatprep.subr.bf16.mxu0 %v15188_v1 }
 0x3dc   :  { %7407 = vmatmul.mubr.bf16.gmra.mrb[44].mxu0 %v17506_v49 }
 0x3dd   :  { %7414 = vmatprep.mubr.bf16.mxu0 %v17326_v54  ;;  %v5222_v54 = vld [vmem:[#allocation2 + $0x1c8] sm:$0xff] }
 0x3de   :  { %v17524_v53 = vpack.c.bf16 %v5223_v7, %v5222_v54  ;;  %v5714_v54 = vld [vmem:[#allocation2 + $0x91] sm:$0xff] }
 0x3df   :  { %v5775_v7 = vpack.c.bf16 %v5714_v54, %v5713_v56  ;;  %v5725_v54 = vld [vmem:[#allocation2 + $0x149] sm:$0xff] }
 0x3e4   :  { %7415 = vmatmul.mubr.bf16.gmra.mrb[48].mxu0 %v17510_v45 }
 0x3e5   :  { %7422 = vmatprep.mubr.bf16.mxu0 %v17330_v62  ;;  %v14956_v62 = vld [vmem:[%s19549_s29 + $0x218] sm:$0xff]  }
 0x3e6   :  { %14225 = vmatprep.subr.bf16.mxu1 %v14956_v62 }
 0x3e7   :  { %14226 = vmatpush3.bf16.msra.mxu1 %v14956_v62  ;;  %v5716_v62 = vld [vmem:[#allocation2 + $0xb1] sm:$0xff] }
 0x3e8   :  { %14227 = vmatprep.subr.bf16.mxu1 %v14958_v5  ;;  %v5776_v4 = vpack.c.bf16 %v5716_v62, %v5715_v57  ;;  %v5727_v62 = vld [vmem:[#allocation2 + $0x169] sm:$0xff] }
 0x3eb   :  { %14228 = vmatpush3.bf16.msra.mxu1 %v14958_v5 }
 0x3ec   :  { %7423 = vmatmul.mubr.bf16.gmra.mrb[52].mxu0 %v17524_v53  ;;  %14229 = vmatprep.subr.bf16.mxu1 %v14959_v43 }
 0x3ed   :  { %7430 = vmatprep.mubr.bf16.mxu0 %v17345_v11  ;;  %v14957_v11 = vld [vmem:[%s19549_s29 + $0x1f8] sm:$0xff]   ;;  %s19552_s29 = sld [smem:[#allocation26_spill]] }
 0x3ee   :  { %7606 = vmatpush1.bf16.msra.mxu0 %v14957_v11  ;;  %v5717_v11 = vld [vmem:[#allocation2 + $0xc9] sm:$0xff] }
 0x3ef   :  { %14230 = vmatpush3.bf16.msra.mxu1 %v14959_v43  ;;  %v5718_v43 = vld [vmem:[#allocation2 + $0xd1] sm:$0xff] }
 0x3f0   :  { %14231 = vmatprep.subr.bf16.mxu1 %v14960_v10  ;;  %v5777_v18 = vpack.c.bf16 %v5718_v43, %v5717_v11  ;;  %v5729_v43 = vld [vmem:[#allocation2 + $0x189] sm:$0xff] }
 0x3f3   :  { %14232 = vmatpush3.bf16.msra.mxu1 %v14960_v10  ;;  %v5720_v10 = vld [vmem:[#allocation2 + $0xf1] sm:$0xff] }
 0x3f4   :  { %7431 = vmatmul.mubr.bf16.gmra.mrb[56].mxu0 %v17534_v12  ;;  %14233 = vmatprep.subr.bf16.mxu1 %v14961_v21 }
 0x3f5   :  { %7438 = vmatprep.mubr.bf16.mxu0 %v17536_v41 }
 0x3f7   :  { %14234 = vmatpush3.bf16.msra.mxu1 %v14961_v21  ;;  %v5778_v21 = vpack.c.bf16 %v5720_v10, %v5719_v60  ;;  %v5731_v10 = vld [vmem:[#allocation2 + $0x1a9] sm:$0xff] }
 0x3fa   :  { %14236 = vmatmul.mubr.bf16.vlgmr.msra.gmra.mrb[0].mxu1 %v5774_v44  ;;  %v5724_v44 = vld [vmem:[#allocation2 + $0x131] sm:$0xff] }
 0x3fb   :  { %14239 = vmatprep.mubr.bf16.mxu1 %v5775_v7  ;;  %v5726_v7 = vld [vmem:[#allocation2 + $0x151] sm:$0xff] }
 0x3fc   :  { %7439 = vmatmul.mubr.bf16.gmra.mrb[60].mxu0 %v17549_v52  ;;  %v5781_v57 = vpack.c.bf16 %v5726_v7, %v5725_v54  ;;  %v5386_v54 = vld [vmem:[#allocation2 + $0x449] sm:$0xff]  ;;  %v5387_v7 = vld [vmem:[#allocation2 + $0x451] sm:$0xff] }
 0x3fd   :  { %7446 = vmatprep.mubr.bf16.mxu0 %v17350_v25  ;;  %v17560_v25 = vpack.c.bf16 %v5231_v13, %v5230_v28  ;;  %v5780_v28 = vpack.c.bf16 %v5724_v44, %v5723_v40  ;;  %v5243_v13 = vld [vmem:[#allocation2 + $0x350] sm:$0xff] }
 0x3fe   :  { %v5735_v44 = vld [vmem:[#allocation2 + $0x1e9] sm:$0xff] }
 0x402   :  { %14240 = vmatmul.mubr.bf16.gmra.mrb[4].mxu1 %v5776_v4  ;;  %v5728_v4 = vld [vmem:[#allocation2 + $0x171] sm:$0xff] }
 0x403   :  { %14243 = vmatprep.mubr.bf16.mxu1 %v5777_v18  ;;  %v5730_v18 = vld [vmem:[#allocation2 + $0x191] sm:$0xff] }
 0x404   :  { %7447 = vmatmul.mubr.bf16.gmra.mrb[64].mxu0 %v5276_v31  ;;  %v5241_v31 = vld [vmem:[#allocation2 + $0x330] sm:$0xff]  ;;  %v5783_v60 = vpack.c.bf16 %v5730_v18, %v5729_v43 }
 0x405   :  { %7454 = vmatprep.mubr.bf16.mxu0 %v17354_v9  ;;  %v5234_v9 = vld [vmem:[#allocation2 + $0x2c8] sm:$0xff]  ;;  %v5742_v18 = vld [vmem:[#allocation2 + $0x291] sm:$0xff] }
 0x406   :  { %v17568_v58 = vpack.c.bf16 %v5235_v24, %v5234_v9  ;;  %v5782_v9 = vpack.c.bf16 %v5728_v4, %v5727_v62  ;;  %v5247_v24 = vld [vmem:[#allocation2 + $0x390] sm:$0xff]  ;;  %v17615_v62 = vpack.c.bf16 %v5387_v7, %v5386_v54 }
 0x407   :  { %v5740_v4 = vld [vmem:[#allocation2 + $0x231] sm:$0xff]  ;;  %v5741_v43 = vld [vmem:[#allocation2 + $0x289] sm:$0xff] }
 0x408   :  { %v5749_v7 = vld [vmem:[#allocation2 + $0x309] sm:$0xff] }
 0x40a   :  { %14244 = vmatmul.mubr.bf16.gmra.mrb[8].mxu1 %v5778_v21  ;;  %v5732_v21 = vld [vmem:[#allocation2 + $0x1b1] sm:$0xff] }
 0x40b   :  { %14247 = vmatprep.mubr.bf16.mxu1 %v5779_v36  ;;  %v5734_v36 = vld [vmem:[#allocation2 + $0x1d1] sm:$0xff] }
 0x40c   :  { %7455 = vmatmul.mubr.bf16.gmra.mrb[68].mxu0 %v17560_v25  ;;  %v5785_v40 = vpack.c.bf16 %v5734_v36, %v5733_v37  ;;  %v5745_v36 = vld [vmem:[#allocation2 + $0x2c9] sm:$0xff] }
 0x40d   :  { %7462 = vmatprep.mubr.bf16.mxu0 %v17358_v35  ;;  %v5236_v35 = vld [vmem:[#allocation2 + $0x2e8] sm:$0xff] }
 0x40e   :  { %v17572_v5 = vpack.c.bf16 %v5237_v6, %v5236_v35  ;;  %v5249_v6 = vld [vmem:[#allocation2 + $0x3b0] sm:$0xff] }
 0x412   :  { %14248 = vmatmul.mubr.bf16.gmra.mrb[12].mxu1 %v5780_v28  ;;  %v5736_v28 = vld [vmem:[#allocation2 + $0x1f1] sm:$0xff] }
 0x413   :  { %14251 = vmatprep.mubr.bf16.mxu1 %v5781_v57 }
 0x414   :  { %7463 = vmatmul.mubr.bf16.gmra.mrb[72].mxu0 %v17564_v48 }
 0x415   :  { %7470 = vmatprep.mubr.bf16.mxu0 %v17362_v39  ;;  %v5238_v39 = vld [vmem:[#allocation2 + $0x308] sm:$0xff] }
 0x416   :  { %v17576_v20 = vpack.c.bf16 %v5239_v22, %v5238_v39  ;;  %v5784_v39 = vpack.c.bf16 %v5732_v21, %v5731_v10  ;;  %v5251_v22 = vld [vmem:[#allocation2 + $0x3d0] sm:$0xff] }
 0x417   :  { %v5743_v10 = vld [vmem:[#allocation2 + $0x2a9] sm:$0xff]  ;;  %v5744_v21 = vld [vmem:[#allocation2 + $0x2b1] sm:$0xff] }
 0x41a   :  { %14252 = vmatmul.mubr.bf16.gmra.mrb[16].mxu1 %v5782_v9 }
 0x41b   :  { %14255 = vmatprep.mubr.bf16.mxu1 %v5783_v60  ;;  %v5789_v60 = vpack.c.bf16 %v5742_v18, %v5741_v43  ;;  %v5753_v18 = vld [vmem:[#allocation2 + $0x349] sm:$0xff] }
 0x41c   :  { %7471 = vmatmul.mubr.bf16.gmra.mrb[76].mxu0 %v17568_v58 }
 0x41d   :  { %7478 = vmatprep.mubr.bf16.mxu0 %v17366_v42  ;;  %v5240_v42 = vld [vmem:[#allocation2 + $0x328] sm:$0xff] }
 0x41e   :  { %v17580_v30 = vpack.c.bf16 %v5241_v31, %v5240_v42  ;;  %v5253_v31 = vld [vmem:[#allocation2 + $0x3f0] sm:$0xff] }
 0x422   :  { %14256 = vmatmul.mubr.bf16.gmra.mrb[20].mxu1 %v5784_v39  ;;  %v5790_v39 = vpack.c.bf16 %v5744_v21, %v5743_v10  ;;  %v5755_v21 = vld [vmem:[#allocation2 + $0x369] sm:$0xff] }
 0x423   :  { %14259 = vmatprep.mubr.bf16.mxu1 %v5785_v40  ;;  %v5746_v40 = vld [vmem:[#allocation2 + $0x2d1] sm:$0xff] }
 0x424   :  { %7479 = vmatmul.mubr.bf16.gmra.mrb[80].mxu0 %v17572_v5 }
 0x425   :  { %7486 = vmatprep.mubr.bf16.mxu0 %v17370_v38  ;;  %v5242_v38 = vld [vmem:[#allocation2 + $0x348] sm:$0xff] }
 0x426   :  { %v17584_v51 = vpack.c.bf16 %v5243_v13, %v5242_v38  ;;  %v5786_v38 = vpack.c.bf16 %v5736_v28, %v5735_v44  ;;  %v5255_v13 = vld [vmem:[#allocation2 + $0x410] sm:$0xff]  ;;  %v5791_v44 = vpack.c.bf16 %v5746_v40, %v5745_v36 }
 0x427   :  { %v5747_v28 = vld [vmem:[#allocation2 + $0x2e9] sm:$0xff]  ;;  %v5758_v36 = vld [vmem:[#allocation2 + $0x391] sm:$0xff] }
 0x42a   :  { %14260 = vmatmul.mubr.bf16.gmra.mrb[24].mxu1 %v5786_v38  ;;  %v5748_v38 = vld [vmem:[#allocation2 + $0x2f1] sm:$0xff] }
 0x42b   :  { %14263 = vmatprep.mubr.bf16.mxu1 %v17536_v41  ;;  %v5258_v41 = vld [vmem:[#allocation2 + $0x448] sm:$0xff] }
 0x42c   :  { %7487 = vmatmul.mubr.bf16.gmra.mrb[84].mxu0 %v17576_v20 }
 0x42d   :  { %7494 = vmatprep.mubr.bf16.mxu0 %v17374_v47  ;;  %v5244_v47 = vld [vmem:[#allocation2 + $0x368] sm:$0xff] }
 0x42e   :  { %v17588_v56 = vpack.c.bf16 %v5245_v46, %v5244_v47  ;;  %v5256_v47 = vld [vmem:[#allocation2 + $0x428] sm:$0xff]  ;;  %v5257_v46 = vld [vmem:[#allocation2 + $0x430] sm:$0xff] }
 0x42f   :  { %v17613_v57 = vpack.c.bf16 %v5257_v46, %v5256_v47  ;;  %v5462_v46 = vld [vmem:[#allocation2 + $0xcf] sm:$0xff] }
 0x434   :  { %7495 = vmatmul.mubr.bf16.gmra.mrb[88].mxu0 %v17580_v30 }
 0x435   :  { %7502 = vmatprep.mubr.bf16.mxu0 %v17378_v23  ;;  %v5246_v23 = vld [vmem:[#allocation2 + $0x388] sm:$0xff] }
 0x436   :  { %v17592_v35 = vpack.c.bf16 %v5247_v24, %v5246_v23  ;;  %v5259_v23 = vld [vmem:[#allocation2 + $0x450] sm:$0xff] }
 0x437   :  { %v17619_v24 = vpack.c.bf16 %v5259_v23, %v5258_v41  ;;  %v5752_v41 = vld [vmem:[#allocation2 + $0x331] sm:$0xff] }
 0x43c   :  { %7503 = vmatmul.mubr.bf16.gmra.mrb[92].mxu0 %v17584_v51 }
 0x43d   :  { %7510 = vmatprep.mubr.bf16.mxu0 %v17382_v55  ;;  %v5248_v55 = vld [vmem:[#allocation2 + $0x3a8] sm:$0xff] }
 0x43e   :  { %v17596_v11 = vpack.c.bf16 %v5249_v6, %v5248_v55  ;;  %v5454_v55 = vld [vmem:[#allocation2 + $0x4f] sm:$0xff] }
 0x444   :  { %7511 = vmatmul.mubr.bf16.gmra.mrb[96].mxu0 %v17588_v56 }
 0x445   :  { %7518 = vmatprep.mubr.bf16.mxu0 %v17386_v33  ;;  %v5250_v33 = vld [vmem:[#allocation2 + $0x3c8] sm:$0xff] }
 0x446   :  { %v17600_v42 = vpack.c.bf16 %v5251_v22, %v5250_v33  ;;  %v5455_v33 = vld [vmem:[#allocation2 + $0x67] sm:$0xff]  ;;  %v5456_v22 = vld [vmem:[#allocation2 + $0x6f] sm:$0xff] }
 0x44c   :  { %7519 = vmatmul.mubr.bf16.gmra.mrb[100].mxu0 %v17592_v35 }
 0x44d   :  { %7526 = vmatprep.mubr.bf16.mxu0 %v17390_v63  ;;  %v5252_v63 = vld [vmem:[#allocation2 + $0x3e8] sm:$0xff] }
 0x44e   :  { %v17604_v29 = vpack.c.bf16 %v5253_v31, %v5252_v63  ;;  %v5518_v63 = vpack.c.bf16 %v5456_v22, %v5455_v33  ;;  %v5458_v31 = vld [vmem:[#allocation2 + $0x8f] sm:$0xff] }
 0x44f   :  { %v5468_v22 = vld [vmem:[#allocation2 + $0x12f] sm:$0xff] }
 0x454   :  { %7527 = vmatmul.mubr.bf16.gmra.mrb[104].mxu0 %v17596_v11 }
 0x455   :  { %7534 = vmatprep.mubr.bf16.mxu0 %v17394_v15  ;;  %v5254_v15 = vld [vmem:[#allocation2 + $0x408] sm:$0xff] }
 0x45c   :  { %7535 = vmatmul.mubr.bf16.gmra.mrb[108].mxu0 %v17600_v42 }
 0x45d   :  { %7542 = vmatprep.mubr.bf16.mxu0 %v17398_v8  ;;  %v17609_v8 = vpack.c.bf16 %v5255_v13, %v5254_v15  ;;  %v5792_v15 = vpack.c.bf16 %v5748_v38, %v5747_v28  ;;  %v5460_v13 = vld [vmem:[#allocation2 + $0xaf] sm:$0xff] }
 0x45e   :  { %v5760_v28 = vld [vmem:[#allocation2 + $0x3b1] sm:$0xff] }
 0x464   :  { %7543 = vmatmul.mubr.bf16.gmra.mrb[112].mxu0 %v17604_v29 }
 0x465   :  { %7550 = vmatprep.mubr.bf16.mxu0 %v17402_v17  ;;  %v5739_v17 = vld [vmem:[#allocation2 + $0x229] sm:$0xff] }
 0x466   :  { %v5788_v9 = vpack.c.bf16 %v5740_v4, %v5739_v17  ;;  %v5750_v17 = vld [vmem:[#allocation2 + $0x311] sm:$0xff] }
 0x467   :  { %v5793_v4 = vpack.c.bf16 %v5750_v17, %v5749_v7  ;;  %v5763_v7 = vld [vmem:[#allocation2 + $0x3e9] sm:$0xff]  ;;  %v5764_v17 = vld [vmem:[#allocation2 + $0x3f1] sm:$0xff] }
 0x468   :  { %14264 = vmatmul.mubr.bf16.gmra.mrb[28].mxu1 %v5788_v9  ;;  %v5751_v9 = vld [vmem:[#allocation2 + $0x329] sm:$0xff] }
 0x469   :  { %14267 = vmatprep.mubr.bf16.mxu1 %v5789_v60  ;;  %v5794_v23 = vpack.c.bf16 %v5752_v41, %v5751_v9  ;;  %v5754_v60 = vld [vmem:[#allocation2 + $0x351] sm:$0xff] }
 0x46a   :  { %v5795_v10 = vpack.c.bf16 %v5754_v60, %v5753_v18  ;;  %v5476_v9 = vld [vmem:[#allocation2 + $0x1af] sm:$0xff] }
 0x46b   :  { %v5765_v18 = vld [vmem:[#allocation2 + $0x409] sm:$0xff]  ;;  %v5766_v60 = vld [vmem:[#allocation2 + $0x411] sm:$0xff] }
 0x46c   :  { %7551 = vmatmul.mubr.bf16.gmra.mrb[116].mxu0 %v17609_v8 }
 0x46d   :  { %7558 = vmatprep.mubr.bf16.mxu0 %v17405_v26  ;;  %v5453_v26 = vld [vmem:[#allocation2 + $0x47] sm:$0xff] }
 0x46e   :  { %v5517_v6 = vpack.c.bf16 %v5454_v55, %v5453_v26  ;;  %v5464_v26 = vld [vmem:[#allocation2 + $0xef] sm:$0xff] }
 0x470   :  { %14268 = vmatmul.mubr.bf16.gmra.mrb[32].mxu1 %v5790_v39  ;;  %v5756_v39 = vld [vmem:[#allocation2 + $0x371] sm:$0xff] }
 0x471   :  { %14271 = vmatprep.mubr.bf16.mxu1 %v5791_v44  ;;  %v5796_v33 = vpack.c.bf16 %v5756_v39, %v5755_v21  ;;  %v5759_v44 = vld [vmem:[#allocation2 + $0x3a9] sm:$0xff]  ;;  %v5801_v21 = vpack.c.bf16 %v5766_v60, %v5765_v18  ;;  %v5768_v39 = vld [vmem:[#allocation2 + $0x431] sm:$0xff] }
 0x472   :  { %v5798_v38 = vpack.c.bf16 %v5760_v28, %v5759_v44  ;;  %v14969_v28 = vld [vmem:[%s19551_s28 + $0x18] sm:$0xff]   ;;  %v5485_v18 = vld [vmem:[#allocation2 + $0x287] sm:$0xff]  ;;  %v5486_v60 = vld [vmem:[#allocation2 + $0x28f] sm:$0xff] }
 0x474   :  { %7559 = vmatmul.mubr.bf16.gmra.mrb[120].mxu0 %v17613_v57 }
 0x475   :  { %7566 = vmatprep.mubr.bf16.mxu0 %v17615_v62 }
 0x478   :  { %14272 = vmatmul.mubr.bf16.gmra.mrb[36].mxu1 %v5792_v15  ;;  %v5472_v15 = vld [vmem:[#allocation2 + $0x16f] sm:$0xff] }
 0x479   :  { %14275 = vmatprep.mubr.bf16.mxu1 %v5793_v4  ;;  %v5800_v4 = vpack.c.bf16 %v5764_v17, %v5763_v7  ;;  %v5483_v7 = vld [vmem:[#allocation2 + $0x227] sm:$0xff]  ;;  %v5484_v17 = vld [vmem:[#allocation2 + $0x22f] sm:$0xff] }
 0x47c   :  { %7567 = vmatmul.mubr.bf16.gmra.mrb[124].mxu0 %v17619_v24 }
 0x47d   :  { %7607 = vmatprep.mubr.bf16.mxu0 %v17417_v0  ;;  %v5457_v0 = vld [vmem:[#allocation2 + $0x87] sm:$0xff] }
 0x47e   :  { %v5519_v37 = vpack.c.bf16 %v5458_v31, %v5457_v0  ;;  %v5470_v0 = vld [vmem:[#allocation2 + $0x14f] sm:$0xff] }
 0x480   :  { %14276 = vmatmul.mubr.bf16.gmra.mrb[40].mxu1 %v5794_v23 }
 0x481   :  { %14279 = vmatprep.mubr.bf16.mxu1 %v5795_v10  ;;  %v14964_v10 = vld [vmem:[%s19551_s28 + $0x48] sm:$0xff]  }
 0x484   :  { %7608 = vmatmul.mubr.bf16.vlgmr.msra.gmra.mrb[0].mxu0 %v5517_v6  ;;  %v5466_v6 = vld [vmem:[#allocation2 + $0x10f] sm:$0xff] }
 0x485   :  { %7615 = vmatprep.mubr.bf16.mxu0 %v17429_v59  ;;  %v5459_v59 = vld [vmem:[#allocation2 + $0xa7] sm:$0xff] }
 0x486   :  { %v5520_v47 = vpack.c.bf16 %v5460_v13, %v5459_v59  ;;  %v5474_v13 = vld [vmem:[#allocation2 + $0x18f] sm:$0xff] }
 0x488   :  { %14280 = vmatmul.mubr.bf16.gmra.mrb[44].mxu1 %v5796_v33  ;;  %v14965_v33 = vld [vmem:[%s19551_s28 + $0x8] sm:$0xff]  }
 0x48c   :  { %7616 = vmatmul.mubr.bf16.gmra.mrb[4].mxu0 %v5518_v63 }
 0x48d   :  { %7623 = vmatprep.mubr.bf16.mxu0 %v17441_v16  ;;  %v5461_v16 = vld [vmem:[#allocation2 + $0xc7] sm:$0xff] }
 0x48e   :  { %v5521_v54 = vpack.c.bf16 %v5462_v46, %v5461_v16  ;;  %v5761_v16 = vld [vmem:[#allocation2 + $0x3c9] sm:$0xff]  ;;  %v5762_v46 = vld [vmem:[#allocation2 + $0x3d1] sm:$0xff] }
 0x494   :  { %7624 = vmatmul.mubr.bf16.gmra.mrb[8].mxu0 %v5519_v37  ;;  %v5757_v37 = vld [vmem:[#allocation2 + $0x389] sm:$0xff] }
 0x495   :  { %7631 = vmatprep.mubr.bf16.mxu0 %v17453_v32  ;;  %v5463_v32 = vld [vmem:[#allocation2 + $0xe7] sm:$0xff]  ;;  %v5797_v40 = vpack.c.bf16 %v5758_v36, %v5757_v37 }
 0x496   :  { %v5522_v55 = vpack.c.bf16 %v5464_v26, %v5463_v32 }
 0x497   :  { %14283 = vmatprep.mubr.bf16.mxu1 %v5797_v40  ;;  %v14968_v40 = vld [vmem:[%s19551_s28 + $0x58] sm:$0xff]  }
 0x498   :  { %14284 = vmatmul.mubr.bf16.gmra.mrb[48].mxu1 %v5798_v38  ;;  %v5482_v38 = vld [vmem:[#allocation2 + $0x20f] sm:$0xff] }
 0x49c   :  { %7632 = vmatmul.mubr.bf16.gmra.mrb[12].mxu0 %v5520_v47 }
 0x49d   :  { %7639 = vmatprep.mubr.bf16.mxu0 %v17465_v50  ;;  %v5465_v50 = vld [vmem:[#allocation2 + $0x107] sm:$0xff] }
 0x49e   :  { %v5523_v43 = vpack.c.bf16 %v5466_v6, %v5465_v50  ;;  %v5478_v50 = vld [vmem:[#allocation2 + $0x1cf] sm:$0xff]  ;;  %v14963_v6 = vld [vmem:[%s19551_s28] sm:$0xff]  }
 0x4a4   :  { %7640 = vmatmul.mubr.bf16.gmra.mrb[16].mxu0 %v5521_v54  ;;  %v5799_v54 = vpack.c.bf16 %v5762_v46, %v5761_v16  ;;  %v5772_v16 = vld [vmem:[#allocation2 + $0x471] sm:$0xff] }
 0x4a5   :  { %7647 = vmatprep.mubr.bf16.mxu0 %v17474_v14  ;;  %v5467_v14 = vld [vmem:[#allocation2 + $0x127] sm:$0xff] }
 0x4a6   :  { %v5524_v63 = vpack.c.bf16 %v5468_v22, %v5467_v14  ;;  %14287 = vmatprep.mubr.bf16.mxu1 %v5799_v54  ;;  %v5479_v22 = vld [vmem:[#allocation2 + $0x1e7] sm:$0xff] }
 0x4a7   :  { %14288 = vmatmul.mubr.bf16.gmra.mrb[52].mxu1 %v5800_v4  ;;  %v14973_v54 = vld [vmem:[%s19551_s28 + $0x28] sm:$0xff]   ;;  %v14974_v4 = vld [vmem:[%s19551_s28 + $0x70] sm:$0xff]  }
 0x4a8   :  { %14291 = vmatprep.mubr.bf16.mxu1 %v5801_v21  ;;  %v5488_v21 = vld [vmem:[#allocation2 + $0x2af] sm:$0xff] }
 0x4ac   :  { %7648 = vmatmul.mubr.bf16.gmra.mrb[20].mxu0 %v5522_v55  ;;  %v5477_v55 = vld [vmem:[#allocation2 + $0x1c7] sm:$0xff] }
 0x4ad   :  { %7655 = vmatprep.mubr.bf16.mxu0 %v17482_v61  ;;  %v5469_v61 = vld [vmem:[#allocation2 + $0x147] sm:$0xff] }
 0x4ae   :  { %v5525_v31 = vpack.c.bf16 %v5470_v0, %v5469_v61  ;;  %v14966_v61 = vld [vmem:[%s19551_s28 + $0x50] sm:$0xff]  }
 0x4af   :  { %v14967_v0 = vld [vmem:[%s19551_s28 + $0x10] sm:$0xff]  }
 0x4b4   :  { %7656 = vmatmul.mubr.bf16.gmra.mrb[24].mxu0 %v5523_v43  ;;  %v5529_v43 = vpack.c.bf16 %v5478_v50, %v5477_v55 }
 0x4b5   :  { %7663 = vmatprep.mubr.bf16.mxu0 %v17486_v27  ;;  %v5471_v27 = vld [vmem:[#allocation2 + $0x167] sm:$0xff] }
 0x4b6   :  { %v5526_v59 = vpack.c.bf16 %v5472_v15, %v5471_v27  ;;  %v14970_v27 = vld [vmem:[%s19551_s28 + $0x60] sm:$0xff]  }
 0x4b7   :  { %v14971_v15 = vld [vmem:[%s19551_s28 + $0x20] sm:$0xff]  }
 0x4bc   :  { %7664 = vmatmul.mubr.bf16.gmra.mrb[28].mxu0 %v5524_v63  ;;  %v5480_v63 = vld [vmem:[#allocation2 + $0x1ef] sm:$0xff] }
 0x4bd   :  { %7671 = vmatprep.mubr.bf16.mxu0 %v17494_v34  ;;  %v5473_v34 = vld [vmem:[#allocation2 + $0x187] sm:$0xff] }
 0x4be   :  { %v5527_v47 = vpack.c.bf16 %v5474_v13, %v5473_v34  ;;  %v17684_v34 = vld [vmem:[#allocation2 + $0x8] sm:$0xff] }
 0x4bf   :  { %v17688_v13 = vpack.c.bf16 %v17684_v34, %v17684_v34 }
 0x4c4   :  { %7672 = vmatmul.mubr.bf16.gmra.mrb[32].mxu0 %v5525_v31  ;;  %v5530_v31 = vpack.c.bf16 %v5480_v63, %v5479_v22 }
 0x4c5   :  { %7679 = vmatprep.mubr.bf16.mxu0 %v17498_v19  ;;  %v5475_v19 = vld [vmem:[#allocation2 + $0x1a7] sm:$0xff] }
 0x4c6   :  { %v5528_v41 = vpack.c.bf16 %v5476_v9, %v5475_v19  ;;  %v14975_v19 = vld [vmem:[%s19551_s28 + $0x30] sm:$0xff]   ;;  %v5532_v9 = vpack.c.bf16 %v5484_v17, %v5483_v7 }
 0x4c7   :  { %v5498_v17 = vld [vmem:[#allocation2 + $0x34f] sm:$0xff] }
 0x4cc   :  { %7680 = vmatmul.mubr.bf16.gmra.mrb[36].mxu0 %v5526_v59 }
 0x4cd   :  { %7687 = vmatprep.mubr.bf16.mxu0 %v17506_v49  ;;  %v17634_v23 = vpop.f32.mrb[0].mxu1 }
 0x4ce   :  { %v17636_v49 = vpop.f32.mrb[1].mxu1 }
 0x4cf   :  { %v17638_v32 = vpop.f32.mrb[2].mxu1 }
 0x4d0   :  { %v17640_v26 = vpop.f32.mrb[3].mxu1 }
 0x4d4   :  { %7688 = vmatmul.mubr.bf16.gmra.mrb[40].mxu0 %v5527_v47  ;;  %v5771_v47 = vld [vmem:[#allocation2 + $0x469] sm:$0xff] }
 0x4d5   :  { %7695 = vmatprep.mubr.bf16.mxu0 %v17510_v45  ;;  %v14962_v45 = vld [vmem:[%s19551_s28 + $0x40] sm:$0xff]   ;;  %v17663_v37 = vpop.f32.mrb[4].mxu1  ;;  %v5804_v46 = vpack.c.bf16 %v5772_v16, %v5771_v47 }
 0x4d6   :  { %13641 = vmatprep.subr.bf16.mxu1 %v14962_v45  ;;  %v14976_v45 = vld [vmem:[%s19551_s28 + $0x78] sm:$0xff]  }
 0x4d7   :  { %13642 = vmatpush3.bf16.msra.mxu1 %v14963_v6 }
 0x4d8   :  { %13643 = vmatprep.subr.bf16.mxu1 %v14964_v10  ;;  %v5533_v10 = vpack.c.bf16 %v5486_v60, %v5485_v18 }
 0x4db   :  { %13644 = vmatpush3.bf16.msra.mxu1 %v14965_v33 }
 0x4dc   :  { %7696 = vmatmul.mubr.bf16.gmra.mrb[44].mxu0 %v5528_v41  ;;  %13645 = vmatprep.subr.bf16.mxu1 %v14966_v61  ;;  %v5490_v61 = vld [vmem:[#allocation2 + $0x2cf] sm:$0xff] }
 0x4dd   :  { %7703 = vmatprep.mubr.bf16.mxu0 %v17524_v53  ;;  %v5767_v53 = vld [vmem:[#allocation2 + $0x429] sm:$0xff] }
 0x4de   :  { %v5802_v14 = vpack.c.bf16 %v5768_v39, %v5767_v53  ;;  %v5487_v53 = vld [vmem:[#allocation2 + $0x2a7] sm:$0xff] }
 0x4df   :  { %13646 = vmatpush3.bf16.msra.mxu1 %v14967_v0  ;;  %v5534_v39 = vpack.c.bf16 %v5488_v21, %v5487_v53  ;;  %v5504_v21 = vld [vmem:[#allocation2 + $0x3af] sm:$0xff] }
 0x4e0   :  { %14292 = vmatmul.mubr.bf16.gmra.mrb[56].mxu1 %v5802_v14  ;;  %13647 = vmatprep.subr.bf16.mxu1 %v14968_v40 }
 0x4e1   :  { %14295 = vmatprep.mubr.bf16.mxu1 %v17615_v62  ;;  %v5481_v62 = vld [vmem:[#allocation2 + $0x207] sm:$0xff] }
 0x4e2   :  { %v5531_v59 = vpack.c.bf16 %v5482_v38, %v5481_v62 }
 0x4e3   :  { %13648 = vmatpush3.bf16.msra.mxu1 %v14969_v28 }
 0x4e4   :  { %7704 = vmatmul.mubr.bf16.gmra.mrb[48].mxu0 %v5529_v43  ;;  %13649 = vmatprep.subr.bf16.mxu1 %v14970_v27  ;;  %v14977_v43 = vld [vmem:[%s19551_s28 + $0x38] sm:$0xff]  }
 0x4e5   :  { %7711 = vmatprep.mubr.bf16.mxu0 %v17534_v12  ;;  %v17665_v12 = vpop.f32.mrb[5].mxu1 }
 0x4e6   :  { %v17667_v36 = vpop.f32.mrb[6].mxu1 }
 0x4e7   :  { %v17672_v44 = vpop.f32.mrb[7].mxu1  ;;  %13650 = vmatpush3.bf16.msra.mxu1 %v14971_v15  ;;  %v5494_v15 = vld [vmem:[#allocation2 + $0x30f] sm:$0xff] }
 0x4e8   :  { %14296 = vmatmul.mubr.bf16.gmra.mrb[60].mxu1 %v5804_v46  ;;  %v17703_v41 = vpop.f32.mrb[8].mxu1 }
 0x4e9   :  { %v17705_v55 = vpop.f32.mrb[9].mxu1 }
 0x4ea   :  { %v17707_v50 = vpop.f32.mrb[10].mxu1 }
 0x4eb   :  { %v17712_v6 = vpop.f32.mrb[11].mxu1 }
 0x4ec   :  { %7712 = vmatmul.mubr.bf16.gmra.mrb[52].mxu0 %v5530_v31  ;;  %v17719_v33 = vpop.f32.mrb[12].mxu1  ;;  %v5492_v31 = vld [vmem:[#allocation2 + $0x2ef] sm:$0xff] }
 0x4ed   :  { %7719 = vmatprep.mubr.bf16.mxu0 %v17549_v52  ;;  %v14972_v52 = vld [vmem:[%s19551_s28 + $0x68] sm:$0xff]   ;;  %v17721_v14 = vpop.f32.mrb[13].mxu1 }
 0x4ee   :  { %13651 = vmatprep.subr.bf16.mxu1 %v14972_v52  ;;  %v17723_v22 = vpop.f32.mrb[14].mxu1  ;;  %v5496_v52 = vld [vmem:[#allocation2 + $0x32f] sm:$0xff] }
 0x4ef   :  { %13652 = vmatpush3.bf16.msra.mxu1 %v14973_v54  ;;  %v17725_v63 = vpop.f32.mrb[15].mxu1 }
 0x4f0   :  { %13653 = vmatprep.subr.bf16.mxu1 %v14974_v4  ;;  %v17729_v28 = vpop.f32.mrb[16].mxu1 }
 0x4f1   :  { %v17731_v62 = vpop.f32.mrb[17].mxu1 }
 0x4f2   :  { %v17733_v38 = vpop.f32.mrb[18].mxu1 }
 0x4f3   :  { %13654 = vmatpush3.bf16.msra.mxu1 %v14975_v19  ;;  %v17735_v27 = vpop.f32.mrb[19].mxu1  ;;  %v5500_v19 = vld [vmem:[#allocation2 + $0x36f] sm:$0xff] }
 0x4f4   :  { %7720 = vmatmul.mubr.bf16.gmra.mrb[56].mxu0 %v5531_v59  ;;  %13655 = vmatprep.subr.bf16.mxu1 %v14976_v45 }
 0x4f5   :  { %7727 = vmatprep.mubr.bf16.mxu0 %v17688_v13  ;;  %v17739_v16 = vpop.f32.mrb[20].mxu1 }
 0x4f6   :  { %v17741_v46 = vpop.f32.mrb[21].mxu1 }
 0x4f7   :  { %13656 = vmatpush3.bf16.msra.mxu1 %v14977_v43  ;;  %v17743_v54 = vpop.f32.mrb[22].mxu1 }
 0x4f8   :  { %v17745_v7 = vpop.f32.mrb[23].mxu1 }
 0x4fc   :  { %7728 = vmatmul.mubr.bf16.gmra.mrb[60].mxu0 %v5532_v9 }
 0x4fd   :  { %7735 = vmatprep.mubr.bf16.mxu0 %v17560_v25  ;;  %v5489_v25 = vld [vmem:[#allocation2 + $0x2c7] sm:$0xff]  ;;  %v17749_v45 = vpop.f32.mrb[24].mxu1 }
 0x4fe   :  { %v5535_v0 = vpack.c.bf16 %v5490_v61, %v5489_v25  ;;  %v17751_v43 = vpop.f32.mrb[25].mxu1 }
 0x4ff   :  { %v17753_v18 = vpop.f32.mrb[26].mxu1 }
 0x500   :  { %v17755_v60 = vpop.f32.mrb[27].mxu1 }
 0x504   :  { %7736 = vmatmul.mubr.bf16.gmra.mrb[64].mxu0 %v5533_v10  ;;  %v5502_v10 = vld [vmem:[#allocation2 + $0x38f] sm:$0xff] }
 0x505   :  { %7743 = vmatprep.mubr.bf16.mxu0 %v17564_v48  ;;  %v5491_v48 = vld [vmem:[#allocation2 + $0x2e7] sm:$0xff] }
 0x506   :  { %v5536_v40 = vpack.c.bf16 %v5492_v31, %v5491_v48  ;;  %v5506_v31 = vld [vmem:[#allocation2 + $0x3cf] sm:$0xff] }
 0x50c   :  { %7744 = vmatmul.mubr.bf16.gmra.mrb[68].mxu0 %v5534_v39 }
 0x50d   :  { %7751 = vmatprep.mubr.bf16.mxu0 %v17568_v58  ;;  %v5493_v58 = vld [vmem:[#allocation2 + $0x307] sm:$0xff] }
 0x50e   :  { %v5537_v59 = vpack.c.bf16 %v5494_v15, %v5493_v58  ;;  %v5507_v58 = vld [vmem:[#allocation2 + $0x3e7] sm:$0xff]  ;;  %v5508_v15 = vld [vmem:[#allocation2 + $0x3ef] sm:$0xff] }
 0x514   :  { %7752 = vmatmul.mubr.bf16.gmra.mrb[72].mxu0 %v5535_v0 }
 0x515   :  { %7759 = vmatprep.mubr.bf16.mxu0 %v17572_v5  ;;  %v5495_v5 = vld [vmem:[#allocation2 + $0x327] sm:$0xff] }
 0x516   :  { %v5538_v47 = vpack.c.bf16 %v5496_v52, %v5495_v5 }
 0x51c   :  { %7760 = vmatmul.mubr.bf16.gmra.mrb[76].mxu0 %v5536_v40 }
 0x51d   :  { %7767 = vmatprep.mubr.bf16.mxu0 %v17576_v20  ;;  %v5497_v20 = vld [vmem:[#allocation2 + $0x347] sm:$0xff] }
 0x51e   :  { %v5539_v4 = vpack.c.bf16 %v5498_v17, %v5497_v20 }
 0x524   :  { %7768 = vmatmul.mubr.bf16.gmra.mrb[80].mxu0 %v5537_v59 }
 0x525   :  { %7775 = vmatprep.mubr.bf16.mxu0 %v17580_v30  ;;  %v5499_v30 = vld [vmem:[#allocation2 + $0x367] sm:$0xff] }
 0x526   :  { %v5540_v9 = vpack.c.bf16 %v5500_v19, %v5499_v30 }
 0x52c   :  { %7776 = vmatmul.mubr.bf16.gmra.mrb[84].mxu0 %v5538_v47  ;;  %v5544_v47 = vpack.c.bf16 %v5508_v15, %v5507_v58 }
 0x52d   :  { %7783 = vmatprep.mubr.bf16.mxu0 %v17584_v51  ;;  %v5501_v51 = vld [vmem:[#allocation2 + $0x387] sm:$0xff] }
 0x52e   :  { %v5541_v53 = vpack.c.bf16 %v5502_v10, %v5501_v51  ;;  %v5509_v10 = vld [vmem:[#allocation2 + $0x407] sm:$0xff] }
 0x534   :  { %7784 = vmatmul.mubr.bf16.gmra.mrb[88].mxu0 %v5539_v4 }
 0x535   :  { %7791 = vmatprep.mubr.bf16.mxu0 %v17588_v56  ;;  %v5503_v56 = vld [vmem:[#allocation2 + $0x3a7] sm:$0xff] }
 0x536   :  { %v5542_v39 = vpack.c.bf16 %v5504_v21, %v5503_v56 }
 0x53b   :  { %v17759_v25 = vpop.f32.mrb[28].mxu1 }
 0x53c   :  { %7792 = vmatmul.mubr.bf16.gmra.mrb[92].mxu0 %v5540_v9  ;;  %v17761_v61 = vpop.f32.mrb[29].mxu1 }
 0x53d   :  { %7799 = vmatprep.mubr.bf16.mxu0 %v17592_v35  ;;  %v17763_v0 = vpop.f32.mrb[30].mxu1  ;;  %v5505_v35 = vld [vmem:[#allocation2 + $0x3c7] sm:$0xff] }
 0x53e   :  { %v17765_v48 = vpop.f32.mrb[31].mxu1  ;;  %v5543_v40 = vpack.c.bf16 %v5506_v31, %v5505_v35 }
 0x543   :  { %v17775_v20 = vpop.f32.mrb[32].mxu1 }
 0x544   :  { %7800 = vmatmul.mubr.bf16.gmra.mrb[96].mxu0 %v5541_v53  ;;  %v17777_v17 = vpop.f32.mrb[33].mxu1  ;;  %v5510_v53 = vld [vmem:[#allocation2 + $0x40f] sm:$0xff] }
 0x545   :  { %7807 = vmatprep.mubr.bf16.mxu0 %v17596_v11  ;;  %v17771_v11 = vld [vmem:[%s19552_s29] ss:$0 sm:$0xff]  ;;  %v17781_v9 = vpop.f32.mrb[34].mxu1  ;;  %v5545_v35 = vpack.c.bf16 %v5510_v53, %v5509_v10 }
 0x54c   :  { %7808 = vmatmul.mubr.bf16.gmra.mrb[100].mxu0 %v5542_v39 }
 0x54d   :  { %7815 = vmatprep.mubr.bf16.mxu0 %v17600_v42 }
 0x554   :  { %7816 = vmatmul.mubr.bf16.gmra.mrb[104].mxu0 %v5543_v40 }
 0x555   :  { %7823 = vmatprep.mubr.bf16.mxu0 %v17604_v29  ;;  %v17783_v29 = vpop.f32.mrb[35].mxu1 }
 0x557   :  { %v7609_v59 = vpop.f32.mrb[0].mxu0 }
 0x558   :  { %v14394_v5 = vadd.f32 %v17771_v11, %v7609_v59  ;;  %v7611_v52 = vpop.f32.mrb[1].mxu0 }
 0x559   :  { %v7612_v42 = vpop.f32.mrb[2].mxu0  ;;  %v5512_v52 = vld [vmem:[#allocation2 + $0x42f] sm:$0xff] }
 0x55a   :  { %v14395_v4 = vadd.f32 %v17771_v11, %v7612_v42  ;;  %v7899_v30 = vadd.f32 %v14394_v5, %v17636_v49  ;;  %v7614_v19 = vpop.f32.mrb[3].mxu0 }
 0x55c   :  { %v7902_v51 = vadd.f32 %v14395_v4, %v17640_v26  ;;  %7824 = vmatmul.mubr.bf16.gmra.mrb[108].mxu0 %v5544_v47  ;;  %v8153_v40 = vmax.f32 %v7899_v30, 0.0 }
 0x55d   :  { %7831 = vmatprep.mubr.bf16.mxu0 %v17609_v8  ;;  %v5511_v8 = vld [vmem:[#allocation2 + $0x427] sm:$0xff] }
 0x55e   :  { %v8154_v59 = vmax.f32 %v7902_v51, 0.0  ;;  %v8218_v47 = vsel %vm8217_vm1, %v8153_v40, -inf }
 0x55f   :  { %v7617_v56 = vpop.f32.mrb[4].mxu0 }
 0x560   :  { %v14396_v21 = vadd.f32 %v17771_v11, %v7617_v56  ;;  %v7619_v39 = vpop.f32.mrb[5].mxu0  ;;  %v8221_v19 = vsel %vm8217_vm1, %v8154_v59, -inf  ;;  %v17797_v56 = vpop.f32.mrb[36].mxu1  ;;  %v5513_v59 = vld [vmem:[#allocation2 + $0x447] sm:$0xff] }
 0x561   :  { %v7620_v31 = vpop.f32.mrb[6].mxu0  ;;  %v17800_v39 = vpop.f32.mrb[37].mxu1 }
 0x562   :  { %v7907_v49 = vadd.f32 %v14396_v21, %v17634_v23  ;;  %v14397_v58 = vadd.f32 %v17771_v11, %v7620_v31  ;;  %v7622_v15 = vpop.f32.mrb[7].mxu0 }
 0x564   :  { %v8155_v26 = vmax.f32 %v7907_v49, 0.0  ;;  %v7910_v5 = vadd.f32 %v14397_v58, %v17638_v32  ;;  %7832 = vmatmul.mubr.bf16.gmra.mrb[112].mxu0 %v5545_v35  ;;  %v5546_v32 = vpack.c.bf16 %v5512_v52, %v5511_v8  ;;  %v17804_v49 = vpop.f32.mrb[38].mxu1 }
 0x565   :  { %7839 = vmatprep.mubr.bf16.mxu0 %v17613_v57  ;;  %v17807_v58 = vpop.f32.mrb[39].mxu1 }
 0x566   :  { %v8219_v42 = vsel %vm8217_vm1, %v8155_v26, -inf  ;;  %v8156_v4 = vmax.f32 %v7910_v5, 0.0  ;;  %v5514_v26 = vld [vmem:[#allocation2 + $0x44f] sm:$0xff] }
 0x567   :  { %v8220_v30 = vmax.f32 %v8218_v47, %v8219_v42  ;;  %v7625_v23 = vpop.f32.mrb[8].mxu0  ;;  %v5547_v47 = vpack.c.bf16 %v5514_v26, %v5513_v59 }
 0x568   :  { %v8222_v10 = vsel %vm8217_vm1, %v8156_v4, -inf  ;;  %v14398_v51 = vadd.f32 %v17771_v11, %v7625_v23  ;;  %v7627_v53 = vpop.f32.mrb[9].mxu0 }
 0x569   :  { %8314 = vst.msk [vmem:[#allocation6] sm:$0xff] %vm8217_vm1, %v8220_v30  ;;  %v8223_v57 = vmax.f32 %v8221_v19, %v8222_v10  ;;  %v7628_v21 = vpop.f32.mrb[10].mxu0 }
 0x56a   :  { %v14399_v35 = vadd.f32 %v17771_v11, %v7628_v21  ;;  %v7915_v31 = vadd.f32 %v14398_v51, %v17665_v12  ;;  %v7630_v40 = vpop.f32.mrb[11].mxu0 }
 0x56b   :  { %8315 = vst.msk [vmem:[#allocation6 + $0x8] sm:$0xff] %vm8217_vm1, %v8223_v57  ;;  %v5516_v57 = vld [vmem:[#allocation2 + $0x46f] sm:$0xff] }
 0x56c   :  { %v7918_v15 = vadd.f32 %v14399_v35, %v17672_v44  ;;  %7840 = vmatmul.mubr.bf16.gmra.mrb[116].mxu0 %v5546_v32  ;;  %v8157_v30 = vmax.f32 %v7915_v31, 0.0  ;;  %v5515_v32 = vld [vmem:[#allocation2 + $0x467] sm:$0xff] }
 0x56d   :  { %7847 = vmatprep.mubr.bf16.mxu0 %v17619_v24 }
 0x56e   :  { %v8158_v51 = vmax.f32 %v7918_v15, 0.0  ;;  %v8224_v21 = vsel %vm8217_vm1, %v8157_v30, -inf  ;;  %v8442_v30 = vld [vmem:[#allocation3 + $0x7] sm:$0xff] }
 0x56f   :  { %v7633_v5 = vpop.f32.mrb[12].mxu0 }
 0x570   :  { %v14400_v8 = vadd.f32 %v17771_v11, %v7633_v5  ;;  %v7635_v52 = vpop.f32.mrb[13].mxu0  ;;  %v8227_v59 = vsel %vm8217_vm1, %v8158_v51, -inf  ;;  %v5548_v5 = vpack.c.bf16 %v5516_v57, %v5515_v32 }
 0x571   :  { %v7636_v12 = vpop.f32.mrb[14].mxu0 }
 0x572   :  { %v8346_v42 = vld [vmem:[#allocation6] ss:$2 sm:$0xff]  ;;  %v8378_v4 = vld [vmem:[#allocation6 + $0x1] ss:$2 sm:$0xff]  ;;  %v7923_v23 = vadd.f32 %v14400_v8, %v17663_v37  ;;  %v14401_v19 = vadd.f32 %v17771_v11, %v7636_v12  ;;  %v7638_v10 = vpop.f32.mrb[15].mxu0  ;;  %v17822_v8 = vpop.f32.mrb[40].mxu1 }
 0x573   :  { %v8409_v44 = vmax.f32 %v8346_v42, %v8378_v4 }
 0x574   :  { %v8159_v53 = vmax.f32 %v7923_v23, 0.0  ;;  %v7926_v24 = vadd.f32 %v14401_v19, %v17667_v36  ;;  %7848 = vmatmul.mubr.bf16.gmra.mrb[120].mxu0 %v5547_v47  ;;  %v17825_v47 = vpop.f32.mrb[41].mxu1 }
 0x575   :  { %8426 = vst.msk [vmem:[#allocation3 + $0x20] sm:$0xff] %vm8217_vm1, %v8409_v44  ;;  %7855 = vmatprep.mubr.bf16.mxu0 %v17688_v13  ;;  %v17829_v23 = vpop.f32.mrb[42].mxu1 }
 0x576   :  { %v8225_v35 = vsel %vm8217_vm1, %v8159_v53, -inf  ;;  %v8160_v37 = vmax.f32 %v7926_v24, 0.0  ;;  %v17832_v19 = vpop.f32.mrb[43].mxu1 }
 0x577   :  { %v8226_v31 = vmax.f32 %v8224_v21, %v8225_v35  ;;  %v7641_v40 = vpop.f32.mrb[16].mxu0 }
 0x578   :  { %v8228_v15 = vsel %vm8217_vm1, %v8160_v37, -inf  ;;  %v14402_v36 = vadd.f32 %v17771_v11, %v7641_v40  ;;  %v7643_v26 = vpop.f32.mrb[17].mxu0 }
 0x579   :  { %8316 = vst.msk [vmem:[#allocation6 + $0x10] sm:$0xff] %vm8217_vm1, %v8226_v31  ;;  %v8229_v13 = vmax.f32 %v8227_v59, %v8228_v15  ;;  %v7644_v52 = vpop.f32.mrb[18].mxu0 }
 0x57a   :  { %v14403_v12 = vadd.f32 %v17771_v11, %v7644_v52  ;;  %v7931_v42 = vadd.f32 %v14402_v36, %v17705_v55  ;;  %v7646_v4 = vpop.f32.mrb[19].mxu0 }
 0x57b   :  { %8317 = vst.msk [vmem:[#allocation6 + $0x18] sm:$0xff] %vm8217_vm1, %v8229_v13 }
 0x57c   :  { %v7934_v10 = vadd.f32 %v14403_v12, %v17712_v6  ;;  %7856 = vmatmul.mubr.bf16.gmra.mrb[124].mxu0 %v5548_v5  ;;  %v8475_v44 = vld [vmem:[#allocation3 + $0x20] sm:$0xff]  ;;  %v8161_v31 = vmax.f32 %v7931_v42, 0.0 }
 0x57d   :  { %v8443_v51 = vld [vmem:[#allocation3 + $0x1f] sm:$0xff]  ;;  %v8490_v53 = vpack.c.bf16 %v8475_v44, %v17684_v34 }
 0x57e   :  { %v8458_v24 = vpack.c.bf16 %v8443_v51, %v8442_v30  ;;  %v8162_v36 = vmax.f32 %v7934_v10, 0.0  ;;  %v8230_v5 = vsel %vm8217_vm1, %v8161_v31, -inf  ;;  %v17846_v10 = vpop.f32.mrb[44].mxu1 }
 0x57f   :  { %v7649_v32 = vpop.f32.mrb[20].mxu0  ;;  %9418 = vmatprep.mubr.bf16.mxu1 %v8490_v53  ;;  %v17849_v53 = vpop.f32.mrb[45].mxu1 }
 0x580   :  { %v14404_v55 = vadd.f32 %v17771_v11, %v7649_v32  ;;  %v7651_v57 = vpop.f32.mrb[21].mxu0  ;;  %9419 = vmatmul.mubr.bf16.vlgmr.msra.gmra.mrb[64].mxu1 %v8458_v24  ;;  %v8233_v42 = vsel %vm8217_vm1, %v8162_v36, -inf }
 0x581   :  { %v7652_v21 = vpop.f32.mrb[22].mxu0  ;;  %v17853_v57 = vpop.f32.mrb[46].mxu1 }
 0x582   :  { %v8348_v35 = vld [vmem:[#allocation6 + $0x10] ss:$2 sm:$0xff]  ;;  %v8380_v37 = vld [vmem:[#allocation6 + $0x11] ss:$2 sm:$0xff]  ;;  %v7939_v40 = vadd.f32 %v14404_v55, %v17703_v41  ;;  %v14405_v6 = vadd.f32 %v17771_v11, %v7652_v21  ;;  %v7654_v59 = vpop.f32.mrb[23].mxu0  ;;  %v17856_v21 = vpop.f32.mrb[47].mxu1 }
 0x583   :  { %v8410_v15 = vmax.f32 %v8348_v35, %v8380_v37 }
 0x584   :  { %v8163_v26 = vmax.f32 %v7939_v40, 0.0  ;;  %v7942_v34 = vadd.f32 %v14405_v6, %v17707_v50 }
 0x585   :  { %8427 = vst.msk [vmem:[#allocation3 + $0x38] sm:$0xff] %vm8217_vm1, %v8410_v15 }
 0x586   :  { %v8231_v13 = vsel %vm8217_vm1, %v8163_v26, -inf  ;;  %v8164_v52 = vmax.f32 %v7942_v34, 0.0 }
 0x587   :  { %v8232_v12 = vmax.f32 %v8230_v5, %v8231_v13  ;;  %v7657_v4 = vpop.f32.mrb[24].mxu0 }
 0x588   :  { %v8234_v41 = vsel %vm8217_vm1, %v8164_v52, -inf  ;;  %v14406_v30 = vadd.f32 %v17771_v11, %v7657_v4  ;;  %v7659_v44 = vpop.f32.mrb[25].mxu0 }
 0x589   :  { %8318 = vst.msk [vmem:[#allocation6 + $0x20] sm:$0xff] %vm8217_vm1, %v8232_v12  ;;  %v8235_v50 = vmax.f32 %v8233_v42, %v8234_v41  ;;  %v7660_v51 = vpop.f32.mrb[26].mxu0 }
 0x58a   :  { %v14407_v24 = vadd.f32 %v17771_v11, %v7660_v51  ;;  %v7947_v32 = vadd.f32 %v14406_v30, %v17721_v14  ;;  %v7662_v55 = vpop.f32.mrb[27].mxu0 }
 0x58b   :  { %8319 = vst.msk [vmem:[#allocation6 + $0x28] sm:$0xff] %vm8217_vm1, %v8235_v50 }
 0x58c   :  { %v7950_v35 = vadd.f32 %v14407_v24, %v17725_v63  ;;  %v8165_v36 = vmax.f32 %v7947_v32, 0.0  ;;  %v17869_v24 = vpop.f32.mrb[48].mxu1 }
 0x58d   :  { %v17872_v55 = vpop.f32.mrb[49].mxu1 }
 0x58e   :  { %v8166_v13 = vmax.f32 %v7950_v35, 0.0  ;;  %v8236_v63 = vsel %vm8217_vm1, %v8165_v36, -inf  ;;  %v17881_v36 = vld [vmem:[#allocation3 + $0x37] sm:$0xff] }
 0x58f   :  { %v7665_v37 = vpop.f32.mrb[28].mxu0 }
 0x590   :  { %v14408_v31 = vadd.f32 %v17771_v11, %v7665_v37  ;;  %v7667_v40 = vpop.f32.mrb[29].mxu0  ;;  %v8239_v44 = vsel %vm8217_vm1, %v8166_v13, -inf }
 0x591   :  { %v7668_v6 = vpop.f32.mrb[30].mxu0  ;;  %v17876_v40 = vpop.f32.mrb[50].mxu1 }
 0x592   :  { %v8350_v59 = vld [vmem:[#allocation6 + $0x20] ss:$2 sm:$0xff]  ;;  %v8382_v15 = vld [vmem:[#allocation6 + $0x21] ss:$2 sm:$0xff]  ;;  %v7955_v26 = vadd.f32 %v14408_v31, %v17719_v33  ;;  %v14409_v14 = vadd.f32 %v17771_v11, %v7668_v6  ;;  %v7670_v34 = vpop.f32.mrb[31].mxu0  ;;  %v8476_v6 = vld [vmem:[#allocation3 + $0x38] sm:$0xff] }
 0x593   :  { %v8411_v5 = vmax.f32 %v8350_v59, %v8382_v15  ;;  %v8444_v59 = vld [vmem:[#allocation3 + $0x37] sm:$0xff]  ;;  %v17879_v15 = vpop.f32.mrb[51].mxu1 }
 0x594   :  { %v8167_v52 = vmax.f32 %v7955_v26, 0.0  ;;  %v7958_v12 = vadd.f32 %v14409_v14, %v17723_v22 }
 0x595   :  { %8428 = vst.msk [vmem:[#allocation3 + $0x50] sm:$0xff] %vm8217_vm1, %v8411_v5 }
 0x596   :  { %v8237_v4 = vsel %vm8217_vm1, %v8167_v52, -inf  ;;  %v8168_v42 = vmax.f32 %v7958_v12, 0.0 }
 0x597   :  { %v8238_v41 = vmax.f32 %v8236_v63, %v8237_v4  ;;  %v7673_v30 = vpop.f32.mrb[32].mxu0 }
 0x598   :  { %v8240_v33 = vsel %vm8217_vm1, %v8168_v42, -inf  ;;  %v14410_v50 = vadd.f32 %v17771_v11, %v7673_v30  ;;  %v7675_v51 = vpop.f32.mrb[33].mxu0 }
 0x599   :  { %8320 = vst.msk [vmem:[#allocation6 + $0x30] sm:$0xff] %vm8217_vm1, %v8238_v41  ;;  %v8241_v22 = vmax.f32 %v8239_v44, %v8240_v33  ;;  %v7676_v32 = vpop.f32.mrb[34].mxu0 }
 0x59a   :  { %v14411_v35 = vadd.f32 %v17771_v11, %v7676_v32  ;;  %v7963_v37 = vadd.f32 %v14410_v50, %v17731_v62  ;;  %v7678_v31 = vpop.f32.mrb[35].mxu0 }
 0x59b   :  { %8321 = vst.msk [vmem:[#allocation6 + $0x38] sm:$0xff] %vm8217_vm1, %v8241_v22 }
 0x59c   :  { %v7966_v26 = vadd.f32 %v14411_v35, %v17735_v27  ;;  %v8477_v14 = vld [vmem:[#allocation3 + $0x50] sm:$0xff]  ;;  %v8169_v44 = vmax.f32 %v7963_v37, 0.0 }
 0x59d   :  { %v8445_v34 = vld [vmem:[#allocation3 + $0x4f] sm:$0xff]  ;;  %v8491_v13 = vpack.c.bf16 %v8477_v14, %v8476_v6 }
 0x59e   :  { %v17884_v5 = vld [vmem:[#allocation3 + $0x4f] sm:$0xff]  ;;  %v8459_v52 = vpack.c.bf16 %v8445_v34, %v8444_v59  ;;  %v8170_v22 = vmax.f32 %v7966_v26, 0.0  ;;  %v8242_v31 = vsel %vm8217_vm1, %v8169_v44, -inf  ;;  %v17898_v26 = vpop.f32.mrb[52].mxu1 }
 0x59f   :  { %v8651_v62 = vpack.c.bf16 %v17884_v5, %v17881_v36  ;;  %v7681_v12 = vpop.f32.mrb[36].mxu0  ;;  %9426 = vmatprep.mubr.bf16.mxu1 %v8491_v13 }
 0x5a0   :  { %v14412_v63 = vadd.f32 %v17771_v11, %v7681_v12  ;;  %v7683_v4 = vpop.f32.mrb[37].mxu0  ;;  %9427 = vmatmul.mubr.bf16.gmra.mrb[68].mxu1 %v8459_v52  ;;  %v8245_v37 = vsel %vm8217_vm1, %v8170_v22, -inf }
 0x5a1   :  { %v7684_v42 = vpop.f32.mrb[38].mxu0 }
 0x5a2   :  { %v8352_v41 = vld [vmem:[#allocation6 + $0x30] ss:$2 sm:$0xff]  ;;  %v8384_v30 = vld [vmem:[#allocation6 + $0x31] ss:$2 sm:$0xff]  ;;  %v7971_v27 = vadd.f32 %v14412_v63, %v17729_v28  ;;  %v14413_v33 = vadd.f32 %v17771_v11, %v7684_v42  ;;  %v7686_v50 = vpop.f32.mrb[39].mxu0  ;;  %v17901_v63 = vpop.f32.mrb[53].mxu1 }
 0x5a3   :  { %v8412_v51 = vmax.f32 %v8352_v41, %v8384_v30  ;;  %v17905_v30 = vpop.f32.mrb[54].mxu1 }
 0x5a4   :  { %v8171_v32 = vmax.f32 %v7971_v27, 0.0  ;;  %v7974_v35 = vadd.f32 %v14413_v33, %v17733_v38  ;;  %v17908_v44 = vpop.f32.mrb[55].mxu1 }
 0x5a5   :  { %8429 = vst.msk [vmem:[#allocation3 + $0x68] sm:$0xff] %vm8217_vm1, %v8412_v51 }
 0x5a6   :  { %v8243_v6 = vsel %vm8217_vm1, %v8171_v32, -inf  ;;  %v8172_v59 = vmax.f32 %v7974_v35, 0.0 }
 0x5a7   :  { %v8244_v14 = vmax.f32 %v8242_v31, %v8243_v6  ;;  %v7689_v34 = vpop.f32.mrb[40].mxu0 }
 0x5a8   :  { %v8246_v28 = vsel %vm8217_vm1, %v8172_v59, -inf  ;;  %v14414_v13 = vadd.f32 %v17771_v11, %v7689_v34  ;;  %v7691_v52 = vpop.f32.mrb[41].mxu0 }
 0x5a9   :  { %8322 = vst.msk [vmem:[#allocation6 + $0x40] sm:$0xff] %vm8217_vm1, %v8244_v14  ;;  %v8247_v38 = vmax.f32 %v8245_v37, %v8246_v28  ;;  %v7692_v12 = vpop.f32.mrb[42].mxu0 }
 0x5aa   :  { %v14415_v4 = vadd.f32 %v17771_v11, %v7692_v12  ;;  %v7979_v42 = vadd.f32 %v14414_v13, %v17741_v46  ;;  %v7694_v41 = vpop.f32.mrb[43].mxu0  ;;  %v14979_v13 = vld [vmem:[%s19551_s28 + $0x80] sm:$0xff]  }
 0x5ab   :  { %8323 = vst.msk [vmem:[#allocation6 + $0x48] sm:$0xff] %vm8217_vm1, %v8247_v38 }
 0x5ac   :  { %v7982_v27 = vadd.f32 %v14415_v4, %v17745_v7  ;;  %v8173_v31 = vmax.f32 %v7979_v42, 0.0  ;;  %v14978_v7 = vld [vmem:[%s19551_s28 + $0xc0] sm:$0xff]  }
 0x5ad   :  { %13705 = vmatprep.subr.bf16.mxu1 %v14978_v7 }
 0x5ae   :  { %v8174_v34 = vmax.f32 %v7982_v27, 0.0  ;;  %13706 = vmatpush3.bf16.msra.mxu1 %v14979_v13 }
 0x5af   :  { %v7697_v33 = vpop.f32.mrb[44].mxu0 }
 0x5b0   :  { %v14416_v50 = vadd.f32 %v17771_v11, %v7697_v33  ;;  %v7699_v51 = vpop.f32.mrb[45].mxu0 }
 0x5b1   :  { %v7700_v22 = vpop.f32.mrb[46].mxu0  ;;  %v14980_v51 = vld [vmem:[%s19551_s28 + $0xc8] sm:$0xff]  }
 0x5b2   :  { %v8354_v32 = vld [vmem:[#allocation6 + $0x40] ss:$2 sm:$0xff]  ;;  %v8386_v35 = vld [vmem:[#allocation6 + $0x41] ss:$2 sm:$0xff]  ;;  %v7987_v6 = vadd.f32 %v14416_v50, %v17739_v16  ;;  %v14417_v46 = vadd.f32 %v17771_v11, %v7700_v22  ;;  %v7702_v59 = vpop.f32.mrb[47].mxu0  ;;  %v8248_v16 = vsel %vm8217_vm1, %v8173_v31, -inf  ;;  %13707 = vmatprep.subr.bf16.mxu1 %v14980_v51 }
 0x5b3   :  { %v8413_v14 = vmax.f32 %v8354_v32, %v8386_v35  ;;  %v17931_v22 = vpop.f32.mrb[56].mxu1 }
 0x5b4   :  { %v8175_v37 = vmax.f32 %v7987_v6, 0.0  ;;  %v7990_v28 = vadd.f32 %v14417_v46, %v17743_v54  ;;  %v8251_v54 = vsel %vm8217_vm1, %v8174_v34, -inf  ;;  %v17935_v6 = vpop.f32.mrb[57].mxu1  ;;  %v8478_v46 = vld [vmem:[#allocation3 + $0x68] sm:$0xff] }
 0x5b5   :  { %8430 = vst.msk [vmem:[#allocation3 + $0x80] sm:$0xff] %vm8217_vm1, %v8413_v14  ;;  %v17938_v59 = vpop.f32.mrb[58].mxu1 }
 0x5b6   :  { %v8249_v52 = vsel %vm8217_vm1, %v8175_v37, -inf  ;;  %v8176_v38 = vmax.f32 %v7990_v28, 0.0  ;;  %v17941_v37 = vld [vmem:[#allocation3 + $0x67] sm:$0xff]  ;;  %v17945_v7 = vpop.f32.mrb[59].mxu1 }
 0x5b7   :  { %v8250_v12 = vmax.f32 %v8248_v16, %v8249_v52  ;;  %v7705_v4 = vpop.f32.mrb[48].mxu0 }
 0x5b8   :  { %v8252_v42 = vsel %vm8217_vm1, %v8176_v38, -inf  ;;  %v14418_v41 = vadd.f32 %v17771_v11, %v7705_v4  ;;  %v7707_v27 = vpop.f32.mrb[49].mxu0 }
 0x5b9   :  { %8324 = vst.msk [vmem:[#allocation6 + $0x50] sm:$0xff] %vm8217_vm1, %v8250_v12  ;;  %v8253_v33 = vmax.f32 %v8251_v54, %v8252_v42  ;;  %v7708_v50 = vpop.f32.mrb[50].mxu0 }
 0x5ba   :  { %v14419_v32 = vadd.f32 %v17771_v11, %v7708_v50  ;;  %v7995_v35 = vadd.f32 %v14418_v41, %v17751_v43  ;;  %v7710_v31 = vpop.f32.mrb[51].mxu0 }
 0x5bb   :  { %8325 = vst.msk [vmem:[#allocation6 + $0x58] sm:$0xff] %vm8217_vm1, %v8253_v33  ;;  %v14981_v31 = vld [vmem:[%s19551_s28 + $0x88] sm:$0xff]  }
 0x5bc   :  { %v7998_v14 = vadd.f32 %v14419_v32, %v17755_v60  ;;  %v8479_v34 = vld [vmem:[#allocation3 + $0x80] sm:$0xff]  ;;  %v8177_v54 = vmax.f32 %v7995_v35, 0.0  ;;  %v14982_v35 = vld [vmem:[%s19551_s28 + $0xd0] sm:$0xff]   ;;  %13708 = vmatpush3.bf16.msra.mxu1 %v14981_v31 }
 0x5bd   :  { %v17943_v28 = vld [vmem:[#allocation3 + $0x7f] sm:$0xff]  ;;  %v8492_v13 = vpack.c.bf16 %v8479_v34, %v8478_v46  ;;  %13709 = vmatprep.subr.bf16.mxu1 %v14982_v35 }
 0x5be   :  { %v8460_v43 = vpack.c.bf16 %v17943_v28, %v17941_v37  ;;  %v8178_v50 = vmax.f32 %v7998_v14, 0.0 }
 0x5bf   :  { %v7713_v16 = vpop.f32.mrb[52].mxu0  ;;  %9434 = vmatprep.mubr.bf16.mxu1 %v8492_v13 }
 0x5c0   :  { %v14420_v52 = vadd.f32 %v17771_v11, %v7713_v16  ;;  %v7715_v38 = vpop.f32.mrb[53].mxu0  ;;  %9435 = vmatmul.mubr.bf16.gmra.mrb[72].mxu1 %v8460_v43  ;;  %v8257_v43 = vsel %vm8217_vm1, %v8178_v50, -inf }
 0x5c1   :  { %v7716_v12 = vpop.f32.mrb[54].mxu0 }
 0x5c2   :  { %v8356_v4 = vld [vmem:[#allocation6 + $0x50] ss:$2 sm:$0xff]  ;;  %v8388_v60 = vld [vmem:[#allocation6 + $0x51] ss:$2 sm:$0xff]  ;;  %v8003_v42 = vadd.f32 %v14420_v52, %v17749_v45  ;;  %v14421_v41 = vadd.f32 %v17771_v11, %v7716_v12  ;;  %v7718_v27 = vpop.f32.mrb[55].mxu0  ;;  %v8254_v45 = vsel %vm8217_vm1, %v8177_v54, -inf }
 0x5c3   :  { %v8414_v33 = vmax.f32 %v8356_v4, %v8388_v60  ;;  %v17968_v12 = vpop.f32.mrb[60].mxu1  ;;  %v14984_v54 = vld [vmem:[%s19551_s28 + $0xd8] sm:$0xff]  }
 0x5c4   :  { %v8179_v51 = vmax.f32 %v8003_v42, 0.0  ;;  %v8006_v32 = vadd.f32 %v14421_v41, %v17753_v18  ;;  %v14983_v18 = vld [vmem:[%s19551_s28 + $0x90] sm:$0xff]   ;;  %v17974_v42 = vpop.f32.mrb[61].mxu1 }
 0x5c5   :  { %8431 = vst.msk [vmem:[#allocation3 + $0x98] sm:$0xff] %vm8217_vm1, %v8414_v33  ;;  %v17978_v50 = vpop.f32.mrb[62].mxu1  ;;  %13710 = vmatpush3.bf16.msra.mxu1 %v14983_v18 }
 0x5c6   :  { %v8255_v46 = vsel %vm8217_vm1, %v8179_v51, -inf  ;;  %v8180_v34 = vmax.f32 %v8006_v32, 0.0  ;;  %v17981_v51 = vpop.f32.mrb[63].mxu1  ;;  %13711 = vmatprep.subr.bf16.mxu1 %v14984_v54 }
 0x5c7   :  { %v8256_v13 = vmax.f32 %v8254_v45, %v8255_v46  ;;  %v7721_v14 = vpop.f32.mrb[56].mxu0 }
 0x5c8   :  { %v8258_v16 = vsel %vm8217_vm1, %v8180_v34, -inf  ;;  %v14422_v52 = vadd.f32 %v17771_v11, %v7721_v14  ;;  %v7723_v38 = vpop.f32.mrb[57].mxu0 }
 0x5c9   :  { %8326 = vst.msk [vmem:[#allocation6 + $0x60] sm:$0xff] %vm8217_vm1, %v8256_v13  ;;  %v8259_v4 = vmax.f32 %v8257_v43, %v8258_v16  ;;  %v7724_v60 = vpop.f32.mrb[58].mxu0  ;;  %v14985_v38 = vld [vmem:[%s19551_s28 + $0x98] sm:$0xff]  }
 0x5ca   :  { %v14423_v41 = vadd.f32 %v17771_v11, %v7724_v60  ;;  %v8011_v27 = vadd.f32 %v14422_v52, %v17761_v61  ;;  %v7726_v33 = vpop.f32.mrb[59].mxu0  ;;  %13712 = vmatpush3.bf16.msra.mxu1 %v14985_v38  ;;  %v14989_v38 = vld [vmem:[%s19551_s28 + $0xa8] sm:$0xff]  }
 0x5cb   :  { %8327 = vst.msk [vmem:[#allocation6 + $0x68] sm:$0xff] %vm8217_vm1, %v8259_v4 }
 0x5cc   :  { %v8014_v32 = vadd.f32 %v14423_v41, %v17765_v48  ;;  %v17984_v31 = vld [vmem:[#allocation3 + $0x97] sm:$0xff]  ;;  %v8181_v43 = vmax.f32 %v8011_v27, 0.0  ;;  %v14986_v41 = vld [vmem:[%s19551_s28 + $0xe0] sm:$0xff]  }
 0x5cd   :  { %v8556_v35 = vpack.c.bf16 %v17984_v31, %v17943_v28  ;;  %13713 = vmatprep.subr.bf16.mxu1 %v14986_v41 }
 0x5ce   :  { %v8182_v4 = vmax.f32 %v8014_v32, 0.0  ;;  %v8260_v27 = vsel %vm8217_vm1, %v8181_v43, -inf  ;;  %v14988_v43 = vld [vmem:[%s19551_s28 + $0xe8] sm:$0xff]  }
 0x5cf   :  { %v7729_v45 = vpop.f32.mrb[60].mxu0 }
 0x5d0   :  { %v14424_v46 = vadd.f32 %v17771_v11, %v7729_v45  ;;  %v7731_v61 = vpop.f32.mrb[61].mxu0 }
 0x5d1   :  { %v7732_v34 = vpop.f32.mrb[62].mxu0 }
 0x5d2   :  { %v8358_v13 = vld [vmem:[#allocation6 + $0x60] ss:$2 sm:$0xff]  ;;  %v8390_v14 = vld [vmem:[#allocation6 + $0x61] ss:$2 sm:$0xff]  ;;  %v8019_v18 = vadd.f32 %v14424_v46, %v17759_v25  ;;  %v14425_v16 = vadd.f32 %v17771_v11, %v7732_v34  ;;  %v7734_v52 = vpop.f32.mrb[63].mxu0 }
 0x5d3   :  { %v8415_v48 = vmax.f32 %v8358_v13, %v8390_v14  ;;  %v14987_v25 = vld [vmem:[%s19551_s28 + $0xa0] sm:$0xff]  }
 0x5d4   :  { %v8183_v60 = vmax.f32 %v8019_v18, 0.0  ;;  %v8022_v54 = vadd.f32 %v14425_v16, %v17763_v0  ;;  %v8263_v0 = vsel %vm8217_vm1, %v8182_v4, -inf  ;;  %13714 = vmatpush3.bf16.msra.mxu1 %v14987_v25 }
 0x5d5   :  { %8432 = vst.msk [vmem:[#allocation3 + $0xb0] sm:$0xff] %vm8217_vm1, %v8415_v48  ;;  %13715 = vmatprep.subr.bf16.mxu1 %v14988_v43  ;;  %v14992_v43 = vld [vmem:[%s19551_s28 + $0xf8] sm:$0xff]  }
 0x5d6   :  { %v8261_v33 = vsel %vm8217_vm1, %v8183_v60, -inf  ;;  %v8184_v45 = vmax.f32 %v8022_v54, 0.0  ;;  %v8480_v60 = vld [vmem:[#allocation3 + $0x98] sm:$0xff] }
 0x5d7   :  { %v8262_v32 = vmax.f32 %v8260_v27, %v8261_v33  ;;  %v7737_v46 = vpop.f32.mrb[64].mxu0 }
 0x5d8   :  { %v8264_v61 = vsel %vm8217_vm1, %v8184_v45, -inf  ;;  %v14426_v34 = vadd.f32 %v17771_v11, %v7737_v46  ;;  %v7739_v13 = vpop.f32.mrb[65].mxu0  ;;  %13716 = vmatpush3.bf16.msra.mxu1 %v14989_v38  ;;  %v14991_v45 = vld [vmem:[%s19551_s28 + $0xb0] sm:$0xff]  }
 0x5d9   :  { %8328 = vst.msk [vmem:[#allocation6 + $0x70] sm:$0xff] %vm8217_vm1, %v8262_v32  ;;  %v8265_v14 = vmax.f32 %v8263_v0, %v8264_v61  ;;  %v7740_v18 = vpop.f32.mrb[66].mxu0 }
 0x5da   :  { %v14427_v16 = vadd.f32 %v17771_v11, %v7740_v18  ;;  %v8027_v52 = vadd.f32 %v14426_v34, %v17777_v17  ;;  %v7742_v48 = vpop.f32.mrb[67].mxu0  ;;  %v14990_v17 = vld [vmem:[%s19551_s28 + $0xf0] sm:$0xff]  }
 0x5db   :  { %8329 = vst.msk [vmem:[#allocation6 + $0x78] sm:$0xff] %vm8217_vm1, %v8265_v14  ;;  %13717 = vmatprep.subr.bf16.mxu1 %v14990_v17  ;;  %v14993_v48 = vld [vmem:[%s19551_s28 + $0xb8] sm:$0xff]  }
 0x5dc   :  { %v8030_v4 = vadd.f32 %v14427_v16, %v17783_v29  ;;  %v8481_v54 = vld [vmem:[#allocation3 + $0xb0] sm:$0xff]  ;;  %v8185_v46 = vmax.f32 %v8027_v52, 0.0  ;;  %13718 = vmatpush3.bf16.msra.mxu1 %v14991_v45 }
 0x5dd   :  { %v18018_v41 = vld [vmem:[#allocation3 + $0xaf] sm:$0xff]  ;;  %v8493_v25 = vpack.c.bf16 %v8481_v54, %v8480_v60  ;;  %13719 = vmatprep.subr.bf16.mxu1 %v14992_v43 }
 0x5de   :  { %v8461_v27 = vpack.c.bf16 %v18018_v41, %v17984_v31  ;;  %v8186_v38 = vmax.f32 %v8030_v4, 0.0  ;;  %v18278_v31 = vld [vmem:[#allocation3 + $0x69] sm:$0xff] }
 0x5df   :  { %v7745_v33 = vpop.f32.mrb[68].mxu0  ;;  %9442 = vmatprep.mubr.bf16.mxu1 %v8493_v25 }
 0x5e0   :  { %v14428_v29 = vadd.f32 %v17771_v11, %v7745_v33  ;;  %v7747_v32 = vpop.f32.mrb[69].mxu0  ;;  %9443 = vmatmul.mubr.bf16.gmra.mrb[76].mxu1 %v8461_v27  ;;  %v8269_v33 = vsel %vm8217_vm1, %v8186_v38, -inf }
 0x5e1   :  { %v7748_v0 = vpop.f32.mrb[70].mxu0  ;;  %13720 = vmatpush3.bf16.msra.mxu1 %v14993_v48 }
 0x5e2   :  { %v8360_v61 = vld [vmem:[#allocation6 + $0x70] ss:$2 sm:$0xff]  ;;  %v8392_v34 = vld [vmem:[#allocation6 + $0x71] ss:$2 sm:$0xff]  ;;  %v8035_v13 = vadd.f32 %v14428_v29, %v17775_v20  ;;  %v14429_v14 = vadd.f32 %v17771_v11, %v7748_v0  ;;  %v7750_v18 = vpop.f32.mrb[71].mxu0  ;;  %v8266_v20 = vsel %vm8217_vm1, %v8185_v46, -inf }
 0x5e3   :  { %v8416_v16 = vmax.f32 %v8360_v61, %v8392_v34 }
 0x5e4   :  { %v8187_v52 = vmax.f32 %v8035_v13, 0.0  ;;  %v8038_v60 = vadd.f32 %v14429_v14, %v17781_v9  ;;  %v14994_v9 = vld [vmem:[%s19551_s28 + $0x140] sm:$0xff]  }
 0x5e5   :  { %8433 = vst.msk [vmem:[#allocation3 + $0xc8] sm:$0xff] %vm8217_vm1, %v8416_v16  ;;  %13769 = vmatprep.subr.bf16.mxu1 %v14994_v9 }
 0x5e6   :  { %v8267_v54 = vsel %vm8217_vm1, %v8187_v52, -inf  ;;  %v8188_v25 = vmax.f32 %v8038_v60, 0.0 }
 0x5e7   :  { %v8268_v27 = vmax.f32 %v8266_v20, %v8267_v54  ;;  %v7753_v17 = vpop.f32.mrb[72].mxu0 }
 0x5e8   :  { %v8270_v45 = vsel %vm8217_vm1, %v8188_v25, -inf  ;;  %v14430_v4 = vadd.f32 %v17771_v11, %v7753_v17  ;;  %v7755_v29 = vpop.f32.mrb[73].mxu0 }
 0x5e9   :  { %8330 = vst.msk [vmem:[#allocation6 + $0x80] sm:$0xff] %vm8217_vm1, %v8268_v27  ;;  %v8271_v32 = vmax.f32 %v8269_v33, %v8270_v45  ;;  %v7756_v46 = vpop.f32.mrb[74].mxu0 }
 0x5ea   :  { %v14431_v0 = vadd.f32 %v17771_v11, %v7756_v46  ;;  %v8043_v61 = vadd.f32 %v14430_v4, %v17800_v39  ;;  %v7758_v34 = vpop.f32.mrb[75].mxu0 }
 0x5eb   :  { %8331 = vst.msk [vmem:[#allocation6 + $0x88] sm:$0xff] %vm8217_vm1, %v8271_v32 }
 0x5ec   :  { %v8046_v13 = vadd.f32 %v14431_v0, %v17807_v58  ;;  %v8189_v52 = vmax.f32 %v8043_v61, 0.0 }
 0x5ee   :  { %v8190_v25 = vmax.f32 %v8046_v13, 0.0  ;;  %v8272_v58 = vsel %vm8217_vm1, %v8189_v52, -inf }
 0x5ef   :  { %v7761_v14 = vpop.f32.mrb[76].mxu0 }
 0x5f0   :  { %v14432_v18 = vadd.f32 %v17771_v11, %v7761_v14  ;;  %v7763_v43 = vpop.f32.mrb[77].mxu0  ;;  %v8275_v9 = vsel %vm8217_vm1, %v8190_v25, -inf  ;;  %v8450_v14 = vld [vmem:[#allocation3 + $0xf7] sm:$0xff] }
 0x5f1   :  { %v7764_v16 = vpop.f32.mrb[78].mxu0 }
 0x5f2   :  { %v8362_v48 = vld [vmem:[#allocation6 + $0x80] ss:$2 sm:$0xff]  ;;  %v8394_v38 = vld [vmem:[#allocation6 + $0x81] ss:$2 sm:$0xff]  ;;  %v8051_v60 = vadd.f32 %v14432_v18, %v17797_v56  ;;  %v14433_v20 = vadd.f32 %v17771_v11, %v7764_v16  ;;  %v7766_v54 = vpop.f32.mrb[79].mxu0 }
 0x5f3   :  { %v8417_v39 = vmax.f32 %v8362_v48, %v8394_v38  ;;  %v18071_v48 = vld [vmem:[#allocation2 + $0x8] sm:$0xff] }
 0x5f4   :  { %v8191_v27 = vmax.f32 %v8051_v60, 0.0  ;;  %v8054_v17 = vadd.f32 %v14433_v20, %v17804_v49 }
 0x5f5   :  { %8434 = vst.msk [vmem:[#allocation3 + $0x110] sm:$0xff] %vm8217_vm1, %v8417_v39 }
 0x5f6   :  { %v8273_v33 = vsel %vm8217_vm1, %v8191_v27, -inf  ;;  %v8192_v45 = vmax.f32 %v8054_v17, 0.0 }
 0x5f7   :  { %v8274_v4 = vmax.f32 %v8272_v58, %v8273_v33  ;;  %v7769_v29 = vpop.f32.mrb[80].mxu0 }
 0x5f8   :  { %v8276_v56 = vsel %vm8217_vm1, %v8192_v45, -inf  ;;  %v14434_v32 = vadd.f32 %v17771_v11, %v7769_v29  ;;  %v7771_v46 = vpop.f32.mrb[81].mxu0 }
 0x5f9   :  { %8332 = vst.msk [vmem:[#allocation6 + $0x90] sm:$0xff] %vm8217_vm1, %v8274_v4  ;;  %v8277_v0 = vmax.f32 %v8275_v9, %v8276_v56  ;;  %v7772_v49 = vpop.f32.mrb[82].mxu0 }
 0x5fa   :  { %v14435_v61 = vadd.f32 %v17771_v11, %v7772_v49  ;;  %v8059_v34 = vadd.f32 %v14434_v32, %v17825_v47  ;;  %v7774_v13 = vpop.f32.mrb[83].mxu0 }
 0x5fb   :  { %8333 = vst.msk [vmem:[#allocation6 + $0x98] sm:$0xff] %vm8217_vm1, %v8277_v0 }
 0x5fc   :  { %v8062_v18 = vadd.f32 %v14435_v61, %v17832_v19  ;;  %v18067_v43 = vld [vmem:[#allocation3 + $0x110] sm:$0xff]  ;;  %v8193_v25 = vmax.f32 %v8059_v34, 0.0 }
 0x5fd   :  { %v18069_v16 = vld [vmem:[#allocation3 + $0x10f] sm:$0xff]  ;;  %v8494_v38 = vpack.c.bf16 %v18067_v43, %v18071_v48 }
 0x5fe   :  { %v8462_v52 = vpack.c.bf16 %v18069_v16, %v8450_v14  ;;  %v8194_v45 = vmax.f32 %v8062_v18, 0.0  ;;  %v8278_v9 = vsel %vm8217_vm1, %v8193_v25, -inf }
 0x5ff   :  { %v7777_v60 = vpop.f32.mrb[84].mxu0  ;;  %9450 = vmatprep.mubr.bf16.mxu1 %v8494_v38 }
 0x600   :  { %v14436_v47 = vadd.f32 %v17771_v11, %v7777_v60  ;;  %v7779_v20 = vpop.f32.mrb[85].mxu0  ;;  %9451 = vmatmul.mubr.bf16.gmra.mrb[80].mxu1 %v8462_v52  ;;  %v8281_v49 = vsel %vm8217_vm1, %v8194_v45, -inf }
 0x601   :  { %v7780_v54 = vpop.f32.mrb[86].mxu0 }
 0x602   :  { %v8364_v39 = vld [vmem:[#allocation6 + $0x90] ss:$2 sm:$0xff]  ;;  %v8396_v19 = vld [vmem:[#allocation6 + $0x91] ss:$2 sm:$0xff]  ;;  %v8067_v27 = vadd.f32 %v14436_v47, %v17822_v8  ;;  %v14437_v17 = vadd.f32 %v17771_v11, %v7780_v54  ;;  %v7782_v58 = vpop.f32.mrb[87].mxu0 }
 0x603   :  { %v8418_v33 = vmax.f32 %v8364_v39, %v8396_v19 }
 0x604   :  { %v8195_v4 = vmax.f32 %v8067_v27, 0.0  ;;  %v8070_v29 = vadd.f32 %v14437_v17, %v17829_v23 }
 0x605   :  { %8435 = vst.msk [vmem:[#allocation3 + $0x128] sm:$0xff] %vm8217_vm1, %v8418_v33 }
 0x606   :  { %v8279_v56 = vsel %vm8217_vm1, %v8195_v4, -inf  ;;  %v8196_v32 = vmax.f32 %v8070_v29, 0.0 }
 0x607   :  { %v8280_v46 = vmax.f32 %v8278_v9, %v8279_v56  ;;  %v7785_v0 = vpop.f32.mrb[88].mxu0 }
 0x608   :  { %v8282_v8 = vsel %vm8217_vm1, %v8196_v32, -inf  ;;  %v14438_v61 = vadd.f32 %v17771_v11, %v7785_v0  ;;  %v7787_v34 = vpop.f32.mrb[89].mxu0 }
 0x609   :  { %8334 = vst.msk [vmem:[#allocation6 + $0xa0] sm:$0xff] %vm8217_vm1, %v8280_v46  ;;  %v8283_v13 = vmax.f32 %v8281_v49, %v8282_v8  ;;  %v7788_v23 = vpop.f32.mrb[90].mxu0 }
 0x60a   :  { %v14439_v14 = vadd.f32 %v17771_v11, %v7788_v23  ;;  %v8075_v18 = vadd.f32 %v14438_v61, %v17849_v53  ;;  %v7790_v38 = vpop.f32.mrb[91].mxu0 }
 0x60b   :  { %8335 = vst.msk [vmem:[#allocation6 + $0xa8] sm:$0xff] %vm8217_vm1, %v8283_v13 }
 0x60c   :  { %v8078_v52 = vadd.f32 %v14439_v14, %v17856_v21  ;;  %v18091_v60 = vld [vmem:[#allocation3 + $0x128] sm:$0xff]  ;;  %v8197_v58 = vmax.f32 %v8075_v18, 0.0 }
 0x60d   :  { %v18093_v47 = vld [vmem:[#allocation3 + $0x127] sm:$0xff]  ;;  %v8590_v54 = vpack.c.bf16 %v18091_v60, %v18067_v43 }
 0x60e   :  { %v8558_v20 = vpack.c.bf16 %v18093_v47, %v18069_v16  ;;  %v8198_v29 = vmax.f32 %v8078_v52, 0.0  ;;  %v8284_v32 = vsel %vm8217_vm1, %v8197_v58, -inf }
 0x60f   :  { %v7793_v39 = vpop.f32.mrb[92].mxu0 }
 0x610   :  { %v14440_v19 = vadd.f32 %v17771_v11, %v7793_v39  ;;  %v7795_v25 = vpop.f32.mrb[93].mxu0  ;;  %v8287_v61 = vsel %vm8217_vm1, %v8198_v29, -inf }
 0x611   :  { %v7796_v53 = vpop.f32.mrb[94].mxu0 }
 0x612   :  { %v8366_v27 = vld [vmem:[#allocation6 + $0xa0] ss:$2 sm:$0xff]  ;;  %v8398_v17 = vld [vmem:[#allocation6 + $0xa1] ss:$2 sm:$0xff]  ;;  %v8083_v21 = vadd.f32 %v14440_v19, %v17846_v10  ;;  %v14441_v33 = vadd.f32 %v17771_v11, %v7796_v53  ;;  %v7798_v45 = vpop.f32.mrb[95].mxu0 }
 0x613   :  { %v8419_v4 = vmax.f32 %v8366_v27, %v8398_v17  ;;  %v18111_v11 = vld [vmem:[%s19552_s29] ss:$0 sm:$0xff] }
 0x614   :  { %v8199_v9 = vmax.f32 %v8083_v21, 0.0  ;;  %v8086_v56 = vadd.f32 %v14441_v33, %v17853_v57 }
 0x615   :  { %8436 = vst.msk [vmem:[#allocation3 + $0x140] sm:$0xff] %vm8217_vm1, %v8419_v4 }
 0x616   :  { %v8285_v46 = vsel %vm8217_vm1, %v8199_v9, -inf  ;;  %v8200_v0 = vmax.f32 %v8086_v56, 0.0 }
 0x617   :  { %v8286_v49 = vmax.f32 %v8284_v32, %v8285_v46  ;;  %v7801_v8 = vpop.f32.mrb[96].mxu0 }
 0x618   :  { %v8288_v10 = vsel %vm8217_vm1, %v8200_v0, -inf  ;;  %v14442_v57 = vadd.f32 %v18111_v11, %v7801_v8  ;;  %v7803_v34 = vpop.f32.mrb[97].mxu0 }
 0x619   :  { %8336 = vst.msk [vmem:[#allocation6 + $0xb0] sm:$0xff] %vm8217_vm1, %v8286_v49  ;;  %v8289_v13 = vmax.f32 %v8287_v61, %v8288_v10  ;;  %v7804_v23 = vpop.f32.mrb[98].mxu0 }
 0x61a   :  { %v14443_v14 = vadd.f32 %v18111_v11, %v7804_v23  ;;  %v8091_v18 = vadd.f32 %v14442_v57, %v17872_v55  ;;  %v7806_v38 = vpop.f32.mrb[99].mxu0 }
 0x61b   :  { %8337 = vst.msk [vmem:[#allocation6 + $0xb8] sm:$0xff] %vm8217_vm1, %v8289_v13 }
 0x61c   :  { %v8094_v52 = vadd.f32 %v14443_v14, %v17879_v15  ;;  %v18119_v39 = vld [vmem:[#allocation3 + $0x140] sm:$0xff]  ;;  %v8201_v15 = vmax.f32 %v8091_v18, 0.0 }
 0x61d   :  { %v18121_v19 = vld [vmem:[#allocation3 + $0x13f] sm:$0xff]  ;;  %v8495_v25 = vpack.c.bf16 %v18119_v39, %v18091_v60 }
 0x61e   :  { %v8463_v53 = vpack.c.bf16 %v18121_v19, %v18093_v47  ;;  %v8202_v56 = vmax.f32 %v8094_v52, 0.0  ;;  %v8290_v0 = vsel %vm8217_vm1, %v8201_v15, -inf  ;;  %v18331_v16 = vld [vmem:[#allocation3 + $0x141] sm:$0xff]  ;;  %v18333_v47 = vld [vmem:[#allocation3 + $0x129] sm:$0xff] }
 0x61f   :  { %v7809_v27 = vpop.f32.mrb[100].mxu0  ;;  %9458 = vmatprep.mubr.bf16.mxu1 %v8495_v25 }
 0x620   :  { %v14444_v17 = vadd.f32 %v18111_v11, %v7809_v27  ;;  %v7811_v55 = vpop.f32.mrb[101].mxu0  ;;  %9459 = vmatmul.mubr.bf16.gmra.mrb[84].mxu1 %v8463_v53  ;;  %v8293_v57 = vsel %vm8217_vm1, %v8202_v56, -inf }
 0x621   :  { %v7812_v58 = vpop.f32.mrb[102].mxu0 }
 0x622   :  { %v8368_v21 = vld [vmem:[#allocation6 + $0xb0] ss:$2 sm:$0xff]  ;;  %v8400_v33 = vld [vmem:[#allocation6 + $0xb1] ss:$2 sm:$0xff]  ;;  %v8099_v45 = vadd.f32 %v14444_v17, %v17869_v24  ;;  %v14445_v4 = vadd.f32 %v18111_v11, %v7812_v58  ;;  %v7814_v29 = vpop.f32.mrb[103].mxu0 }
 0x623   :  { %v8420_v9 = vmax.f32 %v8368_v21, %v8400_v33 }
 0x624   :  { %v8203_v32 = vmax.f32 %v8099_v45, 0.0  ;;  %v8102_v46 = vadd.f32 %v14445_v4, %v17876_v40 }
 0x625   :  { %8437 = vst.msk [vmem:[#allocation3 + $0x158] sm:$0xff] %vm8217_vm1, %v8420_v9 }
 0x626   :  { %v8291_v49 = vsel %vm8217_vm1, %v8203_v32, -inf  ;;  %v8204_v8 = vmax.f32 %v8102_v46, 0.0 }
 0x627   :  { %v8292_v61 = vmax.f32 %v8290_v0, %v8291_v49  ;;  %v7817_v10 = vpop.f32.mrb[104].mxu0 }
 0x628   :  { %v8294_v24 = vsel %vm8217_vm1, %v8204_v8, -inf  ;;  %v14446_v34 = vadd.f32 %v18111_v11, %v7817_v10  ;;  %v7819_v13 = vpop.f32.mrb[105].mxu0 }
 0x629   :  { %8338 = vst.msk [vmem:[#allocation6 + $0xc0] sm:$0xff] %vm8217_vm1, %v8292_v61  ;;  %v8295_v23 = vmax.f32 %v8293_v57, %v8294_v24  ;;  %v7820_v40 = vpop.f32.mrb[106].mxu0 }
 0x62a   :  { %v14447_v14 = vadd.f32 %v18111_v11, %v7820_v40  ;;  %v8107_v18 = vadd.f32 %v14446_v34, %v17901_v63  ;;  %v7822_v38 = vpop.f32.mrb[107].mxu0 }
 0x62b   :  { %8339 = vst.msk [vmem:[#allocation6 + $0xc8] sm:$0xff] %vm8217_vm1, %v8295_v23 }
 0x62c   :  { %v8110_v52 = vadd.f32 %v14447_v14, %v17908_v44  ;;  %v18142_v25 = vld [vmem:[#allocation3 + $0x158] sm:$0xff]  ;;  %v8205_v45 = vmax.f32 %v8107_v18, 0.0 }
 0x62d   :  { %v18144_v53 = vld [vmem:[#allocation3 + $0x157] sm:$0xff]  ;;  %v8591_v17 = vpack.c.bf16 %v18142_v25, %v18119_v39 }
 0x62e   :  { %v8559_v27 = vpack.c.bf16 %v18144_v53, %v18121_v19  ;;  %v8206_v56 = vmax.f32 %v8110_v52, 0.0  ;;  %v8296_v0 = vsel %vm8217_vm1, %v8205_v45, -inf }
 0x62f   :  { %v7825_v55 = vpop.f32.mrb[108].mxu0 }
 0x630   :  { %v14448_v58 = vadd.f32 %v18111_v11, %v7825_v55  ;;  %v7827_v21 = vpop.f32.mrb[109].mxu0  ;;  %v8299_v57 = vsel %vm8217_vm1, %v8206_v56, -inf }
 0x631   :  { %v7828_v63 = vpop.f32.mrb[110].mxu0 }
 0x632   :  { %v8370_v33 = vld [vmem:[#allocation6 + $0xc0] ss:$2 sm:$0xff]  ;;  %v8402_v15 = vld [vmem:[#allocation6 + $0xc1] ss:$2 sm:$0xff]  ;;  %v8115_v44 = vadd.f32 %v14448_v58, %v17898_v26  ;;  %v14449_v4 = vadd.f32 %v18111_v11, %v7828_v63  ;;  %v7830_v29 = vpop.f32.mrb[111].mxu0 }
 0x633   :  { %v8421_v9 = vmax.f32 %v8370_v33, %v8402_v15 }
 0x634   :  { %v8207_v32 = vmax.f32 %v8115_v44, 0.0  ;;  %v8118_v46 = vadd.f32 %v14449_v4, %v17905_v30 }
 0x635   :  { %8438 = vst.msk [vmem:[#allocation3 + $0x170] sm:$0xff] %vm8217_vm1, %v8421_v9 }
 0x636   :  { %v8297_v49 = vsel %vm8217_vm1, %v8207_v32, -inf  ;;  %v8208_v8 = vmax.f32 %v8118_v46, 0.0 }
 0x637   :  { %v8298_v61 = vmax.f32 %v8296_v0, %v8297_v49  ;;  %v7833_v10 = vpop.f32.mrb[112].mxu0 }
 0x638   :  { %v8300_v26 = vsel %vm8217_vm1, %v8208_v8, -inf  ;;  %v14450_v24 = vadd.f32 %v18111_v11, %v7833_v10  ;;  %v7835_v34 = vpop.f32.mrb[113].mxu0 }
 0x639   :  { %8340 = vst.msk [vmem:[#allocation6 + $0xd0] sm:$0xff] %vm8217_vm1, %v8298_v61  ;;  %v8301_v13 = vmax.f32 %v8299_v57, %v8300_v26  ;;  %v7836_v30 = vpop.f32.mrb[114].mxu0 }
 0x63a   :  { %v14451_v23 = vadd.f32 %v18111_v11, %v7836_v30  ;;  %v8123_v40 = vadd.f32 %v14450_v24, %v17935_v6  ;;  %v7838_v14 = vpop.f32.mrb[115].mxu0 }
 0x63b   :  { %8341 = vst.msk [vmem:[#allocation6 + $0xd8] sm:$0xff] %vm8217_vm1, %v8301_v13 }
 0x63c   :  { %v8126_v18 = vadd.f32 %v14451_v23, %v17945_v7  ;;  %v18165_v38 = vld [vmem:[#allocation3 + $0x170] sm:$0xff]  ;;  %v8209_v45 = vmax.f32 %v8123_v40, 0.0 }
 0x63d   :  { %v18167_v52 = vld [vmem:[#allocation3 + $0x16f] sm:$0xff]  ;;  %v18171_v55 = vpack.c.bf16 %v18165_v38, %v18142_v25 }
 0x63e   :  { %v18175_v58 = vpack.c.bf16 %v18167_v52, %v18144_v53  ;;  %v8210_v56 = vmax.f32 %v8126_v18, 0.0  ;;  %v8302_v0 = vsel %vm8217_vm1, %v8209_v45, -inf  ;;  %v15027_v25 = vld [vmem:[%s19551_s28 + $0x208] sm:$0xff]  }
 0x63f   :  { %v7841_v21 = vpop.f32.mrb[116].mxu0  ;;  %9466 = vmatprep.mubr.bf16.mxu1 %v18171_v55 }
 0x640   :  { %v14452_v6 = vadd.f32 %v18111_v11, %v7841_v21  ;;  %v7843_v63 = vpop.f32.mrb[117].mxu0  ;;  %9467 = vmatmul.mubr.bf16.gmra.mrb[88].mxu1 %v18175_v58  ;;  %v8305_v57 = vsel %vm8217_vm1, %v8210_v56, -inf }
 0x641   :  { %v7844_v7 = vpop.f32.mrb[118].mxu0 }
 0x642   :  { %v8372_v33 = vld [vmem:[#allocation6 + $0xd0] ss:$2 sm:$0xff]  ;;  %v8404_v15 = vld [vmem:[#allocation6 + $0xd1] ss:$2 sm:$0xff]  ;;  %v8131_v44 = vadd.f32 %v14452_v6, %v17931_v22  ;;  %v14453_v4 = vadd.f32 %v18111_v11, %v7844_v7  ;;  %v7846_v29 = vpop.f32.mrb[119].mxu0 }
 0x643   :  { %v8422_v9 = vmax.f32 %v8372_v33, %v8404_v15 }
 0x644   :  { %v8211_v32 = vmax.f32 %v8131_v44, 0.0  ;;  %v8134_v46 = vadd.f32 %v14453_v4, %v17938_v59 }
 0x645   :  { %8439 = vst.msk [vmem:[#allocation3 + $0x188] sm:$0xff] %vm8217_vm1, %v8422_v9 }
 0x646   :  { %v8303_v49 = vsel %vm8217_vm1, %v8211_v32, -inf  ;;  %v8212_v8 = vmax.f32 %v8134_v46, 0.0 }
 0x647   :  { %v8304_v61 = vmax.f32 %v8302_v0, %v8303_v49  ;;  %v7849_v10 = vpop.f32.mrb[120].mxu0 }
 0x648   :  { %v8306_v22 = vsel %vm8217_vm1, %v8212_v8, -inf  ;;  %v14454_v26 = vadd.f32 %v18111_v11, %v7849_v10  ;;  %v7851_v24 = vpop.f32.mrb[121].mxu0 }
 0x649   :  { %8342 = vst.msk [vmem:[#allocation6 + $0xe0] sm:$0xff] %vm8217_vm1, %v8304_v61  ;;  %v8307_v34 = vmax.f32 %v8305_v57, %v8306_v22  ;;  %v7852_v59 = vpop.f32.mrb[122].mxu0 }
 0x64a   :  { %v14455_v13 = vadd.f32 %v18111_v11, %v7852_v59  ;;  %v8139_v30 = vadd.f32 %v14454_v26, %v17974_v42  ;;  %v7854_v23 = vpop.f32.mrb[123].mxu0 }
 0x64b   :  { %8343 = vst.msk [vmem:[#allocation6 + $0xe8] sm:$0xff] %vm8217_vm1, %v8307_v34  ;;  %v8538_v23 = vld [vmem:[#allocation3 + $0x1f] sm:$0xff] }
 0x64c   :  { %v8142_v40 = vadd.f32 %v14455_v13, %v17981_v51  ;;  %v18194_v14 = vld [vmem:[#allocation3 + $0x188] sm:$0xff]  ;;  %v8213_v45 = vmax.f32 %v8139_v30, 0.0 }
 0x64d   :  { %v8592_v18 = vpack.c.bf16 %v18194_v14, %v18165_v38  ;;  %v18215_v34 = vld [vmem:[#allocation3 + $0x187] sm:$0xff]  ;;  %v15028_v38 = vld [vmem:[%s19551_s28 + $0x210] sm:$0xff]  }
 0x64e   :  { %v8214_v9 = vmax.f32 %v8142_v40, 0.0  ;;  %v8308_v8 = vsel %vm8217_vm1, %v8213_v45, -inf  ;;  %v8554_v40 = vpack.c.bf16 %v17881_v36, %v8538_v23  ;;  %v15030_v36 = vld [vmem:[%s19551_s28 + $0x220] sm:$0xff]  }
 0x64f   :  { %v7857_v21 = vpop.f32.mrb[124].mxu0 }
 0x650   :  { %v14456_v6 = vadd.f32 %v18111_v11, %v7857_v21  ;;  %v7859_v63 = vpop.f32.mrb[125].mxu0  ;;  %v8311_v22 = vsel %vm8217_vm1, %v8214_v9, -inf  ;;  %v18250_v9 = vld [vmem:[#allocation3 + $0x39] sm:$0xff] }
 0x651   :  { %v7860_v7 = vpop.f32.mrb[126].mxu0 }
 0x652   :  { %v8374_v33 = vld [vmem:[#allocation6 + $0xe0] ss:$2 sm:$0xff]  ;;  %v8406_v15 = vld [vmem:[#allocation6 + $0xe1] ss:$2 sm:$0xff]  ;;  %v8147_v42 = vadd.f32 %v14456_v6, %v17968_v12  ;;  %v14457_v44 = vadd.f32 %v18111_v11, %v7860_v7  ;;  %v7862_v4 = vpop.f32.mrb[127].mxu0 }
 0x653   :  { %v8423_v29 = vmax.f32 %v8374_v33, %v8406_v15  ;;  %v13657_v51 = vpop.f32.mrb[64].mxu1  ;;  %v8506_v7 = vld [vmem:[#allocation3 + $0x9] sm:$0xff]  ;;  %v18230_v33 = vld [vmem:[#allocation3 + $0x21] sm:$0xff] }
 0x654   :  { %v8215_v56 = vmax.f32 %v8147_v42, 0.0  ;;  %v8150_v32 = vadd.f32 %v14457_v44, %v17978_v50  ;;  %v13658_v46 = vpop.f32.mrb[65].mxu1  ;;  %v14995_v15 = vld [vmem:[%s19551_s28 + $0x100] sm:$0xff]   ;;  %v8522_v45 = vpack.c.bf16 %v18230_v33, %v8506_v7  ;;  %v14996_v42 = vld [vmem:[%s19551_s28 + $0x148] sm:$0xff]   ;;  %v8555_v44 = vpack.c.bf16 %v17941_v37, %v17884_v5  ;;  %v14999_v37 = vld [vmem:[%s19551_s28 + $0x110] sm:$0xff]  }
 0x655   :  { %8440 = vst.msk [vmem:[#allocation3 + $0x1a0] sm:$0xff] %vm8217_vm1, %v8423_v29  ;;  %v18203_v0 = vadd.f32 %v13658_v46, %v13657_v51  ;;  %v13660_v49 = vpop.f32.mrb[66].mxu1  ;;  %v14997_v4 = vld [vmem:[%s19551_s28 + $0x108] sm:$0xff]   ;;  %v14998_v29 = vld [vmem:[%s19551_s28 + $0x150] sm:$0xff]   ;;  %v15001_v46 = vld [vmem:[%s19551_s28 + $0x118] sm:$0xff]  }
 0x656   :  { %v8309_v61 = vsel %vm8217_vm1, %v8215_v56, -inf  ;;  %v8216_v12 = vmax.f32 %v8150_v32, 0.0  ;;  %v13661_v10 = vpop.f32.mrb[67].mxu1  ;;  %v18248_v51 = vld [vmem:[#allocation3 + $0x51] sm:$0xff]  ;;  %v18303_v7 = vld [vmem:[#allocation3 + $0x99] sm:$0xff] }
 0x657   :  { %v8310_v11 = vmax.f32 %v8308_v8, %v8309_v61  ;;  %v18207_v57 = vadd.f32 %v13661_v10, %v13660_v49  ;;  %v18257_v56 = vpack.c.bf16 %v18248_v51, %v18250_v9  ;;  %v15000_v32 = vld [vmem:[%s19551_s28 + $0x158] sm:$0xff]   ;;  %v15002_v49 = vld [vmem:[%s19551_s28 + $0x160] sm:$0xff]  }
 0x658   :  { %v8312_v26 = vsel %vm8217_vm1, %v8216_v12, -inf  ;;  %v18272_v61 = vld [vmem:[#allocation3 + $0x81] sm:$0xff] }
 0x659   :  { %8344 = vst.msk [vmem:[#allocation6 + $0xf0] sm:$0xff] %vm8217_vm1, %v8310_v11  ;;  %v8313_v50 = vmax.f32 %v8311_v22, %v8312_v26  ;;  %v18274_v10 = vld [vmem:[#allocation3 + $0xc7] sm:$0xff]  ;;  %v18285_v26 = vpack.c.bf16 %v18272_v61, %v18278_v31 }
 0x65b   :  { %8345 = vst.msk [vmem:[#allocation6 + $0xf8] sm:$0xff] %vm8217_vm1, %v8313_v50  ;;  %v15004_v50 = vld [vmem:[%s19551_s28 + $0x168] sm:$0xff]  }
 0x65c   :  { %v18213_v24 = vld [vmem:[#allocation3 + $0x1a0] sm:$0xff] }
 0x65d   :  { %v18217_v59 = vld [vmem:[#allocation3 + $0x19f] sm:$0xff]  ;;  %v18221_v13 = vpack.c.bf16 %v18213_v24, %v18194_v14 }
 0x65e   :  { %v18225_v30 = vpack.c.bf16 %v18217_v59, %v18215_v34  ;;  %v8638_v14 = vld [vmem:[#allocation3 + $0x7f] sm:$0xff] }
 0x65f   :  { %9474 = vmatprep.mubr.bf16.mxu1 %v18221_v13 }
 0x660   :  { %9475 = vmatmul.mubr.bf16.gmra.mrb[92].mxu1 %v18225_v30 }
 0x661   :  { %9515 = vmatprep.mubr.bf16.mxu1 %v8554_v40  ;;  %v8557_v40 = vpack.c.bf16 %v18274_v10, %v18018_v41  ;;  %v15007_v41 = vld [vmem:[%s19551_s28 + $0x130] sm:$0xff]  }
 0x662   :  { %v8376_v21 = vld [vmem:[#allocation6 + $0xf0] ss:$2 sm:$0xff]  ;;  %v8408_v6 = vld [vmem:[#allocation6 + $0xf1] ss:$2 sm:$0xff] }
 0x663   :  { %v8424_v63 = vmax.f32 %v8376_v21, %v8408_v6  ;;  %v15005_v21 = vld [vmem:[%s19551_s28 + $0x128] sm:$0xff]   ;;  %v15006_v6 = vld [vmem:[%s19551_s28 + $0x170] sm:$0xff]  }
 0x665   :  { %8441 = vst.msk [vmem:[#allocation3 + $0x1b8] sm:$0xff] %vm8217_vm1, %v8424_v63  ;;  %v18301_v63 = vld [vmem:[#allocation3 + $0xb1] sm:$0xff] }
 0x668   :  { %9516 = vmatmul.mubr.bf16.vlgmr.msra.gmra.mrb[96].mxu1 %v8522_v45  ;;  %v15008_v45 = vld [vmem:[%s19551_s28 + $0x178] sm:$0xff]  }
 0x669   :  { %9523 = vmatprep.mubr.bf16.mxu1 %v8555_v44  ;;  %13770 = vmatpush3.bf16.msra.mxu1 %v14995_v15  ;;  %v18310_v15 = vpack.c.bf16 %v18301_v63, %v18303_v7  ;;  %v15010_v44 = vld [vmem:[%s19551_s28 + $0x1c0] sm:$0xff]  }
 0x66a   :  { %13771 = vmatprep.subr.bf16.mxu1 %v14996_v42  ;;  %v15009_v42 = vld [vmem:[%s19551_s28 + $0x138] sm:$0xff]  }
 0x66c   :  { %v18344_v19 = vld [vmem:[#allocation3 + $0x1b7] sm:$0xff] }
 0x66d   :  { %13772 = vmatpush3.bf16.msra.mxu1 %v14997_v4  ;;  %v8514_v4 = vld [vmem:[#allocation3 + $0xf9] sm:$0xff] }
 0x66e   :  { %13773 = vmatprep.subr.bf16.mxu1 %v14998_v29  ;;  %v18325_v29 = vld [vmem:[#allocation3 + $0x111] sm:$0xff] }
 0x66f   :  { %v18468_v60 = vld [vmem:[#allocation3 + $0x1b8] sm:$0xff] }
 0x670   :  { %9524 = vmatmul.mubr.bf16.gmra.mrb[100].mxu1 %v18257_v56 }
 0x671   :  { %9531 = vmatprep.mubr.bf16.mxu1 %v8556_v35  ;;  %13774 = vmatpush3.bf16.msra.mxu1 %v14999_v37  ;;  %v15003_v35 = vld [vmem:[%s19551_s28 + $0x120] sm:$0xff]   ;;  %v8526_v37 = vpack.c.bf16 %v18325_v29, %v8514_v4  ;;  %v18387_v4 = vld [vmem:[#allocation3 + $0x68] sm:$0xff] }
 0x672   :  { %13775 = vmatprep.subr.bf16.mxu1 %v15000_v32  ;;  %v8560_v32 = vpack.c.bf16 %v18215_v34, %v18167_v52  ;;  %v8561_v34 = vpack.c.bf16 %v18344_v19, %v18217_v59  ;;  %v8570_v59 = vld [vmem:[#allocation3 + $0x20] sm:$0xff] }
 0x673   :  { %v13663_v8 = vpop.f32.mrb[68].mxu1 }
 0x674   :  { %v13664_v12 = vpop.f32.mrb[69].mxu1 }
 0x675   :  { %v18276_v11 = vadd.f32 %v13664_v12, %v13663_v8  ;;  %v13666_v28 = vpop.f32.mrb[70].mxu1  ;;  %13776 = vmatpush3.bf16.msra.mxu1 %v15001_v46  ;;  %v18348_v12 = vld [vmem:[#allocation3 + $0x159] sm:$0xff] }
 0x676   :  { %v13667_v22 = vpop.f32.mrb[71].mxu1  ;;  %13777 = vmatprep.subr.bf16.mxu1 %v15002_v49  ;;  %v18342_v49 = vld [vmem:[#allocation3 + $0x171] sm:$0xff] }
 0x677   :  { %v18290_v23 = vadd.f32 %v13667_v22, %v13666_v28  ;;  %v18359_v22 = vld [vmem:[#allocation3 + $0x1a1] sm:$0xff] }
 0x678   :  { %9532 = vmatmul.mubr.bf16.gmra.mrb[104].mxu1 %v18285_v26 }
 0x679   :  { %9539 = vmatprep.mubr.bf16.mxu1 %v8557_v40  ;;  %13778 = vmatpush3.bf16.msra.mxu1 %v15003_v35  ;;  %v18352_v35 = vpack.c.bf16 %v18342_v49, %v18348_v12 }
 0x67a   :  { %13779 = vmatprep.subr.bf16.mxu1 %v15004_v50  ;;  %v18361_v50 = vld [vmem:[#allocation3 + $0x189] sm:$0xff] }
 0x67b   :  { %v18365_v40 = vpack.c.bf16 %v18359_v22, %v18361_v50 }
 0x67d   :  { %13780 = vmatpush3.bf16.msra.mxu1 %v15005_v21  ;;  %v8618_v21 = vpack.c.bf16 %v18250_v9, %v18230_v33  ;;  %v15013_v33 = vld [vmem:[%s19551_s28 + $0x188] sm:$0xff]   ;;  %v15014_v9 = vld [vmem:[%s19551_s28 + $0x1d0] sm:$0xff]  }
 0x67e   :  { %13781 = vmatprep.subr.bf16.mxu1 %v15006_v6  ;;  %v18370_v6 = vld [vmem:[#allocation3 + $0x38] sm:$0xff] }
 0x680   :  { %9540 = vmatmul.mubr.bf16.gmra.mrb[108].mxu1 %v18310_v15 }
 0x681   :  { %9547 = vmatprep.mubr.bf16.mxu1 %v8558_v20  ;;  %13782 = vmatpush3.bf16.msra.mxu1 %v15007_v41  ;;  %v18337_v20 = vpack.c.bf16 %v18331_v16, %v18333_v47  ;;  %v15011_v41 = vld [vmem:[%s19551_s28 + $0x180] sm:$0xff]  }
 0x682   :  { %13783 = vmatprep.subr.bf16.mxu1 %v15008_v45  ;;  %v8586_v45 = vpack.c.bf16 %v18370_v6, %v8570_v59  ;;  %v18409_v59 = vld [vmem:[#allocation3 + $0xc9] sm:$0xff] }
 0x685   :  { %13784 = vmatpush3.bf16.msra.mxu1 %v15009_v42  ;;  %v15012_v42 = vld [vmem:[%s19551_s28 + $0x1c8] sm:$0xff]  }
 0x686   :  { %13833 = vmatprep.subr.bf16.mxu1 %v15010_v44  ;;  %v8619_v44 = vpack.c.bf16 %v18278_v31, %v18248_v51  ;;  %v15015_v51 = vld [vmem:[%s19551_s28 + $0x190] sm:$0xff]  }
 0x688   :  { %9548 = vmatmul.mubr.bf16.gmra.mrb[112].mxu1 %v8526_v37  ;;  %v18389_v37 = vld [vmem:[#allocation3 + $0x50] sm:$0xff] }
 0x689   :  { %9555 = vmatprep.mubr.bf16.mxu1 %v8559_v27  ;;  %v8587_v31 = vpack.c.bf16 %v18387_v4, %v18389_v37  ;;  %v8683_v39 = vpack.c.bf16 %v18389_v37, %v18370_v6  ;;  %v8639_v37 = vld [vmem:[#allocation3 + $0x97] sm:$0xff] }
 0x690   :  { %9556 = vmatmul.mubr.bf16.gmra.mrb[116].mxu1 %v18337_v20 }
 0x691   :  { %9563 = vmatprep.mubr.bf16.mxu1 %v8560_v32  ;;  %v15016_v32 = vld [vmem:[%s19551_s28 + $0x1d8] sm:$0xff]  }
 0x693   :  { %v13669_v46 = vpop.f32.mrb[72].mxu1 }
 0x694   :  { %v13670_v8 = vpop.f32.mrb[73].mxu1 }
 0x695   :  { %v18346_v53 = vadd.f32 %v13670_v8, %v13669_v46  ;;  %v13672_v27 = vpop.f32.mrb[74].mxu1  ;;  %v8620_v46 = vpack.c.bf16 %v18303_v7, %v18272_v61  ;;  %v15017_v8 = vld [vmem:[%s19551_s28 + $0x198] sm:$0xff]   ;;  %v8574_v7 = vld [vmem:[#allocation3 + $0x80] sm:$0xff] }
 0x696   :  { %v13673_v28 = vpop.f32.mrb[75].mxu1 }
 0x697   :  { %v18354_v52 = vadd.f32 %v13673_v28, %v13672_v27  ;;  %v15018_v27 = vld [vmem:[%s19551_s28 + $0x1e0] sm:$0xff]  }
 0x698   :  { %9564 = vmatmul.mubr.bf16.gmra.mrb[120].mxu1 %v18352_v35 }
 0x699   :  { %9571 = vmatprep.mubr.bf16.mxu1 %v8561_v34  ;;  %v18407_v34 = vld [vmem:[#allocation3 + $0x98] sm:$0xff] }
 0x6a0   :  { %9572 = vmatmul.mubr.bf16.gmra.mrb[124].mxu1 %v18365_v40 }
 0x6a1   :  { %9612 = vmatprep.mubr.bf16.mxu1 %v8618_v21 }
 0x6a8   :  { %9613 = vmatmul.mubr.bf16.vlgmr.msra.gmra.mrb[128].mxu1 %v8586_v45  ;;  %v15019_v45 = vld [vmem:[%s19551_s28 + $0x1a0] sm:$0xff]  }
 0x6a9   :  { %9620 = vmatprep.mubr.bf16.mxu1 %v8619_v44  ;;  %13834 = vmatpush3.bf16.msra.mxu1 %v15011_v41  ;;  %v8588_v44 = vpack.c.bf16 %v18407_v34, %v8574_v7 }
 0x6aa   :  { %13835 = vmatprep.subr.bf16.mxu1 %v15012_v42 }
 0x6ad   :  { %13836 = vmatpush3.bf16.msra.mxu1 %v15013_v33  ;;  %v15020_v33 = vld [vmem:[%s19551_s28 + $0x1e8] sm:$0xff]  }
 0x6ae   :  { %13837 = vmatprep.subr.bf16.mxu1 %v15014_v9 }
 0x6b0   :  { %9621 = vmatmul.mubr.bf16.gmra.mrb[132].mxu1 %v8587_v31  ;;  %v15021_v31 = vld [vmem:[%s19551_s28 + $0x1a8] sm:$0xff]  }
 0x6b1   :  { %9628 = vmatprep.mubr.bf16.mxu1 %v8620_v46  ;;  %13838 = vmatpush3.bf16.msra.mxu1 %v15015_v51  ;;  %v8621_v51 = vpack.c.bf16 %v18409_v59, %v18301_v63  ;;  %v18430_v46 = vld [vmem:[#allocation3 + $0xc8] sm:$0xff]  ;;  %v15023_v63 = vld [vmem:[%s19551_s28 + $0x1b0] sm:$0xff]  }
 0x6b2   :  { %13839 = vmatprep.subr.bf16.mxu1 %v15016_v32  ;;  %v15022_v32 = vld [vmem:[%s19551_s28 + $0x1f0] sm:$0xff]  }
 0x6b3   :  { %v13675_v28 = vpop.f32.mrb[76].mxu1 }
 0x6b4   :  { %v13676_v21 = vpop.f32.mrb[77].mxu1 }
 0x6b5   :  { %v18411_v41 = vadd.f32 %v13676_v21, %v13675_v28  ;;  %v13678_v61 = vpop.f32.mrb[78].mxu1  ;;  %13840 = vmatpush3.bf16.msra.mxu1 %v15017_v8  ;;  %v8576_v8 = vld [vmem:[#allocation3 + $0xb0] sm:$0xff]  ;;  %v15024_v28 = vld [vmem:[%s19551_s28 + $0x1f8] sm:$0xff]   ;;  %v8622_v21 = vpack.c.bf16 %v18333_v47, %v18325_v29  ;;  %v8624_v29 = vpack.c.bf16 %v18361_v50, %v18342_v49 }
 0x6b6   :  { %v13679_v42 = vpop.f32.mrb[79].mxu1  ;;  %13841 = vmatprep.subr.bf16.mxu1 %v15018_v27  ;;  %v8589_v27 = vpack.c.bf16 %v18430_v46, %v8576_v8  ;;  %v15029_v49 = vld [vmem:[%s19551_s28 + $0x218] sm:$0xff]  }
 0x6b7   :  { %v18420_v9 = vadd.f32 %v13679_v42, %v13678_v61  ;;  %v15025_v61 = vld [vmem:[%s19551_s28 + $0x1b8] sm:$0xff]   ;;  %v8623_v42 = vpack.c.bf16 %v18348_v12, %v18331_v16 }
 0x6b8   :  { %9629 = vmatmul.mubr.bf16.gmra.mrb[136].mxu1 %v8588_v44 }
 0x6b9   :  { %9636 = vmatprep.mubr.bf16.mxu1 %v8621_v51  ;;  %13842 = vmatpush3.bf16.msra.mxu1 %v15019_v45  ;;  %v15026_v45 = vld [vmem:[%s19551_s28 + $0x200] sm:$0xff]  }
 0x6ba   :  { %13843 = vmatprep.subr.bf16.mxu1 %v15020_v33  ;;  %v18457_v33 = vld [vmem:[#allocation3 + $0x1b9] sm:$0xff] }
 0x6bb   :  { %v8625_v43 = vpack.c.bf16 %v18457_v33, %v18359_v22  ;;  %v8685_v22 = vpack.c.bf16 %v8576_v8, %v18407_v34  ;;  %v15031_v34 = vld [vmem:[%s19551_s28 + $0x228] sm:$0xff]  }
 0x6bd   :  { %13844 = vmatpush3.bf16.msra.mxu1 %v15021_v31 }
 0x6be   :  { %13845 = vmatprep.subr.bf16.mxu1 %v15022_v32 }
 0x6c0   :  { %9637 = vmatmul.mubr.bf16.gmra.mrb[140].mxu1 %v8589_v27  ;;  %v15032_v27 = vld [vmem:[%s19551_s28 + $0x230] sm:$0xff]  }
 0x6c1   :  { %9644 = vmatprep.mubr.bf16.mxu1 %v8622_v21  ;;  %13846 = vmatpush3.bf16.msra.mxu1 %v15023_v63  ;;  %v8686_v63 = vpack.c.bf16 %v18071_v48, %v18430_v46  ;;  %v8676_v21 = vld [vmem:[#allocation3 + $0x140] sm:$0xff] }
 0x6c2   :  { %13847 = vmatprep.subr.bf16.mxu1 %v15024_v28  ;;  %v8642_v28 = vld [vmem:[#allocation3 + $0xdf] sm:$0xff] }
 0x6c5   :  { %13848 = vmatpush3.bf16.msra.mxu1 %v15025_v61  ;;  %v8654_v61 = vpack.c.bf16 %v8642_v28, %v18274_v10 }
 0x6c6   :  { %14299 = vmatprep.subr.bf16.mxu1 %v15026_v45 }
 0x6c8   :  { %9645 = vmatmul.mubr.bf16.gmra.mrb[144].mxu1 %v8590_v54  ;;  %v8593_v54 = vpack.c.bf16 %v18468_v60, %v18213_v24 }
 0x6c9   :  { %9652 = vmatprep.mubr.bf16.mxu1 %v8623_v42  ;;  %v15033_v42 = vld [vmem:[%s19551_s28 + $0x238] sm:$0xff]  }
 0x6d0   :  { %9653 = vmatmul.mubr.bf16.gmra.mrb[148].mxu1 %v8591_v17  ;;  %v8684_v17 = vpack.c.bf16 %v8574_v7, %v18387_v4 }
 0x6d1   :  { %9660 = vmatprep.mubr.bf16.mxu1 %v8624_v29  ;;  %v8644_v29 = vld [vmem:[#allocation3 + $0x13f] sm:$0xff] }
 0x6d3   :  { %v13681_v47 = vpop.f32.mrb[80].mxu1 }
 0x6d4   :  { %v13682_v44 = vpop.f32.mrb[81].mxu1 }
 0x6d5   :  { %v18459_v51 = vadd.f32 %v13682_v44, %v13681_v47  ;;  %v13684_v16 = vpop.f32.mrb[82].mxu1  ;;  %v8643_v47 = vld [vmem:[#allocation3 + $0x127] sm:$0xff] }
 0x6d6   :  { %v13685_v12 = vpop.f32.mrb[83].mxu1  ;;  %v8655_v44 = vpack.c.bf16 %v8644_v29, %v8643_v47 }
 0x6d7   :  { %v18461_v31 = vadd.f32 %v13685_v12, %v13684_v16 }
 0x6d8   :  { %9661 = vmatmul.mubr.bf16.gmra.mrb[152].mxu1 %v8592_v18  ;;  %v8637_v18 = vld [vmem:[#allocation3 + $0x67] sm:$0xff] }
 0x6d9   :  { %9668 = vmatprep.mubr.bf16.mxu1 %v8625_v43  ;;  %v8652_v24 = vpack.c.bf16 %v8638_v14, %v8637_v18 }
 0x6e0   :  { %9669 = vmatmul.mubr.bf16.gmra.mrb[156].mxu1 %v8593_v54 }
 0x6e1   :  { %9709 = vmatprep.mubr.bf16.mxu1 %v8683_v39 }
 0x6e8   :  { %9710 = vmatmul.mubr.bf16.vlgmr.msra.gmra.mrb[160].mxu1 %v8651_v62  ;;  %v8640_v62 = vld [vmem:[#allocation3 + $0xaf] sm:$0xff] }
 0x6e9   :  { %9717 = vmatprep.mubr.bf16.mxu1 %v8684_v17  ;;  %14300 = vmatpush3.bf16.msra.mxu1 %v15026_v45  ;;  %v8653_v32 = vpack.c.bf16 %v8640_v62, %v8639_v37  ;;  %v8675_v45 = vld [vmem:[#allocation3 + $0x128] sm:$0xff] }
 0x6ea   :  { %14301 = vmatprep.subr.bf16.mxu1 %v15027_v25  ;;  %v8687_v46 = vpack.c.bf16 %v8676_v21, %v8675_v45  ;;  %v8650_v17 = vld [vmem:[#allocation3 + $0x1cf] sm:$0xff] }
 0x6ed   :  { %14302 = vmatpush3.bf16.msra.mxu1 %v15027_v25  ;;  %v8690_v25 = vpack.c.bf16 %v18071_v48, %v18468_v60 }
 0x6ee   :  { %14303 = vmatprep.subr.bf16.mxu1 %v15028_v38 }
 0x6f0   :  { %9718 = vmatmul.mubr.bf16.gmra.mrb[164].mxu1 %v8652_v24 }
 0x6f1   :  { %9725 = vmatprep.mubr.bf16.mxu1 %v8685_v22  ;;  %14304 = vmatpush3.bf16.msra.mxu1 %v15028_v38 }
 0x6f2   :  { %14305 = vmatprep.subr.bf16.mxu1 %v15029_v49 }
 0x6f3   :  { %v13687_v5 = vpop.f32.mrb[84].mxu1 }
 0x6f4   :  { %v13688_v50 = vpop.f32.mrb[85].mxu1 }
 0x6f5   :  { %v18491_v6 = vadd.f32 %v13688_v50, %v13687_v5  ;;  %v13690_v4 = vpop.f32.mrb[86].mxu1  ;;  %14306 = vmatpush3.bf16.msra.mxu1 %v15029_v49 }
 0x6f6   :  { %v13691_v7 = vpop.f32.mrb[87].mxu1  ;;  %14307 = vmatprep.subr.bf16.mxu1 %v15030_v36 }
 0x6f7   :  { %v18496_v8 = vadd.f32 %v13691_v7, %v13690_v4 }
 0x6f8   :  { %9726 = vmatmul.mubr.bf16.gmra.mrb[168].mxu1 %v8653_v32 }
 0x6f9   :  { %9733 = vmatprep.mubr.bf16.mxu1 %v8686_v63  ;;  %14308 = vmatpush3.bf16.msra.mxu1 %v15030_v36 }
 0x6fa   :  { %14309 = vmatprep.subr.bf16.mxu1 %v15031_v34 }
 0x6fd   :  { %14310 = vmatpush3.bf16.msra.mxu1 %v15031_v34 }
 0x6fe   :  { %14311 = vmatprep.subr.bf16.mxu1 %v15032_v27 }
 0x700   :  { %9734 = vmatmul.mubr.bf16.gmra.mrb[172].mxu1 %v8654_v61 }
 0x701   :  { %9741 = vmatprep.mubr.bf16.mxu1 %v8687_v46  ;;  %14312 = vmatpush3.bf16.msra.mxu1 %v15032_v27 }
 0x702   :  { %14313 = vmatprep.subr.bf16.mxu1 %v15033_v42 }
 0x705   :  { %14314 = vmatpush3.bf16.msra.mxu1 %v15033_v42 }
 0x708   :  { %9742 = vmatmul.mubr.bf16.gmra.mrb[176].mxu1 %v8655_v44 }
 0x709   :  { %9749 = vmatprep.mubr.bf16.mxu1 %v18171_v55  ;;  %v8658_v55 = vpack.c.bf16 %v8650_v17, %v18344_v19 }
 0x710   :  { %9750 = vmatmul.mubr.bf16.gmra.mrb[180].mxu1 %v18175_v58  ;;  %v8706_v58 = vld [vmem:[#allocation3 + $0xe1] sm:$0xff] }
 0x711   :  { %9757 = vmatprep.mubr.bf16.mxu1 %v18221_v13  ;;  %v8718_v13 = vpack.c.bf16 %v8706_v58, %v18409_v59 }
 0x713   :  { %v13693_v10 = vpop.f32.mrb[88].mxu1 }
 0x714   :  { %v13694_v16 = vpop.f32.mrb[89].mxu1 }
 0x715   :  { %v18510_v12 = vadd.f32 %v13694_v16, %v13693_v10  ;;  %v13696_v43 = vpop.f32.mrb[90].mxu1 }
 0x716   :  { %v13697_v54 = vpop.f32.mrb[91].mxu1 }
 0x717   :  { %v18512_v39 = vadd.f32 %v13697_v54, %v13696_v43 }
 0x718   :  { %9758 = vmatmul.mubr.bf16.gmra.mrb[184].mxu1 %v18225_v30 }
 0x719   :  { %9765 = vmatprep.mubr.bf16.mxu1 %v8690_v25 }
 0x720   :  { %9766 = vmatmul.mubr.bf16.gmra.mrb[188].mxu1 %v8658_v55 }
 0x721   :  { %14315 = vmatprep.mubr.bf16.mxu1 %v18257_v56  ;;  %v18532_v56 = vld [vmem:[%s19523_s5] ss:$0 sm:$0xff] }
 0x722   :  { %v9421_v59 = vadd.f32 %v18203_v0, %v18532_v56  ;;  %v9429_v4 = vadd.f32 %v18276_v11, %v18532_v56  ;;  %v9437_v28 = vadd.f32 %v18346_v53, %v18532_v56  ;;  %v9440_v42 = vadd.f32 %v18354_v52, %v18532_v56 }
 0x723   :  { %v9445_v44 = vadd.f32 %v18411_v41, %v18532_v56  ;;  %v9448_v54 = vadd.f32 %v18420_v9, %v18532_v56  ;;  %v9453_v58 = vadd.f32 %v18459_v51, %v18532_v56 }
 0x728   :  { %14316 = vmatmul.mubr.bf16.vlgmr.msra.gmra.mrb[192].mxu1 %v18285_v26 }
 0x729   :  { %14319 = vmatprep.mubr.bf16.mxu1 %v18310_v15  ;;  %v8714_v15 = vld [vmem:[#allocation3 + $0x1d1] sm:$0xff] }
 0x72a   :  { %v8722_v22 = vpack.c.bf16 %v8714_v15, %v18457_v33  ;;  %v9432_v33 = vadd.f32 %v18290_v23, %v18532_v56 }
 0x730   :  { %14320 = vmatmul.mubr.bf16.gmra.mrb[196].mxu1 %v8718_v13 }
 0x731   :  { %14323 = vmatprep.mubr.bf16.mxu1 %v18337_v20 }
 0x733   :  { %v13699_v48 = vpop.f32.mrb[92].mxu1 }
 0x734   :  { %v13700_v60 = vpop.f32.mrb[93].mxu1 }
 0x735   :  { %v18523_v30 = vadd.f32 %v13700_v60, %v13699_v48  ;;  %v13702_v38 = vpop.f32.mrb[94].mxu1 }
 0x736   :  { %v13703_v14 = vpop.f32.mrb[95].mxu1 }
 0x737   :  { %v18525_v19 = vadd.f32 %v13703_v14, %v13702_v38  ;;  %v9456_v38 = vadd.f32 %v18461_v31, %v18532_v56 }
 0x738   :  { %14324 = vmatmul.mubr.bf16.gmra.mrb[200].mxu1 %v18352_v35  ;;  %v9424_v35 = vadd.f32 %v18207_v57, %v18532_v56 }
 0x739   :  { %14327 = vmatprep.mubr.bf16.mxu1 %v18365_v40 }
 0x73b   :  { %v13721_v26 = vpop.f32.mrb[96].mxu1 }
 0x73c   :  { %v13722_v20 = vpop.f32.mrb[97].mxu1 }
 0x73d   :  { %v13723_v18 = vadd.f32 %v13722_v20, %v13721_v26  ;;  %v13724_v24 = vpop.f32.mrb[98].mxu1  ;;  %v9461_v20 = vadd.f32 %v18491_v6, %v18532_v56  ;;  %v15035_v6 = vld [vmem:[#allocation12] sm:$0xff]  }
 0x73e   :  { %v13725_v49 = vpop.f32.mrb[99].mxu1 }
 0x73f   :  { %v18537_v36 = vadd.f32 %v13723_v18, %v9421_v59  ;;  %v13726_v40 = vadd.f32 %v13725_v49, %v13724_v24  ;;  %v9464_v49 = vadd.f32 %v18496_v8, %v18532_v56 }
 0x740   :  { %14328 = vmatmul.mubr.bf16.gmra.mrb[204].mxu1 %v8722_v22 }
 0x741   :  { %v18541_v5 = vadd.f32 %v13726_v40, %v9424_v35 }
 0x743   :  { %v13727_v62 = vpop.f32.mrb[100].mxu1 }
 0x744   :  { %v13728_v50 = vpop.f32.mrb[101].mxu1 }
 0x745   :  { %v13729_v0 = vadd.f32 %v13728_v50, %v13727_v62  ;;  %v13730_v37 = vpop.f32.mrb[102].mxu1  ;;  %v15034_v62 = vld [vmem:[#allocation12 + $0x40] sm:$0xff]   ;;  %v9469_v50 = vadd.f32 %v18510_v12, %v18532_v56 }
 0x746   :  { %v13731_v7 = vpop.f32.mrb[103].mxu1  ;;  %13913 = vmatprep.subr.bf16.mxu1 %v15034_v62 }
 0x747   :  { %v18545_v32 = vadd.f32 %v13729_v0, %v9429_v4  ;;  %v13732_v34 = vadd.f32 %v13731_v7, %v13730_v37  ;;  %13914 = vmatpush3.bf16.msra.mxu1 %v15035_v6 }
 0x749   :  { %v18549_v63 = vadd.f32 %v13732_v34, %v9432_v33  ;;  %v9472_v33 = vadd.f32 %v18512_v39, %v18532_v56  ;;  %v15036_v34 = vld [vmem:[#allocation12 + $0x48] sm:$0xff]  }
 0x74a   :  { %13915 = vmatprep.subr.bf16.mxu1 %v15036_v34 }
 0x74b   :  { %v13733_v57 = vpop.f32.mrb[104].mxu1 }
 0x74c   :  { %v13734_v27 = vpop.f32.mrb[105].mxu1 }
 0x74d   :  { %v13735_v21 = vadd.f32 %v13734_v27, %v13733_v57  ;;  %v13736_v61 = vpop.f32.mrb[106].mxu1  ;;  %v15037_v57 = vld [vmem:[#allocation12 + $0x8] sm:$0xff]  }
 0x74e   :  { %v13737_v45 = vpop.f32.mrb[107].mxu1  ;;  %13916 = vmatpush3.bf16.msra.mxu1 %v15037_v57 }
 0x74f   :  { %v18553_v11 = vadd.f32 %v13735_v21, %v9437_v28  ;;  %v13738_v46 = vadd.f32 %v13737_v45, %v13736_v61  ;;  %v15038_v21 = vld [vmem:[#allocation12 + $0x50] sm:$0xff]   ;;  %v9477_v61 = vadd.f32 %v18523_v30, %v18532_v56 }
 0x750   :  { %13917 = vmatprep.subr.bf16.mxu1 %v15038_v21 }
 0x751   :  { %v18557_v29 = vadd.f32 %v13738_v46, %v9440_v42  ;;  %v15039_v46 = vld [vmem:[#allocation12 + $0x10] sm:$0xff]  }
 0x752   :  { %13918 = vmatpush3.bf16.msra.mxu1 %v15039_v46 }
 0x753   :  { %v13739_v23 = vpop.f32.mrb[108].mxu1 }
 0x754   :  { %v13740_v47 = vpop.f32.mrb[109].mxu1 }
 0x755   :  { %v13741_v10 = vadd.f32 %v13740_v47, %v13739_v23  ;;  %v13742_v16 = vpop.f32.mrb[110].mxu1  ;;  %v9480_v47 = vadd.f32 %v18525_v19, %v18532_v56  ;;  %v15044_v56 = vld [vmem:[#allocation12 + $0x68] sm:$0xff]  }
 0x756   :  { %v13743_v43 = vpop.f32.mrb[111].mxu1 }
 0x757   :  { %v18561_v53 = vadd.f32 %v13741_v10, %v9445_v44  ;;  %v13744_v25 = vadd.f32 %v13743_v43, %v13742_v16  ;;  %v15040_v10 = vld [vmem:[#allocation12 + $0x58] sm:$0xff]  }
 0x758   :  { %v15041_v16 = vld [vmem:[#allocation12 + $0x18] sm:$0xff]   ;;  %13919 = vmatprep.subr.bf16.mxu1 %v15040_v10 }
 0x759   :  { %v18565_v17 = vadd.f32 %v13744_v25, %v9448_v54  ;;  %13920 = vmatpush3.bf16.msra.mxu1 %v15041_v16  ;;  %v15042_v25 = vld [vmem:[#allocation12 + $0x60] sm:$0xff]  }
 0x75a   :  { %13921 = vmatprep.subr.bf16.mxu1 %v15042_v25 }
 0x75b   :  { %v13745_v52 = vpop.f32.mrb[112].mxu1 }
 0x75c   :  { %v13746_v55 = vpop.f32.mrb[113].mxu1 }
 0x75d   :  { %v13747_v13 = vadd.f32 %v13746_v55, %v13745_v52  ;;  %v13748_v48 = vpop.f32.mrb[114].mxu1 }
 0x75e   :  { %v13749_v60 = vpop.f32.mrb[115].mxu1 }
 0x75f   :  { %v18569_v41 = vadd.f32 %v13747_v13, %v9453_v58  ;;  %v13750_v14 = vadd.f32 %v13749_v60, %v13748_v48  ;;  %v15043_v58 = vld [vmem:[#allocation12 + $0x20] sm:$0xff]  }
 0x760   :  { %13922 = vmatpush3.bf16.msra.mxu1 %v15043_v58 }
 0x761   :  { %v18573_v26 = vadd.f32 %v13750_v14, %v9456_v38  ;;  %v15045_v38 = vld [vmem:[#allocation12 + $0x28] sm:$0xff]   ;;  %13923 = vmatprep.subr.bf16.mxu1 %v15044_v56 }
 0x763   :  { %v13751_v9 = vpop.f32.mrb[116].mxu1 }
 0x764   :  { %v13752_v15 = vpop.f32.mrb[117].mxu1  ;;  %13924 = vmatpush3.bf16.msra.mxu1 %v15045_v38 }
 0x765   :  { %v13753_v59 = vadd.f32 %v13752_v15, %v13751_v9  ;;  %v13754_v18 = vpop.f32.mrb[118].mxu1  ;;  %v15046_v15 = vld [vmem:[#allocation12 + $0x70] sm:$0xff]  }
 0x766   :  { %v13755_v24 = vpop.f32.mrb[119].mxu1  ;;  %13925 = vmatprep.subr.bf16.mxu1 %v15046_v15 }
 0x767   :  { %v18577_v51 = vadd.f32 %v13753_v59, %v9461_v20  ;;  %v13756_v22 = vadd.f32 %v13755_v24, %v13754_v18  ;;  %v15047_v18 = vld [vmem:[#allocation12 + $0x30] sm:$0xff]  }
 0x768   :  { %13926 = vmatpush3.bf16.msra.mxu1 %v15047_v18 }
 0x769   :  { %v18581_v35 = vadd.f32 %v13756_v22, %v9464_v49  ;;  %v15048_v22 = vld [vmem:[#allocation12 + $0x78] sm:$0xff]  }
 0x76a   :  { %13927 = vmatprep.subr.bf16.mxu1 %v15048_v22 }
 0x76b   :  { %v13757_v31 = vpop.f32.mrb[120].mxu1 }
 0x76c   :  { %v13758_v40 = vpop.f32.mrb[121].mxu1 }
 0x76d   :  { %v13759_v4 = vadd.f32 %v13758_v40, %v13757_v31  ;;  %v13760_v0 = vpop.f32.mrb[122].mxu1  ;;  %v15049_v31 = vld [vmem:[#allocation12 + $0x38] sm:$0xff]  }
 0x76e   :  { %v13761_v37 = vpop.f32.mrb[123].mxu1  ;;  %13928 = vmatpush3.bf16.msra.mxu1 %v15049_v31 }
 0x76f   :  { %v18585_v7 = vadd.f32 %v13759_v4, %v9469_v50  ;;  %v13762_v8 = vadd.f32 %v13761_v37, %v13760_v0 }
 0x771   :  { %v18589_v27 = vadd.f32 %v13762_v8, %v9472_v33  ;;  %v15050_v33 = vld [vmem:[#allocation12 + $0xc0] sm:$0xff]  }
 0x772   :  { %13977 = vmatprep.subr.bf16.mxu1 %v15050_v33 }
 0x773   :  { %v13763_v28 = vpop.f32.mrb[124].mxu1 }
 0x774   :  { %v13764_v12 = vpop.f32.mrb[125].mxu1 }
 0x775   :  { %v13765_v45 = vadd.f32 %v13764_v12, %v13763_v28  ;;  %v13766_v42 = vpop.f32.mrb[126].mxu1 }
 0x776   :  { %v13767_v23 = vpop.f32.mrb[127].mxu1 }
 0x777   :  { %v18593_v39 = vadd.f32 %v13765_v45, %v9477_v61  ;;  %v13768_v44 = vadd.f32 %v13767_v23, %v13766_v42 }
 0x779   :  { %v18597_v43 = vadd.f32 %v13768_v44, %v9480_v47 }
 0x77b   :  { %v13785_v54 = vpop.f32.mrb[128].mxu1 }
 0x77c   :  { %v13786_v30 = vpop.f32.mrb[129].mxu1 }
 0x77d   :  { %v13787_v52 = vadd.f32 %v13786_v30, %v13785_v54  ;;  %v13788_v55 = vpop.f32.mrb[130].mxu1 }
 0x77e   :  { %v13789_v13 = vpop.f32.mrb[131].mxu1 }
 0x77f   :  { %v18600_v48 = vadd.f32 %v13787_v52, %v18537_v36  ;;  %v13790_v19 = vadd.f32 %v13789_v13, %v13788_v55 }
 0x781   :  { %v18603_v60 = vadd.f32 %v13790_v19, %v18541_v5 }
 0x783   :  { %v13791_v14 = vpop.f32.mrb[132].mxu1 }
 0x784   :  { %v13792_v9 = vpop.f32.mrb[133].mxu1 }
 0x785   :  { %v13793_v20 = vadd.f32 %v13792_v9, %v13791_v14  ;;  %v13794_v59 = vpop.f32.mrb[134].mxu1 }
 0x786   :  { %v13795_v24 = vpop.f32.mrb[135].mxu1 }
 0x787   :  { %v18606_v36 = vadd.f32 %v13793_v20, %v18545_v32  ;;  %v13796_v49 = vadd.f32 %v13795_v24, %v13794_v59 }
 0x789   :  { %v18609_v5 = vadd.f32 %v13796_v49, %v18549_v63 }
 0x78b   :  { %v13797_v40 = vpop.f32.mrb[136].mxu1 }
 0x78c   :  { %v13798_v62 = vpop.f32.mrb[137].mxu1 }
 0x78d   :  { %v13799_v50 = vadd.f32 %v13798_v62, %v13797_v40  ;;  %v13800_v4 = vpop.f32.mrb[138].mxu1 }
 0x78e   :  { %v13801_v0 = vpop.f32.mrb[139].mxu1 }
 0x78f   :  { %v18612_v6 = vadd.f32 %v13799_v50, %v18553_v11  ;;  %v13802_v37 = vadd.f32 %v13801_v0, %v13800_v4 }
 0x791   :  { %v18615_v32 = vadd.f32 %v13802_v37, %v18557_v29 }
 0x793   :  { %v13803_v8 = vpop.f32.mrb[140].mxu1 }
 0x794   :  { %v13804_v63 = vpop.f32.mrb[141].mxu1 }
 0x795   :  { %v13805_v34 = vadd.f32 %v13804_v63, %v13803_v8  ;;  %v13806_v57 = vpop.f32.mrb[142].mxu1 }
 0x796   :  { %v13807_v28 = vpop.f32.mrb[143].mxu1 }
 0x797   :  { %v18618_v12 = vadd.f32 %v13805_v34, %v18561_v53  ;;  %v13808_v21 = vadd.f32 %v13807_v28, %v13806_v57 }
 0x799   :  { %v18621_v61 = vadd.f32 %v13808_v21, %v18565_v17 }
 0x79b   :  { %v13809_v11 = vpop.f32.mrb[144].mxu1 }
 0x79c   :  { %v13810_v45 = vpop.f32.mrb[145].mxu1 }
 0x79d   :  { %v13811_v42 = vadd.f32 %v13810_v45, %v13809_v11  ;;  %v13812_v46 = vpop.f32.mrb[146].mxu1 }
 0x79e   :  { %v13813_v29 = vpop.f32.mrb[147].mxu1 }
 0x79f   :  { %v18624_v23 = vadd.f32 %v13811_v42, %v18569_v41  ;;  %v13814_v47 = vadd.f32 %v13813_v29, %v13812_v46 }
 0x7a1   :  { %v18627_v44 = vadd.f32 %v13814_v47, %v18573_v26 }
 0x7a3   :  { %v13815_v10 = vpop.f32.mrb[148].mxu1 }
 0x7a4   :  { %v13816_v16 = vpop.f32.mrb[149].mxu1 }
 0x7a5   :  { %v13817_v53 = vadd.f32 %v13816_v16, %v13815_v10  ;;  %v13818_v54 = vpop.f32.mrb[150].mxu1 }
 0x7a6   :  { %v13819_v30 = vpop.f32.mrb[151].mxu1 }
 0x7a7   :  { %v18630_v17 = vadd.f32 %v13817_v53, %v18577_v51  ;;  %v13820_v25 = vadd.f32 %v13819_v30, %v13818_v54 }
 0x7a9   :  { %v18633_v52 = vadd.f32 %v13820_v25, %v18581_v35 }
 0x7ab   :  { %v13821_v55 = vpop.f32.mrb[152].mxu1 }
 0x7ac   :  { %v13822_v58 = vpop.f32.mrb[153].mxu1 }
 0x7ad   :  { %v13823_v41 = vadd.f32 %v13822_v58, %v13821_v55  ;;  %v13824_v13 = vpop.f32.mrb[154].mxu1 }
 0x7ae   :  { %v13825_v19 = vpop.f32.mrb[155].mxu1 }
 0x7af   :  { %v18636_v26 = vadd.f32 %v13823_v41, %v18585_v7  ;;  %v13826_v56 = vadd.f32 %v13825_v19, %v13824_v13 }
 0x7b1   :  { %v18639_v38 = vadd.f32 %v13826_v56, %v18589_v27 }
 0x7b3   :  { %v13827_v14 = vpop.f32.mrb[156].mxu1 }
 0x7b4   :  { %v13828_v9 = vpop.f32.mrb[157].mxu1 }
 0x7b5   :  { %v13829_v51 = vadd.f32 %v13828_v9, %v13827_v14  ;;  %v13830_v15 = vpop.f32.mrb[158].mxu1 }
 0x7b6   :  { %v13831_v20 = vpop.f32.mrb[159].mxu1 }
 0x7b7   :  { %v18642_v35 = vadd.f32 %v13829_v51, %v18593_v39  ;;  %v13832_v59 = vadd.f32 %v13831_v20, %v13830_v15 }
 0x7b9   :  { %v18645_v18 = vadd.f32 %v13832_v59, %v18597_v43 }
 0x7bb   :  { %v13849_v24 = vpop.f32.mrb[160].mxu1 }
 0x7bc   :  { %v13850_v49 = vpop.f32.mrb[161].mxu1 }
 0x7bd   :  { %v13851_v7 = vadd.f32 %v13850_v49, %v13849_v24  ;;  %v13852_v22 = vpop.f32.mrb[162].mxu1 }
 0x7be   :  { %v13853_v31 = vpop.f32.mrb[163].mxu1 }
 0x7bf   :  { %v13854_v40 = vadd.f32 %v13853_v31, %v13852_v22  ;;  %v9712_v27 = vadd.f32 %v13851_v7, %v18600_v48 }
 0x7c1   :  { %v18649_v62 = vadd.f32 %v13854_v40, %v18603_v60 }
 0x7c3   :  { %v13855_v50 = vpop.f32.mrb[164].mxu1 }
 0x7c4   :  { %v13856_v4 = vpop.f32.mrb[165].mxu1 }
 0x7c5   :  { %v13857_v0 = vadd.f32 %v13856_v4, %v13855_v50  ;;  %v13858_v39 = vpop.f32.mrb[166].mxu1 }
 0x7c6   :  { %v13859_v37 = vpop.f32.mrb[167].mxu1 }
 0x7c7   :  { %v13860_v33 = vadd.f32 %v13859_v37, %v13858_v39  ;;  %v9720_v43 = vadd.f32 %v13857_v0, %v18606_v36 }
 0x7c9   :  { %v9723_v8 = vadd.f32 %v13860_v33, %v18609_v5 }
 0x7cb   :  { %v13861_v63 = vpop.f32.mrb[168].mxu1 }
 0x7cc   :  { %v13862_v34 = vpop.f32.mrb[169].mxu1 }
 0x7cd   :  { %v13863_v57 = vadd.f32 %v13862_v34, %v13861_v63  ;;  %v13864_v28 = vpop.f32.mrb[170].mxu1 }
 0x7ce   :  { %v13865_v21 = vpop.f32.mrb[171].mxu1 }
 0x7cf   :  { %v13866_v11 = vadd.f32 %v13865_v21, %v13864_v28  ;;  %v9728_v48 = vadd.f32 %v13863_v57, %v18612_v6 }
 0x7d1   :  { %v18655_v60 = vadd.f32 %v13866_v11, %v18615_v32 }
 0x7d3   :  { %v13867_v45 = vpop.f32.mrb[172].mxu1 }
 0x7d4   :  { %v13868_v42 = vpop.f32.mrb[173].mxu1 }
 0x7d5   :  { %v13869_v46 = vadd.f32 %v13868_v42, %v13867_v45  ;;  %v13870_v29 = vpop.f32.mrb[174].mxu1 }
 0x7d6   :  { %v13871_v47 = vpop.f32.mrb[175].mxu1 }
 0x7d7   :  { %v13872_v10 = vadd.f32 %v13871_v47, %v13870_v29  ;;  %v9736_v36 = vadd.f32 %v13869_v46, %v18618_v12  ;;  %v9905_v46 = vld [vmem:[#allocation4 + $0x7] sm:$0xff] }
 0x7d9   :  { %v9739_v5 = vadd.f32 %v13872_v10, %v18621_v61 }
 0x7db   :  { %v13873_v16 = vpop.f32.mrb[176].mxu1 }
 0x7dc   :  { %v13874_v53 = vpop.f32.mrb[177].mxu1 }
 0x7dd   :  { %v13875_v54 = vadd.f32 %v13874_v53, %v13873_v16  ;;  %v13876_v30 = vpop.f32.mrb[178].mxu1  ;;  %v18695_v53 = vld [vmem:[#allocation2 + $0x8] sm:$0xff] }
 0x7de   :  { %v13877_v25 = vpop.f32.mrb[179].mxu1 }
 0x7df   :  { %v13878_v55 = vadd.f32 %v13877_v25, %v13876_v30  ;;  %v18660_v6 = vadd.f32 %v13875_v54, %v18624_v23 }
 0x7e1   :  { %v18663_v32 = vadd.f32 %v13878_v55, %v18627_v44  ;;  %v15052_v55 = vld [vmem:[#allocation12 + $0xc8] sm:$0xff]  }
 0x7e3   :  { %v13879_v58 = vpop.f32.mrb[180].mxu1 }
 0x7e4   :  { %v13880_v41 = vpop.f32.mrb[181].mxu1 }
 0x7e5   :  { %v13881_v13 = vadd.f32 %v13880_v41, %v13879_v58  ;;  %v13882_v19 = vpop.f32.mrb[182].mxu1 }
 0x7e6   :  { %v13883_v56 = vpop.f32.mrb[183].mxu1 }
 0x7e7   :  { %v13884_v12 = vadd.f32 %v13883_v56, %v13882_v19  ;;  %v18666_v61 = vadd.f32 %v13881_v13, %v18630_v17 }
 0x7e9   :  { %v18669_v14 = vadd.f32 %v13884_v12, %v18633_v52 }
 0x7eb   :  { %v13885_v9 = vpop.f32.mrb[184].mxu1 }
 0x7ec   :  { %v13886_v51 = vpop.f32.mrb[185].mxu1 }
 0x7ed   :  { %v13887_v15 = vadd.f32 %v13886_v51, %v13885_v9  ;;  %v13888_v23 = vpop.f32.mrb[186].mxu1 }
 0x7ee   :  { %v13889_v20 = vpop.f32.mrb[187].mxu1 }
 0x7ef   :  { %v13890_v59 = vadd.f32 %v13889_v20, %v13888_v23  ;;  %v18672_v44 = vadd.f32 %v13887_v15, %v18636_v26  ;;  %v15053_v15 = vld [vmem:[#allocation12 + $0x88] sm:$0xff]  }
 0x7f1   :  { %v18675_v24 = vadd.f32 %v13890_v59, %v18639_v38 }
 0x7f3   :  { %v13891_v49 = vpop.f32.mrb[188].mxu1 }
 0x7f4   :  { %v13892_v7 = vpop.f32.mrb[189].mxu1 }
 0x7f5   :  { %v13893_v22 = vadd.f32 %v13892_v7, %v13891_v49  ;;  %v13894_v17 = vpop.f32.mrb[190].mxu1  ;;  %v15054_v49 = vld [vmem:[#allocation12 + $0xd0] sm:$0xff]  }
 0x7f6   :  { %v13895_v31 = vpop.f32.mrb[191].mxu1 }
 0x7f7   :  { %v13896_v40 = vadd.f32 %v13895_v31, %v13894_v17  ;;  %v18678_v52 = vadd.f32 %v13893_v22, %v18642_v35 }
 0x7f9   :  { %v18681_v50 = vadd.f32 %v13896_v40, %v18645_v18 }
 0x7fb   :  { %v14317_v4 = vpop.f32.mrb[192].mxu1 }
 0x7fc   :  { %v9817_v0 = vadd.f32 %v14317_v4, %v9720_v43  ;;  %v9808_v39 = vpop.f32.mrb[193].mxu1 }
 0x7fd   :  { %v9809_v26 = vadd.f32 %v9808_v39, %v9712_v27  ;;  %v14318_v37 = vpop.f32.mrb[194].mxu1 }
 0x7fe   :  { %v9873_v38 = vmax.f32 %v9817_v0, 0.0  ;;  %v9820_v33 = vadd.f32 %v14318_v37, %v9723_v8  ;;  %v9811_v63 = vpop.f32.mrb[195].mxu1  ;;  %v15056_v0 = vld [vmem:[#allocation12 + $0xd8] sm:$0xff]  }
 0x7ff   :  { %v9871_v34 = vmax.f32 %v9809_v26, 0.0  ;;  %v9812_v57 = vadd.f32 %v9811_v63, %v18649_v62 }
 0x800   :  { %9891 = vst.msk [vmem:[#allocation4 + $0x50] sm:$0xff] %vm9888_vm2, %v9873_v38  ;;  %v9874_v28 = vmax.f32 %v9820_v33, 0.0 }
 0x801   :  { %9889 = vst.msk [vmem:[#allocation4 + $0x20] sm:$0xff] %vm9888_vm2, %v9871_v34  ;;  %v9872_v35 = vmax.f32 %v9812_v57, 0.0  ;;  %v15057_v57 = vld [vmem:[#allocation12 + $0x98] sm:$0xff]  }
 0x802   :  { %9892 = vst.msk [vmem:[#allocation4 + $0x68] sm:$0xff] %vm9888_vm2, %v9874_v28 }
 0x803   :  { %9890 = vst.msk [vmem:[#allocation4 + $0x38] sm:$0xff] %vm9888_vm2, %v9872_v35  ;;  %v14321_v18 = vpop.f32.mrb[196].mxu1 }
 0x804   :  { %v9833_v43 = vadd.f32 %v14321_v18, %v9736_v36  ;;  %v9824_v27 = vpop.f32.mrb[197].mxu1 }
 0x805   :  { %v9825_v21 = vadd.f32 %v9824_v27, %v9728_v48  ;;  %v14322_v11 = vpop.f32.mrb[198].mxu1 }
 0x806   :  { %v9877_v8 = vmax.f32 %v9833_v43, 0.0  ;;  %v9836_v45 = vadd.f32 %v14322_v11, %v9739_v5  ;;  %v9827_v42 = vpop.f32.mrb[199].mxu1  ;;  %v15058_v43 = vld [vmem:[#allocation12 + $0xe0] sm:$0xff]  }
 0x807   :  { %v9875_v62 = vmax.f32 %v9825_v21, 0.0  ;;  %v9828_v29 = vadd.f32 %v9827_v42, %v18655_v60  ;;  %v18700_v54 = vld [vmem:[#allocation4 + $0x50] sm:$0xff]  ;;  %v15051_v60 = vld [vmem:[#allocation12 + $0x80] sm:$0xff]  }
 0x808   :  { %9895 = vst.msk [vmem:[#allocation4 + $0xb0] sm:$0xff] %vm9888_vm2, %v9877_v8  ;;  %v9878_v47 = vmax.f32 %v9836_v45, 0.0  ;;  %v18690_v10 = vld [vmem:[#allocation4 + $0x20] sm:$0xff]  ;;  %v18727_v40 = vld [vmem:[#allocation4 + $0x4f] sm:$0xff] }
 0x809   :  { %v18692_v16 = vld [vmem:[#allocation4 + $0x1f] sm:$0xff]  ;;  %9893 = vst.msk [vmem:[#allocation4 + $0x80] sm:$0xff] %vm9888_vm2, %v9875_v62  ;;  %v9876_v36 = vmax.f32 %v9828_v29, 0.0  ;;  %v9953_v48 = vpack.c.bf16 %v18690_v10, %v18695_v53  ;;  %v18702_v30 = vld [vmem:[#allocation4 + $0x68] sm:$0xff] }
 0x80a   :  { %v9921_v5 = vpack.c.bf16 %v18692_v16, %v9905_v46  ;;  %9896 = vst.msk [vmem:[#allocation4 + $0xc8] sm:$0xff] %vm9888_vm2, %v9878_v47  ;;  %v18705_v25 = vld [vmem:[#allocation4 + $0x38] sm:$0xff]  ;;  %v10050_v58 = vpack.c.bf16 %v18702_v30, %v18700_v54  ;;  %v18753_v45 = vld [vmem:[#allocation4 + $0x67] sm:$0xff] }
 0x80b   :  { %9894 = vst.msk [vmem:[#allocation4 + $0x98] sm:$0xff] %vm9888_vm2, %v9876_v36  ;;  %v14325_v41 = vpop.f32.mrb[200].mxu1  ;;  %10881 = vmatprep.mubr.bf16.mxu1 %v9953_v48  ;;  %v18712_v13 = vpack.c.bf16 %v18700_v54, %v18705_v25  ;;  %v10049_v12 = vpack.c.bf16 %v18705_v25, %v18690_v10  ;;  %v18721_v22 = vld [vmem:[#allocation4 + $0x37] sm:$0xff]  ;;  %v15060_v29 = vld [vmem:[#allocation12 + $0xe8] sm:$0xff]   ;;  %v15090_v10 = vld [vmem:[#allocation12 + $0x1e0] sm:$0xff]  }
 0x80c   :  { %v9849_v19 = vadd.f32 %v14325_v41, %v18666_v61  ;;  %v9840_v56 = vpop.f32.mrb[201].mxu1  ;;  %10882 = vmatmul.mubr.bf16.vlgmr.msra.gmra.mrb[208].mxu1 %v9921_v5  ;;  %v18732_v4 = vpack.c.bf16 %v18727_v40, %v18721_v22  ;;  %v15093_v54 = vld [vmem:[#allocation12 + $0x1a8] sm:$0xff]  }
 0x80d   :  { %v9841_v9 = vadd.f32 %v9840_v56, %v18660_v6  ;;  %v14326_v51 = vpop.f32.mrb[202].mxu1  ;;  %10889 = vmatprep.mubr.bf16.mxu1 %v18712_v13  ;;  %13978 = vmatpush3.bf16.msra.mxu1 %v15051_v60  ;;  %v15061_v60 = vld [vmem:[#allocation12 + $0xa8] sm:$0xff]   ;;  %v15063_v56 = vld [vmem:[#allocation12 + $0xb0] sm:$0xff]  }
 0x80e   :  { %v9881_v23 = vmax.f32 %v9849_v19, 0.0  ;;  %v9852_v20 = vadd.f32 %v14326_v51, %v18669_v14  ;;  %v9843_v59 = vpop.f32.mrb[203].mxu1  ;;  %13979 = vmatprep.subr.bf16.mxu1 %v15052_v55  ;;  %v15055_v14 = vld [vmem:[#allocation12 + $0x90] sm:$0xff]  }
 0x80f   :  { %v9879_v7 = vmax.f32 %v9841_v9, 0.0  ;;  %v9844_v61 = vadd.f32 %v9843_v59, %v18663_v32  ;;  %v18764_v46 = vld [vmem:[#allocation4 + $0xb0] sm:$0xff] }
 0x810   :  { %9899 = vst.msk [vmem:[#allocation4 + $0x140] sm:$0xff] %vm9888_vm2, %v9881_v23  ;;  %v9882_v17 = vmax.f32 %v9852_v20, 0.0  ;;  %v18724_v6 = vld [vmem:[#allocation4 + $0x80] sm:$0xff]  ;;  %v15062_v55 = vld [vmem:[#allocation12 + $0xf0] sm:$0xff]  }
 0x811   :  { %9897 = vst.msk [vmem:[#allocation4 + $0x110] sm:$0xff] %vm9888_vm2, %v9879_v7  ;;  %v9880_v31 = vmax.f32 %v9844_v61, 0.0  ;;  %13980 = vmatpush3.bf16.msra.mxu1 %v15053_v15  ;;  %v18739_v26 = vpack.c.bf16 %v18724_v6, %v18702_v30  ;;  %v18749_v21 = vld [vmem:[#allocation4 + $0x7f] sm:$0xff]  ;;  %v18783_v19 = vld [vmem:[#allocation4 + $0xaf] sm:$0xff]  ;;  %v9913_v61 = vld [vmem:[#allocation4 + $0xf7] sm:$0xff] }
 0x812   :  { %9900 = vst.msk [vmem:[#allocation4 + $0x158] sm:$0xff] %vm9888_vm2, %v9882_v17  ;;  %13981 = vmatprep.subr.bf16.mxu1 %v15054_v49  ;;  %v18734_v32 = vld [vmem:[#allocation4 + $0x98] sm:$0xff]  ;;  %v15066_v7 = vld [vmem:[#allocation12 + $0x140] sm:$0xff]   ;;  %v18917_v25 = vld [vmem:[#allocation4 + $0xc9] sm:$0xff] }
 0x813   :  { %9898 = vst.msk [vmem:[#allocation4 + $0x128] sm:$0xff] %vm9888_vm2, %v9880_v31  ;;  %v14329_v39 = vpop.f32.mrb[204].mxu1  ;;  %v10051_v33 = vpack.c.bf16 %v18734_v32, %v18724_v6  ;;  %v18773_v36 = vpack.c.bf16 %v18764_v46, %v18734_v32  ;;  %v18781_v41 = vld [vmem:[#allocation4 + $0x97] sm:$0xff]  ;;  %v10040_v30 = vld [vmem:[#allocation4 + $0xc8] sm:$0xff]  ;;  %v15098_v6 = vld [vmem:[#allocation12 + $0x200] sm:$0xff]  }
 0x814   :  { %v9865_v37 = vadd.f32 %v14329_v39, %v18678_v52  ;;  %v9856_v38 = vpop.f32.mrb[205].mxu1  ;;  %10890 = vmatmul.mubr.bf16.gmra.mrb[212].mxu1 %v18732_v4  ;;  %v18787_v9 = vpack.c.bf16 %v18783_v19, %v18781_v41  ;;  %v15064_v15 = vld [vmem:[#allocation12 + $0xf8] sm:$0xff]  }
 0x815   :  { %v9857_v63 = vadd.f32 %v9856_v38, %v18672_v44  ;;  %v14330_v34 = vpop.f32.mrb[206].mxu1  ;;  %10897 = vmatprep.mubr.bf16.mxu1 %v18739_v26  ;;  %13982 = vmatpush3.bf16.msra.mxu1 %v15055_v14  ;;  %v15059_v44 = vld [vmem:[#allocation12 + $0xa0] sm:$0xff]   ;;  %v15065_v49 = vld [vmem:[#allocation12 + $0xb8] sm:$0xff]  }
 0x816   :  { %v9885_v28 = vmax.f32 %v9865_v37, 0.0  ;;  %v9868_v35 = vadd.f32 %v14330_v34, %v18681_v50  ;;  %v9859_v18 = vpop.f32.mrb[207].mxu1  ;;  %13983 = vmatprep.subr.bf16.mxu1 %v15056_v0 }
 0x817   :  { %v9883_v52 = vmax.f32 %v9857_v63, 0.0  ;;  %v9860_v27 = vadd.f32 %v9859_v18, %v18675_v24  ;;  %v18755_v42 = vld [vmem:[#allocation4 + $0x140] sm:$0xff]  ;;  %v18762_v24 = vpack.c.bf16 %v18749_v21, %v18753_v45 }
 0x818   :  { %9903 = vst.msk [vmem:[#allocation4 + $0x1a0] sm:$0xff] %vm9888_vm2, %v9885_v28  ;;  %v9886_v11 = vmax.f32 %v9868_v35, 0.0  ;;  %v18775_v48 = vld [vmem:[#allocation4 + $0x110] sm:$0xff]  ;;  %v18808_v39 = vld [vmem:[#allocation4 + $0x13f] sm:$0xff] }
 0x819   :  { %9901 = vst.msk [vmem:[#allocation4 + $0x170] sm:$0xff] %vm9888_vm2, %v9883_v52  ;;  %v9884_v8 = vmax.f32 %v9860_v27, 0.0  ;;  %13984 = vmatpush3.bf16.msra.mxu1 %v15057_v57  ;;  %v18757_v50 = vld [vmem:[#allocation4 + $0x158] sm:$0xff]  ;;  %v9957_v23 = vpack.c.bf16 %v18775_v48, %v18695_v53  ;;  %v18798_v17 = vld [vmem:[#allocation4 + $0x10f] sm:$0xff]  ;;  %v10017_v27 = vpack.c.bf16 %v18721_v22, %v18692_v16 }
 0x81a   :  { %9904 = vst.msk [vmem:[#allocation4 + $0x1b8] sm:$0xff] %vm9888_vm2, %v9886_v11  ;;  %13985 = vmatprep.subr.bf16.mxu1 %v15058_v43  ;;  %v18766_v62 = vld [vmem:[#allocation4 + $0x128] sm:$0xff]  ;;  %v10054_v47 = vpack.c.bf16 %v18757_v50, %v18755_v42  ;;  %v9925_v31 = vpack.c.bf16 %v18798_v17, %v9913_v61  ;;  %v18822_v34 = vld [vmem:[#allocation4 + $0x157] sm:$0xff]  ;;  %v15074_v61 = vld [vmem:[#allocation12 + $0x160] sm:$0xff]  }
 0x81b   :  { %9902 = vst.msk [vmem:[#allocation4 + $0x188] sm:$0xff] %vm9888_vm2, %v9884_v8  ;;  %v10053_v5 = vpack.c.bf16 %v18766_v62, %v18775_v48  ;;  %v18803_v14 = vpack.c.bf16 %v18755_v42, %v18766_v62  ;;  %v18806_v0 = vld [vmem:[#allocation4 + $0x127] sm:$0xff]  ;;  %v18852_v16 = vld [vmem:[#allocation4 + $0x39] sm:$0xff]  ;;  %v18854_v22 = vld [vmem:[#allocation4 + $0x51] sm:$0xff] }
 0x81c   :  { %10898 = vmatmul.mubr.bf16.gmra.mrb[216].mxu1 %v18762_v24  ;;  %v18812_v37 = vpack.c.bf16 %v18808_v39, %v18806_v0  ;;  %v9969_v11 = vld [vmem:[#allocation4 + $0x9] sm:$0xff]  ;;  %v15067_v8 = vld [vmem:[#allocation12 + $0x100] sm:$0xff]  }
 0x81d   :  { %10905 = vmatprep.mubr.bf16.mxu1 %v18773_v36  ;;  %13986 = vmatpush3.bf16.msra.mxu1 %v15059_v44  ;;  %v18847_v44 = vld [vmem:[#allocation4 + $0x21] sm:$0xff] }
 0x81e   :  { %13987 = vmatprep.subr.bf16.mxu1 %v15060_v29  ;;  %v9985_v29 = vpack.c.bf16 %v18847_v44, %v9969_v11  ;;  %v9973_v11 = vld [vmem:[#allocation4 + $0x69] sm:$0xff]  ;;  %v15102_v48 = vld [vmem:[#allocation12 + $0x220] sm:$0xff]  }
 0x81f   :  { %v18828_v28 = vld [vmem:[#allocation4 + $0x1a0] sm:$0xff]  ;;  %v15099_v42 = vld [vmem:[#allocation12 + $0x208] sm:$0xff]  }
 0x820   :  { %v18793_v20 = vld [vmem:[#allocation4 + $0x170] sm:$0xff]  ;;  %v18838_v43 = vld [vmem:[#allocation4 + $0x19f] sm:$0xff] }
 0x821   :  { %13988 = vmatpush3.bf16.msra.mxu1 %v15061_v60  ;;  %v18816_v38 = vpack.c.bf16 %v18793_v20, %v18757_v50  ;;  %v18820_v63 = vld [vmem:[#allocation4 + $0x16f] sm:$0xff] }
 0x822   :  { %13989 = vmatprep.subr.bf16.mxu1 %v15062_v55  ;;  %v18789_v51 = vld [vmem:[#allocation4 + $0x188] sm:$0xff]  ;;  %v18826_v57 = vpack.c.bf16 %v18820_v63, %v18822_v34  ;;  %v10018_v55 = vpack.c.bf16 %v18753_v45, %v18727_v40  ;;  %v10019_v40 = vpack.c.bf16 %v18781_v41, %v18749_v21  ;;  %v15073_v45 = vld [vmem:[#allocation12 + $0x118] sm:$0xff]   ;;  %v15100_v50 = vld [vmem:[#allocation12 + $0x210] sm:$0xff]  }
 0x823   :  { %v10055_v59 = vpack.c.bf16 %v18789_v51, %v18793_v20  ;;  %v18832_v35 = vpack.c.bf16 %v18828_v28, %v18789_v51  ;;  %v18836_v18 = vld [vmem:[#allocation4 + $0x187] sm:$0xff]  ;;  %v10105_v51 = vld [vmem:[#allocation4 + $0xdf] sm:$0xff] }
 0x824   :  { %10906 = vmatmul.mubr.bf16.gmra.mrb[220].mxu1 %v18787_v9  ;;  %v18842_v52 = vpack.c.bf16 %v18838_v43, %v18836_v18  ;;  %v15068_v60 = vld [vmem:[#allocation12 + $0x148] sm:$0xff]  }
 0x825   :  { %10913 = vmatprep.mubr.bf16.mxu1 %v9957_v23  ;;  %13990 = vmatpush3.bf16.msra.mxu1 %v15063_v56  ;;  %v15069_v56 = vld [vmem:[#allocation12 + $0x108] sm:$0xff]   ;;  %v15071_v23 = vld [vmem:[#allocation12 + $0x110] sm:$0xff]  }
 0x826   :  { %13991 = vmatprep.subr.bf16.mxu1 %v15064_v15  ;;  %v15070_v15 = vld [vmem:[#allocation12 + $0x150] sm:$0xff]   ;;  %v15077_v41 = vld [vmem:[#allocation12 + $0x128] sm:$0xff]  }
 0x829   :  { %13992 = vmatpush3.bf16.msra.mxu1 %v15065_v49  ;;  %v18858_v49 = vpack.c.bf16 %v18854_v22, %v18852_v16 }
 0x82a   :  { %14041 = vmatprep.subr.bf16.mxu1 %v15066_v7  ;;  %v15072_v7 = vld [vmem:[#allocation12 + $0x158] sm:$0xff]  }
 0x82c   :  { %10914 = vmatmul.mubr.bf16.gmra.mrb[224].mxu1 %v9925_v31  ;;  %v18863_v31 = vld [vmem:[#allocation4 + $0x81] sm:$0xff] }
 0x82d   :  { %10921 = vmatprep.mubr.bf16.mxu1 %v18803_v14 }
 0x834   :  { %10922 = vmatmul.mubr.bf16.gmra.mrb[228].mxu1 %v18812_v37 }
 0x835   :  { %10929 = vmatprep.mubr.bf16.mxu1 %v18816_v38 }
 0x83c   :  { %10930 = vmatmul.mubr.bf16.gmra.mrb[232].mxu1 %v18826_v57 }
 0x83d   :  { %10937 = vmatprep.mubr.bf16.mxu1 %v18832_v35 }
 0x844   :  { %10938 = vmatmul.mubr.bf16.gmra.mrb[236].mxu1 %v18842_v52 }
 0x845   :  { %10978 = vmatprep.mubr.bf16.mxu1 %v10017_v27  ;;  %v18865_v27 = vld [vmem:[#allocation4 + $0xc7] sm:$0xff] }
 0x846   :  { %v10020_v21 = vpack.c.bf16 %v18865_v27, %v18783_v19  ;;  %v10021_v19 = vpack.c.bf16 %v18806_v0, %v18798_v17  ;;  %v9979_v17 = vld [vmem:[#allocation4 + $0x129] sm:$0xff]  ;;  %v18886_v0 = vld [vmem:[#allocation4 + $0x141] sm:$0xff] }
 0x84c   :  { %10979 = vmatmul.mubr.bf16.vlgmr.msra.gmra.mrb[240].mxu1 %v9985_v29  ;;  %v18868_v29 = vpack.c.bf16 %v18863_v31, %v9973_v11 }
 0x84d   :  { %10986 = vmatprep.mubr.bf16.mxu1 %v10018_v55  ;;  %14042 = vmatpush3.bf16.msra.mxu1 %v15067_v8  ;;  %v15075_v8 = vld [vmem:[#allocation12 + $0x120] sm:$0xff]   ;;  %v15078_v55 = vld [vmem:[#allocation12 + $0x170] sm:$0xff]  }
 0x84e   :  { %14043 = vmatprep.subr.bf16.mxu1 %v15068_v60  ;;  %v15076_v60 = vld [vmem:[#allocation12 + $0x168] sm:$0xff]  }
 0x851   :  { %14044 = vmatpush3.bf16.msra.mxu1 %v15069_v56  ;;  %v9975_v56 = vld [vmem:[#allocation4 + $0x99] sm:$0xff] }
 0x852   :  { %14045 = vmatprep.subr.bf16.mxu1 %v15070_v15  ;;  %v18873_v15 = vld [vmem:[#allocation4 + $0xb1] sm:$0xff] }
 0x854   :  { %10987 = vmatmul.mubr.bf16.gmra.mrb[244].mxu1 %v18858_v49 }
 0x855   :  { %10994 = vmatprep.mubr.bf16.mxu1 %v10019_v40  ;;  %14046 = vmatpush3.bf16.msra.mxu1 %v15071_v23  ;;  %v15079_v23 = vld [vmem:[#allocation12 + $0x130] sm:$0xff]   ;;  %v15080_v40 = vld [vmem:[#allocation12 + $0x178] sm:$0xff]  }
 0x856   :  { %14047 = vmatprep.subr.bf16.mxu1 %v15072_v7  ;;  %v18876_v7 = vpack.c.bf16 %v18873_v15, %v9975_v56 }
 0x859   :  { %14048 = vmatpush3.bf16.msra.mxu1 %v15073_v45  ;;  %v15081_v45 = vld [vmem:[#allocation12 + $0x138] sm:$0xff]  }
 0x85a   :  { %14049 = vmatprep.subr.bf16.mxu1 %v15074_v61  ;;  %v15082_v61 = vld [vmem:[#allocation12 + $0x1c0] sm:$0xff]  }
 0x85c   :  { %10995 = vmatmul.mubr.bf16.gmra.mrb[248].mxu1 %v18868_v29 }
 0x85d   :  { %11002 = vmatprep.mubr.bf16.mxu1 %v10020_v21  ;;  %14050 = vmatpush3.bf16.msra.mxu1 %v15075_v8  ;;  %v9977_v8 = vld [vmem:[#allocation4 + $0xf9] sm:$0xff] }
 0x85e   :  { %14051 = vmatprep.subr.bf16.mxu1 %v15076_v60  ;;  %v18881_v60 = vld [vmem:[#allocation4 + $0x111] sm:$0xff] }
 0x85f   :  { %v9989_v21 = vpack.c.bf16 %v18881_v60, %v9977_v8  ;;  %v9984_v8 = vld [vmem:[#allocation4 + $0x1a1] sm:$0xff] }
 0x861   :  { %14052 = vmatpush3.bf16.msra.mxu1 %v15077_v41  ;;  %v10022_v41 = vpack.c.bf16 %v18822_v34, %v18808_v39 }
 0x862   :  { %14053 = vmatprep.subr.bf16.mxu1 %v15078_v55  ;;  %v18889_v55 = vpack.c.bf16 %v18886_v0, %v9979_v17 }
 0x864   :  { %11003 = vmatmul.mubr.bf16.gmra.mrb[252].mxu1 %v18876_v7 }
 0x865   :  { %11010 = vmatprep.mubr.bf16.mxu1 %v10021_v19  ;;  %14054 = vmatpush3.bf16.msra.mxu1 %v15079_v23  ;;  %v10023_v23 = vpack.c.bf16 %v18836_v18, %v18820_v63  ;;  %v18896_v19 = vld [vmem:[#allocation4 + $0x1b7] sm:$0xff]  ;;  %v10081_v18 = vpack.c.bf16 %v18852_v16, %v18847_v44  ;;  %v10083_v16 = vpack.c.bf16 %v9975_v56, %v18863_v31 }
 0x866   :  { %14055 = vmatprep.subr.bf16.mxu1 %v15080_v40  ;;  %v18894_v40 = vld [vmem:[#allocation4 + $0x171] sm:$0xff]  ;;  %v10024_v34 = vpack.c.bf16 %v18896_v19, %v18838_v43  ;;  %v15085_v43 = vld [vmem:[#allocation12 + $0x188] sm:$0xff]   ;;  %v10052_v31 = vpack.c.bf16 %v10040_v30, %v18764_v46  ;;  %v18934_v46 = vld [vmem:[#allocation4 + $0x1b9] sm:$0xff] }
 0x867   :  { %v15088_v44 = vld [vmem:[#allocation12 + $0x1d8] sm:$0xff]  }
 0x868   :  { %v15096_v56 = vld [vmem:[#allocation12 + $0x1f8] sm:$0xff]  }
 0x869   :  { %14056 = vmatpush3.bf16.msra.mxu1 %v15081_v45  ;;  %v9981_v45 = vld [vmem:[#allocation4 + $0x159] sm:$0xff] }
 0x86a   :  { %14105 = vmatprep.subr.bf16.mxu1 %v15082_v61  ;;  %v18899_v39 = vpack.c.bf16 %v18894_v40, %v9981_v45  ;;  %v9983_v61 = vld [vmem:[#allocation4 + $0x189] sm:$0xff]  ;;  %v10086_v32 = vpack.c.bf16 %v9981_v45, %v18886_v0  ;;  %v15105_v0 = vld [vmem:[#allocation12 + $0x238] sm:$0xff]  }
 0x86b   :  { %v18904_v63 = vpack.c.bf16 %v9984_v8, %v9983_v61 }
 0x86c   :  { %11011 = vmatmul.mubr.bf16.gmra.mrb[0].mxu1 %v9989_v21  ;;  %v15083_v21 = vld [vmem:[#allocation12 + $0x180] sm:$0xff]  }
 0x86d   :  { %11018 = vmatprep.mubr.bf16.mxu1 %v10022_v41  ;;  %v15084_v41 = vld [vmem:[#allocation12 + $0x1c8] sm:$0xff]  }
 0x874   :  { %11019 = vmatmul.mubr.bf16.gmra.mrb[4].mxu1 %v18889_v55 }
 0x875   :  { %11026 = vmatprep.mubr.bf16.mxu1 %v10023_v23  ;;  %v10082_v23 = vpack.c.bf16 %v9973_v11, %v18854_v22  ;;  %v15089_v22 = vld [vmem:[#allocation12 + $0x198] sm:$0xff]   ;;  %v15092_v11 = vld [vmem:[#allocation12 + $0x1e8] sm:$0xff]  }
 0x87c   :  { %11027 = vmatmul.mubr.bf16.gmra.mrb[8].mxu1 %v18899_v39 }
 0x87d   :  { %11034 = vmatprep.mubr.bf16.mxu1 %v10024_v34  ;;  %v15086_v34 = vld [vmem:[#allocation12 + $0x1d0] sm:$0xff]  }
 0x884   :  { %11035 = vmatmul.mubr.bf16.gmra.mrb[12].mxu1 %v18904_v63 }
 0x885   :  { %11075 = vmatprep.mubr.bf16.mxu1 %v10081_v18  ;;  %v10084_v18 = vpack.c.bf16 %v18917_v25, %v18873_v15  ;;  %v15097_v15 = vld [vmem:[#allocation12 + $0x1b8] sm:$0xff]  }
 0x88c   :  { %11076 = vmatmul.mubr.bf16.vlgmr.msra.gmra.mrb[16].mxu1 %v10049_v12  ;;  %v15091_v12 = vld [vmem:[#allocation12 + $0x1a0] sm:$0xff]  }
 0x88d   :  { %11083 = vmatprep.mubr.bf16.mxu1 %v10082_v23  ;;  %14106 = vmatpush3.bf16.msra.mxu1 %v15083_v21  ;;  %v10085_v21 = vpack.c.bf16 %v9979_v17, %v18881_v60  ;;  %v10088_v60 = vpack.c.bf16 %v18934_v46, %v9984_v8  ;;  %v18940_v17 = vld [vmem:[#allocation4 + $0x1b8] sm:$0xff] }
 0x88e   :  { %14107 = vmatprep.subr.bf16.mxu1 %v15084_v41  ;;  %v10056_v62 = vpack.c.bf16 %v18940_v17, %v18828_v28  ;;  %v10117_v28 = vpack.c.bf16 %v10105_v51, %v18865_v27 }
 0x891   :  { %14108 = vmatpush3.bf16.msra.mxu1 %v15085_v43 }
 0x892   :  { %14109 = vmatprep.subr.bf16.mxu1 %v15086_v34 }
 0x894   :  { %11084 = vmatmul.mubr.bf16.gmra.mrb[20].mxu1 %v10050_v58  ;;  %v15095_v58 = vld [vmem:[#allocation12 + $0x1b0] sm:$0xff]  }
 0x895   :  { %11091 = vmatprep.mubr.bf16.mxu1 %v10083_v16  ;;  %14110 = vmatpush3.bf16.msra.mxu1 %v15087_v2  ;;  %v15094_v2 = vld [vmem:[#allocation12 + $0x1f0] sm:$0xff]  }
 0x896   :  { %14111 = vmatprep.subr.bf16.mxu1 %v15088_v44 }
 0x899   :  { %14112 = vmatpush3.bf16.msra.mxu1 %v15089_v22 }
 0x89a   :  { %14113 = vmatprep.subr.bf16.mxu1 %v15090_v10 }
 0x89c   :  { %11092 = vmatmul.mubr.bf16.gmra.mrb[24].mxu1 %v10051_v33  ;;  %v10087_v33 = vpack.c.bf16 %v9983_v61, %v18894_v40 }
 0x89d   :  { %11099 = vmatprep.mubr.bf16.mxu1 %v10084_v18  ;;  %14114 = vmatpush3.bf16.msra.mxu1 %v15091_v12 }
 0x89e   :  { %14115 = vmatprep.subr.bf16.mxu1 %v15092_v11 }
 0x8a1   :  { %14116 = vmatpush3.bf16.msra.mxu1 %v15093_v54 }
 0x8a2   :  { %14117 = vmatprep.subr.bf16.mxu1 %v15094_v2  ;;  %v10113_v2 = vld [vmem:[#allocation4 + $0x1cf] sm:$0xff] }
 0x8a4   :  { %11100 = vmatmul.mubr.bf16.gmra.mrb[28].mxu1 %v10052_v31  ;;  %v10121_v31 = vpack.c.bf16 %v10113_v2, %v18896_v19 }
 0x8a5   :  { %11107 = vmatprep.mubr.bf16.mxu1 %v10085_v21  ;;  %14118 = vmatpush3.bf16.msra.mxu1 %v15095_v58 }
 0x8a6   :  { %14119 = vmatprep.subr.bf16.mxu1 %v15096_v56 }
 0x8a9   :  { %14120 = vmatpush3.bf16.msra.mxu1 %v15097_v15 }
 0x8aa   :  { %14331 = vmatprep.subr.bf16.mxu1 %v15098_v6 }
 0x8ac   :  { %11108 = vmatmul.mubr.bf16.gmra.mrb[32].mxu1 %v10053_v5 }
 0x8ad   :  { %11115 = vmatprep.mubr.bf16.mxu1 %v10086_v32 }
 0x8b4   :  { %11116 = vmatmul.mubr.bf16.gmra.mrb[36].mxu1 %v10054_v47  ;;  %v15101_v47 = vld [vmem:[#allocation12 + $0x218] sm:$0xff]  }
 0x8b5   :  { %11123 = vmatprep.mubr.bf16.mxu1 %v10087_v33 }
 0x8bc   :  { %11124 = vmatmul.mubr.bf16.gmra.mrb[40].mxu1 %v10055_v59 }
 0x8bd   :  { %11131 = vmatprep.mubr.bf16.mxu1 %v10088_v60  ;;  %v10169_v60 = vld [vmem:[#allocation4 + $0xe1] sm:$0xff] }
 0x8c4   :  { %11132 = vmatmul.mubr.bf16.gmra.mrb[44].mxu1 %v10056_v62 }
 0x8c5   :  { %11172 = vmatprep.mubr.bf16.mxu1 %v18712_v13  ;;  %v15103_v13 = vld [vmem:[#allocation12 + $0x228] sm:$0xff]  }
 0x8cc   :  { %11173 = vmatmul.mubr.bf16.vlgmr.msra.gmra.mrb[48].mxu1 %v18732_v4  ;;  %v10149_v4 = vpack.c.bf16 %v18695_v53, %v10040_v30 }
 0x8cd   :  { %11180 = vmatprep.mubr.bf16.mxu1 %v18739_v26  ;;  %14332 = vmatpush3.bf16.msra.mxu1 %v15098_v6  ;;  %v15104_v26 = vld [vmem:[#allocation12 + $0x230] sm:$0xff]  }
 0x8ce   :  { %14333 = vmatprep.subr.bf16.mxu1 %v15099_v42 }
 0x8d1   :  { %14334 = vmatpush3.bf16.msra.mxu1 %v15099_v42 }
 0x8d2   :  { %14335 = vmatprep.subr.bf16.mxu1 %v15100_v50 }
 0x8d4   :  { %11181 = vmatmul.mubr.bf16.gmra.mrb[52].mxu1 %v18762_v24 }
 0x8d5   :  { %11188 = vmatprep.mubr.bf16.mxu1 %v18773_v36  ;;  %14336 = vmatpush3.bf16.msra.mxu1 %v15100_v50 }
 0x8d6   :  { %14337 = vmatprep.subr.bf16.mxu1 %v15101_v47 }
 0x8d9   :  { %14338 = vmatpush3.bf16.msra.mxu1 %v15101_v47 }
 0x8da   :  { %14339 = vmatprep.subr.bf16.mxu1 %v15102_v48 }
 0x8dc   :  { %11189 = vmatmul.mubr.bf16.gmra.mrb[56].mxu1 %v18787_v9 }
 0x8dd   :  { %11196 = vmatprep.mubr.bf16.mxu1 %v10149_v4  ;;  %14340 = vmatpush3.bf16.msra.mxu1 %v15102_v48 }
 0x8de   :  { %14341 = vmatprep.subr.bf16.mxu1 %v15103_v13 }
 0x8df   :  { %v13929_v5 = vpop.f32.mrb[208].mxu1 }
 0x8e0   :  { %v13930_v20 = vpop.f32.mrb[209].mxu1 }
 0x8e1   :  { %v18951_v24 = vadd.f32 %v13930_v20, %v13929_v5  ;;  %v13932_v36 = vpop.f32.mrb[210].mxu1  ;;  %14342 = vmatpush3.bf16.msra.mxu1 %v15103_v13  ;;  %v10177_v5 = vld [vmem:[#allocation4 + $0x1d1] sm:$0xff] }
 0x8e2   :  { %v13933_v59 = vpop.f32.mrb[211].mxu1  ;;  %14343 = vmatprep.subr.bf16.mxu1 %v15104_v26 }
 0x8e3   :  { %v18954_v40 = vadd.f32 %v13933_v59, %v13932_v36 }
 0x8e4   :  { %11197 = vmatmul.mubr.bf16.gmra.mrb[60].mxu1 %v10117_v28  ;;  %v10185_v28 = vpack.c.bf16 %v10177_v5, %v18934_v46 }
 0x8e5   :  { %11204 = vmatprep.mubr.bf16.mxu1 %v18803_v14  ;;  %14344 = vmatpush3.bf16.msra.mxu1 %v15104_v26 }
 0x8e6   :  { %14345 = vmatprep.subr.bf16.mxu1 %v15105_v0 }
 0x8e7   :  { %v13935_v9 = vpop.f32.mrb[212].mxu1 }
 0x8e8   :  { %v13936_v45 = vpop.f32.mrb[213].mxu1 }
 0x8e9   :  { %v18957_v61 = vadd.f32 %v13936_v45, %v13935_v9  ;;  %v13938_v8 = vpop.f32.mrb[214].mxu1  ;;  %14346 = vmatpush3.bf16.msra.mxu1 %v15105_v0 }
 0x8ea   :  { %v13939_v41 = vpop.f32.mrb[215].mxu1 }
 0x8eb   :  { %v18959_v23 = vadd.f32 %v13939_v41, %v13938_v8 }
 0x8ec   :  { %11205 = vmatmul.mubr.bf16.gmra.mrb[64].mxu1 %v18812_v37 }
 0x8ed   :  { %11212 = vmatprep.mubr.bf16.mxu1 %v18816_v38  ;;  %v10153_v38 = vpack.c.bf16 %v18695_v53, %v18940_v17 }
 0x8ef   :  { %v13941_v27 = vpop.f32.mrb[216].mxu1 }
 0x8f0   :  { %v13942_v43 = vpop.f32.mrb[217].mxu1 }
 0x8f1   :  { %v18963_v34 = vadd.f32 %v13942_v43, %v13941_v27  ;;  %v13944_v14 = vpop.f32.mrb[218].mxu1 }
 0x8f2   :  { %v13945_v44 = vpop.f32.mrb[219].mxu1 }
 0x8f3   :  { %v18965_v16 = vadd.f32 %v13945_v44, %v13944_v14 }
 0x8f4   :  { %11213 = vmatmul.mubr.bf16.gmra.mrb[68].mxu1 %v18826_v57 }
 0x8f5   :  { %11220 = vmatprep.mubr.bf16.mxu1 %v18832_v35 }
 0x8f7   :  { %v13947_v22 = vpop.f32.mrb[220].mxu1 }
 0x8f8   :  { %v13948_v10 = vpop.f32.mrb[221].mxu1 }
 0x8f9   :  { %v18969_v12 = vadd.f32 %v13948_v10, %v13947_v22  ;;  %v13950_v11 = vpop.f32.mrb[222].mxu1 }
 0x8fa   :  { %v13951_v37 = vpop.f32.mrb[223].mxu1 }
 0x8fb   :  { %v18971_v18 = vadd.f32 %v13951_v37, %v13950_v11 }
 0x8fc   :  { %11221 = vmatmul.mubr.bf16.gmra.mrb[72].mxu1 %v18842_v52 }
 0x8fd   :  { %11228 = vmatprep.mubr.bf16.mxu1 %v10153_v38 }
 0x8ff   :  { %v13953_v54 = vpop.f32.mrb[224].mxu1 }
 0x900   :  { %v13954_v30 = vpop.f32.mrb[225].mxu1 }
 0x901   :  { %v18976_v57 = vadd.f32 %v13954_v30, %v13953_v54  ;;  %v13956_v35 = vpop.f32.mrb[226].mxu1 }
 0x902   :  { %v13957_v58 = vpop.f32.mrb[227].mxu1 }
 0x903   :  { %v18979_v56 = vadd.f32 %v13957_v58, %v13956_v35 }
 0x904   :  { %11229 = vmatmul.mubr.bf16.gmra.mrb[76].mxu1 %v10121_v31 }
 0x905   :  { %14347 = vmatprep.mubr.bf16.mxu1 %v18858_v49  ;;  %v10181_v49 = vpack.c.bf16 %v10169_v60, %v18917_v25  ;;  %v19003_v25 = vld [vmem:[%s19525_s7] ss:$0 sm:$0xff] }
 0x906   :  { %v10884_v51 = vadd.f32 %v18951_v24, %v19003_v25  ;;  %v10892_v41 = vadd.f32 %v18957_v61, %v19003_v25  ;;  %v10895_v46 = vadd.f32 %v18959_v23, %v19003_v25  ;;  %v10900_v11 = vadd.f32 %v18963_v34, %v19003_v25 }
 0x907   :  { %v13959_v21 = vpop.f32.mrb[228].mxu1  ;;  %v10903_v61 = vadd.f32 %v18965_v16, %v19003_v25  ;;  %v10908_v31 = vadd.f32 %v18969_v12, %v19003_v25  ;;  %v10911_v34 = vadd.f32 %v18971_v18, %v19003_v25  ;;  %v10919_v12 = vadd.f32 %v18979_v56, %v19003_v25 }
 0x908   :  { %v13960_v15 = vpop.f32.mrb[229].mxu1 }
 0x909   :  { %v18982_v53 = vadd.f32 %v13960_v15, %v13959_v21  ;;  %v13962_v52 = vpop.f32.mrb[230].mxu1 }
 0x90a   :  { %v13963_v6 = vpop.f32.mrb[231].mxu1 }
 0x90b   :  { %v18984_v32 = vadd.f32 %v13963_v6, %v13962_v52  ;;  %v10924_v5 = vadd.f32 %v18982_v53, %v19003_v25 }
 0x90c   :  { %14348 = vmatmul.mubr.bf16.vlgmr.msra.gmra.mrb[80].mxu1 %v18868_v29 }
 0x90d   :  { %14351 = vmatprep.mubr.bf16.mxu1 %v18876_v7 }
 0x90f   :  { %v13965_v33 = vpop.f32.mrb[232].mxu1 }
 0x910   :  { %v13966_v19 = vpop.f32.mrb[233].mxu1 }
 0x911   :  { %v18988_v17 = vadd.f32 %v13966_v19, %v13965_v33  ;;  %v13968_v62 = vpop.f32.mrb[234].mxu1 }
 0x912   :  { %v13969_v42 = vpop.f32.mrb[235].mxu1 }
 0x913   :  { %v18991_v50 = vadd.f32 %v13969_v42, %v13968_v62  ;;  %v10916_v62 = vadd.f32 %v18976_v57, %v19003_v25  ;;  %v10927_v57 = vadd.f32 %v18984_v32, %v19003_v25 }
 0x914   :  { %14352 = vmatmul.mubr.bf16.gmra.mrb[84].mxu1 %v10181_v49 }
 0x915   :  { %14355 = vmatprep.mubr.bf16.mxu1 %v18889_v55  ;;  %v10935_v53 = vadd.f32 %v18991_v50, %v19003_v25 }
 0x917   :  { %v13971_v47 = vpop.f32.mrb[236].mxu1 }
 0x918   :  { %v13972_v48 = vpop.f32.mrb[237].mxu1 }
 0x919   :  { %v18994_v13 = vadd.f32 %v13972_v48, %v13971_v47  ;;  %v13974_v29 = vpop.f32.mrb[238].mxu1 }
 0x91a   :  { %v13975_v7 = vpop.f32.mrb[239].mxu1 }
 0x91b   :  { %v18996_v4 = vadd.f32 %v13975_v7, %v13974_v29 }
 0x91c   :  { %14356 = vmatmul.mubr.bf16.gmra.mrb[88].mxu1 %v18899_v39  ;;  %v10887_v39 = vadd.f32 %v18954_v40, %v19003_v25 }
 0x91d   :  { %14359 = vmatprep.mubr.bf16.mxu1 %v18904_v63 }
 0x91f   :  { %v13993_v26 = vpop.f32.mrb[240].mxu1 }
 0x920   :  { %v13994_v55 = vpop.f32.mrb[241].mxu1 }
 0x921   :  { %v13995_v20 = vadd.f32 %v13994_v55, %v13993_v26  ;;  %v13996_v36 = vpop.f32.mrb[242].mxu1 }
 0x922   :  { %v13997_v59 = vpop.f32.mrb[243].mxu1 }
 0x923   :  { %v19010_v63 = vadd.f32 %v13995_v20, %v10884_v51  ;;  %v13998_v0 = vadd.f32 %v13997_v59, %v13996_v36 }
 0x924   :  { %14360 = vmatmul.mubr.bf16.gmra.mrb[92].mxu1 %v10185_v28 }
 0x925   :  { %v19012_v9 = vadd.f32 %v13998_v0, %v10887_v39  ;;  %v10932_v0 = vadd.f32 %v18988_v17, %v19003_v25  ;;  %v10943_v17 = vadd.f32 %v18996_v4, %v19003_v25 }
 0x927   :  { %v13999_v45 = vpop.f32.mrb[244].mxu1 }
 0x928   :  { %v14000_v8 = vpop.f32.mrb[245].mxu1 }
 0x929   :  { %v14001_v24 = vadd.f32 %v14000_v8, %v13999_v45  ;;  %v14002_v27 = vpop.f32.mrb[246].mxu1 }
 0x92a   :  { %v14003_v43 = vpop.f32.mrb[247].mxu1 }
 0x92b   :  { %v19018_v14 = vadd.f32 %v14001_v24, %v10892_v41  ;;  %v14004_v40 = vadd.f32 %v14003_v43, %v14002_v27 }
 0x92d   :  { %v19020_v44 = vadd.f32 %v14004_v40, %v10895_v46  ;;  %v10940_v40 = vadd.f32 %v18994_v13, %v19003_v25 }
 0x92f   :  { %v14005_v22 = vpop.f32.mrb[248].mxu1 }
 0x930   :  { %v14006_v10 = vpop.f32.mrb[249].mxu1 }
 0x931   :  { %v14007_v37 = vadd.f32 %v14006_v10, %v14005_v22  ;;  %v14008_v38 = vpop.f32.mrb[250].mxu1 }
 0x932   :  { %v14009_v54 = vpop.f32.mrb[251].mxu1 }
 0x933   :  { %v19026_v2 = vadd.f32 %v14007_v37, %v10900_v11  ;;  %v14010_v30 = vadd.f32 %v14009_v54, %v14008_v38 }
 0x935   :  { %v19028_v23 = vadd.f32 %v14010_v30, %v10903_v61 }
 0x937   :  { %v14011_v35 = vpop.f32.mrb[252].mxu1 }
 0x938   :  { %v14012_v58 = vpop.f32.mrb[253].mxu1 }
 0x939   :  { %v14013_v21 = vadd.f32 %v14012_v58, %v14011_v35  ;;  %v14014_v15 = vpop.f32.mrb[254].mxu1 }
 0x93a   :  { %v14015_v52 = vpop.f32.mrb[255].mxu1 }
 0x93b   :  { %v19034_v6 = vadd.f32 %v14013_v21, %v10908_v31  ;;  %v14016_v33 = vadd.f32 %v14015_v52, %v14014_v15 }
 0x93d   :  { %v19036_v16 = vadd.f32 %v14016_v33, %v10911_v34 }
 0x93f   :  { %v14017_v60 = vpop.f32.mrb[0].mxu1 }
 0x940   :  { %v14018_v19 = vpop.f32.mrb[1].mxu1 }
 0x941   :  { %v14019_v42 = vadd.f32 %v14018_v19, %v14017_v60  ;;  %v14020_v49 = vpop.f32.mrb[2].mxu1 }
 0x942   :  { %v14021_v47 = vpop.f32.mrb[3].mxu1 }
 0x943   :  { %v19042_v48 = vadd.f32 %v14019_v42, %v10916_v62  ;;  %v14022_v29 = vadd.f32 %v14021_v47, %v14020_v49 }
 0x945   :  { %v19044_v18 = vadd.f32 %v14022_v29, %v10919_v12 }
 0x947   :  { %v14023_v7 = vpop.f32.mrb[4].mxu1 }
 0x948   :  { %v14024_v26 = vpop.f32.mrb[5].mxu1 }
 0x949   :  { %v14025_v55 = vadd.f32 %v14024_v26, %v14023_v7  ;;  %v14026_v51 = vpop.f32.mrb[6].mxu1 }
 0x94a   :  { %v14027_v20 = vpop.f32.mrb[7].mxu1 }
 0x94b   :  { %v19050_v36 = vadd.f32 %v14025_v55, %v10924_v5  ;;  %v14028_v59 = vadd.f32 %v14027_v20, %v14026_v51 }
 0x94d   :  { %v19052_v56 = vadd.f32 %v14028_v59, %v10927_v57 }
 0x94f   :  { %v14029_v28 = vpop.f32.mrb[8].mxu1 }
 0x950   :  { %v14030_v39 = vpop.f32.mrb[9].mxu1 }
 0x951   :  { %v14031_v45 = vadd.f32 %v14030_v39, %v14029_v28  ;;  %v14032_v8 = vpop.f32.mrb[10].mxu1 }
 0x952   :  { %v14033_v41 = vpop.f32.mrb[11].mxu1 }
 0x953   :  { %v19058_v24 = vadd.f32 %v14031_v45, %v10932_v0  ;;  %v14034_v27 = vadd.f32 %v14033_v41, %v14032_v8 }
 0x955   :  { %v19060_v32 = vadd.f32 %v14034_v27, %v10935_v53 }
 0x957   :  { %v14035_v43 = vpop.f32.mrb[12].mxu1 }
 0x958   :  { %v14036_v46 = vpop.f32.mrb[13].mxu1 }
 0x959   :  { %v14037_v22 = vadd.f32 %v14036_v46, %v14035_v43  ;;  %v14038_v10 = vpop.f32.mrb[14].mxu1 }
 0x95a   :  { %v14039_v11 = vpop.f32.mrb[15].mxu1 }
 0x95b   :  { %v19066_v37 = vadd.f32 %v14037_v22, %v10940_v40  ;;  %v14040_v38 = vadd.f32 %v14039_v11, %v14038_v10 }
 0x95d   :  { %v19068_v50 = vadd.f32 %v14040_v38, %v10943_v17 }
 0x95f   :  { %v14057_v54 = vpop.f32.mrb[16].mxu1 }
 0x960   :  { %v14058_v61 = vpop.f32.mrb[17].mxu1 }
 0x961   :  { %v14059_v30 = vadd.f32 %v14058_v61, %v14057_v54  ;;  %v14060_v35 = vpop.f32.mrb[18].mxu1 }
 0x962   :  { %v14061_v58 = vpop.f32.mrb[19].mxu1 }
 0x963   :  { %v19071_v31 = vadd.f32 %v14059_v30, %v19010_v63  ;;  %v14062_v13 = vadd.f32 %v14061_v58, %v14060_v35 }
 0x965   :  { %v19074_v21 = vadd.f32 %v14062_v13, %v19012_v9 }
 0x967   :  { %v14063_v15 = vpop.f32.mrb[20].mxu1 }
 0x968   :  { %v14064_v52 = vpop.f32.mrb[21].mxu1 }
 0x969   :  { %v14065_v4 = vadd.f32 %v14064_v52, %v14063_v15  ;;  %v14066_v25 = vpop.f32.mrb[22].mxu1 }
 0x96a   :  { %v14067_v34 = vpop.f32.mrb[23].mxu1 }
 0x96b   :  { %v19077_v33 = vadd.f32 %v14065_v4, %v19018_v14  ;;  %v14068_v60 = vadd.f32 %v14067_v34, %v14066_v25 }
 0x96d   :  { %v19080_v19 = vadd.f32 %v14068_v60, %v19020_v44 }
 0x96f   :  { %v14069_v62 = vpop.f32.mrb[24].mxu1 }
 0x970   :  { %v14070_v42 = vpop.f32.mrb[25].mxu1 }
 0x971   :  { %v14071_v63 = vadd.f32 %v14070_v42, %v14069_v62  ;;  %v14072_v49 = vpop.f32.mrb[26].mxu1 }
 0x972   :  { %v14073_v47 = vpop.f32.mrb[27].mxu1 }
 0x973   :  { %v19083_v9 = vadd.f32 %v14071_v63, %v19026_v2  ;;  %v14074_v12 = vadd.f32 %v14073_v47, %v14072_v49 }
 0x975   :  { %v19086_v29 = vadd.f32 %v14074_v12, %v19028_v23 }
 0x977   :  { %v14075_v7 = vpop.f32.mrb[28].mxu1 }
 0x978   :  { %v14076_v26 = vpop.f32.mrb[29].mxu1 }
 0x979   :  { %v14077_v14 = vadd.f32 %v14076_v26, %v14075_v7  ;;  %v14078_v5 = vpop.f32.mrb[30].mxu1 }
 0x97a   :  { %v14079_v55 = vpop.f32.mrb[31].mxu1 }
 0x97b   :  { %v19089_v44 = vadd.f32 %v14077_v14, %v19034_v6  ;;  %v14080_v51 = vadd.f32 %v14079_v55, %v14078_v5 }
 0x97d   :  { %v19092_v20 = vadd.f32 %v14080_v51, %v19036_v16 }
 0x97f   :  { %v14081_v57 = vpop.f32.mrb[32].mxu1 }
 0x980   :  { %v14082_v59 = vpop.f32.mrb[33].mxu1 }
 0x981   :  { %v14083_v2 = vadd.f32 %v14082_v59, %v14081_v57  ;;  %v14084_v28 = vpop.f32.mrb[34].mxu1 }
 0x982   :  { %v14085_v39 = vpop.f32.mrb[35].mxu1 }
 0x983   :  { %v19095_v23 = vadd.f32 %v14083_v2, %v19042_v48  ;;  %v14086_v0 = vadd.f32 %v14085_v39, %v14084_v28 }
 0x985   :  { %v19098_v45 = vadd.f32 %v14086_v0, %v19044_v18 }
 0x987   :  { %v14087_v8 = vpop.f32.mrb[36].mxu1 }
 0x988   :  { %v14088_v41 = vpop.f32.mrb[37].mxu1 }
 0x989   :  { %v14089_v6 = vadd.f32 %v14088_v41, %v14087_v8  ;;  %v14090_v53 = vpop.f32.mrb[38].mxu1 }
 0x98a   :  { %v14091_v27 = vpop.f32.mrb[39].mxu1 }
 0x98b   :  { %v19101_v16 = vadd.f32 %v14089_v6, %v19050_v36  ;;  %v14092_v43 = vadd.f32 %v14091_v27, %v14090_v53 }
 0x98d   :  { %v19104_v46 = vadd.f32 %v14092_v43, %v19052_v56 }
 0x98f   :  { %v14093_v40 = vpop.f32.mrb[40].mxu1 }
 0x990   :  { %v14094_v22 = vpop.f32.mrb[41].mxu1 }
 0x991   :  { %v14095_v48 = vadd.f32 %v14094_v22, %v14093_v40  ;;  %v14096_v10 = vpop.f32.mrb[42].mxu1 }
 0x992   :  { %v14097_v11 = vpop.f32.mrb[43].mxu1 }
 0x993   :  { %v19107_v18 = vadd.f32 %v14095_v48, %v19058_v24  ;;  %v14098_v17 = vadd.f32 %v14097_v11, %v14096_v10 }
 0x995   :  { %v19110_v38 = vadd.f32 %v14098_v17, %v19060_v32 }
 0x997   :  { %v14099_v54 = vpop.f32.mrb[44].mxu1 }
 0x998   :  { %v14100_v61 = vpop.f32.mrb[45].mxu1 }
 0x999   :  { %v14101_v36 = vadd.f32 %v14100_v61, %v14099_v54  ;;  %v14102_v30 = vpop.f32.mrb[46].mxu1 }
 0x99a   :  { %v14103_v35 = vpop.f32.mrb[47].mxu1 }
 0x99b   :  { %v19113_v56 = vadd.f32 %v14101_v36, %v19066_v37  ;;  %v14104_v58 = vadd.f32 %v14103_v35, %v14102_v30 }
 0x99d   :  { %v19116_v13 = vadd.f32 %v14104_v58, %v19068_v50 }
 0x99f   :  { %v14121_v15 = vpop.f32.mrb[48].mxu1 }
 0x9a0   :  { %v14122_v52 = vpop.f32.mrb[49].mxu1 }
 0x9a1   :  { %v14123_v24 = vadd.f32 %v14122_v52, %v14121_v15  ;;  %v14124_v4 = vpop.f32.mrb[50].mxu1 }
 0x9a2   :  { %v14125_v25 = vpop.f32.mrb[51].mxu1 }
 0x9a3   :  { %v14126_v34 = vadd.f32 %v14125_v25, %v14124_v4  ;;  %v11175_v32 = vadd.f32 %v14123_v24, %v19071_v31 }
 0x9a5   :  { %v19120_v60 = vadd.f32 %v14126_v34, %v19074_v21 }
 0x9a7   :  { %v14127_v62 = vpop.f32.mrb[52].mxu1 }
 0x9a8   :  { %v14128_v42 = vpop.f32.mrb[53].mxu1 }
 0x9a9   :  { %v14129_v63 = vadd.f32 %v14128_v42, %v14127_v62  ;;  %v14130_v37 = vpop.f32.mrb[54].mxu1 }
 0x9aa   :  { %v14131_v49 = vpop.f32.mrb[55].mxu1 }
 0x9ab   :  { %v14132_v47 = vadd.f32 %v14131_v49, %v14130_v37  ;;  %v11183_v50 = vadd.f32 %v14129_v63, %v19077_v33 }
 0x9ad   :  { %v11186_v12 = vadd.f32 %v14132_v47, %v19080_v19 }
 0x9af   :  { %v14133_v7 = vpop.f32.mrb[56].mxu1 }
 0x9b0   :  { %v14134_v26 = vpop.f32.mrb[57].mxu1 }
 0x9b1   :  { %v14135_v14 = vadd.f32 %v14134_v26, %v14133_v7  ;;  %v14136_v5 = vpop.f32.mrb[58].mxu1 }
 0x9b2   :  { %v14137_v55 = vpop.f32.mrb[59].mxu1 }
 0x9b3   :  { %v14138_v51 = vadd.f32 %v14137_v55, %v14136_v5  ;;  %v11191_v31 = vadd.f32 %v14135_v14, %v19083_v9 }
 0x9b5   :  { %v19126_v21 = vadd.f32 %v14138_v51, %v19086_v29 }
 0x9b7   :  { %v14139_v57 = vpop.f32.mrb[60].mxu1 }
 0x9b8   :  { %v14140_v59 = vpop.f32.mrb[61].mxu1 }
 0x9b9   :  { %v14141_v2 = vadd.f32 %v14140_v59, %v14139_v57  ;;  %v14142_v28 = vpop.f32.mrb[62].mxu1 }
 0x9ba   :  { %v14143_v39 = vpop.f32.mrb[63].mxu1 }
 0x9bb   :  { %v14144_v0 = vadd.f32 %v14143_v39, %v14142_v28  ;;  %v11199_v33 = vadd.f32 %v14141_v2, %v19089_v44 }
 0x9bd   :  { %v11202_v19 = vadd.f32 %v14144_v0, %v19092_v20 }
 0x9bf   :  { %v14145_v8 = vpop.f32.mrb[64].mxu1 }
 0x9c0   :  { %v14146_v41 = vpop.f32.mrb[65].mxu1 }
 0x9c1   :  { %v14147_v6 = vadd.f32 %v14146_v41, %v14145_v8  ;;  %v14148_v53 = vpop.f32.mrb[66].mxu1 }
 0x9c2   :  { %v14149_v27 = vpop.f32.mrb[67].mxu1 }
 0x9c3   :  { %v14150_v43 = vadd.f32 %v14149_v27, %v14148_v53  ;;  %v11207_v9 = vadd.f32 %v14147_v6, %v19095_v23 }
 0x9c5   :  { %v19132_v29 = vadd.f32 %v14150_v43, %v19098_v45 }
 0x9c7   :  { %v14151_v40 = vpop.f32.mrb[68].mxu1 }
 0x9c8   :  { %v14152_v22 = vpop.f32.mrb[69].mxu1 }
 0x9c9   :  { %v14153_v48 = vadd.f32 %v14152_v22, %v14151_v40  ;;  %v14154_v10 = vpop.f32.mrb[70].mxu1 }
 0x9ca   :  { %v14155_v11 = vpop.f32.mrb[71].mxu1 }
 0x9cb   :  { %v14156_v17 = vadd.f32 %v14155_v11, %v14154_v10  ;;  %v11215_v44 = vadd.f32 %v14153_v48, %v19101_v16 }
 0x9cd   :  { %v11218_v20 = vadd.f32 %v14156_v17, %v19104_v46 }
 0x9cf   :  { %v14157_v54 = vpop.f32.mrb[72].mxu1 }
 0x9d0   :  { %v14158_v61 = vpop.f32.mrb[73].mxu1 }
 0x9d1   :  { %v14159_v36 = vadd.f32 %v14158_v61, %v14157_v54  ;;  %v14160_v30 = vpop.f32.mrb[74].mxu1 }
 0x9d2   :  { %v14161_v35 = vpop.f32.mrb[75].mxu1 }
 0x9d3   :  { %v14162_v58 = vadd.f32 %v14161_v35, %v14160_v30  ;;  %v19137_v23 = vadd.f32 %v14159_v36, %v19107_v18 }
 0x9d5   :  { %v19140_v45 = vadd.f32 %v14162_v58, %v19110_v38 }
 0x9d7   :  { %v14163_v15 = vpop.f32.mrb[76].mxu1 }
 0x9d8   :  { %v14164_v52 = vpop.f32.mrb[77].mxu1 }
 0x9d9   :  { %v14165_v24 = vadd.f32 %v14164_v52, %v14163_v15  ;;  %v14166_v4 = vpop.f32.mrb[78].mxu1 }
 0x9da   :  { %v14167_v25 = vpop.f32.mrb[79].mxu1 }
 0x9db   :  { %v14168_v16 = vadd.f32 %v14167_v25, %v14166_v4  ;;  %v11231_v46 = vadd.f32 %v14165_v24, %v19113_v56 }
 0x9dd   :  { %v19144_v34 = vadd.f32 %v14168_v16, %v19116_v13 }
 0x9df   :  { %v14349_v62 = vpop.f32.mrb[80].mxu1 }
 0x9e0   :  { %v11280_v42 = vadd.f32 %v14349_v62, %v11183_v50  ;;  %v11271_v63 = vpop.f32.mrb[81].mxu1 }
 0x9e1   :  { %v11272_v37 = vadd.f32 %v11271_v63, %v11175_v32  ;;  %v14350_v18 = vpop.f32.mrb[82].mxu1 }
 0x9e2   :  { %v11283_v49 = vadd.f32 %v14350_v18, %v11186_v12  ;;  %v11274_v47 = vpop.f32.mrb[83].mxu1  ;;  %v11336_v7 = vmax.f32 %v11280_v42, 0.0 }
 0x9e3   :  { %v11275_v38 = vadd.f32 %v11274_v47, %v19120_v60  ;;  %v11334_v14 = vmax.f32 %v11272_v37, 0.0 }
 0x9e4   :  { %v11337_v26 = vmax.f32 %v11283_v49, 0.0 }
 0x9e5   :  { %v11335_v5 = vmax.f32 %v11275_v38, 0.0 }
 0x9e6   :  { %v11351_v55 = vmax.f32 %v11336_v7, %v11337_v26 }
 0x9e7   :  { %v11350_v51 = vmax.f32 %v11334_v14, %v11335_v5  ;;  %v14353_v57 = vpop.f32.mrb[84].mxu1 }
 0x9e8   :  { %11359 = vst [vmem:[#allocation7 + $0x8] sm:$0xff] %v11351_v55  ;;  %v11296_v56 = vadd.f32 %v14353_v57, %v11199_v33  ;;  %v11287_v13 = vpop.f32.mrb[85].mxu1 }
 0x9e9   :  { %11358 = vst [vmem:[#allocation7] sm:$0xff] %v11350_v51  ;;  %v11288_v59 = vadd.f32 %v11287_v13, %v11191_v31  ;;  %v14354_v50 = vpop.f32.mrb[86].mxu1  ;;  %v15198_v31 = vmov 1983009808  }
 0x9ea   :  { %v11299_v2 = vadd.f32 %v14354_v50, %v11202_v19  ;;  %v11290_v32 = vpop.f32.mrb[87].mxu1  ;;  %v11340_v28 = vmax.f32 %v11296_v56, 0.0  ;;  %v11375_v22 = vunpack.c.l.s4 %v15198_v31  ;;  %v11377_v19 = vlaneseq }
 0x9eb   :  { %v11291_v12 = vadd.f32 %v11290_v32, %v19126_v21  ;;  %v11338_v60 = vmax.f32 %v11288_v59, 0.0 }
 0x9ec   :  { %v11341_v39 = vmax.f32 %v11299_v2, 0.0  ;;  %v11376_v11 = vunpack.c.0.s8 %v11375_v22  ;;  %v19152_v17 = vshrl.u32 %v11377_v19, 7 }
 0x9ed   :  { %v11339_v0 = vmax.f32 %v11291_v12, 0.0 }
 0x9ee   :  { %v11353_v8 = vmax.f32 %v11340_v28, %v11341_v39 }
 0x9ef   :  { %v11352_v41 = vmax.f32 %v11338_v60, %v11339_v0  ;;  %v14357_v6 = vpop.f32.mrb[88].mxu1  ;;  %v19148_v48 = vld [vmem:[#allocation7 + $0x8] sm:$0x1]  ;;  %v19150_v21 = vld [vmem:[#allocation7 + $0x9] sm:$0x1] }
 0x9f0   :  { %11361 = vst [vmem:[#allocation7 + $0x18] sm:$0xff] %v11353_v8  ;;  %v11312_v53 = vadd.f32 %v14357_v6, %v11215_v44  ;;  %v11303_v27 = vpop.f32.mrb[89].mxu1  ;;  %v19154_v54 = vld [vmem:[#allocation7 + $0xa] sm:$0x1]  ;;  %v19156_v61 = vld [vmem:[#allocation7 + $0xb] sm:$0x1] }
 0x9f1   :  { %11360 = vst [vmem:[#allocation7 + $0x10] sm:$0xff] %v11352_v41  ;;  %v11304_v33 = vadd.f32 %v11303_v27, %v11207_v9  ;;  %v14358_v43 = vpop.f32.mrb[90].mxu1  ;;  %v11559_v30 = vld [vmem:[#allocation7 + $0xc] sm:$0x1]  ;;  %v19158_v35 = vld [vmem:[#allocation7 + $0xe] sm:$0x1] }
 0x9f2   :  { %v11315_v40 = vadd.f32 %v14358_v43, %v11218_v20  ;;  %v11306_v10 = vpop.f32.mrb[91].mxu1  ;;  %v11344_v44 = vmax.f32 %v11312_v53, 0.0  ;;  %v11561_v20 = vld [vmem:[#allocation7 + $0xd] sm:$0x1]  ;;  %v19160_v58 = vld [vmem:[#allocation7 + $0xf] sm:$0x1] }
 0x9f3   :  { %v11307_v15 = vadd.f32 %v11306_v10, %v19132_v29  ;;  %v19163_v4 = vld [vmem:[#allocation7] sm:$0x1]  ;;  %v11368_v25 = vld [vmem:[#allocation7 + $0x1] sm:$0x1]  ;;  %v11403_v16 = vld [vmem:[#allocation7 + $0x2] sm:$0x1]  ;;  %v19168_v29 = vsub.s32 %v11376_v11, %v19152_v17  ;;  %v11563_v2 = vmax.f32 %v11559_v30, %v11561_v20  ;;  %v11594_v32 = vmax.f32 %v19158_v35, %v19160_v58 }
 0x9f4   :  { %v11345_v36 = vmax.f32 %v11315_v40, 0.0  ;;  %v11405_v62 = vld [vmem:[#allocation7 + $0x3] sm:$0x1]  ;;  %v11434_v42 = vld [vmem:[#allocation7 + $0x4] sm:$0x1]  ;;  %v11342_v38 = vmax.f32 %v11304_v33, 0.0  ;;  %v11370_v0 = vmax.f32 %v19163_v4, %v11368_v25 }
 0x9f5   :  { %v11436_v63 = vld [vmem:[#allocation7 + $0x5] sm:$0x1]  ;;  %v11465_v47 = vld [vmem:[#allocation7 + $0x6] sm:$0x1]  ;;  %v11343_v7 = vmax.f32 %v11307_v15, 0.0  ;;  %v11407_v8 = vmax.f32 %v11403_v16, %v11405_v62  ;;  %v11573_v11 = vrot.slane %v11563_v2, %v19168_v29 }
 0x9f6   :  { %v11355_v37 = vmax.f32 %v11344_v44, %v11345_v36  ;;  %v11467_v5 = vld [vmem:[#allocation7 + $0x7] sm:$0x1]  ;;  %v19195_v30 = vrot.slane %v11370_v0, %v19168_v29 }
 0x9f7   :  { %v14361_v9 = vpop.f32.mrb[92].mxu1  ;;  %v11747_v55 = vld [vmem:[#allocation7 + $0x18] sm:$0x1]  ;;  %v11749_v51 = vld [vmem:[#allocation7 + $0x19] sm:$0x1]  ;;  %v11354_v59 = vmax.f32 %v11342_v38, %v11343_v7  ;;  %v11469_v27 = vmax.f32 %v11465_v47, %v11467_v5  ;;  %v19198_v20 = vrot.slane %v11407_v8, %v19168_v29 }
 0x9f8   :  { %v11328_v52 = vadd.f32 %v14361_v9, %v11231_v46  ;;  %v11319_v24 = vpop.f32.mrb[93].mxu1  ;;  %v11501_v46 = vmax.f32 %v19148_v48, %v19150_v21  ;;  %11363 = vst [vmem:[#allocation7 + $0x28] sm:$0xff] %v11355_v37  ;;  %v11778_v56 = vld [vmem:[#allocation7 + $0x1a] sm:$0x1]  ;;  %v11780_v13 = vld [vmem:[#allocation7 + $0x1b] sm:$0x1]  ;;  %v11751_v33 = vmax.f32 %v11747_v55, %v11749_v51  ;;  %v11604_v9 = vrot.slane %v11594_v32, %v19168_v29 }
 0x9f9   :  { %v11320_v18 = vadd.f32 %v11319_v24, %v19137_v23  ;;  %v14362_v49 = vpop.f32.mrb[94].mxu1  ;;  %v11532_v23 = vmax.f32 %v19154_v54, %v19156_v61  ;;  %v11809_v12 = vld [vmem:[#allocation7 + $0x1c] sm:$0x1]  ;;  %v11811_v28 = vld [vmem:[#allocation7 + $0x1d] sm:$0x1]  ;;  %11362 = vst [vmem:[#allocation7 + $0x20] sm:$0xff] %v11354_v59  ;;  %v11782_v43 = vmax.f32 %v11778_v56, %v11780_v13  ;;  %v19204_v24 = vrot.slane %v11469_v27, %v19168_v29 }
 0x9fa   :  { %v11331_v26 = vadd.f32 %v14362_v49, %v19144_v34  ;;  %v11322_v14 = vpop.f32.mrb[95].mxu1  ;;  %v11348_v34 = vmax.f32 %v11328_v52, 0.0  ;;  %v11840_v41 = vld [vmem:[#allocation7 + $0x1e] sm:$0x1]  ;;  %v11842_v6 = vld [vmem:[#allocation7 + $0x1f] sm:$0x1]  ;;  %v11813_v31 = vmax.f32 %v11809_v12, %v11811_v28  ;;  %v11511_v21 = vrot.slane %v11501_v46, %v19168_v29 }
 0x9fb   :  { %v11323_v57 = vadd.f32 %v11322_v14, %v19140_v45  ;;  %v11346_v39 = vmax.f32 %v11320_v18, 0.0  ;;  %v11438_v45 = vmax.f32 %v11434_v42, %v11436_v63  ;;  %v19178_v22 = vld [vmem:[#allocation7 + $0x10] sm:$0x1]  ;;  %v19180_v19 = vld [vmem:[#allocation7 + $0x11] sm:$0x1]  ;;  %v11542_v10 = vrot.slane %v11532_v23, %v19168_v29 }
 0x9fc   :  { %v11349_v50 = vmax.f32 %v11331_v26, 0.0  ;;  %v19182_v48 = vld [vmem:[#allocation7 + $0x12] sm:$0x1]  ;;  %v11844_v54 = vmax.f32 %v11840_v41, %v11842_v6  ;;  %v19187_v61 = vld [vmem:[#allocation7 + $0x13] sm:$0x1]  ;;  %v19207_v4 = vrot.slane %v11751_v33, %v19168_v29  ;;  %v19210_v25 = vrot.slane %v11782_v43, %v19168_v29 }
 0x9fd   :  { %v11347_v60 = vmax.f32 %v11323_v57, 0.0  ;;  %v19189_v44 = vld [vmem:[#allocation7 + $0x14] sm:$0x1]  ;;  %v19191_v36 = vld [vmem:[#allocation7 + $0x15] sm:$0x1]  ;;  %v19201_v35 = vrot.slane %v11438_v45, %v19168_v29  ;;  %v19213_v37 = vrot.slane %v11813_v31, %v19168_v29  ;;  %v11626_v18 = vmax.f32 %v19178_v22, %v19180_v19 }
 0x9fe   :  { %v11357_v53 = vmax.f32 %v11348_v34, %v11349_v50  ;;  %v19218_v26 = vrot.slane %v11844_v54, %v19168_v29  ;;  %v11657_v14 = vmax.f32 %v19182_v48, %v19187_v61  ;;  %v11688_v23 = vmax.f32 %v19189_v44, %v19191_v36 }
 0x9ff   :  { %v11356_v40 = vmax.f32 %v11346_v39, %v11347_v60  ;;  %v11498_v58 = vld [vmem:[#allocation7 + $0x28] sm:$0x1]  ;;  %v11500_v15 = vld [vmem:[#allocation7 + $0x29] sm:$0x1]  ;;  %v11529_v52 = vld [vmem:[#allocation7 + $0x2a] sm:$0x1] }
 0xa00   :  { %11365 = vst [vmem:[#allocation7 + $0x38] sm:$0xff] %v11357_v53  ;;  %v11502_v16 = vmax.f32 %v11498_v58, %v11500_v15  ;;  %v11531_v62 = vld [vmem:[#allocation7 + $0x2b] sm:$0x1]  ;;  %v11560_v42 = vld [vmem:[#allocation7 + $0x2c] sm:$0x1] }
 0xa01   :  { %11364 = vst [vmem:[#allocation7 + $0x30] sm:$0xff] %v11356_v40  ;;  %v11562_v63 = vld [vmem:[#allocation7 + $0x2d] sm:$0x1]  ;;  %v11533_v49 = vmax.f32 %v11529_v52, %v11531_v62  ;;  %v11591_v38 = vld [vmem:[#allocation7 + $0x2e] sm:$0x1] }
 0xa02   :  { %v11564_v47 = vmax.f32 %v11560_v42, %v11562_v63  ;;  %v11593_v7 = vld [vmem:[#allocation7 + $0x2f] sm:$0x1]  ;;  %v11518_v46 = vrot.slane %v11502_v16, %v19168_v29  ;;  %v11367_v55 = vld [vmem:[#allocation7 + $0x20] sm:$0x1]  ;;  %v11369_v51 = vld [vmem:[#allocation7 + $0x21] sm:$0x1] }
 0xa03   :  { %v11595_v5 = vmax.f32 %v11591_v38, %v11593_v7  ;;  %v11404_v57 = vld [vmem:[#allocation7 + $0x22] sm:$0x1]  ;;  %v11549_v56 = vrot.slane %v11533_v49, %v19168_v29  ;;  %v11371_v59 = vmax.f32 %v11367_v55, %v11369_v51  ;;  %v11406_v34 = vld [vmem:[#allocation7 + $0x23] sm:$0x1]  ;;  %v11435_v50 = vld [vmem:[#allocation7 + $0x24] sm:$0x1] }
 0xa04   :  { %v11580_v13 = vrot.slane %v11564_v47, %v19168_v29  ;;  %v11437_v2 = vld [vmem:[#allocation7 + $0x25] sm:$0x1]  ;;  %v11521_v32 = vrot.slane %v11518_v46, 7  ;;  %v11408_v28 = vmax.f32 %v11404_v57, %v11406_v34  ;;  %v11466_v60 = vld [vmem:[#allocation7 + $0x26] sm:$0x1] }
 0xa05   :  { %v11611_v12 = vrot.slane %v11595_v5, %v19168_v29  ;;  %v11439_v39 = vmax.f32 %v11435_v50, %v11437_v2  ;;  %v11468_v0 = vld [vmem:[#allocation7 + $0x27] sm:$0x1]  ;;  %v11552_v8 = vrot.slane %v11549_v56, 7  ;;  %v11387_v41 = vrot.slane %v11371_v59, %v19168_v29 }
 0xa06   :  { %v11583_v45 = vrot.slane %v11580_v13, 7  ;;  %v11470_v6 = vmax.f32 %v11466_v60, %v11468_v0  ;;  %v11522_v53 = vsel %vm11393_vm3, %v11521_v32, %v11511_v21  ;;  %v11424_v33 = vrot.slane %v11408_v28, %v19168_v29 }
 0xa07   :  { %v11614_v27 = vrot.slane %v11611_v12, 7  ;;  %v11455_v43 = vrot.slane %v11439_v39, %v19168_v29  ;;  %v11523_v40 = vsel %vm11395_vm4, %v11521_v32, %v11522_v53  ;;  %v11553_v31 = vsel %vm11393_vm3, %v11552_v8, %v11542_v10  ;;  %v11748_v62 = vld [vmem:[#allocation7 + $0x38] sm:$0x1]  ;;  %v11750_v47 = vld [vmem:[#allocation7 + $0x39] sm:$0x1] }
 0xa08   :  { %v11584_v54 = vsel %vm11393_vm3, %v11583_v45, %v11573_v11  ;;  %v11392_v58 = vrot.slane %v11387_v41, 7  ;;  %v11524_v15 = vsel %vm11397_vm5, %v11521_v32, %v11523_v40  ;;  %v11554_v52 = vsel %vm11395_vm4, %v11552_v8, %v11553_v31  ;;  %v11779_v11 = vld [vmem:[#allocation7 + $0x3a] sm:$0x1]  ;;  %v11781_v38 = vld [vmem:[#allocation7 + $0x3b] sm:$0x1] }
 0xa09   :  { %v11585_v16 = vsel %vm11395_vm4, %v11583_v45, %v11584_v54  ;;  %v11615_v21 = vsel %vm11393_vm3, %v11614_v27, %v11604_v9  ;;  %v11525_v42 = vsel %vm11399_vm6, %v11521_v32, %v11524_v15  ;;  %v11555_v63 = vsel %vm11397_vm5, %v11552_v8, %v11554_v52  ;;  %v11810_v55 = vld [vmem:[#allocation7 + $0x3c] sm:$0x1]  ;;  %v11812_v51 = vld [vmem:[#allocation7 + $0x3d] sm:$0x1]  ;;  %v11841_v60 = vld [vmem:[#allocation7 + $0x3e] sm:$0x1] }
 0xa0a   :  { %v11586_v49 = vsel %vm11397_vm5, %v11583_v45, %v11585_v16  ;;  %v11616_v10 = vsel %vm11395_vm4, %v11614_v27, %v11615_v21  ;;  %11527 = vst [vmem:[#allocation8 + $0x8] sm:$0x3] %v11525_v42  ;;  %v11556_v7 = vsel %vm11399_vm6, %v11552_v8, %v11555_v63  ;;  %v11394_v9 = vsel %vm11393_vm3, %v11392_v58, %v19195_v30  ;;  %v11623_v53 = vld [vmem:[#allocation7 + $0x30] sm:$0x1]  ;;  %v11654_v40 = vld [vmem:[#allocation7 + $0x32] sm:$0x1] }
 0xa0b   :  { %v11587_v46 = vsel %vm11399_vm6, %v11583_v45, %v11586_v49  ;;  %v11617_v5 = vsel %vm11397_vm5, %v11614_v27, %v11616_v10  ;;  %11558 = vst [vmem:[#allocation8 + $0xa] sm:$0x3] %v11556_v7  ;;  %v11396_v56 = vsel %vm11395_vm4, %v11392_v58, %v11394_v9  ;;  %v11427_v13 = vrot.slane %v11424_v33, 7  ;;  %v11656_v31 = vld [vmem:[#allocation7 + $0x33] sm:$0x1] }
 0xa0c   :  { %11589 = vst [vmem:[#allocation8 + $0xc] sm:$0x3] %v11587_v46  ;;  %v11618_v57 = vsel %vm11399_vm6, %v11614_v27, %v11617_v5  ;;  %v11458_v59 = vrot.slane %v11455_v43, 7  ;;  %v11398_v34 = vsel %vm11397_vm5, %v11392_v58, %v11396_v56  ;;  %v11486_v50 = vrot.slane %v11470_v6, %v19168_v29  ;;  %v11843_v6 = vld [vmem:[#allocation7 + $0x3f] sm:$0x1] }
 0xa0d   :  { %11620 = vst [vmem:[#allocation8 + $0xe] sm:$0x3] %v11618_v57  ;;  %v11752_v2 = vmax.f32 %v11748_v62, %v11750_v47  ;;  %v11783_v32 = vmax.f32 %v11779_v11, %v11781_v38  ;;  %v11400_v12 = vsel %vm11399_vm6, %v11392_v58, %v11398_v34  ;;  %v11428_v30 = vsel %vm11393_vm3, %v11427_v13, %v19198_v20  ;;  %v11625_v43 = vld [vmem:[#allocation7 + $0x31] sm:$0x1]  ;;  %v11685_v46 = vld [vmem:[#allocation7 + $0x34] sm:$0x1] }
 0xa0e   :  { %v11459_v28 = vsel %vm11393_vm3, %v11458_v59, %v19201_v35  ;;  %v11814_v39 = vmax.f32 %v11810_v55, %v11812_v51  ;;  %11402 = vst [vmem:[#allocation8] sm:$0x3] %v11400_v12  ;;  %v11429_v0 = vsel %vm11395_vm4, %v11427_v13, %v11428_v30  ;;  %v11489_v45 = vrot.slane %v11486_v50, 7  ;;  %v11687_v51 = vld [vmem:[#allocation7 + $0x35] sm:$0x1] }
 0xa0f   :  { %v11460_v8 = vsel %vm11395_vm4, %v11458_v59, %v11459_v28  ;;  %v11768_v41 = vrot.slane %v11752_v2, %v19168_v29  ;;  %v11430_v27 = vsel %vm11397_vm5, %v11427_v13, %v11429_v0  ;;  %v11799_v20 = vrot.slane %v11783_v32, %v19168_v29  ;;  %v11716_v57 = vld [vmem:[#allocation7 + $0x36] sm:$0x1]  ;;  %v11718_v56 = vld [vmem:[#allocation7 + $0x37] sm:$0x1] }
 0xa10   :  { %v11461_v33 = vsel %vm11397_vm5, %v11458_v59, %v11460_v8  ;;  %v11830_v35 = vrot.slane %v11814_v39, %v19168_v29  ;;  %v11431_v54 = vsel %vm11399_vm6, %v11427_v13, %v11430_v27  ;;  %v11490_v15 = vsel %vm11393_vm3, %v11489_v45, %v19204_v24  ;;  %v11715_v13 = vld [vmem:[#allocation7 + $0x16] sm:$0x1] }
 0xa11   :  { %v11462_v58 = vsel %vm11399_vm6, %v11458_v59, %v11461_v33  ;;  %v11771_v52 = vrot.slane %v11768_v41, 7  ;;  %11433 = vst [vmem:[#allocation8 + $0x2] sm:$0x3] %v11431_v54  ;;  %v11491_v16 = vsel %vm11395_vm4, %v11489_v45, %v11490_v15  ;;  %v11802_v21 = vrot.slane %v11799_v20, 7  ;;  %v11717_v59 = vld [vmem:[#allocation7 + $0x17] sm:$0x1] }
 0xa12   :  { %11464 = vst [vmem:[#allocation8 + $0x4] sm:$0x3] %v11462_v58  ;;  %v11833_v62 = vrot.slane %v11830_v35, 7  ;;  %v11845_v42 = vmax.f32 %v11841_v60, %v11843_v6  ;;  %v11492_v63 = vsel %vm11397_vm5, %v11489_v45, %v11491_v16  ;;  %v11627_v10 = vmax.f32 %v11623_v53, %v11625_v43 }
 0xa13   :  { %v11772_v49 = vsel %vm11393_vm3, %v11771_v52, %v19207_v4  ;;  %v11658_v47 = vmax.f32 %v11654_v40, %v11656_v31  ;;  %v11493_v11 = vsel %vm11399_vm6, %v11489_v45, %v11492_v63  ;;  %v11803_v24 = vsel %vm11393_vm3, %v11802_v21, %v19210_v25 }
 0xa14   :  { %v11773_v38 = vsel %vm11395_vm4, %v11771_v52, %v11772_v49  ;;  %v11834_v7 = vsel %vm11393_vm3, %v11833_v62, %v19213_v37  ;;  %11495 = vst [vmem:[#allocation8 + $0x6] sm:$0x3] %v11493_v11  ;;  %v11804_v9 = vsel %vm11395_vm4, %v11802_v21, %v11803_v24  ;;  %v11861_v55 = vrot.slane %v11845_v42, %v19168_v29 }
 0xa15   :  { %v11774_v5 = vsel %vm11397_vm5, %v11771_v52, %v11773_v38  ;;  %v11835_v4 = vsel %vm11395_vm4, %v11833_v62, %v11834_v7  ;;  %v11805_v34 = vsel %vm11397_vm5, %v11802_v21, %v11804_v9  ;;  %v11643_v50 = vrot.slane %v11627_v10, %v19168_v29 }
 0xa16   :  { %v11775_v25 = vsel %vm11399_vm6, %v11771_v52, %v11774_v5  ;;  %v11836_v37 = vsel %vm11397_vm5, %v11833_v62, %v11835_v4  ;;  %v11806_v2 = vsel %vm11399_vm6, %v11802_v21, %v11805_v34  ;;  %v11864_v12 = vrot.slane %v11861_v55, 7 }
 0xa17   :  { %11777 = vst [vmem:[#allocation8 + $0x18] sm:$0x3] %v11775_v25  ;;  %v11837_v32 = vsel %vm11399_vm6, %v11833_v62, %v11836_v37  ;;  %v11674_v30 = vrot.slane %v11658_v47, %v19168_v29  ;;  %v11636_v28 = vrot.slane %v11626_v18, %v19168_v29  ;;  %11808 = vst [vmem:[#allocation8 + $0x1a] sm:$0x3] %v11806_v2  ;;  %v11646_v39 = vrot.slane %v11643_v50, 7 }
 0xa18   :  { %11839 = vst [vmem:[#allocation8 + $0x1c] sm:$0x3] %v11837_v32  ;;  %v11689_v60 = vmax.f32 %v11685_v46, %v11687_v51  ;;  %v11720_v0 = vmax.f32 %v11716_v57, %v11718_v56  ;;  %v11667_v8 = vrot.slane %v11657_v14, %v19168_v29  ;;  %v11719_v45 = vmax.f32 %v11715_v13, %v11717_v59 }
 0xa19   :  { %v11865_v41 = vsel %vm11393_vm3, %v11864_v12, %v19218_v26  ;;  %v11677_v6 = vrot.slane %v11674_v30, 7  ;;  %v11647_v22 = vsel %vm11393_vm3, %v11646_v39, %v11636_v28  ;;  %v11698_v27 = vrot.slane %v11688_v23, %v19168_v29 }
 0xa1a   :  { %v11866_v53 = vsel %vm11395_vm4, %v11864_v12, %v11865_v41  ;;  %v11705_v19 = vrot.slane %v11689_v60, %v19168_v29  ;;  %v11736_v18 = vrot.slane %v11720_v0, %v19168_v29  ;;  %v11648_v61 = vsel %vm11395_vm4, %v11646_v39, %v11647_v22 }
 0xa1b   :  { %v11867_v48 = vsel %vm11397_vm5, %v11864_v12, %v11866_v53  ;;  %v11678_v26 = vsel %vm11393_vm3, %v11677_v6, %v11667_v8  ;;  %v11649_v33 = vsel %vm11397_vm5, %v11646_v39, %v11648_v61  ;;  %v11729_v43 = vrot.slane %v11719_v45, %v19168_v29 }
 0xa1c   :  { %v11868_v14 = vsel %vm11399_vm6, %v11864_v12, %v11867_v48  ;;  %v11679_v20 = vsel %vm11395_vm4, %v11677_v6, %v11678_v26  ;;  %v11708_v35 = vrot.slane %v11705_v19, 7  ;;  %v11650_v40 = vsel %vm11399_vm6, %v11646_v39, %v11649_v33 }
 0xa1d   :  { %11870 = vst [vmem:[#allocation8 + $0x1e] sm:$0x3] %v11868_v14  ;;  %v11680_v44 = vsel %vm11397_vm5, %v11677_v6, %v11679_v20  ;;  %v11739_v36 = vrot.slane %v11736_v18, 7  ;;  %11652 = vst [vmem:[#allocation8 + $0x10] sm:$0x3] %v11650_v40 }
 0xa1e   :  { %v11681_v23 = vsel %vm11399_vm6, %v11677_v6, %v11680_v44  ;;  %v11709_v31 = vsel %vm11393_vm3, %v11708_v35, %v11698_v27 }
 0xa1f   :  { %11683 = vst [vmem:[#allocation8 + $0x12] sm:$0x3] %v11681_v23  ;;  %v11710_v54 = vsel %vm11395_vm4, %v11708_v35, %v11709_v31  ;;  %v11740_v58 = vsel %vm11393_vm3, %v11739_v36, %v11729_v43 }
 0xa20   :  { %v11711_v15 = vsel %vm11397_vm5, %v11708_v35, %v11710_v54  ;;  %v11741_v52 = vsel %vm11395_vm4, %v11739_v36, %v11740_v58 }
 0xa21   :  { %v11712_v16 = vsel %vm11399_vm6, %v11708_v35, %v11711_v15  ;;  %v11742_v21 = vsel %vm11397_vm5, %v11739_v36, %v11741_v52 }
 0xa22   :  { %11714 = vst [vmem:[#allocation8 + $0x14] sm:$0x3] %v11712_v16  ;;  %v11743_v62 = vsel %vm11399_vm6, %v11739_v36, %v11742_v21 }
 0xa23   :  { %11745 = vst [vmem:[#allocation8 + $0x16] sm:$0x3] %v11743_v62 }
 0xa24   :  { %15178 = dma.done.wait [#allocation11], 32768 }
 0xa25   :  { %15179 = vsyncadd [#allocation11], 4294934528 }
 0xa26   :  { %15180 = dma.done.wait [#allocation11 + $0x1], 18432 }
 0xa27   :  { %15181 = vsyncadd [#allocation11 + $0x1], 4294948864  ;;  %12656 = vmatprep.mubr.bf16.mxu0 %v15188_v1  ;;  %v11884_v42 = vld [vmem:[#allocation9 + $0x8] sm:$0xff]  ;;  %v11883_v63 = vld [vmem:[#allocation9] sm:$0xff]  ;;  %s19553_s1 = sld [smem:[#allocation24_spill]]  ;;  %vm15199_vm7 = vmmov 0  }
 0xa28   :  { %12255 = vmatprep.subr.bf16.mxu1 %v11884_v42  ;;  %v15110_v49 = vld [vmem:[%s19528_s10 + $0x4] ss:$8 sps:$4 sm:$0xff]   ;;  %v15112_v10 = vld [vmem:[%s19528_s10] ss:$8 sps:$4 sm:$0xff]   ;;  %v11886_v47 = vld [vmem:[#allocation9 + $0x18] sm:$0xff]  ;;  %vm13189_vm8 = vcmask 74752  }
 0xa29   :  { %12256 = vmatpush1.bf16.msra.mxu1 %v11883_v63  ;;  %12624 = vmatprep.subr.bf16.mxu0 %v15110_v49  ;;  %v11885_v11 = vld [vmem:[#allocation9 + $0x10] sm:$0xff]  ;;  %v11888_v24 = vld [vmem:[#allocation9 + $0x28] sm:$0xff]  ;;  %v11887_v46 = vld [vmem:[#allocation9 + $0x20] sm:$0xff]  ;;  %vm13207_vm9 = vcmask 1041408   ;;  %vm15200_vm10 = vmmov 1   ;;  %vm13203_vm12 = vcmask 80896  }
 0xa2a   :  { %12257 = vmatprep.subr.bf16.mxu1 %v11886_v47  ;;  %v15113_v1 = vld [vmem:[%s19528_s10 + $0x14] ss:$8 sps:$4 sm:$0xff]   ;;  %12625 = vmatpush1.bf16.msra.mxu0 %v15112_v10  ;;  %v15115_v38 = vld [vmem:[%s19528_s10 + $0x10] ss:$8 sps:$4 sm:$0xff]   ;;  %v11892_v55 = vld [vmem:[#allocation9 + $0x48] sm:$0xff]  ;;  %s15201_s2 = smov [#allocation15]  }
 0xa2b   :  { %12626 = vmatprep.subr.bf16.mxu0 %v15113_v1  ;;  %v11890_v9 = vld [vmem:[#allocation9 + $0x38] sm:$0xff]  ;;  %v11889_v4 = vld [vmem:[#allocation9 + $0x30] sm:$0xff]  ;;  %v19342_v51 = vld [vmem:[#allocation8] sm:$0xff]  ;;  %s13289_s8 = sshll.u32 %s15201_s2, 4  ;;  %vm13281_vm13 = vcmask 254976   ;;  %s13290_s8 = int_to_ptr.vmem [resolvable:$true] %s13289_s8 }
 0xa2c   :  { %v19346_v57 = vrot.slane %v19342_v51, %v19168_v29  ;;  %v11891_v56 = vld [vmem:[#allocation9 + $0x40] sm:$0xff]  ;;  %v11894_v13 = vld [vmem:[#allocation9 + $0x58] sm:$0xff]  ;;  %v11893_v34 = vld [vmem:[#allocation9 + $0x50] sm:$0xff]  ;;  %v12143_v26 = vcombine.high %v19342_v51, %v19342_v51  ;;  %p15159_p9 = scmp.lt.s32.totalorder %s13290_s8, %s13290_s8 }
 0xa2d   :  { %v12583_v7 = vld [vmem:[%s19553_s1] sm:$0x3]  ;;  %12258 = vmatpush1.bf16.msra.mxu1 %v11885_v11  ;;  %v11896_v37 = vld [vmem:[#allocation9 + $0x68] sm:$0xff]  ;;  %v11898_v2 = vld [vmem:[#allocation9 + $0x78] sm:$0xff] }
 0xa2e   :  { %12259 = vmatprep.subr.bf16.mxu1 %v11888_v24  ;;  %v12588_v5 = vpack.c.bf16 %v12583_v7, %v12583_v7  ;;  %12627 = vmatpush1.bf16.msra.mxu0 %v15115_v38  ;;  %v12158_v59 = vcombine.high %v19346_v57, %v19346_v57  ;;  %v11895_v50 = vld [vmem:[#allocation9 + $0x60] sm:$0xff]  ;;  %v11897_v32 = vld [vmem:[#allocation9 + $0x70] sm:$0xff]  ;;  %v11900_v12 = vld [vmem:[#allocation9 + $0x88] sm:$0xff]  ;;  %v19353_v43 = vrot.slane %v12143_v26, %v19168_v29 }
 0xa2f   :  { %v11899_v30 = vld [vmem:[#allocation9 + $0x80] sm:$0xff]  ;;  %v11902_v28 = vld [vmem:[#allocation9 + $0x98] sm:$0xff]  ;;  %v11901_v39 = vld [vmem:[#allocation9 + $0x90] sm:$0xff]  ;;  %v12227_v16 = vpack.c.bf16 %v19346_v57, %v19346_v57 }
 0xa30   :  { %v12228_v25 = vpack.c.bf16 %v12158_v59, %v12158_v59  ;;  %v11904_v60 = vld [vmem:[#allocation9 + $0xa8] sm:$0xff]  ;;  %v12667_v8 = vld [vmem:[#allocation10] sm:$0xff]  ;;  %v11906_v41 = vld [vmem:[#allocation9 + $0xb8] sm:$0xff]  ;;  %v12159_v31 = vcombine.high %v19353_v43, %v19353_v43 }
 0xa31   :  { %12260 = vmatpush1.bf16.msra.mxu1 %v11887_v46  ;;  %13586 = vmatmul.mubr.msk.bf16.vlgmr.msra.gmra.mrb[128].mxu0 %vm8217_vm1, %v12588_v5  ;;  %v12668_v0 = vld [vmem:[#allocation10 + $0x8] sm:$0xff]  ;;  %v11903_v45 = vld [vmem:[#allocation9 + $0xa0] sm:$0xff]  ;;  %v12670_v6 = vld [vmem:[#allocation10 + $0x50] sm:$0xff] }
 0xa32   :  { %12261 = vmatprep.subr.bf16.mxu1 %v11890_v9  ;;  %12287 = vmatprep.mubr.bf16.mxu1 %v12228_v25  ;;  %v12669_v53 = vld [vmem:[#allocation10 + $0x48] sm:$0xff]  ;;  %v11905_v22 = vld [vmem:[#allocation9 + $0xb0] sm:$0xff]  ;;  %v12672_v18 = vld [vmem:[#allocation10 + $0x98] sm:$0xff]  ;;  %v12230_v21 = vpack.c.bf16 %v12159_v31, %v12159_v31 }
 0xa33   :  { %12713 = vmatprep.subr.bf16.mxu0 %v12668_v0  ;;  %v11908_v19 = vld [vmem:[#allocation9 + $0xc8] sm:$0xff]  ;;  %v12671_v27 = vld [vmem:[#allocation10 + $0x90] sm:$0xff]  ;;  %v11907_v48 = vld [vmem:[#allocation9 + $0xc0] sm:$0xff] }
 0xa34   :  { %12714 = vmatpush1.bf16.msra.mxu0 %v12667_v8  ;;  %v11910_v61 = vld [vmem:[#allocation9 + $0xd8] sm:$0xff]  ;;  %v12674_v14 = vld [vmem:[#allocation10 + $0xe0] sm:$0xff]  ;;  %v11909_v20 = vld [vmem:[#allocation9 + $0xd0] sm:$0xff] }
 0xa35   :  { %12262 = vmatpush1.bf16.msra.mxu1 %v11889_v4  ;;  %12715 = vmatprep.subr.bf16.mxu0 %v12670_v6  ;;  %v12673_v33 = vld [vmem:[#allocation10 + $0xd8] sm:$0xff]  ;;  %v11912_v35 = vld [vmem:[#allocation9 + $0xe8] sm:$0xff]  ;;  %v12675_v44 = vld [vmem:[#allocation10 + $0x120] sm:$0xff] }
 0xa36   :  { %12263 = vmatprep.subr.bf16.mxu1 %v11892_v55  ;;  %v12676_v40 = vld [vmem:[#allocation10 + $0x128] sm:$0xff]  ;;  %v11911_v36 = vld [vmem:[#allocation9 + $0xe0] sm:$0xff]  ;;  %v11914_v23 = vld [vmem:[#allocation9 + $0xf8] sm:$0xff] }
 0xa37   :  { %v12678_v54 = vld [vmem:[#allocation10 + $0x170] sm:$0xff]  ;;  %v12677_v58 = vld [vmem:[#allocation10 + $0x168] sm:$0xff]  ;;  %v12680_v62 = vld [vmem:[#allocation10 + $0x1b8] sm:$0xff] }
 0xa38   :  { %12716 = vmatpush1.bf16.msra.mxu0 %v12669_v53  ;;  %v11913_v15 = vld [vmem:[#allocation9 + $0xf0] sm:$0xff]  ;;  %v11916_v52 = vld [vmem:[#allocation9 + $0x108] sm:$0xff]  ;;  %v11915_v63 = vld [vmem:[#allocation9 + $0x100] sm:$0xff] }
 0xa39   :  { %12264 = vmatpush1.bf16.msra.mxu1 %v11891_v56  ;;  %12717 = vmatprep.subr.bf16.mxu0 %v12672_v18  ;;  %v12679_v42 = vld [vmem:[#allocation10 + $0x1b0] sm:$0xff]  ;;  %v11918_v49 = vld [vmem:[#allocation9 + $0x118] sm:$0xff]  ;;  %v12682_v10 = vld [vmem:[#allocation10 + $0x200] sm:$0xff] }
 0xa3a   :  { %12265 = vmatprep.subr.bf16.mxu1 %v11894_v13  ;;  %v12681_v47 = vld [vmem:[#allocation10 + $0x1f8] sm:$0xff]  ;;  %v11917_v11 = vld [vmem:[#allocation9 + $0x110] sm:$0xff]  ;;  %v11920_v1 = vld [vmem:[#allocation9 + $0x128] sm:$0xff] }
 0xa3b   :  { %v12684_v38 = vld [vmem:[#allocation10 + $0x248] sm:$0xff]  ;;  %v12683_v24 = vld [vmem:[#allocation10 + $0x240] sm:$0xff]  ;;  %v11922_v46 = vld [vmem:[#allocation9 + $0x138] sm:$0xff] }
 0xa3c   :  { %12718 = vmatpush1.bf16.msra.mxu0 %v12671_v27  ;;  %v11919_v7 = vld [vmem:[#allocation9 + $0x120] sm:$0xff]  ;;  %v12686_v5 = vld [vmem:[#allocation10 + $0x290] sm:$0xff]  ;;  %v12685_v9 = vld [vmem:[#allocation10 + $0x288] sm:$0xff] }
 0xa3d   :  { %12266 = vmatpush1.bf16.msra.mxu1 %v11893_v34  ;;  %12719 = vmatprep.subr.bf16.mxu0 %v12674_v14  ;;  %v11921_v4 = vld [vmem:[#allocation9 + $0x130] sm:$0xff]  ;;  %v11924_v55 = vld [vmem:[#allocation9 + $0x148] sm:$0xff]  ;;  %v12688_v51 = vld [vmem:[#allocation10 + $0x2d8] sm:$0xff] }
 0xa3e   :  { %12267 = vmatprep.subr.bf16.mxu1 %v11896_v37  ;;  %v12687_v57 = vld [vmem:[#allocation10 + $0x2d0] sm:$0xff]  ;;  %v11923_v56 = vld [vmem:[#allocation9 + $0x140] sm:$0xff]  ;;  %v11926_v13 = vld [vmem:[#allocation9 + $0x158] sm:$0xff] }
 0xa3f   :  { %v12690_v59 = vld [vmem:[#allocation10 + $0x320] sm:$0xff]  ;;  %v12689_v25 = vld [vmem:[#allocation10 + $0x318] sm:$0xff]  ;;  %v11925_v34 = vld [vmem:[#allocation9 + $0x150] sm:$0xff] }
 0xa40   :  { %12720 = vmatpush1.bf16.msra.mxu0 %v12673_v33  ;;  %v11928_v37 = vld [vmem:[#allocation9 + $0x168] sm:$0xff]  ;;  %v12696_v0 = vld [vmem:[#allocation10 + $0x3f8] sm:$0xff]  ;;  %v11931_v8 = vld [vmem:[#allocation9 + $0x180] sm:$0xff] }
 0xa41   :  { %12268 = vmatpush1.bf16.msra.mxu1 %v11895_v50  ;;  %12721 = vmatprep.subr.bf16.mxu0 %v12676_v40  ;;  %v12692_v50 = vld [vmem:[#allocation10 + $0x368] sm:$0xff]  ;;  %v12698_v6 = vld [vmem:[#allocation10 + $0x440] sm:$0xff]  ;;  %v11933_v53 = vld [vmem:[#allocation9 + $0x190] sm:$0xff] }
 0xa42   :  { %12269 = vmatprep.subr.bf16.mxu1 %v11898_v2  ;;  %v12691_v2 = vld [vmem:[#allocation10 + $0x360] sm:$0xff]  ;;  %v11938_v27 = vld [vmem:[#allocation9 + $0x1b8] sm:$0xff]  ;;  %v11941_v33 = vld [vmem:[#allocation9 + $0x1d0] sm:$0xff] }
 0xa43   :  { %v11935_v18 = vld [vmem:[#allocation9 + $0x1a0] sm:$0xff]  ;;  %v11942_v14 = vld [vmem:[#allocation9 + $0x1d8] sm:$0xff]  ;;  %v11945_v31 = vld [vmem:[#allocation9 + $0x1f0] sm:$0xff] }
 0xa44   :  { %12722 = vmatpush1.bf16.msra.mxu0 %v12675_v44  ;;  %v11939_v26 = vld [vmem:[#allocation9 + $0x1c0] sm:$0xff]  ;;  %vm14392_vm11 = vmpackc.low %vm13207_vm9, %vm15200_vm10 }
 0xa45   :  { %12270 = vmatpush1.bf16.msra.mxu1 %v11897_v32  ;;  %12723 = vmatprep.subr.bf16.mxu0 %v12678_v54  ;;  %v11927_v32 = vld [vmem:[#allocation9 + $0x160] sm:$0xff]  ;;  %v11948_v54 = vld [vmem:[#allocation9 + $0x208] sm:$0xff] }
 0xa46   :  { %12271 = vmatprep.subr.bf16.mxu1 %v11900_v12  ;;  %v11930_v12 = vld [vmem:[#allocation9 + $0x178] sm:$0xff]  ;;  %v11943_v44 = vld [vmem:[#allocation9 + $0x1e0] sm:$0xff] }
 0xa48   :  { %12724 = vmatpush1.bf16.msra.mxu0 %v12677_v58  ;;  %v12229_v58 = vpack.c.bf16 %v19353_v43, %v19353_v43  ;;  %v11955_v43 = vld [vmem:[#allocation9 + $0x240] sm:$0xff] }
 0xa49   :  { %12272 = vmatpush1.bf16.msra.mxu1 %v11899_v30  ;;  %12725 = vmatprep.subr.bf16.mxu0 %v12680_v62  ;;  %v12694_v30 = vld [vmem:[#allocation10 + $0x3b0] sm:$0xff]  ;;  %v11952_v62 = vld [vmem:[#allocation9 + $0x228] sm:$0xff] }
 0xa4a   :  { %12273 = vmatprep.subr.bf16.mxu1 %v11902_v28  ;;  %v12693_v28 = vld [vmem:[#allocation10 + $0x3a8] sm:$0xff] }
 0xa4c   :  { %12726 = vmatpush1.bf16.msra.mxu0 %v12679_v42  ;;  %v11951_v42 = vld [vmem:[#allocation9 + $0x220] sm:$0xff] }
 0xa4d   :  { %12274 = vmatpush1.bf16.msra.mxu1 %v11901_v39  ;;  %12727 = vmatprep.subr.bf16.mxu0 %v12682_v10  ;;  %v11929_v39 = vld [vmem:[#allocation9 + $0x170] sm:$0xff]  ;;  %v11956_v10 = vld [vmem:[#allocation9 + $0x248] sm:$0xff] }
 0xa4e   :  { %12275 = vmatprep.subr.bf16.mxu1 %v11904_v60  ;;  %v11932_v60 = vld [vmem:[#allocation9 + $0x188] sm:$0xff] }
 0xa50   :  { %12728 = vmatpush1.bf16.msra.mxu0 %v12681_v47  ;;  %v11958_v47 = vld [vmem:[#allocation9 + $0x258] sm:$0xff] }
 0xa51   :  { %12276 = vmatpush1.bf16.msra.mxu1 %v11903_v45  ;;  %12729 = vmatprep.subr.bf16.mxu0 %v12684_v38  ;;  %v12695_v45 = vld [vmem:[#allocation10 + $0x3f0] sm:$0xff]  ;;  %v11959_v38 = vld [vmem:[#allocation9 + $0x260] sm:$0xff] }
 0xa52   :  { %12277 = vmatprep.subr.bf16.mxu1 %v11906_v41  ;;  %v11934_v41 = vld [vmem:[#allocation9 + $0x198] sm:$0xff] }
 0xa54   :  { %12730 = vmatpush1.bf16.msra.mxu0 %v12683_v24  ;;  %v11962_v24 = vld [vmem:[#allocation9 + $0x278] sm:$0xff] }
 0xa55   :  { %12278 = vmatpush1.bf16.msra.mxu1 %v11905_v22  ;;  %12731 = vmatprep.subr.bf16.mxu0 %v12686_v5  ;;  %v12697_v22 = vld [vmem:[#allocation10 + $0x438] sm:$0xff]  ;;  %v11963_v5 = vld [vmem:[#allocation9 + $0x280] sm:$0xff] }
 0xa56   :  { %12279 = vmatprep.subr.bf16.mxu1 %v11908_v19  ;;  %v11936_v19 = vld [vmem:[#allocation9 + $0x1a8] sm:$0xff] }
 0xa58   :  { %12732 = vmatpush1.bf16.msra.mxu0 %v12685_v9  ;;  %v11966_v9 = vld [vmem:[#allocation9 + $0x298] sm:$0xff] }
 0xa59   :  { %12280 = vmatpush1.bf16.msra.mxu1 %v11907_v48  ;;  %12733 = vmatprep.subr.bf16.mxu0 %v12688_v51  ;;  %v11937_v48 = vld [vmem:[#allocation9 + $0x1b0] sm:$0xff]  ;;  %v11967_v51 = vld [vmem:[#allocation9 + $0x2a0] sm:$0xff] }
 0xa5a   :  { %12281 = vmatprep.subr.bf16.mxu1 %v11910_v61  ;;  %v11940_v61 = vld [vmem:[#allocation9 + $0x1c8] sm:$0xff] }
 0xa5c   :  { %12734 = vmatpush1.bf16.msra.mxu0 %v12687_v57  ;;  %v11970_v57 = vld [vmem:[#allocation9 + $0x2b8] sm:$0xff] }
 0xa5d   :  { %12282 = vmatpush1.bf16.msra.mxu1 %v11909_v20  ;;  %12735 = vmatprep.subr.bf16.mxu0 %v12690_v59  ;;  %v19359_v20 = vld [vmem:[#allocation8 + $0x8] sm:$0xff]  ;;  %v11971_v59 = vld [vmem:[#allocation9 + $0x2c0] sm:$0xff] }
 0xa5e   :  { %12283 = vmatprep.subr.bf16.mxu1 %v11912_v35  ;;  %v11944_v35 = vld [vmem:[#allocation9 + $0x1e8] sm:$0xff]  ;;  %v19363_v40 = vrot.slane %v19359_v20, %v19168_v29 }
 0xa60   :  { %12736 = vmatpush1.bf16.msra.mxu0 %v12689_v25  ;;  %v11974_v25 = vld [vmem:[#allocation9 + $0x2d8] sm:$0xff] }
 0xa61   :  { %12284 = vmatpush1.bf16.msra.mxu1 %v11911_v36  ;;  %12737 = vmatprep.subr.bf16.mxu0 %v12692_v50  ;;  %v11946_v36 = vld [vmem:[#allocation9 + $0x1f8] sm:$0xff]  ;;  %v11976_v50 = vld [vmem:[#allocation9 + $0x2e8] sm:$0xff] }
 0xa62   :  { %12285 = vmatprep.subr.bf16.mxu1 %v11914_v23  ;;  %v12175_v23 = vcombine.high %v19363_v40, %v19363_v40 }
 0xa64   :  { %12738 = vmatpush1.bf16.msra.mxu0 %v12691_v2 }
 0xa65   :  { %12286 = vmatpush1.bf16.msra.mxu1 %v11913_v15  ;;  %12739 = vmatprep.subr.bf16.mxu0 %v12694_v30  ;;  %v12232_v15 = vpack.c.bf16 %v12175_v23, %v12175_v23 }
 0xa66   :  { %12296 = vmatprep.subr.bf16.mxu1 %v11916_v52  ;;  %v11947_v52 = vld [vmem:[#allocation9 + $0x200] sm:$0xff] }
 0xa68   :  { %12288 = vmatmul.mubr.bf16.vlgmr.msra.gmra.mrb[96].mxu1 %v12227_v16  ;;  %12740 = vmatpush1.bf16.msra.mxu0 %v12693_v28  ;;  %v11950_v16 = vld [vmem:[#allocation9 + $0x218] sm:$0xff]  ;;  %v11977_v28 = vld [vmem:[#allocation9 + $0x2f0] sm:$0xff] }
 0xa69   :  { %12297 = vmatpush1.bf16.msra.mxu1 %v11915_v63  ;;  %12328 = vmatprep.mubr.bf16.mxu1 %v12230_v21  ;;  %v11949_v21 = vld [vmem:[#allocation9 + $0x210] sm:$0xff]  ;;  %v11954_v63 = vld [vmem:[#allocation9 + $0x238] sm:$0xff] }
 0xa6a   :  { %12298 = vmatprep.subr.bf16.mxu1 %v11918_v49  ;;  %12741 = vmatprep.subr.bf16.mxu0 %v12696_v0  ;;  %v11953_v49 = vld [vmem:[#allocation9 + $0x230] sm:$0xff] }
 0xa6c   :  { %12742 = vmatpush1.bf16.msra.mxu0 %v12695_v45  ;;  %v11982_v45 = vld [vmem:[#allocation9 + $0x318] sm:$0xff] }
 0xa6d   :  { %12299 = vmatpush1.bf16.msra.mxu1 %v11917_v11  ;;  %12743 = vmatprep.subr.bf16.mxu0 %v12698_v6  ;;  %v11957_v11 = vld [vmem:[#allocation9 + $0x250] sm:$0xff]  ;;  %v11984_v6 = vld [vmem:[#allocation9 + $0x328] sm:$0xff] }
 0xa6e   :  { %12300 = vmatprep.subr.bf16.mxu1 %v11920_v1  ;;  %v11960_v1 = vld [vmem:[#allocation9 + $0x268] sm:$0xff] }
 0xa70   :  { %12744 = vmatpush1.bf16.msra.mxu0 %v12697_v22  ;;  %v11986_v22 = vld [vmem:[#allocation9 + $0x338] sm:$0xff] }
 0xa71   :  { %12301 = vmatpush1.bf16.msra.mxu1 %v11919_v7  ;;  %v11961_v7 = vld [vmem:[#allocation9 + $0x270] sm:$0xff] }
 0xa72   :  { %12302 = vmatprep.subr.bf16.mxu1 %v11922_v46  ;;  %v11964_v46 = vld [vmem:[#allocation9 + $0x288] sm:$0xff] }
 0xa75   :  { %12303 = vmatpush1.bf16.msra.mxu1 %v11921_v4  ;;  %v11965_v4 = vld [vmem:[#allocation9 + $0x290] sm:$0xff] }
 0xa76   :  { %12304 = vmatprep.subr.bf16.mxu1 %v11924_v55  ;;  %v11968_v55 = vld [vmem:[#allocation9 + $0x2a8] sm:$0xff] }
 0xa79   :  { %12305 = vmatpush1.bf16.msra.mxu1 %v11923_v56  ;;  %v11969_v56 = vld [vmem:[#allocation9 + $0x2b0] sm:$0xff] }
 0xa7a   :  { %12306 = vmatprep.subr.bf16.mxu1 %v11926_v13  ;;  %v11972_v13 = vld [vmem:[#allocation9 + $0x2c8] sm:$0xff] }
 0xa7d   :  { %12307 = vmatpush1.bf16.msra.mxu1 %v11925_v34  ;;  %v12160_v34 = vcombine.high %v19359_v20, %v19359_v20  ;;  %v11994_v20 = vld [vmem:[#allocation9 + $0x378] sm:$0xff] }
 0xa7e   :  { %12308 = vmatprep.subr.bf16.mxu1 %v11928_v37  ;;  %v11973_v37 = vld [vmem:[#allocation9 + $0x2d0] sm:$0xff] }
 0xa7f   :  { %v19372_v2 = vrot.slane %v12160_v34, %v19168_v29 }
 0xa81   :  { %12309 = vmatpush1.bf16.msra.mxu1 %v11927_v32  ;;  %v11975_v32 = vld [vmem:[#allocation9 + $0x2e0] sm:$0xff]  ;;  %v12176_v30 = vcombine.high %v19372_v2, %v19372_v2 }
 0xa82   :  { %12310 = vmatprep.subr.bf16.mxu1 %v11930_v12  ;;  %v11978_v12 = vld [vmem:[#allocation9 + $0x2f8] sm:$0xff] }
 0xa83   :  { %v12234_v0 = vpack.c.bf16 %v12176_v30, %v12176_v30  ;;  %v12013_v30 = vld [vmem:[#allocation9 + $0x410] sm:$0xff] }
 0xa85   :  { %12311 = vmatpush1.bf16.msra.mxu1 %v11929_v39  ;;  %v11980_v39 = vld [vmem:[#allocation9 + $0x308] sm:$0xff] }
 0xa86   :  { %12312 = vmatprep.subr.bf16.mxu1 %v11932_v60  ;;  %v12231_v60 = vpack.c.bf16 %v19363_v40, %v19363_v40  ;;  %v19385_v40 = vsub.s32 1, %v19152_v17 }
 0xa89   :  { %12313 = vmatpush1.bf16.msra.mxu1 %v11931_v8  ;;  %v11979_v8 = vld [vmem:[#allocation9 + $0x300] sm:$0xff] }
 0xa8a   :  { %12314 = vmatprep.subr.bf16.mxu1 %v11934_v41  ;;  %v11981_v41 = vld [vmem:[#allocation9 + $0x310] sm:$0xff] }
 0xa8d   :  { %12315 = vmatpush1.bf16.msra.mxu1 %v11933_v53  ;;  %v11983_v53 = vld [vmem:[#allocation9 + $0x320] sm:$0xff] }
 0xa8e   :  { %12316 = vmatprep.subr.bf16.mxu1 %v11936_v19  ;;  %v11985_v19 = vld [vmem:[#allocation9 + $0x330] sm:$0xff] }
 0xa91   :  { %12317 = vmatpush1.bf16.msra.mxu1 %v11935_v18  ;;  %v11988_v18 = vld [vmem:[#allocation9 + $0x348] sm:$0xff] }
 0xa92   :  { %12318 = vmatprep.subr.bf16.mxu1 %v11938_v27  ;;  %v11987_v27 = vld [vmem:[#allocation9 + $0x340] sm:$0xff] }
 0xa95   :  { %12319 = vmatpush1.bf16.msra.mxu1 %v11937_v48  ;;  %v11990_v48 = vld [vmem:[#allocation9 + $0x358] sm:$0xff] }
 0xa96   :  { %12320 = vmatprep.subr.bf16.mxu1 %v11940_v61  ;;  %v11989_v61 = vld [vmem:[#allocation9 + $0x350] sm:$0xff] }
 0xa99   :  { %12321 = vmatpush1.bf16.msra.mxu1 %v11939_v26  ;;  %v11992_v26 = vld [vmem:[#allocation9 + $0x368] sm:$0xff] }
 0xa9a   :  { %12322 = vmatprep.subr.bf16.mxu1 %v11942_v14  ;;  %v11991_v14 = vld [vmem:[#allocation9 + $0x360] sm:$0xff] }
 0xa9d   :  { %12323 = vmatpush1.bf16.msra.mxu1 %v11941_v33  ;;  %v19379_v33 = vsub.s32 0, %v19152_v17 }
 0xa9e   :  { %12324 = vmatprep.subr.bf16.mxu1 %v11944_v35  ;;  %v12589_v35 = vld [vmem:[%s19529_s11] sm:$0x3] }
 0xa9f   :  { %v12598_v23 = vrot.slane %v12589_v35, %v19385_v40 }
 0xaa1   :  { %12325 = vmatpush1.bf16.msra.mxu1 %v11943_v44  ;;  %v11993_v44 = vld [vmem:[#allocation9 + $0x370] sm:$0xff] }
 0xaa2   :  { %12326 = vmatprep.subr.bf16.mxu1 %v11946_v36  ;;  %v12594_v36 = vrot.slane %v12589_v35, %v19379_v33  ;;  %v12023_v35 = vld [vmem:[#allocation9 + $0x460] sm:$0xff] }
 0xaa5   :  { %12327 = vmatpush1.bf16.msra.mxu1 %v11945_v31  ;;  %v11996_v31 = vld [vmem:[#allocation9 + $0x388] sm:$0xff] }
 0xaa6   :  { %12337 = vmatprep.subr.bf16.mxu1 %v11948_v54 }
 0xaa8   :  { %12329 = vmatmul.mubr.bf16.vlgmr.msra.gmra.mrb[96].mxu1 %v12229_v58 }
 0xaa9   :  { %12338 = vmatpush1.bf16.msra.mxu1 %v11947_v52  ;;  %12369 = vmatprep.mubr.bf16.mxu1 %v12232_v15  ;;  %v11995_v52 = vld [vmem:[#allocation9 + $0x380] sm:$0xff] }
 0xaaa   :  { %12339 = vmatprep.subr.bf16.mxu1 %v11950_v16 }
 0xaad   :  { %12340 = vmatpush1.bf16.msra.mxu1 %v11949_v21  ;;  %v11998_v21 = vld [vmem:[#allocation9 + $0x398] sm:$0xff] }
 0xaae   :  { %12341 = vmatprep.subr.bf16.mxu1 %v11952_v62 }
 0xab1   :  { %12342 = vmatpush1.bf16.msra.mxu1 %v11951_v42 }
 0xab2   :  { %12343 = vmatprep.subr.bf16.mxu1 %v11954_v63 }
 0xab5   :  { %12344 = vmatpush1.bf16.msra.mxu1 %v11953_v49 }
 0xab6   :  { %12345 = vmatprep.subr.bf16.mxu1 %v11956_v10  ;;  %v11997_v10 = vld [vmem:[#allocation9 + $0x390] sm:$0xff] }
 0xab9   :  { %12346 = vmatpush1.bf16.msra.mxu1 %v11955_v43 }
 0xaba   :  { %12347 = vmatprep.subr.bf16.mxu1 %v11958_v47  ;;  %v12000_v47 = vld [vmem:[#allocation9 + $0x3a8] sm:$0xff] }
 0xabd   :  { %12348 = vmatpush1.bf16.msra.mxu1 %v11957_v11  ;;  %v11999_v11 = vld [vmem:[#allocation9 + $0x3a0] sm:$0xff] }
 0xabe   :  { %12349 = vmatprep.subr.bf16.mxu1 %v11960_v1  ;;  %v12002_v1 = vld [vmem:[#allocation9 + $0x3b8] sm:$0xff] }
 0xac1   :  { %12350 = vmatpush1.bf16.msra.mxu1 %v11959_v38  ;;  %v12001_v38 = vld [vmem:[#allocation9 + $0x3b0] sm:$0xff] }
 0xac2   :  { %12351 = vmatprep.subr.bf16.mxu1 %v11962_v24  ;;  %v12004_v24 = vld [vmem:[#allocation9 + $0x3c8] sm:$0xff] }
 0xac5   :  { %12352 = vmatpush1.bf16.msra.mxu1 %v11961_v7  ;;  %v12003_v7 = vld [vmem:[#allocation9 + $0x3c0] sm:$0xff] }
 0xac6   :  { %12353 = vmatprep.subr.bf16.mxu1 %v11964_v46  ;;  %v12006_v46 = vld [vmem:[#allocation9 + $0x3d8] sm:$0xff] }
 0xac9   :  { %12354 = vmatpush1.bf16.msra.mxu1 %v11963_v5  ;;  %v12005_v5 = vld [vmem:[#allocation9 + $0x3d0] sm:$0xff] }
 0xaca   :  { %12355 = vmatprep.subr.bf16.mxu1 %v11966_v9  ;;  %v19397_v9 = vld [vmem:[#allocation8 + $0x10] sm:$0xff] }
 0xacd   :  { %12356 = vmatpush1.bf16.msra.mxu1 %v11965_v4  ;;  %v12008_v4 = vld [vmem:[#allocation9 + $0x3e8] sm:$0xff] }
 0xace   :  { %12357 = vmatprep.subr.bf16.mxu1 %v11968_v55  ;;  %v19401_v55 = vrot.slane %v19397_v9, %v19168_v29 }
 0xad1   :  { %12358 = vmatpush1.bf16.msra.mxu1 %v11967_v51  ;;  %v12007_v51 = vld [vmem:[#allocation9 + $0x3e0] sm:$0xff] }
 0xad2   :  { %12359 = vmatprep.subr.bf16.mxu1 %v11970_v57  ;;  %v12010_v57 = vld [vmem:[#allocation9 + $0x3f8] sm:$0xff] }
 0xad5   :  { %12360 = vmatpush1.bf16.msra.mxu1 %v11969_v56  ;;  %v12192_v56 = vcombine.high %v19401_v55, %v19401_v55 }
 0xad6   :  { %12361 = vmatprep.subr.bf16.mxu1 %v11972_v13  ;;  %v12009_v13 = vld [vmem:[#allocation9 + $0x3f0] sm:$0xff] }
 0xad7   :  { %v12236_v34 = vpack.c.bf16 %v12192_v56, %v12192_v56  ;;  %v12781_v56 = vld [vmem:[#allocation10 + $0x378] sm:$0xff] }
 0xad9   :  { %12362 = vmatpush1.bf16.msra.mxu1 %v11971_v59  ;;  %v12012_v59 = vld [vmem:[#allocation9 + $0x408] sm:$0xff] }
 0xada   :  { %12363 = vmatprep.subr.bf16.mxu1 %v11974_v25  ;;  %v12233_v25 = vpack.c.bf16 %v19372_v2, %v19372_v2  ;;  %v12015_v2 = vld [vmem:[#allocation9 + $0x420] sm:$0xff] }
 0xadd   :  { %12364 = vmatpush1.bf16.msra.mxu1 %v11973_v37  ;;  %v12011_v37 = vld [vmem:[#allocation9 + $0x400] sm:$0xff] }
 0xade   :  { %12365 = vmatprep.subr.bf16.mxu1 %v11976_v50  ;;  %v12014_v50 = vld [vmem:[#allocation9 + $0x418] sm:$0xff] }
 0xae1   :  { %12366 = vmatpush1.bf16.msra.mxu1 %v11975_v32  ;;  %v12757_v32 = vld [vmem:[#allocation10 + $0x18] sm:$0xff] }
 0xae2   :  { %12367 = vmatprep.subr.bf16.mxu1 %v11978_v12  ;;  %v12756_v12 = vld [vmem:[#allocation10 + $0x10] sm:$0xff]  ;;  %12802 = vmatprep.subr.bf16.mxu0 %v12757_v32  ;;  %v12039_v32 = vld [vmem:[#allocation9 + $0x4e0] sm:$0xff] }
 0xae5   :  { %12368 = vmatpush1.bf16.msra.mxu1 %v11977_v28  ;;  %v12016_v28 = vld [vmem:[#allocation9 + $0x428] sm:$0xff] }
 0xae6   :  { %12378 = vmatprep.subr.bf16.mxu1 %v11980_v39  ;;  %v12759_v39 = vld [vmem:[#allocation10 + $0x60] sm:$0xff] }
 0xae8   :  { %12370 = vmatmul.mubr.bf16.vlgmr.msra.gmra.mrb[96].mxu1 %v12231_v60  ;;  %v12758_v60 = vld [vmem:[#allocation10 + $0x58] sm:$0xff] }
 0xae9   :  { %12379 = vmatpush1.bf16.msra.mxu1 %v11979_v8  ;;  %12410 = vmatprep.mubr.bf16.mxu1 %v12234_v0  ;;  %v12018_v0 = vld [vmem:[#allocation9 + $0x438] sm:$0xff]  ;;  %v12761_v8 = vld [vmem:[#allocation10 + $0xa8] sm:$0xff] }
 0xaea   :  { %12380 = vmatprep.subr.bf16.mxu1 %v11982_v45  ;;  %v12760_v45 = vld [vmem:[#allocation10 + $0xa0] sm:$0xff] }
 0xaed   :  { %12381 = vmatpush1.bf16.msra.mxu1 %v11981_v41  ;;  %v12017_v41 = vld [vmem:[#allocation9 + $0x430] sm:$0xff] }
 0xaee   :  { %12382 = vmatprep.subr.bf16.mxu1 %v11984_v6  ;;  %v12020_v6 = vld [vmem:[#allocation9 + $0x448] sm:$0xff] }
 0xaf1   :  { %12383 = vmatpush1.bf16.msra.mxu1 %v11983_v53  ;;  %v12763_v53 = vld [vmem:[#allocation10 + $0xf0] sm:$0xff] }
 0xaf2   :  { %12384 = vmatprep.subr.bf16.mxu1 %v11986_v22  ;;  %v12762_v22 = vld [vmem:[#allocation10 + $0xe8] sm:$0xff] }
 0xaf5   :  { %12385 = vmatpush1.bf16.msra.mxu1 %v11985_v19  ;;  %v12019_v19 = vld [vmem:[#allocation9 + $0x440] sm:$0xff] }
 0xaf6   :  { %12386 = vmatprep.subr.bf16.mxu1 %v11988_v18  ;;  %v12022_v18 = vld [vmem:[#allocation9 + $0x458] sm:$0xff] }
 0xaf9   :  { %12387 = vmatpush1.bf16.msra.mxu1 %v11987_v27  ;;  %v12765_v27 = vld [vmem:[#allocation10 + $0x138] sm:$0xff] }
 0xafa   :  { %12388 = vmatprep.subr.bf16.mxu1 %v11990_v48  ;;  %v12764_v48 = vld [vmem:[#allocation10 + $0x130] sm:$0xff] }
 0xafd   :  { %12389 = vmatpush1.bf16.msra.mxu1 %v11989_v61  ;;  %v12021_v61 = vld [vmem:[#allocation9 + $0x450] sm:$0xff] }
 0xafe   :  { %12390 = vmatprep.subr.bf16.mxu1 %v11992_v26  ;;  %v12024_v26 = vld [vmem:[#allocation9 + $0x468] sm:$0xff] }
 0xb01   :  { %12391 = vmatpush1.bf16.msra.mxu1 %v11991_v14  ;;  %v12767_v14 = vld [vmem:[#allocation10 + $0x180] sm:$0xff] }
 0xb02   :  { %12392 = vmatprep.subr.bf16.mxu1 %v11994_v20  ;;  %v12766_v20 = vld [vmem:[#allocation10 + $0x178] sm:$0xff] }
 0xb04   :  { %v12658_v54 = vpop.f32.mrb[128].mxu0 }
 0xb05   :  { %12393 = vmatpush1.bf16.msra.mxu1 %v11993_v44  ;;  %v12659_v58 = vadd.f32 %v12658_v54, %v12594_v36  ;;  %v12660_v15 = vpop.f32.mrb[129].mxu0  ;;  %v12026_v44 = vld [vmem:[#allocation9 + $0x478] sm:$0xff]  ;;  %v12769_v36 = vld [vmem:[#allocation10 + $0x1c8] sm:$0xff] }
 0xb06   :  { %12394 = vmatprep.subr.bf16.mxu1 %v11996_v31  ;;  %v12661_v16 = vadd.f32 %v12660_v15, %v12598_v23  ;;  %v12662_v62 = vpop.f32.mrb[130].mxu0  ;;  %v12768_v23 = vld [vmem:[#allocation10 + $0x1c0] sm:$0xff]  ;;  %v12025_v31 = vld [vmem:[#allocation9 + $0x470] sm:$0xff]  ;;  %v12028_v54 = vld [vmem:[#allocation9 + $0x488] sm:$0xff] }
 0xb07   :  { %v19389_v42 = vmax.f32 %v12659_v58, 0.0  ;;  %v12663_v17 = vpop.f32.mrb[131].mxu0  ;;  %v12771_v58 = vld [vmem:[#allocation10 + $0x210] sm:$0xff]  ;;  %v12770_v15 = vld [vmem:[#allocation10 + $0x208] sm:$0xff] }
 0xb08   :  { %v19391_v63 = vmax.f32 %v12661_v16, 0.0  ;;  %v12030_v16 = vld [vmem:[#allocation9 + $0x498] sm:$0xff]  ;;  %v12772_v62 = vld [vmem:[#allocation10 + $0x250] sm:$0xff] }
 0xb09   :  { %12395 = vmatpush1.bf16.msra.mxu1 %v11995_v52  ;;  %v12699_v49 = vpack.c.bf16 %v19389_v42, %v19389_v42  ;;  %v12027_v52 = vld [vmem:[#allocation9 + $0x480] sm:$0xff]  ;;  %v12029_v17 = vld [vmem:[#allocation9 + $0x490] sm:$0xff] }
 0xb0a   :  { %12396 = vmatprep.subr.bf16.mxu1 %v11998_v21  ;;  %v12700_v43 = vpack.c.bf16 %v19391_v63, %v19391_v63  ;;  %v12773_v21 = vld [vmem:[#allocation10 + $0x258] sm:$0xff] }
 0xb0c   :  { %12745 = vmatprep.mubr.bf16.mxu0 %v12700_v43  ;;  %v12774_v43 = vld [vmem:[#allocation10 + $0x298] sm:$0xff] }
 0xb0d   :  { %12397 = vmatpush1.bf16.msra.mxu1 %v11997_v10  ;;  %12746 = vmatmul.mubr.bf16.vlgmr.msra.gmra.mrb[132].mxu0 %v12699_v49  ;;  %v12032_v49 = vld [vmem:[#allocation9 + $0x4a8] sm:$0xff]  ;;  %v12775_v10 = vld [vmem:[#allocation10 + $0x2a0] sm:$0xff] }
 0xb0e   :  { %12398 = vmatprep.subr.bf16.mxu1 %v12000_v47  ;;  %12803 = vmatpush1.bf16.msra.mxu0 %v12756_v12  ;;  %v12031_v47 = vld [vmem:[#allocation9 + $0x4a0] sm:$0xff]  ;;  %v12042_v12 = vld [vmem:[#allocation9 + $0x4f8] sm:$0xff] }
 0xb0f   :  { %12804 = vmatprep.subr.bf16.mxu0 %v12759_v39  ;;  %v12784_v39 = vld [vmem:[#allocation10 + $0x400] sm:$0xff] }
 0xb11   :  { %12399 = vmatpush1.bf16.msra.mxu1 %v11999_v11  ;;  %v12034_v11 = vld [vmem:[#allocation9 + $0x4b8] sm:$0xff] }
 0xb12   :  { %12400 = vmatprep.subr.bf16.mxu1 %v12002_v1  ;;  %12805 = vmatpush1.bf16.msra.mxu0 %v12758_v60  ;;  %v12777_v1 = vld [vmem:[#allocation10 + $0x2e8] sm:$0xff] }
 0xb13   :  { %12806 = vmatprep.subr.bf16.mxu0 %v12761_v8  ;;  %v12044_v60 = vld [vmem:[#allocation9 + $0x508] sm:$0xff]  ;;  %v12787_v8 = vld [vmem:[#allocation10 + $0x450] sm:$0xff] }
 0xb15   :  { %12401 = vmatpush1.bf16.msra.mxu1 %v12001_v38  ;;  %v12776_v38 = vld [vmem:[#allocation10 + $0x2e0] sm:$0xff] }
 0xb16   :  { %12402 = vmatprep.subr.bf16.mxu1 %v12004_v24  ;;  %12807 = vmatpush1.bf16.msra.mxu0 %v12760_v45  ;;  %v12033_v24 = vld [vmem:[#allocation9 + $0x4b0] sm:$0xff]  ;;  %v12043_v45 = vld [vmem:[#allocation9 + $0x500] sm:$0xff] }
 0xb17   :  { %12808 = vmatprep.subr.bf16.mxu0 %v12763_v53  ;;  %v12045_v53 = vld [vmem:[#allocation9 + $0x510] sm:$0xff] }
 0xb19   :  { %12403 = vmatpush1.bf16.msra.mxu1 %v12003_v7  ;;  %v12036_v7 = vld [vmem:[#allocation9 + $0x4c8] sm:$0xff] }
 0xb1a   :  { %12404 = vmatprep.subr.bf16.mxu1 %v12006_v46  ;;  %12809 = vmatpush1.bf16.msra.mxu0 %v12762_v22  ;;  %v12779_v46 = vld [vmem:[#allocation10 + $0x330] sm:$0xff]  ;;  %v12048_v22 = vld [vmem:[#allocation9 + $0x528] sm:$0xff] }
 0xb1b   :  { %12810 = vmatprep.subr.bf16.mxu0 %v12765_v27  ;;  %v12052_v27 = vld [vmem:[#allocation9 + $0x548] sm:$0xff] }
 0xb1d   :  { %12405 = vmatpush1.bf16.msra.mxu1 %v12005_v5  ;;  %v12778_v5 = vld [vmem:[#allocation10 + $0x328] sm:$0xff] }
 0xb1e   :  { %12406 = vmatprep.subr.bf16.mxu1 %v12008_v4  ;;  %12811 = vmatpush1.bf16.msra.mxu0 %v12764_v48  ;;  %v12035_v4 = vld [vmem:[#allocation9 + $0x4c0] sm:$0xff] }
 0xb1f   :  { %12812 = vmatprep.subr.bf16.mxu0 %v12767_v14  ;;  %v12051_v48 = vld [vmem:[#allocation9 + $0x540] sm:$0xff]  ;;  %v12056_v14 = vld [vmem:[#allocation9 + $0x568] sm:$0xff] }
 0xb21   :  { %12407 = vmatpush1.bf16.msra.mxu1 %v12007_v51  ;;  %v12038_v51 = vld [vmem:[#allocation9 + $0x4d8] sm:$0xff] }
 0xb22   :  { %12408 = vmatprep.subr.bf16.mxu1 %v12010_v57  ;;  %12813 = vmatpush1.bf16.msra.mxu0 %v12766_v20  ;;  %v12177_v57 = vcombine.high %v19397_v9, %v19397_v9  ;;  %v12055_v20 = vld [vmem:[#allocation9 + $0x560] sm:$0xff] }
 0xb23   :  { %12814 = vmatprep.subr.bf16.mxu0 %v12769_v36  ;;  %v12060_v36 = vld [vmem:[#allocation9 + $0x588] sm:$0xff] }
 0xb25   :  { %12409 = vmatpush1.bf16.msra.mxu1 %v12009_v13  ;;  %v12780_v13 = vld [vmem:[#allocation10 + $0x370] sm:$0xff] }
 0xb26   :  { %12419 = vmatprep.subr.bf16.mxu1 %v12012_v59  ;;  %12815 = vmatpush1.bf16.msra.mxu0 %v12768_v23  ;;  %v12037_v59 = vld [vmem:[#allocation9 + $0x4d0] sm:$0xff]  ;;  %v12059_v23 = vld [vmem:[#allocation9 + $0x580] sm:$0xff] }
 0xb27   :  { %12816 = vmatprep.subr.bf16.mxu0 %v12771_v58  ;;  %v12064_v58 = vld [vmem:[#allocation9 + $0x5a8] sm:$0xff] }
 0xb28   :  { %12411 = vmatmul.mubr.bf16.vlgmr.msra.gmra.mrb[96].mxu1 %v12233_v25  ;;  %v12040_v25 = vld [vmem:[#allocation9 + $0x4e8] sm:$0xff] }
 0xb29   :  { %12420 = vmatpush1.bf16.msra.mxu1 %v12011_v37  ;;  %12451 = vmatprep.mubr.bf16.mxu1 %v12236_v34  ;;  %v19410_v34 = vrot.slane %v12177_v57, %v19168_v29  ;;  %v12783_v37 = vld [vmem:[#allocation10 + $0x3c0] sm:$0xff]  ;;  %v12880_v57 = vld [vmem:[#allocation10 + $0x38] sm:$0xff] }
 0xb2a   :  { %12421 = vmatprep.subr.bf16.mxu1 %v12014_v50  ;;  %12817 = vmatpush1.bf16.msra.mxu0 %v12770_v15  ;;  %v12782_v50 = vld [vmem:[#allocation10 + $0x3b8] sm:$0xff]  ;;  %v12063_v15 = vld [vmem:[#allocation9 + $0x5a0] sm:$0xff] }
 0xb2b   :  { %12818 = vmatprep.subr.bf16.mxu0 %v12773_v21  ;;  %v12193_v9 = vcombine.high %v19410_v34, %v19410_v34  ;;  %v12068_v21 = vld [vmem:[#allocation9 + $0x5c8] sm:$0xff] }
 0xb2d   :  { %12422 = vmatpush1.bf16.msra.mxu1 %v12013_v30  ;;  %v12785_v30 = vld [vmem:[#allocation10 + $0x408] sm:$0xff] }
 0xb2e   :  { %12423 = vmatprep.subr.bf16.mxu1 %v12016_v28  ;;  %12819 = vmatpush1.bf16.msra.mxu0 %v12772_v62  ;;  %v12041_v28 = vld [vmem:[#allocation9 + $0x4f0] sm:$0xff]  ;;  %v12067_v62 = vld [vmem:[#allocation9 + $0x5c0] sm:$0xff] }
 0xb2f   :  { %12820 = vmatprep.subr.bf16.mxu0 %v12775_v10  ;;  %v19416_v10 = vld [vmem:[#allocation8 + $0x18] sm:$0xff] }
 0xb31   :  { %12424 = vmatpush1.bf16.msra.mxu1 %v12015_v2  ;;  %v12235_v2 = vpack.c.bf16 %v19401_v55, %v19401_v55  ;;  %v12049_v55 = vld [vmem:[#allocation9 + $0x530] sm:$0xff] }
 0xb32   :  { %12425 = vmatprep.subr.bf16.mxu1 %v12018_v0  ;;  %12821 = vmatpush1.bf16.msra.mxu0 %v12774_v43  ;;  %v12238_v0 = vpack.c.bf16 %v12193_v9, %v12193_v9  ;;  %v12072_v43 = vld [vmem:[#allocation9 + $0x5e8] sm:$0xff] }
 0xb33   :  { %12822 = vmatprep.subr.bf16.mxu0 %v12777_v1  ;;  %v12074_v1 = vld [vmem:[#allocation9 + $0x5f8] sm:$0xff]  ;;  %v12088_v9 = vld [vmem:[#allocation9 + $0x668] sm:$0xff] }
 0xb35   :  { %12426 = vmatpush1.bf16.msra.mxu1 %v12017_v41  ;;  %v12786_v41 = vld [vmem:[#allocation10 + $0x448] sm:$0xff] }
 0xb36   :  { %12427 = vmatprep.subr.bf16.mxu1 %v12020_v6  ;;  %12823 = vmatpush1.bf16.msra.mxu0 %v12776_v38  ;;  %v12046_v6 = vld [vmem:[#allocation9 + $0x518] sm:$0xff] }
 0xb37   :  { %12824 = vmatprep.subr.bf16.mxu0 %v12779_v46  ;;  %v12237_v46 = vpack.c.bf16 %v19410_v34, %v19410_v34  ;;  %v12081_v34 = vld [vmem:[#allocation9 + $0x630] sm:$0xff] }
 0xb39   :  { %12428 = vmatpush1.bf16.msra.mxu1 %v12019_v19  ;;  %v12047_v19 = vld [vmem:[#allocation9 + $0x520] sm:$0xff] }
 0xb3a   :  { %12429 = vmatprep.subr.bf16.mxu1 %v12022_v18  ;;  %12825 = vmatpush1.bf16.msra.mxu0 %v12778_v5  ;;  %v12050_v18 = vld [vmem:[#allocation9 + $0x538] sm:$0xff] }
 0xb3b   :  { %12826 = vmatprep.subr.bf16.mxu0 %v12781_v56  ;;  %v12077_v56 = vld [vmem:[#allocation9 + $0x610] sm:$0xff] }
 0xb3d   :  { %12430 = vmatpush1.bf16.msra.mxu1 %v12021_v61  ;;  %v12054_v61 = vld [vmem:[#allocation9 + $0x558] sm:$0xff] }
 0xb3e   :  { %12431 = vmatprep.subr.bf16.mxu1 %v12024_v26  ;;  %12827 = vmatpush1.bf16.msra.mxu0 %v12780_v13  ;;  %v12053_v26 = vld [vmem:[#allocation9 + $0x550] sm:$0xff]  ;;  %v12080_v13 = vld [vmem:[#allocation9 + $0x628] sm:$0xff] }
 0xb3f   :  { %12828 = vmatprep.subr.bf16.mxu0 %v12783_v37  ;;  %v12084_v37 = vld [vmem:[#allocation9 + $0x648] sm:$0xff] }
 0xb41   :  { %12432 = vmatpush1.bf16.msra.mxu1 %v12023_v35  ;;  %v12058_v35 = vld [vmem:[#allocation9 + $0x578] sm:$0xff] }
 0xb42   :  { %12433 = vmatprep.subr.bf16.mxu1 %v12026_v44  ;;  %12829 = vmatpush1.bf16.msra.mxu0 %v12782_v50  ;;  %v12057_v44 = vld [vmem:[#allocation9 + $0x570] sm:$0xff]  ;;  %v12083_v50 = vld [vmem:[#allocation9 + $0x640] sm:$0xff] }
 0xb43   :  { %12830 = vmatprep.subr.bf16.mxu0 %v12785_v30  ;;  %v12087_v30 = vld [vmem:[#allocation9 + $0x660] sm:$0xff] }
 0xb45   :  { %12434 = vmatpush1.bf16.msra.mxu1 %v12025_v31  ;;  %v12062_v31 = vld [vmem:[#allocation9 + $0x598] sm:$0xff] }
 0xb46   :  { %12435 = vmatprep.subr.bf16.mxu1 %v12028_v54  ;;  %12831 = vmatpush1.bf16.msra.mxu0 %v12784_v39  ;;  %v12061_v54 = vld [vmem:[#allocation9 + $0x590] sm:$0xff] }
 0xb47   :  { %12832 = vmatprep.subr.bf16.mxu0 %v12787_v8  ;;  %v12089_v39 = vld [vmem:[#allocation9 + $0x670] sm:$0xff] }
 0xb48   :  { %v12093_v8 = vld [vmem:[#allocation9 + $0x690] sm:$0xff] }
 0xb49   :  { %12436 = vmatpush1.bf16.msra.mxu1 %v12027_v52  ;;  %v12066_v52 = vld [vmem:[#allocation9 + $0x5b8] sm:$0xff] }
 0xb4a   :  { %12437 = vmatprep.subr.bf16.mxu1 %v12030_v16  ;;  %12833 = vmatpush1.bf16.msra.mxu0 %v12786_v41  ;;  %v12065_v16 = vld [vmem:[#allocation9 + $0x5b0] sm:$0xff]  ;;  %v12095_v41 = vld [vmem:[#allocation9 + $0x6a0] sm:$0xff] }
 0xb4b   :  { %12913 = vmatprep.subr.bf16.mxu0 %v12880_v57  ;;  %v12883_v57 = vld [vmem:[#allocation10 + $0xc0] sm:$0xff] }
 0xb4d   :  { %12438 = vmatpush1.bf16.msra.mxu1 %v12029_v17  ;;  %v12070_v17 = vld [vmem:[#allocation9 + $0x5d8] sm:$0xff] }
 0xb4e   :  { %12439 = vmatprep.subr.bf16.mxu1 %v12032_v49  ;;  %v12069_v49 = vld [vmem:[#allocation9 + $0x5d0] sm:$0xff] }
 0xb51   :  { %12440 = vmatpush1.bf16.msra.mxu1 %v12031_v47  ;;  %v19420_v47 = vrot.slane %v19416_v10, %v19168_v29 }
 0xb52   :  { %12441 = vmatprep.subr.bf16.mxu1 %v12034_v11  ;;  %v12071_v11 = vld [vmem:[#allocation9 + $0x5e0] sm:$0xff] }
 0xb53   :  { %v12209_v38 = vcombine.high %v19420_v47, %v19420_v47 }
 0xb55   :  { %12442 = vmatpush1.bf16.msra.mxu1 %v12033_v24  ;;  %v12073_v24 = vld [vmem:[#allocation9 + $0x5f0] sm:$0xff]  ;;  %v12240_v5 = vpack.c.bf16 %v12209_v38, %v12209_v38 }
 0xb56   :  { %12443 = vmatprep.subr.bf16.mxu1 %v12036_v7  ;;  %v12076_v7 = vld [vmem:[#allocation9 + $0x608] sm:$0xff]  ;;  %v12879_v38 = vld [vmem:[#allocation10 + $0x30] sm:$0xff] }
 0xb59   :  { %12444 = vmatpush1.bf16.msra.mxu1 %v12035_v4  ;;  %v12075_v4 = vld [vmem:[#allocation9 + $0x600] sm:$0xff] }
 0xb5a   :  { %12445 = vmatprep.subr.bf16.mxu1 %v12038_v51  ;;  %v12078_v51 = vld [vmem:[#allocation9 + $0x618] sm:$0xff] }
 0xb5d   :  { %12446 = vmatpush1.bf16.msra.mxu1 %v12037_v59  ;;  %v12079_v59 = vld [vmem:[#allocation9 + $0x620] sm:$0xff] }
 0xb5e   :  { %12447 = vmatprep.subr.bf16.mxu1 %v12040_v25  ;;  %v12082_v25 = vld [vmem:[#allocation9 + $0x638] sm:$0xff] }
 0xb61   :  { %12448 = vmatpush1.bf16.msra.mxu1 %v12039_v32  ;;  %v12086_v32 = vld [vmem:[#allocation9 + $0x658] sm:$0xff] }
 0xb62   :  { %12449 = vmatprep.subr.bf16.mxu1 %v12042_v12  ;;  %v12085_v12 = vld [vmem:[#allocation9 + $0x650] sm:$0xff] }
 0xb65   :  { %12450 = vmatpush1.bf16.msra.mxu1 %v12041_v28  ;;  %v12090_v28 = vld [vmem:[#allocation9 + $0x678] sm:$0xff] }
 0xb66   :  { %12460 = vmatprep.subr.bf16.mxu1 %v12044_v60  ;;  %v12092_v60 = vld [vmem:[#allocation9 + $0x688] sm:$0xff] }
 0xb68   :  { %12452 = vmatmul.mubr.bf16.vlgmr.msra.gmra.mrb[96].mxu1 %v12235_v2  ;;  %v12091_v2 = vld [vmem:[#allocation9 + $0x680] sm:$0xff] }
 0xb69   :  { %12461 = vmatpush1.bf16.msra.mxu1 %v12043_v45  ;;  %12492 = vmatprep.mubr.bf16.mxu1 %v12238_v0  ;;  %v12094_v0 = vld [vmem:[#allocation9 + $0x698] sm:$0xff]  ;;  %v12096_v45 = vld [vmem:[#allocation9 + $0x6a8] sm:$0xff] }
 0xb6a   :  { %12462 = vmatprep.subr.bf16.mxu1 %v12046_v6  ;;  %v12098_v6 = vld [vmem:[#allocation9 + $0x6b8] sm:$0xff] }
 0xb6d   :  { %12463 = vmatpush1.bf16.msra.mxu1 %v12045_v53  ;;  %v12097_v53 = vld [vmem:[#allocation9 + $0x6b0] sm:$0xff] }
 0xb6e   :  { %12464 = vmatprep.subr.bf16.mxu1 %v12048_v22  ;;  %v12100_v22 = vld [vmem:[#allocation9 + $0x6c8] sm:$0xff] }
 0xb71   :  { %12465 = vmatpush1.bf16.msra.mxu1 %v12047_v19  ;;  %v12099_v19 = vld [vmem:[#allocation9 + $0x6c0] sm:$0xff] }
 0xb72   :  { %12466 = vmatprep.subr.bf16.mxu1 %v12050_v18  ;;  %v12102_v18 = vld [vmem:[#allocation9 + $0x6d8] sm:$0xff] }
 0xb75   :  { %12467 = vmatpush1.bf16.msra.mxu1 %v12049_v55  ;;  %v12101_v55 = vld [vmem:[#allocation9 + $0x6d0] sm:$0xff] }
 0xb76   :  { %12468 = vmatprep.subr.bf16.mxu1 %v12052_v27  ;;  %v12104_v27 = vld [vmem:[#allocation9 + $0x6e8] sm:$0xff] }
 0xb79   :  { %12469 = vmatpush1.bf16.msra.mxu1 %v12051_v48  ;;  %v12701_v48 = vld [vmem:[%s19531_s13] sm:$0x3] }
 0xb7a   :  { %12470 = vmatprep.subr.bf16.mxu1 %v12054_v61  ;;  %v12194_v61 = vcombine.high %v19416_v10, %v19416_v10  ;;  %v12107_v10 = vld [vmem:[#allocation9 + $0x700] sm:$0xff] }
 0xb7d   :  { %12471 = vmatpush1.bf16.msra.mxu1 %v12053_v26  ;;  %v12103_v26 = vld [vmem:[#allocation9 + $0x6e0] sm:$0xff] }
 0xb7e   :  { %12472 = vmatprep.subr.bf16.mxu1 %v12056_v14  ;;  %v12706_v14 = vrot.slane %v12701_v48, %v19379_v33 }
 0xb81   :  { %12473 = vmatpush1.bf16.msra.mxu1 %v12055_v20  ;;  %v12710_v20 = vrot.slane %v12701_v48, %v19385_v40  ;;  %v12128_v48 = vld [vmem:[#allocation9 + $0x7a8] sm:$0xff] }
 0xb82   :  { %12474 = vmatprep.subr.bf16.mxu1 %v12058_v35  ;;  %v12106_v35 = vld [vmem:[#allocation9 + $0x6f8] sm:$0xff] }
 0xb85   :  { %12475 = vmatpush1.bf16.msra.mxu1 %v12057_v44  ;;  %v19434_v44 = vrot.slane %v12194_v61, %v19168_v29  ;;  %v12897_v61 = vld [vmem:[#allocation10 + $0x2b8] sm:$0xff] }
 0xb86   :  { %12476 = vmatprep.subr.bf16.mxu1 %v12060_v36 }
 0xb89   :  { %12477 = vmatpush1.bf16.msra.mxu1 %v12059_v23 }
 0xb8a   :  { %12478 = vmatprep.subr.bf16.mxu1 %v12062_v31 }
 0xb8d   :  { %12479 = vmatpush1.bf16.msra.mxu1 %v12061_v54  ;;  %v12105_v54 = vld [vmem:[#allocation9 + $0x6f0] sm:$0xff] }
 0xb8e   :  { %12480 = vmatprep.subr.bf16.mxu1 %v12064_v58 }
 0xb91   :  { %12481 = vmatpush1.bf16.msra.mxu1 %v12063_v15  ;;  %v12108_v15 = vld [vmem:[#allocation9 + $0x708] sm:$0xff] }
 0xb92   :  { %12482 = vmatprep.subr.bf16.mxu1 %v12066_v52 }
 0xb95   :  { %12483 = vmatpush1.bf16.msra.mxu1 %v12065_v16  ;;  %v12210_v16 = vcombine.high %v19434_v44, %v19434_v44 }
 0xb96   :  { %12484 = vmatprep.subr.bf16.mxu1 %v12068_v21 }
 0xb99   :  { %12485 = vmatpush1.bf16.msra.mxu1 %v12067_v62  ;;  %v12239_v62 = vpack.c.bf16 %v19420_v47, %v19420_v47  ;;  %v12881_v47 = vld [vmem:[#allocation10 + $0x78] sm:$0xff] }
 0xb9a   :  { %12486 = vmatprep.subr.bf16.mxu1 %v12070_v17 }
 0xb9d   :  { %12487 = vmatpush1.bf16.msra.mxu1 %v12069_v49 }
 0xb9e   :  { %12488 = vmatprep.subr.bf16.mxu1 %v12072_v43 }
 0xba1   :  { %12489 = vmatpush1.bf16.msra.mxu1 %v12071_v11  ;;  %v12110_v11 = vld [vmem:[#allocation9 + $0x718] sm:$0xff] }
 0xba2   :  { %12490 = vmatprep.subr.bf16.mxu1 %v12074_v1  ;;  %v12242_v1 = vpack.c.bf16 %v12210_v16, %v12210_v16  ;;  %v12903_v16 = vld [vmem:[#allocation10 + $0x390] sm:$0xff] }
 0xba5   :  { %12491 = vmatpush1.bf16.msra.mxu1 %v12073_v24  ;;  %v12882_v24 = vld [vmem:[#allocation10 + $0x80] sm:$0xff] }
 0xba6   :  { %12501 = vmatprep.subr.bf16.mxu1 %v12076_v7  ;;  %v12109_v7 = vld [vmem:[#allocation9 + $0x710] sm:$0xff] }
 0xba8   :  { %12493 = vmatmul.mubr.bf16.vlgmr.msra.gmra.mrb[96].mxu1 %v12237_v46  ;;  %v12112_v46 = vld [vmem:[#allocation9 + $0x728] sm:$0xff] }
 0xba9   :  { %12502 = vmatpush1.bf16.msra.mxu1 %v12075_v4  ;;  %12533 = vmatprep.mubr.bf16.mxu1 %v12240_v5  ;;  %v12884_v5 = vld [vmem:[#allocation10 + $0xc8] sm:$0xff]  ;;  %v12111_v4 = vld [vmem:[#allocation9 + $0x720] sm:$0xff] }
 0xbaa   :  { %12503 = vmatprep.subr.bf16.mxu1 %v12078_v51  ;;  %v12114_v51 = vld [vmem:[#allocation9 + $0x738] sm:$0xff] }
 0xbad   :  { %12504 = vmatpush1.bf16.msra.mxu1 %v12077_v56  ;;  %v12886_v56 = vld [vmem:[#allocation10 + $0x110] sm:$0xff] }
 0xbae   :  { %12505 = vmatprep.subr.bf16.mxu1 %v12080_v13  ;;  %v12113_v13 = vld [vmem:[#allocation9 + $0x730] sm:$0xff] }
 0xbb1   :  { %12506 = vmatpush1.bf16.msra.mxu1 %v12079_v59  ;;  %v12116_v59 = vld [vmem:[#allocation9 + $0x748] sm:$0xff] }
 0xbb2   :  { %12507 = vmatprep.subr.bf16.mxu1 %v12082_v25  ;;  %v12885_v25 = vld [vmem:[#allocation10 + $0x108] sm:$0xff] }
 0xbb5   :  { %12508 = vmatpush1.bf16.msra.mxu1 %v12081_v34  ;;  %v12888_v34 = vld [vmem:[#allocation10 + $0x158] sm:$0xff] }
 0xbb6   :  { %12509 = vmatprep.subr.bf16.mxu1 %v12084_v37  ;;  %v12115_v37 = vld [vmem:[#allocation9 + $0x740] sm:$0xff] }
 0xbb9   :  { %12510 = vmatpush1.bf16.msra.mxu1 %v12083_v50  ;;  %v12118_v50 = vld [vmem:[#allocation9 + $0x758] sm:$0xff] }
 0xbba   :  { %12511 = vmatprep.subr.bf16.mxu1 %v12086_v32  ;;  %v12887_v32 = vld [vmem:[#allocation10 + $0x150] sm:$0xff] }
 0xbbd   :  { %12512 = vmatpush1.bf16.msra.mxu1 %v12085_v12  ;;  %v12890_v12 = vld [vmem:[#allocation10 + $0x1a0] sm:$0xff] }
 0xbbe   :  { %12513 = vmatprep.subr.bf16.mxu1 %v12088_v9  ;;  %v12117_v9 = vld [vmem:[#allocation9 + $0x750] sm:$0xff] }
 0xbc1   :  { %12514 = vmatpush1.bf16.msra.mxu1 %v12087_v30  ;;  %v12120_v30 = vld [vmem:[#allocation9 + $0x768] sm:$0xff] }
 0xbc2   :  { %12515 = vmatprep.subr.bf16.mxu1 %v12090_v28  ;;  %v12889_v28 = vld [vmem:[#allocation10 + $0x198] sm:$0xff] }
 0xbc5   :  { %12516 = vmatpush1.bf16.msra.mxu1 %v12089_v39  ;;  %v12892_v39 = vld [vmem:[#allocation10 + $0x1e8] sm:$0xff] }
 0xbc6   :  { %12517 = vmatprep.subr.bf16.mxu1 %v12092_v60  ;;  %v12119_v60 = vld [vmem:[#allocation9 + $0x760] sm:$0xff] }
 0xbc9   :  { %12518 = vmatpush1.bf16.msra.mxu1 %v12091_v2  ;;  %v12122_v2 = vld [vmem:[#allocation9 + $0x778] sm:$0xff] }
 0xbca   :  { %12519 = vmatprep.subr.bf16.mxu1 %v12094_v0  ;;  %v12891_v0 = vld [vmem:[#allocation10 + $0x1e0] sm:$0xff] }
 0xbcd   :  { %12520 = vmatpush1.bf16.msra.mxu1 %v12093_v8  ;;  %v12894_v8 = vld [vmem:[#allocation10 + $0x230] sm:$0xff] }
 0xbce   :  { %12521 = vmatprep.subr.bf16.mxu1 %v12096_v45  ;;  %v12121_v45 = vld [vmem:[#allocation9 + $0x770] sm:$0xff] }
 0xbd1   :  { %12522 = vmatpush1.bf16.msra.mxu1 %v12095_v41  ;;  %v12124_v41 = vld [vmem:[#allocation9 + $0x788] sm:$0xff] }
 0xbd2   :  { %12523 = vmatprep.subr.bf16.mxu1 %v12098_v6  ;;  %v12893_v6 = vld [vmem:[#allocation10 + $0x228] sm:$0xff] }
 0xbd5   :  { %12524 = vmatpush1.bf16.msra.mxu1 %v12097_v53  ;;  %v12896_v53 = vld [vmem:[#allocation10 + $0x278] sm:$0xff] }
 0xbd6   :  { %12525 = vmatprep.subr.bf16.mxu1 %v12100_v22  ;;  %v12123_v22 = vld [vmem:[#allocation9 + $0x780] sm:$0xff] }
 0xbd9   :  { %12526 = vmatpush1.bf16.msra.mxu1 %v12099_v19  ;;  %v12126_v19 = vld [vmem:[#allocation9 + $0x798] sm:$0xff] }
 0xbda   :  { %12527 = vmatprep.subr.bf16.mxu1 %v12102_v18  ;;  %v12895_v18 = vld [vmem:[#allocation10 + $0x270] sm:$0xff] }
 0xbdd   :  { %12528 = vmatpush1.bf16.msra.mxu1 %v12101_v55  ;;  %v12898_v55 = vld [vmem:[#allocation10 + $0x2c0] sm:$0xff] }
 0xbde   :  { %12529 = vmatprep.subr.bf16.mxu1 %v12104_v27  ;;  %v12125_v27 = vld [vmem:[#allocation9 + $0x790] sm:$0xff] }
 0xbe0   :  { %v12747_v36 = vpop.f32.mrb[132].mxu0 }
 0xbe1   :  { %12530 = vmatpush1.bf16.msra.mxu1 %v12103_v26  ;;  %v12748_v23 = vadd.f32 %v12747_v36, %v12706_v14  ;;  %v12749_v31 = vpop.f32.mrb[133].mxu0  ;;  %v12900_v26 = vld [vmem:[#allocation10 + $0x308] sm:$0xff]  ;;  %v12127_v14 = vld [vmem:[#allocation9 + $0x7a0] sm:$0xff]  ;;  %v12902_v36 = vld [vmem:[#allocation10 + $0x350] sm:$0xff] }
 0xbe2   :  { %12531 = vmatprep.subr.bf16.mxu1 %v12106_v35  ;;  %v12750_v58 = vadd.f32 %v12749_v31, %v12710_v20  ;;  %v12751_v52 = vpop.f32.mrb[134].mxu0  ;;  %v12130_v20 = vld [vmem:[#allocation9 + $0x7b8] sm:$0xff]  ;;  %v12899_v35 = vld [vmem:[#allocation10 + $0x300] sm:$0xff]  ;;  %v12132_v31 = vld [vmem:[#allocation9 + $0x7c8] sm:$0xff] }
 0xbe3   :  { %v12754_v21 = vmax.f32 %v12748_v23, 0.0  ;;  %v12752_v17 = vpop.f32.mrb[135].mxu0  ;;  %v12129_v23 = vld [vmem:[#allocation9 + $0x7b0] sm:$0xff]  ;;  %v12134_v52 = vld [vmem:[#allocation9 + $0x7d8] sm:$0xff] }
 0xbe4   :  { %v12755_v49 = vmax.f32 %v12750_v58, 0.0  ;;  %v12904_v58 = vld [vmem:[#allocation10 + $0x398] sm:$0xff]  ;;  %v12136_v17 = vld [vmem:[#allocation9 + $0x7e8] sm:$0xff] }
 0xbe5   :  { %12532 = vmatpush1.bf16.msra.mxu1 %v12105_v54  ;;  %v12788_v29 = vpack.c.bf16 %v12754_v21, %v12754_v21  ;;  %v12901_v54 = vld [vmem:[#allocation10 + $0x348] sm:$0xff]  ;;  %v12906_v21 = vld [vmem:[#allocation10 + $0x3e0] sm:$0xff] }
 0xbe6   :  { %12542 = vmatprep.subr.bf16.mxu1 %v12108_v15  ;;  %v12789_v43 = vpack.c.bf16 %v12755_v49, %v12755_v49  ;;  %v12131_v15 = vld [vmem:[#allocation9 + $0x7c0] sm:$0xff]  ;;  %v12905_v49 = vld [vmem:[#allocation10 + $0x3d8] sm:$0xff] }
 0xbe8   :  { %12534 = vmatmul.mubr.bf16.vlgmr.msra.gmra.mrb[96].mxu1 %v12239_v62  ;;  %12834 = vmatprep.mubr.bf16.mxu0 %v12789_v43  ;;  %v12133_v62 = vld [vmem:[#allocation9 + $0x7d0] sm:$0xff] }
 0xbe9   :  { %12543 = vmatpush1.bf16.msra.mxu1 %v12107_v10  ;;  %12835 = vmatmul.mubr.bf16.vlgmr.msra.gmra.mrb[136].mxu0 %v12788_v29  ;;  %v12135_v29 = vld [vmem:[#allocation9 + $0x7e0] sm:$0xff]  ;;  %v12138_v10 = vld [vmem:[#allocation9 + $0x7f8] sm:$0xff]  ;;  %v12137_v43 = vld [vmem:[#allocation9 + $0x7f0] sm:$0xff] }
 0xbea   :  { %12544 = vmatprep.subr.bf16.mxu1 %v12110_v11  ;;  %12574 = vmatprep.mubr.bf16.mxu1 %v12242_v1  ;;  %v12241_v11 = vpack.c.bf16 %v19434_v44, %v19434_v44  ;;  %v12908_v1 = vld [vmem:[#allocation10 + $0x428] sm:$0xff]  ;;  %v12849_v44 = vld [vmem:[#allocation10 + $0xb0] sm:$0xff] }
 0xbeb   :  { %12914 = vmatpush1.bf16.msra.mxu0 %v12879_v38  ;;  %v12907_v38 = vld [vmem:[#allocation10 + $0x420] sm:$0xff] }
 0xbec   :  { %12915 = vmatprep.subr.bf16.mxu0 %v12882_v24  ;;  %v12910_v24 = vld [vmem:[#allocation10 + $0x470] sm:$0xff] }
 0xbed   :  { %12545 = vmatpush1.bf16.msra.mxu1 %v12109_v7  ;;  %v12846_v7 = vld [vmem:[#allocation10 + $0x28] sm:$0xff] }
 0xbee   :  { %12546 = vmatprep.subr.bf16.mxu1 %v12112_v46  ;;  %v12909_v46 = vld [vmem:[#allocation10 + $0x468] sm:$0xff] }
 0xbef   :  { %12916 = vmatpush1.bf16.msra.mxu0 %v12881_v47  ;;  %v12845_v47 = vld [vmem:[#allocation10 + $0x20] sm:$0xff] }
 0xbf0   :  { %12917 = vmatprep.subr.bf16.mxu0 %v12884_v5  ;;  %v12848_v5 = vld [vmem:[#allocation10 + $0x70] sm:$0xff] }
 0xbf1   :  { %12547 = vmatpush1.bf16.msra.mxu1 %v12111_v4  ;;  %v12847_v4 = vld [vmem:[#allocation10 + $0x68] sm:$0xff] }
 0xbf2   :  { %12548 = vmatprep.subr.bf16.mxu1 %v12114_v51  ;;  %v12850_v51 = vld [vmem:[#allocation10 + $0xb8] sm:$0xff] }
 0xbf3   :  { %12918 = vmatpush1.bf16.msra.mxu0 %v12883_v57  ;;  %v12852_v57 = vld [vmem:[#allocation10 + $0x100] sm:$0xff] }
 0xbf4   :  { %12919 = vmatprep.subr.bf16.mxu0 %v12886_v56  ;;  %v12851_v56 = vld [vmem:[#allocation10 + $0xf8] sm:$0xff] }
 0xbf5   :  { %12549 = vmatpush1.bf16.msra.mxu1 %v12113_v13  ;;  %v12854_v13 = vld [vmem:[#allocation10 + $0x148] sm:$0xff] }
 0xbf6   :  { %12550 = vmatprep.subr.bf16.mxu1 %v12116_v59  ;;  %v12853_v59 = vld [vmem:[#allocation10 + $0x140] sm:$0xff] }
 0xbf7   :  { %12920 = vmatpush1.bf16.msra.mxu0 %v12885_v25  ;;  %v12856_v25 = vld [vmem:[#allocation10 + $0x190] sm:$0xff] }
 0xbf8   :  { %12921 = vmatprep.subr.bf16.mxu0 %v12888_v34  ;;  %v12855_v34 = vld [vmem:[#allocation10 + $0x188] sm:$0xff] }
 0xbf9   :  { %12551 = vmatpush1.bf16.msra.mxu1 %v12115_v37  ;;  %v12858_v37 = vld [vmem:[#allocation10 + $0x1d8] sm:$0xff] }
 0xbfa   :  { %12552 = vmatprep.subr.bf16.mxu1 %v12118_v50  ;;  %v12857_v50 = vld [vmem:[#allocation10 + $0x1d0] sm:$0xff] }
 0xbfb   :  { %12922 = vmatpush1.bf16.msra.mxu0 %v12887_v32  ;;  %v12860_v32 = vld [vmem:[#allocation10 + $0x220] sm:$0xff] }
 0xbfc   :  { %12923 = vmatprep.subr.bf16.mxu0 %v12890_v12  ;;  %v12859_v12 = vld [vmem:[#allocation10 + $0x218] sm:$0xff] }
 0xbfd   :  { %12553 = vmatpush1.bf16.msra.mxu1 %v12117_v9  ;;  %v12862_v9 = vld [vmem:[#allocation10 + $0x268] sm:$0xff] }
 0xbfe   :  { %12554 = vmatprep.subr.bf16.mxu1 %v12120_v30  ;;  %v12861_v30 = vld [vmem:[#allocation10 + $0x260] sm:$0xff] }
 0xbff   :  { %12924 = vmatpush1.bf16.msra.mxu0 %v12889_v28  ;;  %v12864_v28 = vld [vmem:[#allocation10 + $0x2b0] sm:$0xff] }
 0xc00   :  { %12925 = vmatprep.subr.bf16.mxu0 %v12892_v39  ;;  %v12863_v39 = vld [vmem:[#allocation10 + $0x2a8] sm:$0xff] }
 0xc01   :  { %12555 = vmatpush1.bf16.msra.mxu1 %v12119_v60  ;;  %v12866_v60 = vld [vmem:[#allocation10 + $0x2f8] sm:$0xff] }
 0xc02   :  { %12556 = vmatprep.subr.bf16.mxu1 %v12122_v2  ;;  %v12865_v2 = vld [vmem:[#allocation10 + $0x2f0] sm:$0xff] }
 0xc03   :  { %12926 = vmatpush1.bf16.msra.mxu0 %v12891_v0  ;;  %v12868_v0 = vld [vmem:[#allocation10 + $0x340] sm:$0xff] }
 0xc04   :  { %12927 = vmatprep.subr.bf16.mxu0 %v12894_v8  ;;  %v12867_v8 = vld [vmem:[#allocation10 + $0x338] sm:$0xff] }
 0xc05   :  { %12557 = vmatpush1.bf16.msra.mxu1 %v12121_v45  ;;  %v12870_v45 = vld [vmem:[#allocation10 + $0x388] sm:$0xff] }
 0xc06   :  { %12558 = vmatprep.subr.bf16.mxu1 %v12124_v41  ;;  %v12869_v41 = vld [vmem:[#allocation10 + $0x380] sm:$0xff] }
 0xc07   :  { %12928 = vmatpush1.bf16.msra.mxu0 %v12893_v6  ;;  %v12872_v6 = vld [vmem:[#allocation10 + $0x3d0] sm:$0xff] }
 0xc08   :  { %12929 = vmatprep.subr.bf16.mxu0 %v12896_v53  ;;  %v12871_v53 = vld [vmem:[#allocation10 + $0x3c8] sm:$0xff] }
 0xc09   :  { %12559 = vmatpush1.bf16.msra.mxu1 %v12123_v22  ;;  %v12874_v22 = vld [vmem:[#allocation10 + $0x418] sm:$0xff] }
 0xc0a   :  { %12560 = vmatprep.subr.bf16.mxu1 %v12126_v19  ;;  %v12873_v19 = vld [vmem:[#allocation10 + $0x410] sm:$0xff] }
 0xc0b   :  { %12930 = vmatpush1.bf16.msra.mxu0 %v12895_v18  ;;  %v12876_v18 = vld [vmem:[#allocation10 + $0x460] sm:$0xff] }
 0xc0c   :  { %12931 = vmatprep.subr.bf16.mxu0 %v12898_v55  ;;  %v12875_v55 = vld [vmem:[#allocation10 + $0x458] sm:$0xff] }
 0xc0d   :  { %12561 = vmatpush1.bf16.msra.mxu1 %v12125_v27  ;;  %v12790_v27 = vld [vmem:[%s19532_s14] sm:$0x3] }
 0xc0e   :  { %12562 = vmatprep.subr.bf16.mxu1 %v12128_v48  ;;  %v12795_v48 = vrot.slane %v12790_v27, %v19379_v33 }
 0xc0f   :  { %12932 = vmatpush1.bf16.msra.mxu0 %v12897_v61  ;;  %v12799_v61 = vrot.slane %v12790_v27, %v19385_v40 }
 0xc10   :  { %12933 = vmatprep.subr.bf16.mxu0 %v12900_v26 }
 0xc11   :  { %12563 = vmatpush1.bf16.msra.mxu1 %v12127_v14 }
 0xc12   :  { %12564 = vmatprep.subr.bf16.mxu1 %v12130_v20 }
 0xc13   :  { %12934 = vmatpush1.bf16.msra.mxu0 %v12899_v35 }
 0xc14   :  { %12935 = vmatprep.subr.bf16.mxu0 %v12902_v36 }
 0xc15   :  { %12565 = vmatpush1.bf16.msra.mxu1 %v12129_v23 }
 0xc16   :  { %12566 = vmatprep.subr.bf16.mxu1 %v12132_v31 }
 0xc17   :  { %12936 = vmatpush1.bf16.msra.mxu0 %v12901_v54 }
 0xc18   :  { %12937 = vmatprep.subr.bf16.mxu0 %v12904_v58 }
 0xc19   :  { %12567 = vmatpush1.bf16.msra.mxu1 %v12131_v15 }
 0xc1a   :  { %12568 = vmatprep.subr.bf16.mxu1 %v12134_v52  ;;  %v12243_v52 = vld [vmem:[%s19527_s9] sm:$0x3] }
 0xc1b   :  { %12938 = vmatpush1.bf16.msra.mxu0 %v12903_v16  ;;  %v12248_v16 = vrot.slane %v12243_v52, %v19379_v33 }
 0xc1c   :  { %12939 = vmatprep.subr.bf16.mxu0 %v12906_v21  ;;  %v12252_v21 = vrot.slane %v12243_v52, %v19385_v40  ;;  %v13588_v52 = vld [vmem:[%s19536_s18] ss:$0 sm:$0xff] }
 0xc1d   :  { %12569 = vmatpush1.bf16.msra.mxu1 %v12133_v62 }
 0xc1e   :  { %12570 = vmatprep.subr.bf16.mxu1 %v12136_v17 }
 0xc1f   :  { %12940 = vmatpush1.bf16.msra.mxu0 %v12905_v49 }
 0xc20   :  { %12941 = vmatprep.subr.bf16.mxu0 %v12908_v1  ;;  %v13011_v1 = vld [vmem:[#allocation10 + $0x40] sm:$0xff] }
 0xc21   :  { %12571 = vmatpush1.bf16.msra.mxu1 %v12135_v29 }
 0xc22   :  { %12572 = vmatprep.subr.bf16.mxu1 %v12138_v10 }
 0xc23   :  { %12942 = vmatpush1.bf16.msra.mxu0 %v12907_v38  ;;  %v13020_v38 = vld [vmem:[#allocation10 + $0x2c8] sm:$0xff] }
 0xc24   :  { %12943 = vmatprep.subr.bf16.mxu0 %v12910_v24  ;;  %v13012_v24 = vld [vmem:[#allocation10 + $0x88] sm:$0xff] }
 0xc25   :  { %12573 = vmatpush1.bf16.msra.mxu1 %v12137_v43 }
 0xc26   :  { %12954 = vmatprep.subr.bf16.mxu1 %v12846_v7  ;;  %v13021_v7 = vld [vmem:[#allocation10 + $0x310] sm:$0xff] }
 0xc27   :  { %12944 = vmatpush1.bf16.msra.mxu0 %v12909_v46  ;;  %v13013_v46 = vld [vmem:[#allocation10 + $0xd0] sm:$0xff] }
 0xc28   :  { %12575 = vmatmul.mubr.bf16.vlgmr.msra.gmra.mrb[96].mxu1 %v12241_v11  ;;  %v13019_v11 = vld [vmem:[#allocation10 + $0x280] sm:$0xff] }
 0xc29   :  { %12955 = vmatpush1.bf16.msra.mxu1 %v12845_v47  ;;  %14185 = vmatprep.subr.bf16.mxu0 %v13019_v11  ;;  %v13022_v47 = vld [vmem:[#allocation10 + $0x358] sm:$0xff]  ;;  %v13201_v11 = vld [vmem:[%s19537_s19] sm:$0xff] }
 0xc2a   :  { %12956 = vmatprep.subr.bf16.mxu1 %v12848_v5  ;;  %v13014_v5 = vld [vmem:[#allocation10 + $0x118] sm:$0xff] }
 0xc2d   :  { %12957 = vmatpush1.bf16.msra.mxu1 %v12847_v4  ;;  %v13023_v4 = vld [vmem:[#allocation10 + $0x3a0] sm:$0xff] }
 0xc2e   :  { %12958 = vmatprep.subr.bf16.mxu1 %v12850_v51  ;;  %v13015_v51 = vld [vmem:[#allocation10 + $0x160] sm:$0xff] }
 0xc31   :  { %12959 = vmatpush1.bf16.msra.mxu1 %v12849_v44  ;;  %v13024_v44 = vld [vmem:[#allocation10 + $0x3e8] sm:$0xff] }
 0xc32   :  { %12960 = vmatprep.subr.bf16.mxu1 %v12852_v57  ;;  %v13016_v57 = vld [vmem:[#allocation10 + $0x1a8] sm:$0xff] }
 0xc35   :  { %12961 = vmatpush1.bf16.msra.mxu1 %v12851_v56  ;;  %v13025_v56 = vld [vmem:[#allocation10 + $0x430] sm:$0xff] }
 0xc36   :  { %12962 = vmatprep.subr.bf16.mxu1 %v12854_v13  ;;  %v13017_v13 = vld [vmem:[#allocation10 + $0x1f0] sm:$0xff] }
 0xc39   :  { %12963 = vmatpush1.bf16.msra.mxu1 %v12853_v59  ;;  %v13026_v59 = vld [vmem:[#allocation10 + $0x478] sm:$0xff] }
 0xc3a   :  { %12964 = vmatprep.subr.bf16.mxu1 %v12856_v25  ;;  %v13018_v25 = vld [vmem:[#allocation10 + $0x238] sm:$0xff] }
 0xc3d   :  { %12965 = vmatpush1.bf16.msra.mxu1 %v12855_v34  ;;  %v15120_v34 = vld [vmem:[%s19535_s17] sm:$0xff]  }
 0xc3e   :  { %12966 = vmatprep.subr.bf16.mxu1 %v12858_v37  ;;  %v15121_v37 = vld [vmem:[%s19535_s17 + $0x8] sm:$0xff]  }
 0xc41   :  { %12967 = vmatpush1.bf16.msra.mxu1 %v12857_v50  ;;  %v15122_v50 = vld [vmem:[%s19535_s17 + $0x10] sm:$0xff]  }
 0xc42   :  { %12968 = vmatprep.subr.bf16.mxu1 %v12860_v32  ;;  %v15123_v32 = vld [vmem:[%s19535_s17 + $0x18] sm:$0xff]  }
 0xc45   :  { %12969 = vmatpush1.bf16.msra.mxu1 %v12859_v12  ;;  %v15124_v12 = vld [vmem:[%s19535_s17 + $0x20] sm:$0xff]  }
 0xc46   :  { %12970 = vmatprep.subr.bf16.mxu1 %v12862_v9  ;;  %v15125_v9 = vld [vmem:[%s19535_s17 + $0x28] sm:$0xff]  }
 0xc49   :  { %12971 = vmatpush1.bf16.msra.mxu1 %v12861_v30 }
 0xc4a   :  { %12972 = vmatprep.subr.bf16.mxu1 %v12864_v28 }
 0xc4d   :  { %12973 = vmatpush1.bf16.msra.mxu1 %v12863_v39 }
 0xc4e   :  { %12974 = vmatprep.subr.bf16.mxu1 %v12866_v60 }
 0xc51   :  { %12975 = vmatpush1.bf16.msra.mxu1 %v12865_v2  ;;  %v12995_v2 = vld [vmem:[%s19533_s15] sm:$0x3] }
 0xc52   :  { %12976 = vmatprep.subr.bf16.mxu1 %v12868_v0  ;;  %v13000_v0 = vrot.slane %v12995_v2, %v19379_v33  ;;  %v15126_v33 = vld [vmem:[%s19535_s17 + $0x30] sm:$0xff]  }
 0xc55   :  { %12977 = vmatpush1.bf16.msra.mxu1 %v12867_v8 }
 0xc56   :  { %12978 = vmatprep.subr.bf16.mxu1 %v12870_v45  ;;  %v13004_v45 = vrot.slane %v12995_v2, %v19385_v40  ;;  %v15127_v40 = vld [vmem:[%s19535_s17 + $0x38] sm:$0xff]  }
 0xc59   :  { %12979 = vmatpush1.bf16.msra.mxu1 %v12869_v41 }
 0xc5a   :  { %12980 = vmatprep.subr.bf16.mxu1 %v12872_v6 }
 0xc5d   :  { %12981 = vmatpush1.bf16.msra.mxu1 %v12871_v53 }
 0xc5e   :  { %12982 = vmatprep.subr.bf16.mxu1 %v12874_v22 }
 0xc61   :  { %12983 = vmatpush1.bf16.msra.mxu1 %v12873_v19 }
 0xc62   :  { %12984 = vmatprep.subr.bf16.mxu1 %v12876_v18 }
 0xc65   :  { %12985 = vmatpush1.bf16.msra.mxu1 %v12875_v55 }
 0xc66   :  { %14363 = vmatprep.subr.bf16.mxu1 %v15197_v3 }
 0xcbc   :  { %v12836_v26 = vpop.f32.mrb[136].mxu0 }
 0xcbd   :  { %v12837_v14 = vadd.f32 %v12836_v26, %v12795_v48  ;;  %v12838_v20 = vpop.f32.mrb[137].mxu0 }
 0xcbe   :  { %v12839_v35 = vadd.f32 %v12838_v20, %v12799_v61  ;;  %v12840_v36 = vpop.f32.mrb[138].mxu0  ;;  %v13587_v20 = vld [vmem:[%s19534_s16] ss:$0 sm:$0xff] }
 0xcbf   :  { %v12843_v23 = vadd.f32 %v12837_v14, %v19389_v42  ;;  %v12841_v31 = vpop.f32.mrb[139].mxu0 }
 0xcc0   :  { %v12844_v54 = vadd.f32 %v12839_v35, %v19391_v63 }
 0xcc1   :  { %v12911_v15 = vpack.c.bf16 %v12843_v23, %v12843_v23 }
 0xcc2   :  { %v12912_v58 = vpack.c.bf16 %v12844_v54, %v12844_v54 }
 0xcc4   :  { %12945 = vmatprep.mubr.bf16.mxu0 %v12912_v58 }
 0xcc5   :  { %12946 = vmatmul.mubr.bf16.vlgmr.msra.gmra.mrb[140].mxu0 %v12911_v15 }
 0xcc6   :  { %14186 = vmatpush3.bf16.msra.mxu0 %v13011_v1  ;;  %v13202_v1 = vld [vmem:[%s19537_s19 + $0x8] sm:$0x3]  ;;  %s15154_s19 = scalar_lea.vmem %s13290_s8, 32 }
 0xcc7   :  { %14187 = vmatprep.subr.bf16.mxu0 %v13020_v38  ;;  %v14391_v38 = vpack.c.bf16 %v13202_v1, %v13201_v11  ;;  %p15155_p8 = scmp.ne.s32.totalorder %s13290_s8, %s15154_s19  ;;  %p15160_p10 = scmp.lt.s32.totalorder %s15154_s19, %s15154_s19 }
 0xcc9   :  { %p15161_p11 = por %p15160_p10, %p15159_p9 }
 0xcca   :  { %14188 = vmatpush3.bf16.msra.mxu0 %v13012_v24  ;;  %v19554_v24 = vmov 0.0|0.0  }
 0xccb   :  { %14189 = vmatprep.subr.bf16.mxu0 %v13021_v7  ;;  %p15162_p12 = pnand %p15161_p11, %p15155_p8 }
 0xcce   :  { %14190 = vmatpush3.bf16.msra.mxu0 %v13013_v46 }
 0xccf   :  { %14191 = vmatprep.subr.bf16.mxu0 %v13022_v47 }
 0xcd2   :  { %14192 = vmatpush3.bf16.msra.mxu0 %v13014_v5 }
 0xcd3   :  { %14193 = vmatprep.subr.bf16.mxu0 %v13023_v4 }
 0xcd6   :  { %14194 = vmatpush3.bf16.msra.mxu0 %v13015_v51 }
 0xcd7   :  { %14195 = vmatprep.subr.bf16.mxu0 %v13024_v44 }
 0xcda   :  { %14196 = vmatpush3.bf16.msra.mxu0 %v13016_v57 }
 0xcdb   :  { %14197 = vmatprep.subr.bf16.mxu0 %v13025_v56 }
 0xcde   :  { %14198 = vmatpush3.bf16.msra.mxu0 %v13017_v13 }
 0xcdf   :  { %14199 = vmatprep.subr.bf16.mxu0 %v13026_v59 }
 0xce2   :  { %14200 = vmatpush3.bf16.msra.mxu0 %v13018_v25 }
 0xce3   :  { %14390 = vmatprep.subr.bf16.mxu0 %v19554_v24 }
 0xcfb   :  { %v12576_v62 = vpop.f32.mrb[96].mxu1 }
 0xcfc   :  { %v14458_v17 = vadd.f32 %v12576_v62, %v12248_v16  ;;  %v12578_v49 = vpop.f32.mrb[97].mxu1 }
 0xcfd   :  { %v14459_v29 = vadd.f32 %v12578_v49, %v12252_v21  ;;  %v12580_v42 = vpop.f32.mrb[98].mxu1 }
 0xcfe   :  { %v12581_v10 = vpop.f32.mrb[99].mxu1  ;;  %v12877_v63 = vpack.c.bf16 %v14458_v17, %v14458_v17 }
 0xcff   :  { %v12878_v43 = vpack.c.bf16 %v14459_v29, %v14459_v29 }
 0xd01   :  { %12986 = vmatprep.mubr.bf16.mxu1 %v12878_v43 }
 0xd02   :  { %12987 = vmatmul.mubr.bf16.vlgmr.msra.gmra.mrb[100].mxu1 %v12877_v63 }
 0xd03   :  { %14364 = vmatpush3.bf16.msra.mxu1 %v15120_v34  ;;  %14379 = vmatprep.mubr.msk.bf16.mxu1 %vm15199_vm7, %v15197_v3 }
 0xd04   :  { %14365 = vmatprep.subr.bf16.mxu1 %v15197_v3 }
 0xd07   :  { %14366 = vmatpush3.bf16.msra.mxu1 %v15121_v37 }
 0xd08   :  { %14367 = vmatprep.subr.bf16.mxu1 %v15197_v3 }
 0xd0b   :  { %14368 = vmatpush3.bf16.msra.mxu1 %v15122_v50 }
 0xd0c   :  { %14369 = vmatprep.subr.bf16.mxu1 %v15197_v3 }
 0xd0f   :  { %14370 = vmatpush3.bf16.msra.mxu1 %v15123_v32 }
 0xd10   :  { %14371 = vmatprep.subr.bf16.mxu1 %v15197_v3 }
 0xd13   :  { %14372 = vmatpush3.bf16.msra.mxu1 %v15124_v12 }
 0xd14   :  { %14373 = vmatprep.subr.bf16.mxu1 %v15197_v3 }
 0xd17   :  { %14374 = vmatpush3.bf16.msra.mxu1 %v15125_v9 }
 0xd18   :  { %14375 = vmatprep.subr.bf16.mxu1 %v15197_v3 }
 0xd1b   :  { %14376 = vmatpush3.bf16.msra.mxu1 %v15126_v33 }
 0xd1c   :  { %14377 = vmatprep.subr.bf16.mxu1 %v15197_v3 }
 0xd1f   :  { %14378 = vmatpush3.bf16.msra.mxu1 %v15127_v40 }
 0xd98   :  { %v12947_v30 = vpop.f32.mrb[140].mxu0 }
 0xd99   :  { %v12949_v28 = vpop.f32.mrb[141].mxu0 }
 0xd9a   :  { %v12951_v39 = vpop.f32.mrb[142].mxu0 }
 0xd9b   :  { %v12952_v60 = vpop.f32.mrb[143].mxu0 }
 0xdd5   :  { %v12988_v8 = vpop.f32.mrb[100].mxu1 }
 0xdd6   :  { %v12989_v41 = vadd.f32 %v12988_v8, %v12947_v30  ;;  %v12990_v6 = vpop.f32.mrb[101].mxu1 }
 0xdd7   :  { %v12991_v53 = vadd.f32 %v12990_v6, %v12949_v28  ;;  %v12992_v22 = vpop.f32.mrb[102].mxu1 }
 0xdd8   :  { %v13007_v19 = vadd.f32 %v13000_v0, %v12989_v41  ;;  %v12993_v18 = vpop.f32.mrb[103].mxu1 }
 0xdd9   :  { %v13008_v55 = vadd.f32 %v13004_v45, %v12991_v53 }
 0xdda   :  { %v13009_v27 = vmax.f32 %v13007_v19, 0.0 }
 0xddb   :  { %v13010_v48 = vmax.f32 %v13008_v55, 0.0 }
 0xddc   :  { %v13027_v26 = vpack.c.bf16 %v13009_v27, %v13009_v27 }
 0xddd   :  { %v13028_v61 = vpack.c.bf16 %v13010_v48, %v13010_v48 }
 0xddf   :  { %13068 = vmatprep.mubr.bf16.mxu0 %v13028_v61 }
 0xde0   :  { %13069 = vmatmul.mubr.bf16.vlgmr.msra.gmra.mrb[144].mxu0 %v13027_v26 }
 0xde1   :  { %14387 = vmatprep.mubr.msk.f32.mxu0 %vm15199_vm7, %v15197_v3  ;;  %14393 = vmatpush3.bf16.msk.msra.mxu0 %vm14392_vm11, %v14391_v38 }
 0xeb3   :  { %v14201_v14 = vpop.f32.mrb[144].mxu0 }
 0xeb4   :  { %v14202_v35 = vpop.f32.mrb[145].mxu0 }
 0xeb5   :  { %v14203_v36 = vadd.f32 %v14202_v35, %v14201_v14  ;;  %v14204_v23 = vpop.f32.mrb[146].mxu0 }
 0xeb6   :  { %v14205_v31 = vpop.f32.mrb[147].mxu0 }
 0xeb7   :  { %v13071_v54 = vadd.f32 %v14203_v36, %v13587_v20 }
 0xeb9   :  { %v13076_v58 = vmax.f32 %v13071_v54, 0.0 }
 0xebb   :  { %v13093_v15 = vpack.c.bf16 %v13076_v58, %v13076_v58 }
 0xebd   :  { %14380 = vmatmul.mubr.bf16.vlgmr.msra.gmra.mrb[104].mxu1 %v13093_v15 }
 0xf90   :  { %v13183_v16 = vpop.f32.mrb[104].mxu1 }
 0xf91   :  { %v13184_v3 = vadd.f32 %v13588_v52, %v13183_v16  ;;  %v14381_v21 = vpop.f32.mrb[105].mxu1 }
 0xf92   :  { %v13186_v62 = vpop.f32.mrb[106].mxu1 }
 0xf93   :  { %v14382_v17 = vpop.f32.mrb[107].mxu1  ;;  %v13190_v49 = vsel %vm13189_vm8, %v13184_v3, -inf }
 0xf94   :  { %13191 = vmax.xlane.f32.xlu0 %v13190_v49 }
0x1021   :  { %v13192_v29 = vpop.xlane.xlu0 %13191 }
0x1022   :  { %v13193_v42 = vsub.f32 %v13184_v3, %v13192_v29 }
0x1024   :  { %v13194_v10 = vmul.f32 1.442695, %v13193_v42 }
0x1026   :  { %15128 = vpow2.f32 %v13194_v10 }
0x1030   :  { %v15129_v43 = vpop.eup %15128 }
0x1031   :  { %v13196_v63 = vsel %vm13189_vm8, %v15129_v43, 0.0 }
0x1032   :  { %13197 = vadd.xlane.f32.xlu0 %v13196_v63 }
0x10bf   :  { %v13198_v7 = vpop.xlane.xlu0 %13197 }
0x10c0   :  { %15130 = vrcp.f32 %v13198_v7 }
0x10ca   :  { %v15131_v46 = vpop.eup %15130 }
0x10cb   :  { %v13200_v47 = vmul.f32 %v15131_v46, %v15129_v43 }
0x10cd   :  { %14388 = vmatmul.mubr.msk.f32.vlgmr.msra.gmra.mrb[148].mxu0 %vm13203_vm12, %v13200_v47 }
0x11a0   :  { %v13277_v5 = vpop.f32.mrb[148].mxu0 }
0x11a1   :  { %v14389_v4 = vpop.f32.mrb[149].mxu0  ;;  %13282 = vst.msk [vmem:[#allocation15] sm:$0x3] %vm13281_vm13, %v13277_v5 }
0x11a2   :  { %15165 = shalt.err (!%p15162_p12)
}
0x11a3   :  { %s15166_s25 = scalar_lea.hbm %s19538_s20, 32 }
0x11a4   :  { %p15167_p13 = scmp.ne.s32.totalorder %s19538_s20, %s15166_s25  ;;  %p15170_p0 = scmp.lt.u32.totalorder %s15166_s25, %s19538_s20 }
0x11a6   :  { %p15172_p1 = pnand %p15170_p0, %p15167_p13 }
0x11a8   :  { %15175 = shalt.err (!%p15172_p1)
}
0x11a9   :  { %13292 = dma.vmem_to_hbm [thread:$0]  %s13290_s8, 32, %s19538_s20, [#allocation14]  }
0x11aa   :  { %15182 = dma.done.wait [#allocation14], 32  }
0x11ab   :  { %15183 = vsyncadd [#allocation14], 4294967264 }
0x11ac   :  { %13296 = vsyncpa [#allocation13], 1 }
0x11ad   :  { %13297 = vsyncpa [#allocation14], 1 }
0x11ae   :  { %13298 = vsyncmov [#allocation11] }
0x11b1   :  { %s13299_s22 = vpop.sfrf %13298 }
0x11b2   :  { %p13599_p2 = scmp.ne.s32.totalorder %s13299_s22, 0 }
0x11b4   :  { %13303 = shalt.err (%p13599_p2)  }
0x11b5   :  { %13305 = vsyncmov [#allocation11 + $0x1] }
0x11b8   :  { %s13306_s30 = vpop.sfrf %13305 }
0x11b9   :  { %p13600_p3 = scmp.ne.s32.totalorder %s13306_s30, 0 }
0x11bb   :  { %13310 = shalt.err (%p13600_p3)  }

</bundles_post_ra>
